<compile_context>
chip_gen: v5e
topology: v5e:2x2
jax: 0.10.0
libtpu: 0.0.40
codegen_flags: <defaults>
</compile_context>

<pallas_src>
import functools

import jax
import jax.numpy as jnp
import numpy as np
from jax.experimental import pallas as pl
from jax.experimental.pallas import tpu as pltpu


def _silu(v):
    # SiLU / swish: v * sigmoid(v).  exp lowers to the EUP slot.
    return v * (1.0 / (1.0 + jnp.exp(-v)))


def ghostconv_kernel(x_ref, w1_ref, s1_ref, b1_ref, wdw_ref, s2_ref, b2_ref,
                     o_ref, ypad_ref, *, H, W, c_):
    """One batch image per grid step.

    x_ref   : (1, H*W, C1)   input image, NHWC flattened over spatial dims
    w1_ref  : (C1, c_)       1x1 conv weight  (= torch cv1.conv.weight[:, :, 0, 0].T)
    s1/b1   : (1, c_)        folded BN1 scale / bias
    wdw_ref : (25, c_)       depthwise 5x5 weight, tap-major: [dy*5+dx, channel]
    s2/b2   : (1, c_)        folded BN2 scale / bias
    o_ref   : (1, H*W, 2*c_) ghost output slab [y | z]
    ypad_ref: (H+4, W+4, c_) VMEM scratch — zero-padded y for the 5x5 stencil
    """
    x = x_ref[0]                                                   # (H*W, C1)

    # ---- cv1: 1x1 conv as one big MXU matmul + folded BN + SiLU -------------
    y = jnp.dot(x, w1_ref[...], preferred_element_type=jnp.float32)
    y = _silu(y * s1_ref[...] + b1_ref[...])                       # (H*W, c_)

    # ---- cv2: depthwise 5x5, pad=2, as 25 shifted MACs (VPU) ----------------
    ypad_ref[...] = jnp.zeros(ypad_ref.shape, ypad_ref.dtype)
    ypad_ref[2:2 + H, 2:2 + W, :] = y.reshape(H, W, c_)

    acc = jnp.zeros((H, W, c_), jnp.float32)
    for t in range(25):                                            # fully unrolled
        dy, dx = t // 5, t % 5
        tap = wdw_ref[t:t + 1, :]                                  # (1, c_) per-channel tap
        acc = acc + ypad_ref[dy:dy + H, dx:dx + W, :] * tap
    z = _silu(acc * s2_ref[...] + b2_ref[...])                     # (H, W, c_)

    # ---- ghost concat: [y, z] along channels, one wide output slab ----------
    o_ref[0, :, 0:c_] = y.astype(o_ref.dtype)
    o_ref[0, :, c_:2 * c_] = z.reshape(H * W, c_).astype(o_ref.dtype)


def _full_spec(a):
    nd = a.ndim
    return pl.BlockSpec(a.shape, lambda b, _nd=nd: (0,) * _nd)


def ghost_conv(x, p):
    """x: (B, C1, H, W) float32 — same NCHW convention as the PyTorch module."""
    B, C1, H, W = x.shape
    c_ = p["w1"].shape[1]

    x_flat = jnp.transpose(x, (0, 2, 3, 1)).reshape(B, H * W, C1)  # NHWC, spatial-flat

    args = (x_flat, p["w1"], p["s1"], p["b1"], p["wdw"], p["s2"], p["b2"])
    in_specs = [pl.BlockSpec((1, H * W, C1), lambda b: (b, 0, 0))]
    in_specs += [_full_spec(a) for a in args[1:]]

    flops = B * H * W * (2 * C1 * c_ + 2 * 25 * c_ + 12 * c_)
    transcendentals = B * H * W * 2 * c_                           # two SiLU exps per channel
    bytes_accessed = 4 * (B * H * W * C1 + B * H * W * 2 * c_
                          + C1 * c_ + 25 * c_ + 4 * c_)

    kern = functools.partial(ghostconv_kernel, H=H, W=W, c_=c_)
    out_flat = pl.pallas_call(
        kern,
        out_shape=jax.ShapeDtypeStruct((B, H * W, 2 * c_), x.dtype),
        grid=(B,),
        in_specs=in_specs,
        out_specs=pl.BlockSpec((1, H * W, 2 * c_), lambda b: (b, 0, 0)),
        scratch_shapes=[pltpu.VMEM((H + 4, W + 4, c_), jnp.float32)],
        compiler_params=pltpu.CompilerParams(dimension_semantics=("parallel",)),
        cost_estimate=pl.CostEstimate(flops=flops,
                                      transcendentals=transcendentals,
                                      bytes_accessed=bytes_accessed),
    )(*args)

    # back to (B, c2, H, W)
    return out_flat.reshape(B, H, W, 2 * c_).transpose(0, 3, 1, 2)


def make_params(key, c1, c2, eps=1e-5):
    """Synthetic deterministic parameters with eval-mode BatchNorm folded."""
    c_ = c2 // 2
    ks = jax.random.split(key, 10)

    def nrm(k, shape, std):
        return (std * jax.random.normal(k, shape)).astype(jnp.float32)

    w1 = nrm(ks[0], (c1, c_), 0.1)        # (in, out) = torch weight[:, :, 0, 0].T
    wdw = nrm(ks[1], (25, c_), 0.1)       # depthwise taps, [dy*5+dx, channel]

    def folded_bn(kg, kb, km, kv):
        gamma = 1.0 + nrm(kg, (1, c_), 0.1)
        beta = nrm(kb, (1, c_), 0.1)
        mean = nrm(km, (1, c_), 0.1)
        var = jnp.abs(nrm(kv, (1, c_), 0.2)) + 1.0
        scale = gamma / jnp.sqrt(var + eps)
        bias = beta - mean * scale
        return scale.astype(jnp.float32), bias.astype(jnp.float32)

    s1, b1 = folded_bn(ks[2], ks[3], ks[4], ks[5])
    s2, b2 = folded_bn(ks[6], ks[7], ks[8], ks[9])
    return dict(w1=w1, wdw=wdw, s1=s1, b1=b1, s2=s2, b2=b2)


def ghostconv_reference(x, p):
    """Pure-JAX/XLA reference (lax conv ops) mirroring the PyTorch forward."""
    c_ = p["w1"].shape[1]
    w1_oihw = jnp.transpose(p["w1"], (1, 0))[:, :, None, None]      # (c_, c1, 1, 1)
    y = jax.lax.conv_general_dilated(x, w1_oihw, (1, 1), "VALID",
                                     dimension_numbers=("NCHW", "OIHW", "NCHW"))
    y = y * p["s1"].reshape(1, c_, 1, 1) + p["b1"].reshape(1, c_, 1, 1)
    y = y * jax.nn.sigmoid(y)
    wdw_oihw = jnp.transpose(p["wdw"], (1, 0)).reshape(c_, 1, 5, 5)  # (c_, 1, 5, 5)
    z = jax.lax.conv_general_dilated(y, wdw_oihw, (1, 1), [(2, 2), (2, 2)],
                                     dimension_numbers=("NCHW", "OIHW", "NCHW"),
                                     feature_group_count=c_)
    z = z * p["s2"].reshape(1, c_, 1, 1) + p["b2"].reshape(1, c_, 1, 1)
    z = z * jax.nn.sigmoid(z)
    return jnp.concatenate([y, z], axis=1)


if __name__ == "__main__":
    key = jax.random.PRNGKey(0)
    k_x, k_p = jax.random.split(key)

    B, C1, H, W = 2, 32, 16, 16
    C2 = 64                                   # c_ = 32, output (2, 64, 16, 16)

    x = jax.random.normal(k_x, (B, C1, H, W), jnp.float32)
    params = make_params(k_p, C1, C2)

    out = ghost_conv(x, params)
    out = jax.block_until_ready(out)

    ref = ghostconv_reference(x, params)
    np.testing.assert_allclose(np.asarray(out), np.asarray(ref), rtol=1e-3, atol=1e-3)
    assert out.shape == (B, C2, H, W) and out.dtype == x.dtype

    print("KERNEL_OK")
</pallas_src>

<mosaic_0001>
module attributes {stable_mosaic.version = 11 : i64} {
  func.func @ghostconv_kernel(%arg0: i32, %arg1: memref<1x256x32xf32, #tpu.memory_space<vmem>>, %arg2: memref<32x32xf32, #tpu.memory_space<vmem>>, %arg3: memref<1x32xf32, #tpu.memory_space<vmem>>, %arg4: memref<1x32xf32, #tpu.memory_space<vmem>>, %arg5: memref<25x32xf32, #tpu.memory_space<vmem>>, %arg6: memref<1x32xf32, #tpu.memory_space<vmem>>, %arg7: memref<1x32xf32, #tpu.memory_space<vmem>>, %arg8: memref<1x256x64xf32, #tpu.memory_space<vmem>>, %arg9: memref<20x20x32xf32, #tpu.memory_space<vmem>>) attributes {dimension_semantics = [#tpu.dimension_semantics<parallel>], iteration_bounds = array<i64: 2>, scalar_prefetch = 0 : i64, scratch_operands = 1 : i64, tpu.core_type = #tpu.core_type<tc>, window_params = [{transform_indices = @transform_0, window_bounds = array<i64: 1, 256, 32>}, {pipeline_mode = #tpu.pipeline_mode<synchronous>, transform_indices = @transform_1, window_bounds = array<i64: 32, 32>}, {pipeline_mode = #tpu.pipeline_mode<synchronous>, transform_indices = @transform_2, window_bounds = array<i64: 1, 32>}, {pipeline_mode = #tpu.pipeline_mode<synchronous>, transform_indices = @transform_3, window_bounds = array<i64: 1, 32>}, {pipeline_mode = #tpu.pipeline_mode<synchronous>, transform_indices = @transform_4, window_bounds = array<i64: 25, 32>}, {pipeline_mode = #tpu.pipeline_mode<synchronous>, transform_indices = @transform_5, window_bounds = array<i64: 1, 32>}, {pipeline_mode = #tpu.pipeline_mode<synchronous>, transform_indices = @transform_6, window_bounds = array<i64: 1, 32>}, {transform_indices = @transform_7, window_bounds = array<i64: 1, 256, 64>}]} {
    %c0 = arith.constant 0 : index
    %c0_0 = arith.constant 0 : index
    %c0_1 = arith.constant 0 : index
    %0 = vector.load %arg1[%c0, %c0_0, %c0_1] : memref<1x256x32xf32, #tpu.memory_space<vmem>>, vector<1x256x32xf32>
    %1 = vector.shape_cast %0 : vector<1x256x32xf32> to vector<256x32xf32>
    %c0_2 = arith.constant 0 : index
    %c0_3 = arith.constant 0 : index
    %2 = vector.load %arg2[%c0_2, %c0_3] : memref<32x32xf32, #tpu.memory_space<vmem>>, vector<32x32xf32>
    %cst = arith.constant dense<0.000000e+00> : vector<256x32xf32>
    %3 = tpu.matmul %1, %2, %cst {dimension_numbers = #tpu.dot_dimension_numbers<[1], [0], [0], [1], [0, 0, 1, 1], [], []>} : vector<256x32xf32>, vector<32x32xf32>, vector<256x32xf32> -> vector<256x32xf32>
    %c0_4 = arith.constant 0 : index
    %c0_5 = arith.constant 0 : index
    %4 = vector.load %arg3[%c0_4, %c0_5] : memref<1x32xf32, #tpu.memory_space<vmem>>, vector<1x32xf32>
    %5 = vector.broadcast %4 : vector<1x32xf32> to vector<256x32xf32>
    %6 = arith.mulf %3, %5 : vector<256x32xf32>
    %c0_6 = arith.constant 0 : index
    %c0_7 = arith.constant 0 : index
    %7 = vector.load %arg4[%c0_6, %c0_7] : memref<1x32xf32, #tpu.memory_space<vmem>>, vector<1x32xf32>
    %8 = vector.broadcast %7 : vector<1x32xf32> to vector<256x32xf32>
    %9 = arith.addf %6, %8 : vector<256x32xf32>
    %cst_8 = arith.constant 0.000000e+00 : f32
    %10 = vector.broadcast %cst_8 : f32 to vector<256x32xf32>
    %11 = arith.subf %10, %9 : vector<256x32xf32>
    %12 = math.exp %11 : vector<256x32xf32>
    %cst_9 = arith.constant 1.000000e+00 : f32
    %13 = vector.broadcast %cst_9 : f32 to vector<256x32xf32>
    %14 = arith.addf %13, %12 : vector<256x32xf32>
    %cst_10 = arith.constant 1.000000e+00 : f32
    %15 = vector.broadcast %cst_10 : f32 to vector<256x32xf32>
    %16 = arith.divf %15, %14 : vector<256x32xf32>
    %17 = arith.mulf %9, %16 : vector<256x32xf32>
    %cst_11 = arith.constant 0.000000e+00 : f32
    %18 = vector.broadcast %cst_11 : f32 to vector<20x20x32xf32>
    %c0_12 = arith.constant 0 : index
    %c0_13 = arith.constant 0 : index
    %c0_14 = arith.constant 0 : index
    %19 = vector.load %arg9[%c0_12, %c0_13, %c0_14] : memref<20x20x32xf32, #tpu.memory_space<vmem>>, vector<20x20x32xf32>
    tpu.vector_store %arg9[%c0_12, %c0_13, %c0_14], %18 {strides = array<i32>} : memref<20x20x32xf32, #tpu.memory_space<vmem>>, vector<20x20x32xf32>,
    %20 = vector.shape_cast %17 : vector<256x32xf32> to vector<16x16x32xf32>
    %c2 = arith.constant 2 : index
    %c2_15 = arith.constant 2 : index
    %c0_16 = arith.constant 0 : index
    %21 = vector.load %arg9[%c2, %c2_15, %c0_16] : memref<20x20x32xf32, #tpu.memory_space<vmem>>, vector<16x16x32xf32>
    tpu.vector_store %arg9[%c2, %c2_15, %c0_16], %20 {strides = array<i32>} : memref<20x20x32xf32, #tpu.memory_space<vmem>>, vector<16x16x32xf32>,
    %cst_17 = arith.constant 0.000000e+00 : f32
    %22 = vector.broadcast %cst_17 : f32 to vector<16x16x32xf32>
    %c0_18 = arith.constant 0 : index
    %c0_19 = arith.constant 0 : index
    %23 = vector.load %arg5[%c0_18, %c0_19] : memref<25x32xf32, #tpu.memory_space<vmem>>, vector<1x32xf32>
    %c0_20 = arith.constant 0 : index
    %c0_21 = arith.constant 0 : index
    %c0_22 = arith.constant 0 : index
    %24 = vector.load %arg9[%c0_20, %c0_21, %c0_22] : memref<20x20x32xf32, #tpu.memory_space<vmem>>, vector<16x16x32xf32>
    %25 = vector.shape_cast %23 : vector<1x32xf32> to vector<1x1x32xf32>
    %26 = vector.broadcast %25 : vector<1x1x32xf32> to vector<16x16x32xf32>
    %27 = arith.mulf %24, %26 : vector<16x16x32xf32>
    %28 = arith.addf %22, %27 : vector<16x16x32xf32>
    %c1 = arith.constant 1 : index
    %c0_23 = arith.constant 0 : index
    %29 = vector.load %arg5[%c1, %c0_23] : memref<25x32xf32, #tpu.memory_space<vmem>>, vector<1x32xf32>
    %c0_24 = arith.constant 0 : index
    %c1_25 = arith.constant 1 : index
    %c0_26 = arith.constant 0 : index
    %30 = vector.load %arg9[%c0_24, %c1_25, %c0_26] : memref<20x20x32xf32, #tpu.memory_space<vmem>>, vector<16x16x32xf32>
    %31 = vector.shape_cast %29 : vector<1x32xf32> to vector<1x1x32xf32>
    %32 = vector.broadcast %31 : vector<1x1x32xf32> to vector<16x16x32xf32>
    %33 = arith.mulf %30, %32 : vector<16x16x32xf32>
    %34 = arith.addf %28, %33 : vector<16x16x32xf32>
    %c2_27 = arith.constant 2 : index
    %c0_28 = arith.constant 0 : index
    %35 = vector.load %arg5[%c2_27, %c0_28] : memref<25x32xf32, #tpu.memory_space<vmem>>, vector<1x32xf32>
    %c0_29 = arith.constant 0 : index
    %c2_30 = arith.constant 2 : index
    %c0_31 = arith.constant 0 : index
    %36 = vector.load %arg9[%c0_29, %c2_30, %c0_31] : memref<20x20x32xf32, #tpu.memory_space<vmem>>, vector<16x16x32xf32>
    %37 = vector.shape_cast %35 : vector<1x32xf32> to vector<1x1x32xf32>
    %38 = vector.broadcast %37 : vector<1x1x32xf32> to vector<16x16x32xf32>
    %39 = arith.mulf %36, %38 : vector<16x16x32xf32>
    %40 = arith.addf %34, %39 : vector<16x16x32xf32>
    %c3 = arith.constant 3 : index
    %c0_32 = arith.constant 0 : index
    %41 = vector.load %arg5[%c3, %c0_32] : memref<25x32xf32, #tpu.memory_space<vmem>>, vector<1x32xf32>
    %c0_33 = arith.constant 0 : index
    %c3_34 = arith.constant 3 : index
    %c0_35 = arith.constant 0 : index
    %42 = vector.load %arg9[%c0_33, %c3_34, %c0_35] : memref<20x20x32xf32, #tpu.memory_space<vmem>>, vector<16x16x32xf32>
    %43 = vector.shape_cast %41 : vector<1x32xf32> to vector<1x1x32xf32>
    %44 = vector.broadcast %43 : vector<1x1x32xf32> to vector<16x16x32xf32>
    %45 = arith.mulf %42, %44 : vector<16x16x32xf32>
    %46 = arith.addf %40, %45 : vector<16x16x32xf32>
    %c4 = arith.constant 4 : index
    %c0_36 = arith.constant 0 : index
    %47 = vector.load %arg5[%c4, %c0_36] : memref<25x32xf32, #tpu.memory_space<vmem>>, vector<1x32xf32>
    %c0_37 = arith.constant 0 : index
    %c4_38 = arith.constant 4 : index
    %c0_39 = arith.constant 0 : index
    %48 = vector.load %arg9[%c0_37, %c4_38, %c0_39] : memref<20x20x32xf32, #tpu.memory_space<vmem>>, vector<16x16x32xf32>
    %49 = vector.shape_cast %47 : vector<1x32xf32> to vector<1x1x32xf32>
    %50 = vector.broadcast %49 : vector<1x1x32xf32> to vector<16x16x32xf32>
    %51 = arith.mulf %48, %50 : vector<16x16x32xf32>
    %52 = arith.addf %46, %51 : vector<16x16x32xf32>
    %c5 = arith.constant 5 : index
    %c0_40 = arith.constant 0 : index
    %53 = vector.load %arg5[%c5, %c0_40] : memref<25x32xf32, #tpu.memory_space<vmem>>, vector<1x32xf32>
    %c1_41 = arith.constant 1 : index
    %c0_42 = arith.constant 0 : index
    %c0_43 = arith.constant 0 : index
    %54 = vector.load %arg9[%c1_41, %c0_42, %c0_43] : memref<20x20x32xf32, #tpu.memory_space<vmem>>, vector<16x16x32xf32>
    %55 = vector.shape_cast %53 : vector<1x32xf32> to vector<1x1x32xf32>
    %56 = vector.broadcast %55 : vector<1x1x32xf32> to vector<16x16x32xf32>
    %57 = arith.mulf %54, %56 : vector<16x16x32xf32>
    %58 = arith.addf %52, %57 : vector<16x16x32xf32>
    %c6 = arith.constant 6 : index
    %c0_44 = arith.constant 0 : index
    %59 = vector.load %arg5[%c6, %c0_44] : memref<25x32xf32, #tpu.memory_space<vmem>>, vector<1x32xf32>
    %c1_45 = arith.constant 1 : index
    %c1_46 = arith.constant 1 : index
    %c0_47 = arith.constant 0 : index
    %60 = vector.load %arg9[%c1_45, %c1_46, %c0_47] : memref<20x20x32xf32, #tpu.memory_space<vmem>>, vector<16x16x32xf32>
    %61 = vector.shape_cast %59 : vector<1x32xf32> to vector<1x1x32xf32>
    %62 = vector.broadcast %61 : vector<1x1x32xf32> to vector<16x16x32xf32>
    %63 = arith.mulf %60, %62 : vector<16x16x32xf32>
    %64 = arith.addf %58, %63 : vector<16x16x32xf32>
    %c7 = arith.constant 7 : index
    %c0_48 = arith.constant 0 : index
    %65 = vector.load %arg5[%c7, %c0_48] : memref<25x32xf32, #tpu.memory_space<vmem>>, vector<1x32xf32>
    %c1_49 = arith.constant 1 : index
    %c2_50 = arith.constant 2 : index
    %c0_51 = arith.constant 0 : index
    %66 = vector.load %arg9[%c1_49, %c2_50, %c0_51] : memref<20x20x32xf32, #tpu.memory_space<vmem>>, vector<16x16x32xf32>
    %67 = vector.shape_cast %65 : vector<1x32xf32> to vector<1x1x32xf32>
    %68 = vector.broadcast %67 : vector<1x1x32xf32> to vector<16x16x32xf32>
    %69 = arith.mulf %66, %68 : vector<16x16x32xf32>
    %70 = arith.addf %64, %69 : vector<16x16x32xf32>
    %c8 = arith.constant 8 : index
    %c0_52 = arith.constant 0 : index
    %71 = vector.load %arg5[%c8, %c0_52] : memref<25x32xf32, #tpu.memory_space<vmem>>, vector<1x32xf32>
    %c1_53 = arith.constant 1 : index
    %c3_54 = arith.constant 3 : index
    %c0_55 = arith.constant 0 : index
    %72 = vector.load %arg9[%c1_53, %c3_54, %c0_55] : memref<20x20x32xf32, #tpu.memory_space<vmem>>, vector<16x16x32xf32>
    %73 = vector.shape_cast %71 : vector<1x32xf32> to vector<1x1x32xf32>
    %74 = vector.broadcast %73 : vector<1x1x32xf32> to vector<16x16x32xf32>
    %75 = arith.mulf %72, %74 : vector<16x16x32xf32>
    %76 = arith.addf %70, %75 : vector<16x16x32xf32>
    %c9 = arith.constant 9 : index
    %c0_56 = arith.constant 0 : index
    %77 = vector.load %arg5[%c9, %c0_56] : memref<25x32xf32, #tpu.memory_space<vmem>>, vector<1x32xf32>
    %c1_57 = arith.constant 1 : index
    %c4_58 = arith.constant 4 : index
    %c0_59 = arith.constant 0 : index
    %78 = vector.load %arg9[%c1_57, %c4_58, %c0_59] : memref<20x20x32xf32, #tpu.memory_space<vmem>>, vector<16x16x32xf32>
    %79 = vector.shape_cast %77 : vector<1x32xf32> to vector<1x1x32xf32>
    %80 = vector.broadcast %79 : vector<1x1x32xf32> to vector<16x16x32xf32>
    %81 = arith.mulf %78, %80 : vector<16x16x32xf32>
    %82 = arith.addf %76, %81 : vector<16x16x32xf32>
    %c10 = arith.constant 10 : index
    %c0_60 = arith.constant 0 : index
    %83 = vector.load %arg5[%c10, %c0_60] : memref<25x32xf32, #tpu.memory_space<vmem>>, vector<1x32xf32>
    %c2_61 = arith.constant 2 : index
    %c0_62 = arith.constant 0 : index
    %c0_63 = arith.constant 0 : index
    %84 = vector.load %arg9[%c2_61, %c0_62, %c0_63] : memref<20x20x32xf32, #tpu.memory_space<vmem>>, vector<16x16x32xf32>
    %85 = vector.shape_cast %83 : vector<1x32xf32> to vector<1x1x32xf32>
    %86 = vector.broadcast %85 : vector<1x1x32xf32> to vector<16x16x32xf32>
    %87 = arith.mulf %84, %86 : vector<16x16x32xf32>
    %88 = arith.addf %82, %87 : vector<16x16x32xf32>
    %c11 = arith.constant 11 : index
    %c0_64 = arith.constant 0 : index
    %89 = vector.load %arg5[%c11, %c0_64] : memref<25x32xf32, #tpu.memory_space<vmem>>, vector<1x32xf32>
    %c2_65 = arith.constant 2 : index
    %c1_66 = arith.constant 1 : index
    %c0_67 = arith.constant 0 : index
    %90 = vector.load %arg9[%c2_65, %c1_66, %c0_67] : memref<20x20x32xf32, #tpu.memory_space<vmem>>, vector<16x16x32xf32>
    %91 = vector.shape_cast %89 : vector<1x32xf32> to vector<1x1x32xf32>
    %92 = vector.broadcast %91 : vector<1x1x32xf32> to vector<16x16x32xf32>
    %93 = arith.mulf %90, %92 : vector<16x16x32xf32>
    %94 = arith.addf %88, %93 : vector<16x16x32xf32>
    %c12 = arith.constant 12 : index
    %c0_68 = arith.constant 0 : index
    %95 = vector.load %arg5[%c12, %c0_68] : memref<25x32xf32, #tpu.memory_space<vmem>>, vector<1x32xf32>
    %c2_69 = arith.constant 2 : index
    %c2_70 = arith.constant 2 : index
    %c0_71 = arith.constant 0 : index
    %96 = vector.load %arg9[%c2_69, %c2_70, %c0_71] : memref<20x20x32xf32, #tpu.memory_space<vmem>>, vector<16x16x32xf32>
    %97 = vector.shape_cast %95 : vector<1x32xf32> to vector<1x1x32xf32>
    %98 = vector.broadcast %97 : vector<1x1x32xf32> to vector<16x16x32xf32>
    %99 = arith.mulf %96, %98 : vector<16x16x32xf32>
    %100 = arith.addf %94, %99 : vector<16x16x32xf32>
    %c13 = arith.constant 13 : index
    %c0_72 = arith.constant 0 : index
    %101 = vector.load %arg5[%c13, %c0_72] : memref<25x32xf32, #tpu.memory_space<vmem>>, vector<1x32xf32>
    %c2_73 = arith.constant 2 : index
    %c3_74 = arith.constant 3 : index
    %c0_75 = arith.constant 0 : index
    %102 = vector.load %arg9[%c2_73, %c3_74, %c0_75] : memref<20x20x32xf32, #tpu.memory_space<vmem>>, vector<16x16x32xf32>
    %103 = vector.shape_cast %101 : vector<1x32xf32> to vector<1x1x32xf32>
    %104 = vector.broadcast %103 : vector<1x1x32xf32> to vector<16x16x32xf32>
    %105 = arith.mulf %102, %104 : vector<16x16x32xf32>
    %106 = arith.addf %100, %105 : vector<16x16x32xf32>
    %c14 = arith.constant 14 : index
    %c0_76 = arith.constant 0 : index
    %107 = vector.load %arg5[%c14, %c0_76] : memref<25x32xf32, #tpu.memory_space<vmem>>, vector<1x32xf32>
    %c2_77 = arith.constant 2 : index
    %c4_78 = arith.constant 4 : index
    %c0_79 = arith.constant 0 : index
    %108 = vector.load %arg9[%c2_77, %c4_78, %c0_79] : memref<20x20x32xf32, #tpu.memory_space<vmem>>, vector<16x16x32xf32>
    %109 = vector.shape_cast %107 : vector<1x32xf32> to vector<1x1x32xf32>
    %110 = vector.broadcast %109 : vector<1x1x32xf32> to vector<16x16x32xf32>
    %111 = arith.mulf %108, %110 : vector<16x16x32xf32>
    %112 = arith.addf %106, %111 : vector<16x16x32xf32>
    %c15 = arith.constant 15 : index
    %c0_80 = arith.constant 0 : index
    %113 = vector.load %arg5[%c15, %c0_80] : memref<25x32xf32, #tpu.memory_space<vmem>>, vector<1x32xf32>
    %c3_81 = arith.constant 3 : index
    %c0_82 = arith.constant 0 : index
    %c0_83 = arith.constant 0 : index
    %114 = vector.load %arg9[%c3_81, %c0_82, %c0_83] : memref<20x20x32xf32, #tpu.memory_space<vmem>>, vector<16x16x32xf32>
    %115 = vector.shape_cast %113 : vector<1x32xf32> to vector<1x1x32xf32>
    %116 = vector.broadcast %115 : vector<1x1x32xf32> to vector<16x16x32xf32>
    %117 = arith.mulf %114, %116 : vector<16x16x32xf32>
    %118 = arith.addf %112, %117 : vector<16x16x32xf32>
    %c16 = arith.constant 16 : index
    %c0_84 = arith.constant 0 : index
    %119 = vector.load %arg5[%c16, %c0_84] : memref<25x32xf32, #tpu.memory_space<vmem>>, vector<1x32xf32>
    %c3_85 = arith.constant 3 : index
    %c1_86 = arith.constant 1 : index
    %c0_87 = arith.constant 0 : index
    %120 = vector.load %arg9[%c3_85, %c1_86, %c0_87] : memref<20x20x32xf32, #tpu.memory_space<vmem>>, vector<16x16x32xf32>
    %121 = vector.shape_cast %119 : vector<1x32xf32> to vector<1x1x32xf32>
    %122 = vector.broadcast %121 : vector<1x1x32xf32> to vector<16x16x32xf32>
    %123 = arith.mulf %120, %122 : vector<16x16x32xf32>
    %124 = arith.addf %118, %123 : vector<16x16x32xf32>
    %c17 = arith.constant 17 : index
    %c0_88 = arith.constant 0 : index
    %125 = vector.load %arg5[%c17, %c0_88] : memref<25x32xf32, #tpu.memory_space<vmem>>, vector<1x32xf32>
    %c3_89 = arith.constant 3 : index
    %c2_90 = arith.constant 2 : index
    %c0_91 = arith.constant 0 : index
    %126 = vector.load %arg9[%c3_89, %c2_90, %c0_91] : memref<20x20x32xf32, #tpu.memory_space<vmem>>, vector<16x16x32xf32>
    %127 = vector.shape_cast %125 : vector<1x32xf32> to vector<1x1x32xf32>
    %128 = vector.broadcast %127 : vector<1x1x32xf32> to vector<16x16x32xf32>
    %129 = arith.mulf %126, %128 : vector<16x16x32xf32>
    %130 = arith.addf %124, %129 : vector<16x16x32xf32>
    %c18 = arith.constant 18 : index
    %c0_92 = arith.constant 0 : index
    %131 = vector.load %arg5[%c18, %c0_92] : memref<25x32xf32, #tpu.memory_space<vmem>>, vector<1x32xf32>
    %c3_93 = arith.constant 3 : index
    %c3_94 = arith.constant 3 : index
    %c0_95 = arith.constant 0 : index
    %132 = vector.load %arg9[%c3_93, %c3_94, %c0_95] : memref<20x20x32xf32, #tpu.memory_space<vmem>>, vector<16x16x32xf32>
    %133 = vector.shape_cast %131 : vector<1x32xf32> to vector<1x1x32xf32>
    %134 = vector.broadcast %133 : vector<1x1x32xf32> to vector<16x16x32xf32>
    %135 = arith.mulf %132, %134 : vector<16x16x32xf32>
    %136 = arith.addf %130, %135 : vector<16x16x32xf32>
    %c19 = arith.constant 19 : index
    %c0_96 = arith.constant 0 : index
    %137 = vector.load %arg5[%c19, %c0_96] : memref<25x32xf32, #tpu.memory_space<vmem>>, vector<1x32xf32>
    %c3_97 = arith.constant 3 : index
    %c4_98 = arith.constant 4 : index
    %c0_99 = arith.constant 0 : index
    %138 = vector.load %arg9[%c3_97, %c4_98, %c0_99] : memref<20x20x32xf32, #tpu.memory_space<vmem>>, vector<16x16x32xf32>
    %139 = vector.shape_cast %137 : vector<1x32xf32> to vector<1x1x32xf32>
    %140 = vector.broadcast %139 : vector<1x1x32xf32> to vector<16x16x32xf32>
    %141 = arith.mulf %138, %140 : vector<16x16x32xf32>
    %142 = arith.addf %136, %141 : vector<16x16x32xf32>
    %c20 = arith.constant 20 : index
    %c0_100 = arith.constant 0 : index
    %143 = vector.load %arg5[%c20, %c0_100] : memref<25x32xf32, #tpu.memory_space<vmem>>, vector<1x32xf32>
    %c4_101 = arith.constant 4 : index
    %c0_102 = arith.constant 0 : index
    %c0_103 = arith.constant 0 : index
    %144 = vector.load %arg9[%c4_101, %c0_102, %c0_103] : memref<20x20x32xf32, #tpu.memory_space<vmem>>, vector<16x16x32xf32>
    %145 = vector.shape_cast %143 : vector<1x32xf32> to vector<1x1x32xf32>
    %146 = vector.broadcast %145 : vector<1x1x32xf32> to vector<16x16x32xf32>
    %147 = arith.mulf %144, %146 : vector<16x16x32xf32>
    %148 = arith.addf %142, %147 : vector<16x16x32xf32>
    %c21 = arith.constant 21 : index
    %c0_104 = arith.constant 0 : index
    %149 = vector.load %arg5[%c21, %c0_104] : memref<25x32xf32, #tpu.memory_space<vmem>>, vector<1x32xf32>
    %c4_105 = arith.constant 4 : index
    %c1_106 = arith.constant 1 : index
    %c0_107 = arith.constant 0 : index
    %150 = vector.load %arg9[%c4_105, %c1_106, %c0_107] : memref<20x20x32xf32, #tpu.memory_space<vmem>>, vector<16x16x32xf32>
    %151 = vector.shape_cast %149 : vector<1x32xf32> to vector<1x1x32xf32>
    %152 = vector.broadcast %151 : vector<1x1x32xf32> to vector<16x16x32xf32>
    %153 = arith.mulf %150, %152 : vector<16x16x32xf32>
    %154 = arith.addf %148, %153 : vector<16x16x32xf32>
    %c22 = arith.constant 22 : index
    %c0_108 = arith.constant 0 : index
    %155 = vector.load %arg5[%c22, %c0_108] : memref<25x32xf32, #tpu.memory_space<vmem>>, vector<1x32xf32>
    %c4_109 = arith.constant 4 : index
    %c2_110 = arith.constant 2 : index
    %c0_111 = arith.constant 0 : index
    %156 = vector.load %arg9[%c4_109, %c2_110, %c0_111] : memref<20x20x32xf32, #tpu.memory_space<vmem>>, vector<16x16x32xf32>
    %157 = vector.shape_cast %155 : vector<1x32xf32> to vector<1x1x32xf32>
    %158 = vector.broadcast %157 : vector<1x1x32xf32> to vector<16x16x32xf32>
    %159 = arith.mulf %156, %158 : vector<16x16x32xf32>
    %160 = arith.addf %154, %159 : vector<16x16x32xf32>
    %c23 = arith.constant 23 : index
    %c0_112 = arith.constant 0 : index
    %161 = vector.load %arg5[%c23, %c0_112] : memref<25x32xf32, #tpu.memory_space<vmem>>, vector<1x32xf32>
    %c4_113 = arith.constant 4 : index
    %c3_114 = arith.constant 3 : index
    %c0_115 = arith.constant 0 : index
    %162 = vector.load %arg9[%c4_113, %c3_114, %c0_115] : memref<20x20x32xf32, #tpu.memory_space<vmem>>, vector<16x16x32xf32>
    %163 = vector.shape_cast %161 : vector<1x32xf32> to vector<1x1x32xf32>
    %164 = vector.broadcast %163 : vector<1x1x32xf32> to vector<16x16x32xf32>
    %165 = arith.mulf %162, %164 : vector<16x16x32xf32>
    %166 = arith.addf %160, %165 : vector<16x16x32xf32>
    %c24 = arith.constant 24 : index
    %c0_116 = arith.constant 0 : index
    %167 = vector.load %arg5[%c24, %c0_116] : memref<25x32xf32, #tpu.memory_space<vmem>>, vector<1x32xf32>
    %c4_117 = arith.constant 4 : index
    %c4_118 = arith.constant 4 : index
    %c0_119 = arith.constant 0 : index
    %168 = vector.load %arg9[%c4_117, %c4_118, %c0_119] : memref<20x20x32xf32, #tpu.memory_space<vmem>>, vector<16x16x32xf32>
    %169 = vector.shape_cast %167 : vector<1x32xf32> to vector<1x1x32xf32>
    %170 = vector.broadcast %169 : vector<1x1x32xf32> to vector<16x16x32xf32>
    %171 = arith.mulf %168, %170 : vector<16x16x32xf32>
    %172 = arith.addf %166, %171 : vector<16x16x32xf32>
    %c0_120 = arith.constant 0 : index
    %c0_121 = arith.constant 0 : index
    %173 = vector.load %arg6[%c0_120, %c0_121] : memref<1x32xf32, #tpu.memory_space<vmem>>, vector<1x32xf32>
    %174 = vector.shape_cast %173 : vector<1x32xf32> to vector<1x1x32xf32>
    %175 = vector.broadcast %174 : vector<1x1x32xf32> to vector<16x16x32xf32>
    %176 = arith.mulf %172, %175 : vector<16x16x32xf32>
    %c0_122 = arith.constant 0 : index
    %c0_123 = arith.constant 0 : index
    %177 = vector.load %arg7[%c0_122, %c0_123] : memref<1x32xf32, #tpu.memory_space<vmem>>, vector<1x32xf32>
    %178 = vector.shape_cast %177 : vector<1x32xf32> to vector<1x1x32xf32>
    %179 = vector.broadcast %178 : vector<1x1x32xf32> to vector<16x16x32xf32>
    %180 = arith.addf %176, %179 : vector<16x16x32xf32>
    %cst_124 = arith.constant 0.000000e+00 : f32
    %181 = vector.broadcast %cst_124 : f32 to vector<16x16x32xf32>
    %182 = arith.subf %181, %180 : vector<16x16x32xf32>
    %183 = math.exp %182 : vector<16x16x32xf32>
    %cst_125 = arith.constant 1.000000e+00 : f32
    %184 = vector.broadcast %cst_125 : f32 to vector<16x16x32xf32>
    %185 = arith.addf %184, %183 : vector<16x16x32xf32>
    %cst_126 = arith.constant 1.000000e+00 : f32
    %186 = vector.broadcast %cst_126 : f32 to vector<16x16x32xf32>
    %187 = arith.divf %186, %185 : vector<16x16x32xf32>
    %188 = arith.mulf %180, %187 : vector<16x16x32xf32>
    %c0_127 = arith.constant 0 : index
    %c0_128 = arith.constant 0 : index
    %c0_129 = arith.constant 0 : index
    %189 = vector.load %arg8[%c0_127, %c0_128, %c0_129] : memref<1x256x64xf32, #tpu.memory_space<vmem>>, vector<1x256x32xf32>
    %190 = vector.shape_cast %189 : vector<1x256x32xf32> to vector<256x32xf32>
    %191 = vector.shape_cast %17 : vector<256x32xf32> to vector<1x256x32xf32>
    tpu.vector_store %arg8[%c0_127, %c0_128, %c0_129], %191 {strides = array<i32>} : memref<1x256x64xf32, #tpu.memory_space<vmem>>, vector<1x256x32xf32>,
    %192 = vector.shape_cast %188 : vector<16x16x32xf32> to vector<256x32xf32>
    %c0_130 = arith.constant 0 : index
    %c0_131 = arith.constant 0 : index
    %c32 = arith.constant 32 : index
    %193 = vector.load %arg8[%c0_130, %c0_131, %c32] : memref<1x256x64xf32, #tpu.memory_space<vmem>>, vector<1x256x32xf32>
    %194 = vector.shape_cast %193 : vector<1x256x32xf32> to vector<256x32xf32>
    %195 = vector.shape_cast %192 : vector<256x32xf32> to vector<1x256x32xf32>
    tpu.vector_store %arg8[%c0_130, %c0_131, %c32], %195 {strides = array<i32>} : memref<1x256x64xf32, #tpu.memory_space<vmem>>, vector<1x256x32xf32>,
    return
  }
  func.func @transform_0(%arg0: i32) -> (i32, i32, i32) {
    %c0_i32 = arith.constant 0 : i32
    %c0_i32_0 = arith.constant 0 : i32
    %c0_i32_1 = arith.constant 0 : i32
    return %arg0, %c0_i32, %c0_i32_0 : i32, i32, i32
  }
  func.func @transform_1(%arg0: i32) -> (i32, i32) {
    %c0_i32 = arith.constant 0 : i32
    %c0_i32_0 = arith.constant 0 : i32
    %c0_i32_1 = arith.constant 0 : i32
    return %c0_i32, %c0_i32_0 : i32, i32
  }
  func.func @transform_2(%arg0: i32) -> (i32, i32) {
    %c0_i32 = arith.constant 0 : i32
    %c0_i32_0 = arith.constant 0 : i32
    %c0_i32_1 = arith.constant 0 : i32
    return %c0_i32, %c0_i32_0 : i32, i32
  }
  func.func @transform_3(%arg0: i32) -> (i32, i32) {
    %c0_i32 = arith.constant 0 : i32
    %c0_i32_0 = arith.constant 0 : i32
    %c0_i32_1 = arith.constant 0 : i32
    return %c0_i32, %c0_i32_0 : i32, i32
  }
  func.func @transform_4(%arg0: i32) -> (i32, i32) {
    %c0_i32 = arith.constant 0 : i32
    %c0_i32_0 = arith.constant 0 : i32
    %c0_i32_1 = arith.constant 0 : i32
    return %c0_i32, %c0_i32_0 : i32, i32
  }
  func.func @transform_5(%arg0: i32) -> (i32, i32) {
    %c0_i32 = arith.constant 0 : i32
    %c0_i32_0 = arith.constant 0 : i32
    %c0_i32_1 = arith.constant 0 : i32
    return %c0_i32, %c0_i32_0 : i32, i32
  }
  func.func @transform_6(%arg0: i32) -> (i32, i32) {
    %c0_i32 = arith.constant 0 : i32
    %c0_i32_0 = arith.constant 0 : i32
    %c0_i32_1 = arith.constant 0 : i32
    return %c0_i32, %c0_i32_0 : i32, i32
  }
  func.func @transform_7(%arg0: i32) -> (i32, i32, i32) {
    %c0_i32 = arith.constant 0 : i32
    %c0_i32_0 = arith.constant 0 : i32
    %c0_i32_1 = arith.constant 0 : i32
    return %arg0, %c0_i32, %c0_i32_0 : i32, i32, i32
  }
}

</mosaic_0001>

<bundles_post_ra>
// kernel: tpu_custom_call.1
= control target key start
LH: loop header
LB: loop body
LE: loop exit
PB: predicated region body
PF: predicated region fallthrough
CT: control target
= control target key end

     0   :  { %s5272_s24 = smov 0   ;;  %s10667_s0 = inlined_call_operand.vmem [shape: f32[2,256,32], index: 0, kind: input, shape index: {}]   ;;  %s10668_s1 = inlined_call_operand.vmem [shape: f32[32,32], index: 1, kind: input, shape index: {}]   ;;  %s10669_s2 = inlined_call_operand.vmem [shape: f32[1,32], index: 2, kind: input, shape index: {}]   ;;  %s10670_s3 = inlined_call_operand.vmem [shape: f32[1,32], index: 3, kind: input, shape index: {}]   ;;  %s10671_s4 = inlined_call_operand.vmem [shape: f32[25,32], index: 4, kind: input, shape index: {}]   ;;  %s10672_s5 = inlined_call_operand.vmem [shape: f32[1,32], index: 5, kind: input, shape index: {}]   ;;  %s10673_s6 = inlined_call_operand.vmem [shape: f32[1,32], index: 6, kind: input, shape index: {}]   ;;  %s10674_s7 = inlined_call_operand.vmem [shape: f32[2,256,64], index: 7, kind: output, shape index: {}]  }
   0x1 LB: > { %s4744_s25 = sadd.s32 4294967295, %s5228_s24   ;;  %p4748_p0 = scmp.ge.s32.totalorder %s5228_s24, 1  ;;  %s5228_s24 = sphi %s5272_s24, %s17_s24  }
   0x2   : > { %p237_p1 = scmp.lt.s32.totalorder %s5228_s24, 3 }
   0x4   : > { %p238_p2 = pnand %p4748_p0, %p237_p1 }
   0x6   : > { %241 = sbr.rel (%p238_p2) target bundleno = 1035 (0x40b), region = 48 }
   0xb   : > { %v314_v0 = vld [vmem:[%s10668_s1 + $0x18] sm:$0xff]  ;;  %v313_v1 = vld [vmem:[%s10668_s1 + $0x10] sm:$0xff]  ;;  %p269_p3 = scmp.lt.s32.totalorder %s4744_s25, 1  ;;  %v312_v2 = vld [vmem:[%s10668_s1 + $0x8] sm:$0xff]  ;;  %vm315_vm0 = vcmask 261120   ;;  %v5230_v36 = vmov 0.0  }
   0xc   : > { %424 = vmatpush.msra.mxu0 %v314_v0  ;;  %4789 = vmatpush.msra.mxu1 %v314_v0  ;;  %v311_v3 = vld [vmem:[%s10668_s1] sm:$0xff]  ;;  %1244 = vst.msk [vmem:[#allocation2 + $0x30] sm:$0xff] %vm315_vm0, %v5230_v36  ;;  %vm1239_vm2 = vcmask 257024   ;;  %s5231_s17 = smov 32  }
   0xd   : > { %4790 = vmatpush.msra.mxu2 %v314_v0  ;;  %4791 = vmatpush.msra.mxu3 %v314_v0  ;;  %s11803_s25 = smov (!%p269_p3, %s4744_s25), 1  ;;  %1245 = vst.msk [vmem:[#allocation2 + $0x38] sm:$0xff] %vm315_vm0, %v5230_v36  ;;  %v5387_v37 = vld [vmem:[%s10669_s2] ss:$0 sm:$0xff] }
   0xe   : > { %425 = vmatpush.msra.mxu0 %v313_v1  ;;  %4792 = vmatpush.msra.mxu1 %v313_v1  ;;  %s4787_s11 = sshll.u32 %s11803_s25, 8  ;;  %1237 = vst.msk [vmem:[#allocation2] sm:$0xff] %vm315_vm0, %v5230_v36  ;;  %v5396_v38 = vld [vmem:[%s10670_s3] ss:$0 sm:$0xff] }
   0xf   : > { %4793 = vmatpush.msra.mxu2 %v313_v1  ;;  %4794 = vmatpush.msra.mxu3 %v313_v1  ;;  %s5300_s14 = scalar_lea.vmem %s10667_s0, %s4787_s11  ;;  %1238 = vst.msk [vmem:[#allocation2 + $0x8] sm:$0xff] %vm315_vm0, %v5230_v36  ;;  %s5589_s23 = scalar_lea.vmem %s10674_s7, %s4787_s11 }
  0x10   : > { %426 = vmatpush.msra.mxu0 %v312_v2  ;;  %4795 = vmatpush.msra.mxu1 %v312_v2  ;;  %v279_v4 = vld [vmem:[%s5300_s14] sm:$0xff]  ;;  %v280_v8 = vld [vmem:[%s5300_s14 + $0x8] sm:$0xff]  ;;  %v281_v12 = vld [vmem:[%s5300_s14 + $0x10] sm:$0xff]  ;;  %1241 = vst.msk [vmem:[#allocation2 + $0x18] sm:$0xff] %vm315_vm0, %v5230_v36 }
  0x11   : > { %4796 = vmatpush.msra.mxu2 %v312_v2  ;;  %4797 = vmatpush.msra.mxu3 %v312_v2  ;;  %v287_v5 = vld [vmem:[%s5300_s14 + $0x40] sm:$0xff]  ;;  %v288_v9 = vld [vmem:[%s5300_s14 + $0x48] sm:$0xff]  ;;  %v289_v13 = vld [vmem:[%s5300_s14 + $0x50] sm:$0xff]  ;;  %1242 = vst.msk [vmem:[#allocation2 + $0x20] sm:$0xff] %vm315_vm0, %v5230_v36 }
  0x12   : > { %427 = vmatpush.msra.mxu0 %v311_v3  ;;  %4798 = vmatpush.msra.mxu1 %v311_v3  ;;  %v295_v6 = vld [vmem:[%s5300_s14 + $0x80] sm:$0xff]  ;;  %v296_v10 = vld [vmem:[%s5300_s14 + $0x88] sm:$0xff]  ;;  %v297_v14 = vld [vmem:[%s5300_s14 + $0x90] sm:$0xff]  ;;  %1247 = vst.msk [vmem:[#allocation2 + $0x48] sm:$0xff] %vm315_vm0, %v5230_v36 }
  0x13   : > { %v303_v7 = vld [vmem:[%s5300_s14 + $0xc0] sm:$0xff]  ;;  %4799 = vmatpush.msra.mxu2 %v311_v3  ;;  %4800 = vmatpush.msra.mxu3 %v311_v3  ;;  %v304_v11 = vld [vmem:[%s5300_s14 + $0xc8] sm:$0xff]  ;;  %v305_v15 = vld [vmem:[%s5300_s14 + $0xd0] sm:$0xff]  ;;  %1248 = vst.msk [vmem:[#allocation2 + $0x50] sm:$0xff] %vm315_vm0, %v5230_v36 }
  0x14   : > { %4753 = vmatmul.msk.f32.vlgmr.msra.gmra.mxu0 %vm315_vm0, %v279_v4  ;;  %4761 = vmatmul.msk.f32.vlgmr.msra.gmra.mxu1 %vm315_vm0, %v287_v5  ;;  %v282_v16 = vld [vmem:[%s5300_s14 + $0x18] sm:$0xff]  ;;  %v283_v20 = vld [vmem:[%s5300_s14 + $0x20] sm:$0xff]  ;;  %v284_v24 = vld [vmem:[%s5300_s14 + $0x28] sm:$0xff]  ;;  %1250 = vst.msk [vmem:[#allocation2 + $0x60] sm:$0xff] %vm315_vm0, %v5230_v36 }
  0x15   : > { %4769 = vmatmul.msk.f32.vlgmr.msra.gmra.mxu2 %vm315_vm0, %v295_v6  ;;  %4777 = vmatmul.msk.f32.vlgmr.msra.gmra.mxu3 %vm315_vm0, %v303_v7  ;;  %v290_v17 = vld [vmem:[%s5300_s14 + $0x58] sm:$0xff]  ;;  %v291_v21 = vld [vmem:[%s5300_s14 + $0x60] sm:$0xff]  ;;  %v292_v25 = vld [vmem:[%s5300_s14 + $0x68] sm:$0xff]  ;;  %1251 = vst.msk [vmem:[#allocation2 + $0x68] sm:$0xff] %vm315_vm0, %v5230_v36 }
  0x16   : > { %v298_v18 = vld [vmem:[%s5300_s14 + $0x98] sm:$0xff]  ;;  %v299_v22 = vld [vmem:[%s5300_s14 + $0xa0] sm:$0xff]  ;;  %v300_v26 = vld [vmem:[%s5300_s14 + $0xa8] sm:$0xff]  ;;  %1253 = vst.msk [vmem:[#allocation2 + $0x78] sm:$0xff] %vm315_vm0, %v5230_v36 }
  0x17   : > { %v306_v19 = vld [vmem:[%s5300_s14 + $0xd8] sm:$0xff]  ;;  %v307_v23 = vld [vmem:[%s5300_s14 + $0xe0] sm:$0xff]  ;;  %v308_v27 = vld [vmem:[%s5300_s14 + $0xe8] sm:$0xff]  ;;  %1254 = vst.msk [vmem:[#allocation2 + $0x80] sm:$0xff] %vm315_vm0, %v5230_v36 }
  0x18   : > { %v285_v28 = vld [vmem:[%s5300_s14 + $0x30] sm:$0xff]  ;;  %v286_v32 = vld [vmem:[%s5300_s14 + $0x38] sm:$0xff]  ;;  %1256 = vst.msk [vmem:[#allocation2 + $0x90] sm:$0xff] %vm315_vm0, %v5230_v36 }
  0x19   : > { %v293_v29 = vld [vmem:[%s5300_s14 + $0x70] sm:$0xff]  ;;  %v294_v33 = vld [vmem:[%s5300_s14 + $0x78] sm:$0xff]  ;;  %1257 = vst.msk [vmem:[#allocation2 + $0x98] sm:$0xff] %vm315_vm0, %v5230_v36 }
  0x1a   : > { %v301_v30 = vld [vmem:[%s5300_s14 + $0xb0] sm:$0xff]  ;;  %v302_v34 = vld [vmem:[%s5300_s14 + $0xb8] sm:$0xff]  ;;  %1259 = vst.msk [vmem:[#allocation2 + $0xa8] sm:$0xff] %vm315_vm0, %v5230_v36 }
  0x1b   : > { %v309_v31 = vld [vmem:[%s5300_s14 + $0xf0] sm:$0xff]  ;;  %v310_v35 = vld [vmem:[%s5300_s14 + $0xf8] sm:$0xff]  ;;  %1260 = vst.msk [vmem:[#allocation2 + $0xb0] sm:$0xff] %vm315_vm0, %v5230_v36 }
  0x1c   : > { %4754 = vmatmul.msk.f32.gmra.mxu0 %vm315_vm0, %v280_v8  ;;  %4762 = vmatmul.msk.f32.gmra.mxu1 %vm315_vm0, %v288_v9  ;;  %1262 = vst.msk [vmem:[#allocation2 + $0xc0] sm:$0xff] %vm315_vm0, %v5230_v36 }
  0x1d   : > { %4770 = vmatmul.msk.f32.gmra.mxu2 %vm315_vm0, %v296_v10  ;;  %4778 = vmatmul.msk.f32.gmra.mxu3 %vm315_vm0, %v304_v11  ;;  %1263 = vst.msk [vmem:[#allocation2 + $0xc8] sm:$0xff] %vm315_vm0, %v5230_v36 }
  0x1e   : > { %1265 = vst.msk [vmem:[#allocation2 + $0xd8] sm:$0xff] %vm315_vm0, %v5230_v36 }
  0x1f   : > { %1266 = vst.msk [vmem:[#allocation2 + $0xe0] sm:$0xff] %vm315_vm0, %v5230_v36 }
  0x20   : > { %1268 = vst.msk [vmem:[#allocation2 + $0xf0] sm:$0xff] %vm315_vm0, %v5230_v36 }
  0x21   : > { %1269 = vst.msk [vmem:[#allocation2 + $0xf8] sm:$0xff] %vm315_vm0, %v5230_v36 }
  0x22   : > { %1271 = vst.msk [vmem:[#allocation2 + $0x108] sm:$0xff] %vm315_vm0, %v5230_v36 }
  0x23   : > { %1272 = vst.msk [vmem:[#allocation2 + $0x110] sm:$0xff] %vm315_vm0, %v5230_v36 }
  0x24   : > { %4755 = vmatmul.msk.f32.gmra.mxu0 %vm315_vm0, %v281_v12  ;;  %4763 = vmatmul.msk.f32.gmra.mxu1 %vm315_vm0, %v289_v13  ;;  %1274 = vst.msk [vmem:[#allocation2 + $0x120] sm:$0xff] %vm315_vm0, %v5230_v36 }
  0x25   : > { %4771 = vmatmul.msk.f32.gmra.mxu2 %vm315_vm0, %v297_v14  ;;  %4779 = vmatmul.msk.f32.gmra.mxu3 %vm315_vm0, %v305_v15  ;;  %1275 = vst.msk [vmem:[#allocation2 + $0x128] sm:$0xff] %vm315_vm0, %v5230_v36 }
  0x26   : > { %1277 = vst.msk [vmem:[#allocation2 + $0x138] sm:$0xff] %vm315_vm0, %v5230_v36 }
  0x27   : > { %1278 = vst.msk [vmem:[#allocation2 + $0x140] sm:$0xff] %vm315_vm0, %v5230_v36 }
  0x28   : > { %1280 = vst.msk [vmem:[#allocation2 + $0x150] sm:$0xff] %vm315_vm0, %v5230_v36 }
  0x29   : > { %1281 = vst.msk [vmem:[#allocation2 + $0x158] sm:$0xff] %vm315_vm0, %v5230_v36 }
  0x2a   : > { %1283 = vst.msk [vmem:[#allocation2 + $0x168] sm:$0xff] %vm315_vm0, %v5230_v36 }
  0x2b   : > { %1284 = vst.msk [vmem:[#allocation2 + $0x170] sm:$0xff] %vm315_vm0, %v5230_v36 }
  0x2c   : > { %4756 = vmatmul.msk.f32.gmra.mxu0 %vm315_vm0, %v282_v16  ;;  %4764 = vmatmul.msk.f32.gmra.mxu1 %vm315_vm0, %v290_v17  ;;  %1286 = vst.msk [vmem:[#allocation2 + $0x180] sm:$0xff] %vm315_vm0, %v5230_v36 }
  0x2d   : > { %4772 = vmatmul.msk.f32.gmra.mxu2 %vm315_vm0, %v298_v18  ;;  %4780 = vmatmul.msk.f32.gmra.mxu3 %vm315_vm0, %v306_v19  ;;  %1287 = vst.msk [vmem:[#allocation2 + $0x188] sm:$0xff] %vm315_vm0, %v5230_v36 }
  0x2e   : > { %1289 = vst.msk [vmem:[#allocation2 + $0x198] sm:$0xff] %vm315_vm0, %v5230_v36 }
  0x2f   : > { %1290 = vst.msk [vmem:[#allocation2 + $0x1a0] sm:$0xff] %vm315_vm0, %v5230_v36 }
  0x30   : > { %1292 = vst.msk [vmem:[#allocation2 + $0x1b0] sm:$0xff] %vm315_vm0, %v5230_v36 }
  0x31   : > { %1293 = vst.msk [vmem:[#allocation2 + $0x1b8] sm:$0xff] %vm315_vm0, %v5230_v36 }
  0x32   : > { %1295 = vst.msk [vmem:[#allocation2 + $0x1c8] sm:$0xff] %vm315_vm0, %v5230_v36 }
  0x33   : > { %1296 = vst.msk [vmem:[#allocation2 + $0x1d0] sm:$0xff] %vm315_vm0, %v5230_v36 }
  0x34   : > { %4757 = vmatmul.msk.f32.gmra.mxu0 %vm315_vm0, %v283_v20  ;;  %4765 = vmatmul.msk.f32.gmra.mxu1 %vm315_vm0, %v291_v21  ;;  %1243 = vst.msk [vmem:[#allocation2 + $0x28] sm:$0xf] %vm1239_vm2, %v5230_v36 }
  0x35   : > { %4773 = vmatmul.msk.f32.gmra.mxu2 %vm315_vm0, %v299_v22  ;;  %4781 = vmatmul.msk.f32.gmra.mxu3 %vm315_vm0, %v307_v23  ;;  %1246 = vst.msk [vmem:[#allocation2 + $0x40] sm:$0xf] %vm1239_vm2, %v5230_v36 }
  0x36   : > { %1240 = vst.msk [vmem:[#allocation2 + $0x10] sm:$0xf] %vm1239_vm2, %v5230_v36 }
  0x37   : > { %1249 = vst.msk [vmem:[#allocation2 + $0x58] sm:$0xf] %vm1239_vm2, %v5230_v36 }
  0x38   : > { %1252 = vst.msk [vmem:[#allocation2 + $0x70] sm:$0xf] %vm1239_vm2, %v5230_v36 }
  0x39   : > { %1255 = vst.msk [vmem:[#allocation2 + $0x88] sm:$0xf] %vm1239_vm2, %v5230_v36 }
  0x3a   : > { %1258 = vst.msk [vmem:[#allocation2 + $0xa0] sm:$0xf] %vm1239_vm2, %v5230_v36 }
  0x3b   : > { %1261 = vst.msk [vmem:[#allocation2 + $0xb8] sm:$0xf] %vm1239_vm2, %v5230_v36 }
  0x3c   : > { %4758 = vmatmul.msk.f32.gmra.mxu0 %vm315_vm0, %v284_v24  ;;  %4766 = vmatmul.msk.f32.gmra.mxu1 %vm315_vm0, %v292_v25  ;;  %1264 = vst.msk [vmem:[#allocation2 + $0xd0] sm:$0xf] %vm1239_vm2, %v5230_v36 }
  0x3d   : > { %4774 = vmatmul.msk.f32.gmra.mxu2 %vm315_vm0, %v300_v26  ;;  %4782 = vmatmul.msk.f32.gmra.mxu3 %vm315_vm0, %v308_v27  ;;  %v1335_v26 = vld [vmem:[#allocation2 + $0x20] sm:$0xff]  ;;  %1267 = vst.msk [vmem:[#allocation2 + $0xe8] sm:$0xf] %vm1239_vm2, %v5230_v36 }
  0x3e   : > { %1270 = vst.msk [vmem:[#allocation2 + $0x100] sm:$0xf] %vm1239_vm2, %v5230_v36 }
  0x3f   : > { %1273 = vst.msk [vmem:[#allocation2 + $0x118] sm:$0xf] %vm1239_vm2, %v5230_v36 }
  0x40   : > { %1276 = vst.msk [vmem:[#allocation2 + $0x130] sm:$0xf] %vm1239_vm2, %v5230_v36 }
  0x41   : > { %1279 = vst.msk [vmem:[#allocation2 + $0x148] sm:$0xf] %vm1239_vm2, %v5230_v36 }
  0x42   : > { %1282 = vst.msk [vmem:[#allocation2 + $0x160] sm:$0xf] %vm1239_vm2, %v5230_v36 }
  0x43   : > { %1285 = vst.msk [vmem:[#allocation2 + $0x178] sm:$0xf] %vm1239_vm2, %v5230_v36 }
  0x44   : > { %4759 = vmatmul.msk.f32.gmra.mxu0 %vm315_vm0, %v285_v28  ;;  %4767 = vmatmul.msk.f32.gmra.mxu1 %vm315_vm0, %v293_v29  ;;  %1288 = vst.msk [vmem:[#allocation2 + $0x190] sm:$0xf] %vm1239_vm2, %v5230_v36 }
  0x45   : > { %4775 = vmatmul.msk.f32.gmra.mxu2 %vm315_vm0, %v301_v30  ;;  %4783 = vmatmul.msk.f32.gmra.mxu3 %vm315_vm0, %v309_v31  ;;  %v5625_v31 = vld [vmem:[%s10671_s4 + $0x1] ss:$0 sm:$0xff]  ;;  %1291 = vst.msk [vmem:[#allocation2 + $0x1a8] sm:$0xf] %vm1239_vm2, %v5230_v36 }
  0x46   : > { %1294 = vst.msk [vmem:[#allocation2 + $0x1c0] sm:$0xf] %vm1239_vm2, %v5230_v36 }
  0x47   : > { %1297 = vst.msk [vmem:[#allocation2 + $0x1d8] sm:$0xf] %vm1239_vm2, %v5230_v36 }
  0x4c   : > { %4760 = vmatmul.msk.f32.gmra.mxu0 %vm315_vm0, %v286_v32  ;;  %4768 = vmatmul.msk.f32.gmra.mxu1 %vm315_vm0, %v294_v33  ;;  %v5513_v32 = vld [vmem:[%s10671_s4] ss:$0 sm:$0xff] }
  0x4d   : > { %4776 = vmatmul.msk.f32.gmra.mxu2 %vm315_vm0, %v302_v34  ;;  %4784 = vmatmul.msk.f32.gmra.mxu3 %vm315_vm0, %v310_v35 }
  0x91   : > { %v429_v39 = vpop.f32.mrf.mxu0  ;;  %v453_v40 = vpop.f32.mrf.mxu1 }
  0x92   : > { %v529_v41 = vmul.f32 %v5387_v37, %v429_v39  ;;  %v537_v42 = vmul.f32 %v5387_v37, %v453_v40 }
  0x94   : > { %v5409_v43 = vadd.f32 %v5396_v38, %v529_v41  ;;  %v5414_v44 = vadd.f32 %v5396_v38, %v537_v42 }
  0x96   : > { %v597_v45 = vsub.f32 0.0, %v5409_v43  ;;  %v605_v46 = vsub.f32 0.0, %v5414_v44 }
  0x98   : > { %v629_v47 = vmul.f32 1.442695, %v597_v45  ;;  %v645_v48 = vmul.f32 1.442695, %v605_v46  ;;  %v477_v49 = vpop.f32.mrf.mxu2  ;;  %v501_v50 = vpop.f32.mrf.mxu3  ;;  %v5536_v46 = vmul.f32 %v5513_v32, %v1335_v26 }
  0x99   : > { %v545_v51 = vmul.f32 %v5387_v37, %v477_v49  ;;  %v553_v52 = vmul.f32 %v5387_v37, %v501_v50  ;;  %v432_v53 = vpop.f32.mrf.mxu0  ;;  %v456_v54 = vpop.f32.mrf.mxu1 }
  0x9a   : > { %4840 = vpow2.f32 %v629_v47  ;;  %v530_v55 = vmul.f32 %v5387_v37, %v432_v53  ;;  %v538_v56 = vmul.f32 %v5387_v37, %v456_v54 }
  0x9b   : > { %4842 = vpow2.f32 %v645_v48  ;;  %v5437_v57 = vadd.f32 %v5396_v38, %v545_v51  ;;  %v5440_v58 = vadd.f32 %v5396_v38, %v553_v52 }
  0x9c   : > { %v5445_v59 = vadd.f32 %v5396_v38, %v530_v55  ;;  %v5448_v60 = vadd.f32 %v5396_v38, %v538_v56 }
  0x9d   : > { %v613_v61 = vsub.f32 0.0, %v5437_v57  ;;  %v621_v62 = vsub.f32 0.0, %v5440_v58 }
  0x9e   : > { %v598_v63 = vsub.f32 0.0, %v5445_v59  ;;  %v606_v0 = vsub.f32 0.0, %v5448_v60 }
  0x9f   : > { %v661_v1 = vmul.f32 1.442695, %v613_v61  ;;  %v677_v2 = vmul.f32 1.442695, %v621_v62 }
  0xa0   : > { %v4841_v3 = vpop.eup %4840  ;;  %v631_v6 = vmul.f32 1.442695, %v598_v63  ;;  %v647_v8 = vmul.f32 1.442695, %v606_v0  ;;  %v480_v9 = vpop.f32.mrf.mxu2 }
  0xa1   : > { %v4843_v4 = vpop.eup %4842  ;;  %v5462_v5 = vadd.f32 1.0, %v4841_v3  ;;  %4844 = vpow2.f32 %v661_v1  ;;  %v504_v10 = vpop.f32.mrf.mxu3  ;;  %v546_v13 = vmul.f32 %v5387_v37, %v480_v9 }
  0xa2   : > { %v5468_v7 = vadd.f32 1.0, %v4843_v4  ;;  %4846 = vpow2.f32 %v677_v2  ;;  %v435_v11 = vpop.f32.mrf.mxu0  ;;  %v459_v12 = vpop.f32.mrf.mxu1  ;;  %v554_v14 = vmul.f32 %v5387_v37, %v504_v10 }
  0xa3   : > { %4848 = vrcp.f32 %v5462_v5  ;;  %v734_v15 = vand.u32 2147483647, %v5462_v5  ;;  %v736_v17 = vand.u32 2147483648, %v5462_v5  ;;  %v531_v18 = vmul.f32 %v5387_v37, %v435_v11 }
  0xa4   : > { %4850 = vrcp.f32 %v5468_v7  ;;  %v539_v19 = vmul.f32 %v5387_v37, %v459_v12  ;;  %vm730_vm1 = vweird.f32 %v5462_v5  ;;  %v854_v21 = vand.u32 2147483647, %v5468_v7 }
  0xa5   : > { %4852 = vpow2.f32 %v631_v6  ;;  %v856_v24 = vand.u32 2147483648, %v5468_v7  ;;  %v5500_v27 = vadd.f32 %v5396_v38, %v546_v13  ;;  %v5503_v28 = vadd.f32 %v5396_v38, %v554_v14 }
  0xa6   : > { %4854 = vpow2.f32 %v647_v8  ;;  %vm5506_vm3 = vcmp.eq.f32.partialorder %v734_v15, 8.507059e+37  ;;  %vm850_vm4 = vweird.f32 %v5468_v7  ;;  %v737_v34 = vor.u32 1.1754944e-38, %v736_v17 }
  0xa7   : > { %v4845_v16 = vpop.eup %4844  ;;  %v5523_v39 = vadd.f32 %v5396_v38, %v531_v18  ;;  %v5526_v40 = vadd.f32 %v5396_v38, %v539_v19  ;;  %vm5530_vm5 = vcmp.eq.f32.partialorder %v854_v21, 8.507059e+37  ;;  %v857_v48 = vor.u32 1.1754944e-38, %v856_v24 }
  0xa8   : > { %v4847_v20 = vpop.eup %4846  ;;  %v5492_v22 = vadd.f32 1.0, %v4845_v16  ;;  %v614_v49 = vsub.f32 0.0, %v5500_v27  ;;  %v622_v50 = vsub.f32 0.0, %v5503_v28 }
  0xa9   : > { %v4849_v23 = vpop.eup %4848  ;;  %v5497_v25 = vadd.f32 1.0, %v4847_v20  ;;  %v599_v55 = vsub.f32 0.0, %v5523_v39  ;;  %v607_v56 = vsub.f32 0.0, %v5526_v40  ;;  %v507_v13 = vpop.f32.mrf.mxu3 }
  0xaa   : > { %v4851_v29 = vpop.eup %4850  ;;  %v726_v30 = vmul.f32 %v4849_v23, %v5462_v5  ;;  %4856 = vrcp.f32 %v5492_v22  ;;  %vm731_vm6 = vweird.f32 %v4849_v23  ;;  %vm970_vm8 = vweird.f32 %v5492_v22 }
  0xab   : > { %v4853_v33 = vpop.eup %4852  ;;  %v846_v35 = vmul.f32 %v4851_v29, %v5468_v7  ;;  %4858 = vrcp.f32 %v5497_v25  ;;  %vm851_vm7 = vweird.f32 %v4851_v29  ;;  %v974_v63 = vand.u32 2147483647, %v5492_v22  ;;  %vm732_vm9 = vmor %vm730_vm1, %vm731_vm6 }
  0xac   : > { %v4855_v41 = vpop.eup %4854  ;;  %v727_v42 = vsub.f32 1.0, %v726_v30  ;;  %v5542_v52 = vadd.f32 1.0, %v4853_v33  ;;  %v976_v2 = vand.u32 2147483648, %v5492_v22  ;;  %vm1090_vm10 = vweird.f32 %v5497_v25  ;;  %vm852_vm11 = vmor %vm850_vm4, %vm851_vm7 }
  0xad   : > { %v847_v47 = vsub.f32 1.0, %v846_v35  ;;  %v5546_v53 = vadd.f32 1.0, %v4855_v41  ;;  %v1094_v5 = vand.u32 2147483647, %v5497_v25  ;;  %v1096_v6 = vand.u32 2147483648, %v5497_v25 }
  0xae   : > { %v728_v51 = vmul.f32 %v4849_v23, %v727_v42  ;;  %4860 = vrcp.f32 %v5542_v52  ;;  %vm5594_vm12 = vcmp.eq.f32.partialorder %v974_v63, 8.507059e+37  ;;  %v663_v14 = vmul.f32 1.442695, %v614_v49  ;;  %v5658_v49 = vld [vmem:[%s10671_s4 + $0x2] ss:$0 sm:$0xff] }
  0xaf   : > { %v848_v54 = vmul.f32 %v4851_v29, %v847_v47  ;;  %4862 = vrcp.f32 %v5546_v53  ;;  %v977_v19 = vor.u32 1.1754944e-38, %v976_v2  ;;  %vm5608_vm14 = vcmp.eq.f32.partialorder %v1094_v5, 8.507059e+37 }
  0xb0   : > { %v5552_v61 = vpop.eup %4856  ;;  %v729_v62 = vadd.f32 %v4849_v23, %v728_v51  ;;  %v1097_v21 = vor.u32 1.1754944e-38, %v1096_v6  ;;  %v751_v33 = vand.u32 2147483648, %v5542_v52  ;;  %4864 = vpow2.f32 %v663_v14  ;;  %v438_v14 = vpop.f32.mrf.mxu0 }
  0xb1   : > { %v849_v0 = vadd.f32 %v4851_v29, %v848_v54  ;;  %v966_v1 = vmul.f32 %v5552_v61, %v5492_v22  ;;  %v5568_v3 = vpop.eup %4858  ;;  %vm971_vm13 = vweird.f32 %v5552_v61  ;;  %vm865_vm7 = vweird.f32 %v5546_v53 }
  0xb2   : > { %v733_v4 = vsel %vm732_vm9, %v4849_v23, %v729_v62  ;;  %v1086_v11 = vmul.f32 %v5568_v3, %v5497_v25  ;;  %vm1091_vm15 = vweird.f32 %v5568_v3  ;;  %vm972_vm1 = vmor %vm970_vm8, %vm971_vm13  ;;  %v871_v6 = vand.u32 2147483648, %v5546_v53 }
  0xb3   : > { %v738_v8 = vsel %vm5506_vm3, %v737_v34, %v733_v4  ;;  %v853_v9 = vsel %vm852_vm11, %v4851_v29, %v849_v0  ;;  %v967_v10 = vsub.f32 1.0, %v966_v1  ;;  %v1433_v29 = vld [vmem:[#allocation2 + $0x21] sm:$0xff]  ;;  %vm745_vm3 = vweird.f32 %v5542_v52  ;;  %vm1092_vm4 = vmor %vm1090_vm10, %vm1091_vm15 }
  0xb4   : > { %v1205_v7 = vmul.f32 %v738_v8, %v5409_v43  ;;  %v858_v12 = vsel %vm5530_vm5, %v857_v48, %v853_v9  ;;  %v1087_v17 = vsub.f32 1.0, %v1086_v11  ;;  %v483_v43 = vpop.f32.mrf.mxu2  ;;  %v5605_v18 = vpop.eup %4860  ;;  %v1466_v48 = vmul.f32 %v5625_v31, %v1433_v29  ;;  %v1629_v9 = vld [vmem:[#allocation2 + $0x23] sm:$0xff] }
  0xb5   : > { %v1213_v15 = vmul.f32 %v858_v12, %v5414_v44  ;;  %v968_v16 = vmul.f32 %v5552_v61, %v967_v10  ;;  %v749_v44 = vand.u32 2147483647, %v5542_v52  ;;  %v741_v26 = vmul.f32 %v5605_v18, %v5542_v52  ;;  %v5620_v30 = vpop.eup %4862 }
  0xb6   : > { %1299 = vst.msk [vmem:[#allocation2 + $0x32] sm:$0xff] %vm315_vm0, %v1205_v7  ;;  %v1088_v24 = vmul.f32 %v5568_v3, %v1087_v17  ;;  %v547_v34 = vmul.f32 %v5387_v37, %v483_v43  ;;  %v861_v45 = vmul.f32 %v5620_v30, %v5546_v53  ;;  %vm746_vm5 = vweird.f32 %v5605_v18  ;;  %v4865_v4 = vpop.eup %4864 }
  0xb7   : > { %4496 = vst.msk [vmem:[%s5589_s23] sm:$0xff] %vm315_vm0, %v1205_v7  ;;  %v969_v23 = vadd.f32 %v5552_v61, %v968_v16  ;;  %v742_v42 = vsub.f32 1.0, %v741_v26  ;;  %vm5648_vm6 = vcmp.eq.f32.partialorder %v749_v44, 8.507059e+37  ;;  %v752_v0 = vor.u32 1.1754944e-38, %v751_v33  ;;  %vm747_vm9 = vmor %vm745_vm3, %vm746_vm5  ;;  %v5701_v7 = vld [vmem:[%s10671_s4 + $0x3] ss:$0 sm:$0xff] }
  0xb8   : > { %1307 = vst.msk [vmem:[#allocation2 + $0x92] sm:$0xff] %vm315_vm0, %v1213_v15  ;;  %v1089_v41 = vadd.f32 %v5568_v3, %v1088_v24  ;;  %v862_v62 = vsub.f32 1.0, %v861_v45  ;;  %vm866_vm8 = vweird.f32 %v5620_v30  ;;  %v5690_v11 = vadd.f32 1.0, %v4865_v4 }
  0xb9   : > { %4504 = vst.msk [vmem:[%s5589_s23 + $0x40] sm:$0xff] %vm315_vm0, %v1213_v15  ;;  %v973_v35 = vsel %vm972_vm1, %v5552_v61, %v969_v23  ;;  %v743_v54 = vmul.f32 %v5605_v18, %v742_v42  ;;  %v1531_v61 = vld [vmem:[#allocation2 + $0x22] sm:$0xff]  ;;  %v633_v52 = vmul.f32 1.442695, %v599_v55  ;;  %vm5707_vm10 = vmor %vm865_vm7, %vm866_vm8  ;;  %v5712_v55 = vadd.f32 %v5396_v38, %v547_v34 }
  0xba   : > { %v978_v22 = vsel %vm5594_vm12, %v977_v19, %v973_v35  ;;  %v1093_v25 = vsel %vm1092_vm4, %v5568_v3, %v1089_v41  ;;  %v863_v3 = vmul.f32 %v5620_v30, %v862_v62  ;;  %v1564_v5 = vmul.f32 %v5658_v49, %v1531_v61  ;;  %v5766_v62 = vld [vmem:[%s10671_s4 + $0x5] ss:$0 sm:$0xff] }
  0xbb   : > { %v1221_v51 = vmul.f32 %v978_v22, %v5437_v57  ;;  %v1098_v63 = vsel %vm5608_vm14, %v1097_v21, %v1093_v25  ;;  %v679_v57 = vmul.f32 1.442695, %v622_v50  ;;  %v744_v2 = vadd.f32 %v5605_v18, %v743_v54  ;;  %v5731_v21 = vld [vmem:[%s10671_s4 + $0x4] ss:$0 sm:$0xff] }
  0xbc   : > { %v1229_v1 = vmul.f32 %v1098_v63, %v5440_v58  ;;  %v1498_v50 = vadd.f32 %v1466_v48, %v5536_v46  ;;  %v869_v58 = vand.u32 2147483647, %v5546_v53  ;;  %v864_v10 = vadd.f32 %v5620_v30, %v863_v3  ;;  %v462_v53 = vpop.f32.mrf.mxu1 }
  0xbd   : > { %1315 = vst.msk [vmem:[#allocation2 + $0xf2] sm:$0xff] %vm315_vm0, %v1221_v51  ;;  %v748_v8 = vsel %vm747_vm9, %v5605_v18, %v744_v2  ;;  %4866 = vpow2.f32 %v679_v57  ;;  %v1662_v43 = vmul.f32 %v5701_v7, %v1629_v9  ;;  %v872_v18 = vor.u32 1.1754944e-38, %v871_v6  ;;  %v1336_v23 = vld [vmem:[#allocation2 + $0x30] sm:$0xff]  ;;  %v441_v57 = vpop.f32.mrf.mxu0 }
  0xbe   : > { %4512 = vst.msk [vmem:[%s5589_s23 + $0x80] sm:$0xff] %vm315_vm0, %v1221_v51  ;;  %v753_v46 = vsel %vm5648_vm6, %v752_v0, %v748_v8  ;;  %v868_v16 = vsel %vm5707_vm10, %v5620_v30, %v864_v10  ;;  %4868 = vrcp.f32 %v5690_v11  ;;  %v1596_v17 = vadd.f32 %v1564_v5, %v1498_v50  ;;  %v1434_v24 = vld [vmem:[#allocation2 + $0x31] sm:$0xff]  ;;  %v486_v51 = vpop.f32.mrf.mxu2  ;;  %v510_v0 = vpop.f32.mrf.mxu3 }
  0xbf   : > { %1323 = vst.msk [vmem:[#allocation2 + $0x152] sm:$0xff] %vm315_vm0, %v1229_v1  ;;  %v1206_v15 = vmul.f32 %v753_v46, %v5445_v59  ;;  %v1727_v59 = vld [vmem:[#allocation2 + $0x24] sm:$0xff]  ;;  %vm870_vm11 = vcmp.eq.f32.partialorder %v869_v58, 8.507059e+37  ;;  %4870 = vpow2.f32 %v633_v52  ;;  %v649_v19 = vmul.f32 1.442695, %v607_v56  ;;  %v1532_v35 = vld [vmem:[#allocation2 + $0x32] sm:$0xff] }
  0xc0   : > { %4520 = vst.msk [vmem:[%s5589_s23 + $0xc0] sm:$0xff] %vm315_vm0, %v1229_v1  ;;  %v615_v20 = vsub.f32 0.0, %v5712_v55  ;;  %v873_v44 = vsel %vm870_vm11, %v872_v18, %v868_v16  ;;  %v1694_v30 = vadd.f32 %v1662_v43, %v1596_v17  ;;  %v1760_v56 = vmul.f32 %v5731_v21, %v1727_v59 }
  0xc1   : > { %1300 = vst.msk [vmem:[#allocation2 + $0x3a] sm:$0xff] %vm315_vm0, %v1206_v15  ;;  %v555_v33 = vmul.f32 %v5387_v37, %v507_v13  ;;  %v1214_v41 = vmul.f32 %v873_v44, %v5448_v60  ;;  %4872 = vpow2.f32 %v649_v19  ;;  %v532_v45 = vmul.f32 %v5387_v37, %v438_v14 }
  0xc2   : > { %v665_v26 = vmul.f32 1.442695, %v615_v20  ;;  %v1369_v22 = vmul.f32 %v5513_v32, %v1336_v23  ;;  %v1467_v47 = vmul.f32 %v5625_v31, %v1434_v24  ;;  %v989_v60 = vand.u32 2147483647, %v5690_v11  ;;  %4497 = vst.msk [vmem:[%s5589_s23 + $0x8] sm:$0xff] %vm315_vm0, %v1206_v15 }
  0xc3   : > { %v4867_v29 = vpop.eup %4866  ;;  %v991_v54 = vand.u32 2147483648, %v5690_v11  ;;  %v5761_v61 = vmul.f32 %v5658_v49, %v1532_v35  ;;  %v5771_v36 = vadd.f32 %v5396_v38, %v555_v33  ;;  %1308 = vst.msk [vmem:[#allocation2 + $0x9a] sm:$0xff] %vm315_vm0, %v1214_v41  ;;  %v5777_v2 = vadd.f32 %v5396_v38, %v532_v45 }
  0xc4   : > { %v5741_v34 = vpop.eup %4868  ;;  %v5746_v42 = vadd.f32 1.0, %v4867_v29  ;;  %4874 = vpow2.f32 %v665_v26  ;;  %v540_v3 = vmul.f32 %v5387_v37, %v462_v53  ;;  %v548_v4 = vmul.f32 %v5387_v37, %v486_v51  ;;  %v465_v50 = vpop.f32.mrf.mxu1  ;;  %4505 = vst.msk [vmem:[%s5589_s23 + $0x48] sm:$0xff] %vm315_vm0, %v1214_v41 }
  0xc5   : > { %v981_v48 = vmul.f32 %v5741_v34, %v5690_v11  ;;  %v4871_v25 = vpop.eup %4870  ;;  %v5781_v5 = vadd.f32 %v1467_v47, %v1369_v22  ;;  %v5784_v58 = vmul.f32 %v5766_v62, %v1336_v23  ;;  %v5786_v6 = vadd.f32 %v1760_v56, %v1694_v30 }
  0xc6   : > { %4876 = vrcp.f32 %v5746_v42  ;;  %v5774_v1 = vadd.f32 1.0, %v4871_v25  ;;  %vm985_vm2 = vweird.f32 %v5690_v11  ;;  %vm5791_vm12 = vcmp.eq.f32.partialorder %v989_v60, 8.507059e+37 }
  0xc7   : > { %v982_v63 = vsub.f32 1.0, %v981_v48  ;;  %11003 = vst [vmem:[#allocation3_spill] sm:$0xff] %v5784_v58  ;;  %v4873_v8 = vpop.eup %4872  ;;  %v992_v10 = vor.u32 1.1754944e-38, %v991_v54  ;;  %v556_v52 = vmul.f32 %v5387_v37, %v510_v0  ;;  %v533_v46 = vmul.f32 %v5387_v37, %v441_v57 }
  0xc8   : > { %vm986_vm13 = vweird.f32 %v5741_v34  ;;  %v623_v14 = vsub.f32 0.0, %v5771_v36  ;;  %v5801_v15 = vmul.f32 %v5387_v37, %v465_v50  ;;  %4878 = vrcp.f32 %v5774_v1  ;;  %v5815_v20 = vld [vmem:[#allocation2 + $0x38] sm:$0xff] }
  0xc9   : > { %v983_v13 = vmul.f32 %v5741_v34, %v982_v63  ;;  %v600_v53 = vsub.f32 0.0, %v5777_v2  ;;  %v5806_v17 = vadd.f32 %v5396_v38, %v540_v3  ;;  %v5809_v43 = vadd.f32 %v5396_v38, %v548_v4  ;;  %vm987_vm15 = vmor %vm985_vm2, %vm986_vm13  ;;  %v5827_v29 = vld [vmem:[#allocation2 + $0x39] sm:$0xff] }
  0xca   : > { %v4875_v12 = vpop.eup %4874  ;;  %vm1105_vm14 = vweird.f32 %v5746_v42  ;;  %v1109_v19 = vand.u32 2147483647, %v5746_v42  ;;  %v1111_v44 = vand.u32 2147483648, %v5746_v42  ;;  %v5820_v23 = vadd.f32 1.0, %v4873_v8 }
  0xcb   : > { %v984_v18 = vadd.f32 %v5741_v34, %v983_v13  ;;  %v5822_v24 = vadd.f32 1.0, %v4875_v12  ;;  %v5825_v26 = vadd.f32 %v5396_v38, %v556_v52  ;;  %v764_v33 = vand.u32 2147483647, %v5774_v1 }
  0xcc   : > { %v4877_v16 = vpop.eup %4876  ;;  %v5832_v35 = vadd.f32 %v5396_v38, %v533_v46  ;;  %v766_v41 = vand.u32 2147483648, %v5774_v1  ;;  %4880 = vrcp.f32 %v5820_v23  ;;  %v681_v45 = vmul.f32 1.442695, %v623_v14 }
  0xcd   : > { %v1101_v59 = vmul.f32 %v4877_v16, %v5746_v42  ;;  %v988_v30 = vsel %vm987_vm15, %v5741_v34, %v984_v18  ;;  %v5840_v22 = vmul.f32 %v5513_v32, %v5815_v20  ;;  %vm1106_vm1 = vweird.f32 %v4877_v16 }
  0xce   : > { %v993_v11 = vsel %vm5791_vm12, %v992_v10, %v988_v30  ;;  %v4879_v48 = vpop.eup %4878  ;;  %v1468_v51 = vmul.f32 %v5625_v31, %v5827_v29  ;;  %vm5845_vm3 = vcmp.eq.f32.partialorder %v1109_v19, 8.507059e+37  ;;  %v1112_v60 = vor.u32 1.1754944e-38, %v1111_v44  ;;  %vm1107_vm6 = vmor %vm1105_vm14, %vm1106_vm1 }
  0xcf   : > { %v1102_v56 = vsub.f32 1.0, %v1101_v59  ;;  %v1222_v34 = vmul.f32 %v993_v11, %v5500_v27  ;;  %4882 = vrcp.f32 %v5822_v24  ;;  %v756_v63 = vmul.f32 %v4879_v48, %v5774_v1 }
  0xd0   : > { %vm760_vm4 = vweird.f32 %v5774_v1  ;;  %vm5853_vm5 = vcmp.eq.f32.partialorder %v764_v33, 8.507059e+37  ;;  %v767_v0 = vor.u32 1.1754944e-38, %v766_v41  ;;  %v884_v57 = vand.u32 2147483647, %v5820_v23 }
  0xd1   : > { %v1103_v47 = vmul.f32 %v4877_v16, %v1102_v56  ;;  %1316 = vst.msk [vmem:[#allocation2 + $0xfa] sm:$0xff] %vm315_vm0, %v1222_v34  ;;  %v886_v3 = vand.u32 2147483648, %v5820_v23  ;;  %4884 = vpow2.f32 %v681_v45  ;;  %v757_v50 = vsub.f32 1.0, %v756_v63 }
  0xd2   : > { %4513 = vst.msk [vmem:[%s5589_s23 + $0x88] sm:$0xff] %vm315_vm0, %v1222_v34  ;;  %vm880_vm7 = vweird.f32 %v5820_v23  ;;  %vm1000_vm8 = vweird.f32 %v5822_v24  ;;  %v635_v8 = vmul.f32 1.442695, %v600_v53  ;;  %v608_v9 = vsub.f32 0.0, %v5806_v17  ;;  %v4881_v10 = vpop.eup %4880 }
  0xd3   : > { %v1104_v54 = vadd.f32 %v4877_v16, %v1103_v47  ;;  %v1004_v52 = vand.u32 2147483647, %v5822_v24  ;;  %v616_v46 = vsub.f32 0.0, %v5809_v43  ;;  %v624_v12 = vsub.f32 0.0, %v5825_v26 }
  0xd4   : > { %v758_v14 = vmul.f32 %v4879_v48, %v757_v50  ;;  %vm761_vm9 = vweird.f32 %v4879_v48  ;;  %v1006_v18 = vand.u32 2147483648, %v5822_v24  ;;  %4886 = vpow2.f32 %v635_v8 }
  0xd5   : > { %v1108_v4 = vsel %vm1107_vm6, %v4877_v16, %v1104_v54  ;;  %v876_v16 = vmul.f32 %v4881_v10, %v5820_v23  ;;  %v4883_v53 = vpop.eup %4882  ;;  %v651_v59 = vmul.f32 1.442695, %v608_v9  ;;  %v667_v19 = vmul.f32 1.442695, %v616_v46  ;;  %vm762_vm10 = vmor %vm760_vm4, %vm761_vm9 }
  0xd6   : > { %v1113_v42 = vsel %vm5845_vm3, %v1112_v60, %v1108_v4  ;;  %v759_v44 = vadd.f32 %v4879_v48, %v758_v14  ;;  %v996_v56 = vmul.f32 %v4883_v53, %v5822_v24  ;;  %v601_v33 = vsub.f32 0.0, %v5832_v35 }
  0xd7   : > { %v1230_v13 = vmul.f32 %v1113_v42, %v5503_v28  ;;  %v877_v30 = vsub.f32 1.0, %v876_v16  ;;  %v4885_v11 = vpop.eup %4884  ;;  %vm881_vm11 = vweird.f32 %v4881_v10  ;;  %4888 = vpow2.f32 %v651_v59  ;;  %v489_v42 = vpop.f32.mrf.mxu2  ;;  %v1728_v59 = vld [vmem:[#allocation2 + $0x34] sm:$0xff] }
  0xd8   : > { %v683_v28 = vmul.f32 1.442695, %v624_v12  ;;  %v5883_v41 = vadd.f32 %v5396_v38, %v5801_v15  ;;  %v763_v45 = vsel %vm762_vm10, %v4879_v48, %v759_v44  ;;  %v997_v47 = vsub.f32 1.0, %v996_v56  ;;  %vm882_vm12 = vmor %vm880_vm7, %vm881_vm11  ;;  %v5903_v12 = vld [vmem:[#allocation2 + $0x3a] sm:$0xff]  ;;  %v5935_v56 = vld [vmem:[%s10671_s4 + $0x6] ss:$0 sm:$0xff] }
  0xd9   : > { %1324 = vst.msk [vmem:[#allocation2 + $0x15a] sm:$0xff] %vm315_vm0, %v1230_v13  ;;  %v878_v34 = vmul.f32 %v4881_v10, %v877_v30  ;;  %v5885_v25 = vadd.f32 1.0, %v4885_v11  ;;  %v768_v60 = vsel %vm5853_vm5, %v767_v0, %v763_v45  ;;  %vm1001_vm2 = vweird.f32 %v4883_v53  ;;  %v1729_v44 = vld [vmem:[#allocation2 + $0x3c] sm:$0xff] }
  0xda   : > { %4521 = vst.msk [vmem:[%s5589_s23 + $0xc8] sm:$0xff] %vm315_vm0, %v1230_v13  ;;  %4890 = vpow2.f32 %v667_v19  ;;  %v609_v1 = vsub.f32 0.0, %v5883_v41  ;;  %v1207_v54 = vmul.f32 %v768_v60, %v5523_v39  ;;  %v998_v4 = vmul.f32 %v4883_v53, %v997_v47  ;;  %v4887_v15 = vpop.eup %4886  ;;  %vm1002_vm14 = vmor %vm1000_vm8, %vm1001_vm2 }
  0xdb   : > { %v879_v63 = vadd.f32 %v4881_v10, %v878_v34  ;;  %4892 = vrcp.f32 %v5885_v25  ;;  %v5894_v48 = vadd.f32 %v5761_v61, %v5781_v5  ;;  %v1500_v50 = vadd.f32 %v1468_v51, %v5840_v22  ;;  %v1630_v22 = vld [vmem:[#allocation2 + $0x33] sm:$0xff]  ;;  %v1631_v51 = vld [vmem:[#allocation2 + $0x3b] sm:$0xff] }
  0xdc   : > { %v887_v27 = vor.u32 1.1754944e-38, %v886_v3  ;;  %v637_v0 = vmul.f32 1.442695, %v601_v33  ;;  %1301 = vst.msk [vmem:[#allocation2 + $0x4a] sm:$0xff] %vm315_vm0, %v1207_v54  ;;  %vm885_vm13 = vcmp.eq.f32.partialorder %v884_v57, 8.507059e+37  ;;  %v999_v8 = vadd.f32 %v4883_v53, %v998_v4 }
  0xdd   : > { %v883_v39 = vsel %vm882_vm12, %v4881_v10, %v879_v63  ;;  %v5901_v9 = vadd.f32 1.0, %v4887_v15  ;;  %v4889_v46 = vpop.eup %4888  ;;  %4498 = vst.msk [vmem:[%s5589_s23 + $0x10] sm:$0xff] %vm315_vm0, %v1207_v54  ;;  %v1007_v5 = vor.u32 1.1754944e-38, %v1006_v18  ;;  %4894 = vpow2.f32 %v683_v28 }
  0xde   : > { %v888_v61 = vsel %vm885_vm13, %v887_v27, %v883_v39  ;;  %v653_v23 = vmul.f32 1.442695, %v609_v1  ;;  %v1003_v3 = vsel %vm1002_vm14, %v4883_v53, %v999_v8  ;;  %vm1005_vm15 = vcmp.eq.f32.partialorder %v1004_v52, 8.507059e+37 }
  0xdf   : > { %v1215_v57 = vmul.f32 %v888_v61, %v5526_v40  ;;  %4896 = vrcp.f32 %v5901_v9  ;;  %v1008_v13 = vsel %vm1005_vm15, %v1007_v5, %v1003_v3  ;;  %v5912_v14 = vadd.f32 1.0, %v4889_v46 }
  0xe0   : > { %v4891_v10 = vpop.eup %4890  ;;  %4898 = vpow2.f32 %v637_v0  ;;  %v549_v24 = vmul.f32 %v5387_v37, %v489_v42  ;;  %v1566_v18 = vmul.f32 %v5658_v49, %v5903_v12  ;;  %v5919_v40 = vmul.f32 %v5766_v62, %v5815_v20 }
  0xe1   : > { %v4893_v16 = vpop.eup %4892  ;;  %1309 = vst.msk [vmem:[#allocation2 + $0xaa] sm:$0xff] %vm315_vm0, %v1215_v57  ;;  %v1223_v52 = vmul.f32 %v1008_v13, %v5712_v55  ;;  %v5923_v53 = vadd.f32 1.0, %v4891_v10  ;;  %v5926_v19 = vmul.f32 %v5701_v7, %v1630_v22  ;;  %v1664_v37 = vmul.f32 %v5701_v7, %v1631_v51 }
  0xe2   : > { %4506 = vst.msk [vmem:[%s5589_s23 + $0x50] sm:$0xff] %vm315_vm0, %v1215_v57  ;;  %v1116_v30 = vmul.f32 %v4893_v16, %v5885_v25  ;;  %4900 = vpow2.f32 %v653_v23  ;;  %v1598_v20 = vadd.f32 %v1566_v18, %v1500_v50  ;;  %v1124_v55 = vand.u32 2147483647, %v5885_v25 }
  0xe3   : > { %1317 = vst.msk [vmem:[#allocation2 + $0x10a] sm:$0xff] %vm315_vm0, %v1223_v52  ;;  %v1126_v33 = vand.u32 2147483648, %v5885_v25  ;;  %4902 = vrcp.f32 %v5912_v14  ;;  %v4895_v11 = vpop.eup %4894  ;;  %v5942_v28 = vmul.f32 %v5731_v21, %v1728_v59  ;;  %v5948_v34 = vadd.f32 %v5396_v38, %v549_v24 }
  0xe4   : > { %4514 = vst.msk [vmem:[%s5589_s23 + $0x90] sm:$0xff] %vm315_vm0, %v1223_v52  ;;  %v1117_v45 = vsub.f32 1.0, %v1116_v30  ;;  %4904 = vrcp.f32 %v5923_v53  ;;  %v5951_v60 = vmul.f32 %v5731_v21, %v1729_v44  ;;  %v5955_v1 = vmul.f32 %v5935_v56, %v5827_v29  ;;  %v1436_v44 = vld [vmem:[#allocation2 + $0x49] sm:$0xff] }
  0xe5   : > { %11010 = vst [vmem:[#allocation4_spill] sm:$0xff] %v5942_v28  ;;  %v4897_v47 = vpop.eup %4896  ;;  %v779_v54 = vand.u32 2147483647, %v5901_v9  ;;  %v781_v63 = vand.u32 2147483648, %v5901_v9  ;;  %vm1120_vm1 = vweird.f32 %v5885_v25  ;;  %vm1121_vm3 = vweird.f32 %v4893_v16  ;;  %v1824_v28 = vld [vmem:[#allocation2 + $0x20] sm:$0xff] }
  0xe6   : > { %v4899_v4 = vpop.eup %4898  ;;  %v1118_v15 = vmul.f32 %v4893_v16, %v1117_v45  ;;  %v771_v38 = vmul.f32 %v4897_v47, %v5901_v9  ;;  %v5961_v50 = vadd.f32 %v1664_v37, %v1598_v20  ;;  %vm5963_vm4 = vcmp.eq.f32.partialorder %v1124_v55, 8.507059e+37  ;;  %vm1122_vm6 = vmor %vm1120_vm1, %vm1121_vm3  ;;  %v5986_v37 = vld [vmem:[#allocation2 + $0x48] sm:$0xff] }
  0xe7   : > { %v1127_v0 = vor.u32 1.1754944e-38, %v1126_v33  ;;  %vm775_vm5 = vweird.f32 %v5901_v9  ;;  %v5968_v42 = vadd.f32 1.0, %v4895_v11  ;;  %v617_v46 = vsub.f32 0.0, %v5948_v34 }
  0xe8   : > { %v4901_v29 = vpop.eup %4900  ;;  %v1119_v39 = vadd.f32 %v4893_v16, %v1118_v15  ;;  %v772_v8 = vsub.f32 1.0, %v771_v38  ;;  %vm5971_vm7 = vcmp.eq.f32.partialorder %v779_v54, 8.507059e+37  ;;  %v782_v5 = vor.u32 1.1754944e-38, %v781_v63 }
  0xe9   : > { %v4903_v25 = vpop.eup %4902  ;;  %vm895_vm8 = vweird.f32 %v5912_v14  ;;  %v5976_v23 = vadd.f32 1.0, %v4899_v4  ;;  %vm776_vm9 = vweird.f32 %v4897_v47  ;;  %v899_v13 = vand.u32 2147483647, %v5912_v14 }
  0xea   : > { %v4905_v22 = vpop.eup %4904  ;;  %v1123_v51 = vsel %vm1122_vm6, %v4893_v16, %v1119_v39  ;;  %v773_v57 = vmul.f32 %v4897_v47, %v772_v8  ;;  %v891_v3 = vmul.f32 %v4903_v25, %v5912_v14  ;;  %4906 = vrcp.f32 %v5968_v42  ;;  %vm777_vm10 = vmor %vm775_vm5, %vm776_vm9 }
  0xeb   : > { %v1128_v10 = vsel %vm5963_vm4, %v1127_v0, %v1123_v51  ;;  %v1011_v24 = vmul.f32 %v4905_v22, %v5923_v53  ;;  %v901_v16 = vand.u32 2147483648, %v5912_v14  ;;  %vm1015_vm11 = vweird.f32 %v5923_v53  ;;  %v6021_v14 = vld [vmem:[%s10671_s4 + $0x7] ss:$0 sm:$0xff] }
  0xec   : > { %v1231_v18 = vmul.f32 %v1128_v10, %v5771_v36  ;;  %v774_v59 = vadd.f32 %v4897_v47, %v773_v57  ;;  %v892_v52 = vsub.f32 1.0, %v891_v3  ;;  %4908 = vrcp.f32 %v5976_v23 }
  0xed   : > { %v1012_v30 = vsub.f32 1.0, %v1011_v24  ;;  %v5992_v20 = vadd.f32 1.0, %v4901_v29  ;;  %vm896_vm2 = vweird.f32 %v4903_v25  ;;  %v1021_v33 = vand.u32 2147483648, %v5923_v53 }
  0xee   : > { %1325 = vst.msk [vmem:[#allocation2 + $0x16a] sm:$0xff] %vm315_vm0, %v1231_v18  ;;  %v778_v36 = vsel %vm777_vm10, %v4897_v47, %v774_v59  ;;  %v893_v55 = vmul.f32 %v4903_v25, %v892_v52  ;;  %vm1016_vm12 = vweird.f32 %v4905_v22  ;;  %v1019_v45 = vand.u32 2147483647, %v5923_v53  ;;  %vm897_vm13 = vmor %vm895_vm8, %vm896_vm2  ;;  %v513_v53 = vpop.f32.mrf.mxu3  ;;  %v6044_v59 = vld [vmem:[%s10669_s2] ss:$0 sm:$0xff] }
  0xef   : > { %4522 = vst.msk [vmem:[%s5589_s23 + $0xd0] sm:$0xff] %vm315_vm0, %v1231_v18  ;;  %v783_v9 = vsel %vm5971_vm7, %v782_v5, %v778_v36  ;;  %v1013_v11 = vmul.f32 %v4905_v22, %v1012_v30  ;;  %v1371_v54 = vmul.f32 %v5513_v32, %v5986_v37  ;;  %v1469_v63 = vmul.f32 %v5625_v31, %v1436_v44  ;;  %vm1017_vm15 = vmor %vm1015_vm11, %vm1016_vm12  ;;  %v444_v44 = vpop.f32.mrf.mxu0 }
  0xf0   : > { %v1208_v47 = vmul.f32 %v783_v9, %v5777_v2  ;;  %v894_v4 = vadd.f32 %v4903_v25, %v893_v55  ;;  %v6005_v15 = vpop.eup %4906  ;;  %v902_v38 = vor.u32 1.1754944e-38, %v901_v16  ;;  %4910 = vrcp.f32 %v5992_v20 }
  0xf1   : > { %v1014_v27 = vadd.f32 %v4905_v22, %v1013_v11  ;;  %v669_v0 = vmul.f32 1.442695, %v617_v46  ;;  %vm900_vm14 = vcmp.eq.f32.partialorder %v899_v13, 8.507059e+37  ;;  %v1022_v2 = vor.u32 1.1754944e-38, %v1021_v33 }
  0xf2   : > { %1302 = vst.msk [vmem:[#allocation2 + $0x52] sm:$0xff] %vm315_vm0, %v1208_v47  ;;  %v898_v29 = vsel %vm897_vm13, %v4903_v25, %v894_v4  ;;  %v1131_v39 = vmul.f32 %v6005_v15, %v5968_v42  ;;  %v6016_v8 = vpop.eup %4908  ;;  %vm1020_vm1 = vcmp.eq.f32.partialorder %v1019_v45, 8.507059e+37  ;;  %v1139_v61 = vand.u32 2147483647, %v5968_v42 }
  0xf3   : > { %4499 = vst.msk [vmem:[%s5589_s23 + $0x18] sm:$0xff] %vm315_vm0, %v1208_v47  ;;  %v903_v46 = vsel %vm900_vm14, %v902_v38, %v898_v29  ;;  %v1018_v25 = vsel %vm1017_vm15, %v4905_v22, %v1014_v27  ;;  %v786_v3 = vmul.f32 %v6016_v8, %v5976_v23  ;;  %v6031_v10 = vadd.f32 %v5919_v40, %v5786_v6  ;;  %v468_v47 = vpop.f32.mrf.mxu1 }
  0xf4   : > { %v1216_v5 = vmul.f32 %v903_v46, %v5806_v17  ;;  %v1023_v51 = vsel %vm1020_vm1, %v1022_v2, %v1018_v25  ;;  %v1132_v57 = vsub.f32 1.0, %v1131_v39  ;;  %v6035_v13 = vmul.f32 %v6021_v14, %v5903_v12  ;;  %v1534_v46 = vld [vmem:[#allocation2 + $0x4a] sm:$0xff] }
  0xf5   : > { %v1224_v22 = vmul.f32 %v1023_v51, %v5809_v43  ;;  %4912 = vpow2.f32 %v669_v0  ;;  %v1141_v24 = vand.u32 2147483648, %v5968_v42  ;;  %v787_v18 = vsub.f32 1.0, %v786_v3 }
  0xf6   : > { %1310 = vst.msk [vmem:[#allocation2 + $0xb2] sm:$0xff] %vm315_vm0, %v1216_v5  ;;  %v1133_v17 = vmul.f32 %v6005_v15, %v1132_v57  ;;  %v557_v6 = vmul.f32 %v6044_v59, %v513_v53  ;;  %v6047_v12 = vpop.eup %4910  ;;  %v6051_v43 = vadd.f32 %v5926_v19, %v5894_v48  ;;  %v6055_v40 = vadd.f32 %v5951_v60, %v5961_v50 }
  0xf7   : > { %4507 = vst.msk [vmem:[%s5589_s23 + $0x58] sm:$0xff] %vm315_vm0, %v1216_v5  ;;  %v794_v52 = vand.u32 2147483647, %v5976_v23  ;;  %v796_v16 = vand.u32 2147483648, %v5976_v23  ;;  %v1501_v30 = vadd.f32 %v1469_v63, %v1371_v54  ;;  %vm1135_vm3 = vweird.f32 %v5968_v42  ;;  %v6088_v54 = vld [vmem:[%s10670_s3] ss:$0 sm:$0xff] }
  0xf8   : > { %11015 = vst [vmem:[#allocation5_spill] sm:$0xff] %v6051_v43  ;;  %vm6063_vm4 = vcmp.eq.f32.partialorder %v1139_v61, 8.507059e+37  ;;  %vm790_vm5 = vweird.f32 %v5976_v23  ;;  %v1134_v50 = vadd.f32 %v6005_v15, %v1133_v17  ;;  %vm1136_vm6 = vweird.f32 %v6005_v15  ;;  %v1922_v43 = vld [vmem:[#allocation2 + $0x21] sm:$0xff] }
  0xf9   : > { %1318 = vst.msk [vmem:[#allocation2 + $0x112] sm:$0xff] %vm315_vm0, %v1224_v22  ;;  %v6068_v48 = vld [vmem:[#allocation2 + $0x50] sm:$0xff]  ;;  %v788_v55 = vmul.f32 %v6016_v8, %v787_v18  ;;  %v906_v33 = vmul.f32 %v6047_v12, %v5992_v20  ;;  %v1142_v45 = vor.u32 1.1754944e-38, %v1141_v24  ;;  %v6091_v63 = vadd.f32 %v6088_v54, %v557_v6  ;;  %vm1137_vm9 = vmor %vm1135_vm3, %vm1136_vm6 }
  0xfa   : > { %v6070_v19 = vld [vmem:[#allocation2 + $0x51] sm:$0xff]  ;;  %4515 = vst.msk [vmem:[%s5589_s23 + $0x98] sm:$0xff] %vm315_vm0, %v1224_v22  ;;  %v1372_v9 = vmul.f32 %v5513_v32, %v6068_v48  ;;  %vm791_vm7 = vweird.f32 %v6016_v8  ;;  %vm6094_vm8 = vcmp.eq.f32.partialorder %v794_v52, 8.507059e+37  ;;  %v797_v32 = vor.u32 1.1754944e-38, %v796_v16  ;;  %v516_v22 = vpop.f32.mrf.mxu3 }
  0xfb   : > { %v6072_v60 = vld [vmem:[#allocation2 + $0x52] sm:$0xff]  ;;  %v1470_v11 = vmul.f32 %v5625_v31, %v6070_v19  ;;  %v4913_v4 = vpop.eup %4912  ;;  %v914_v27 = vand.u32 2147483647, %v5992_v20  ;;  %v916_v2 = vand.u32 2147483648, %v5992_v20  ;;  %v534_v39 = vmul.f32 %v6044_v59, %v444_v44  ;;  %vm792_vm10 = vmor %vm790_vm5, %vm791_vm7  ;;  %v447_v44 = vpop.f32.mrf.mxu0 }
  0xfc   : > { %v1568_v29 = vmul.f32 %v5658_v49, %v6072_v60  ;;  %v1138_v25 = vsel %vm1137_vm9, %v6005_v15, %v1134_v50  ;;  %v789_v61 = vadd.f32 %v6016_v8, %v788_v55  ;;  %v907_v53 = vsub.f32 1.0, %v906_v33  ;;  %v492_v15 = vpop.f32.mrf.mxu2 }
  0xfd   : > { %v1502_v0 = vadd.f32 %v1470_v11, %v1372_v9  ;;  %v542_v5 = vmul.f32 %v6044_v59, %v468_v47  ;;  %v1143_v57 = vsel %vm6063_vm4, %v1142_v45, %v1138_v25  ;;  %v6118_v42 = vadd.f32 1.0, %v4913_v4  ;;  %v1362_v9 = vld [vmem:[#allocation2 + $0x168] sm:$0xff] }
  0xfe   : > { %v625_v3 = vsub.f32 0.0, %v6091_v63  ;;  %v1232_v17 = vmul.f32 %v1143_v57, %v5825_v26  ;;  %v793_v24 = vsel %vm792_vm10, %v6016_v8, %v789_v61  ;;  %v908_v18 = vmul.f32 %v6047_v12, %v907_v53  ;;  %v1460_v11 = vld [vmem:[#allocation2 + $0x169] sm:$0xff] }
  0xff   : > { %v6110_v51 = vadd.f32 %v1568_v29, %v1502_v0  ;;  %vm911_vm11 = vweird.f32 %v6047_v12  ;;  %v1567_v6 = vmul.f32 %v5658_v49, %v1534_v46  ;;  %v798_v23 = vsel %vm6094_vm8, %v797_v32, %v793_v24  ;;  %v1558_v45 = vld [vmem:[#allocation2 + $0x16a] sm:$0xff]  ;;  %v1633_v32 = vld [vmem:[#allocation2 + $0x53] sm:$0xff]  ;;  %v6164_v46 = vld [vmem:[%s10671_s4] ss:$0 sm:$0xff] }
 0x100   : > { %vm910_vm2 = vweird.f32 %v5992_v20  ;;  %4914 = vrcp.f32 %v6118_v42  ;;  %1326 = vst.msk [vmem:[#allocation2 + $0x172] sm:$0xff] %vm315_vm0, %v1232_v17  ;;  %v1209_v52 = vmul.f32 %v798_v23, %v5832_v35  ;;  %v909_v26 = vadd.f32 %v6047_v12, %v908_v18 }
 0x101   : > { %v550_v8 = vmul.f32 %v6044_v59, %v492_v15  ;;  %v558_v16 = vmul.f32 %v6044_v59, %v516_v22  ;;  %v6137_v36 = vmul.f32 %v5766_v62, %v5986_v37  ;;  %4523 = vst.msk [vmem:[%s5589_s23 + $0xd8] sm:$0xff] %vm315_vm0, %v1232_v17  ;;  %vm912_vm12 = vmor %vm910_vm2, %vm911_vm11  ;;  %v917_v20 = vor.u32 1.1754944e-38, %v916_v2 }
 0x102   : > { %v685_v50 = vmul.f32 1.442695, %v625_v3  ;;  %v6142_v55 = vadd.f32 %v6088_v54, %v534_v39  ;;  %v1599_v35 = vadd.f32 %v1567_v6, %v1501_v30  ;;  %1303 = vst.msk [vmem:[#allocation2 + $0x62] sm:$0xff] %vm315_vm0, %v1209_v52  ;;  %v913_v33 = vsel %vm912_vm12, %v6047_v12, %v909_v26  ;;  %v1632_v30 = vld [vmem:[#allocation2 + $0x4b] sm:$0xff] }
 0x103   : > { %11020 = vst [vmem:[#allocation6_spill] sm:$0xff] %v6137_v36  ;;  %vm915_vm13 = vcmp.eq.f32.partialorder %v914_v27, 8.507059e+37  ;;  %v6147_v37 = vadd.f32 %v6088_v54, %v542_v5  ;;  %v535_v38 = vmul.f32 %v6044_v59, %v447_v44  ;;  %v6156_v27 = vadd.f32 %v6088_v54, %v550_v8  ;;  %v1730_v39 = vld [vmem:[#allocation2 + $0x4c] sm:$0xff] }
 0x104   : > { %4500 = vst.msk [vmem:[%s5589_s23 + $0x20] sm:$0xff] %vm315_vm0, %v1209_v52  ;;  %v918_v47 = vsel %vm915_vm13, %v917_v20, %v913_v33  ;;  %4916 = vpow2.f32 %v685_v50  ;;  %v602_v4 = vsub.f32 0.0, %v6142_v55  ;;  %v6159_v29 = vadd.f32 %v6088_v54, %v558_v16  ;;  %v471_v33 = vpop.f32.mrf.mxu1 }
 0x105   : > { %v1217_v0 = vmul.f32 %v918_v47, %v5883_v41  ;;  %v610_v12 = vsub.f32 0.0, %v6147_v37  ;;  %v1395_v25 = vmul.f32 %v6164_v46, %v1362_v9  ;;  %v1493_v41 = vmul.f32 %v5625_v31, %v1460_v11 }
 0x106   : > { %v4915_v2 = vpop.eup %4914  ;;  %v6169_v61 = vmul.f32 %v5658_v49, %v1558_v45  ;;  %v639_v53 = vmul.f32 1.442695, %v602_v4  ;;  %v1861_v5 = vmul.f32 %v5766_v62, %v6068_v48  ;;  %v618_v15 = vsub.f32 0.0, %v6156_v27  ;;  %v1731_v49 = vld [vmem:[#allocation2 + $0x54] sm:$0xff] }
 0x107   : > { %1311 = vst.msk [vmem:[#allocation2 + $0xc2] sm:$0xff] %vm315_vm0, %v1217_v0  ;;  %v1026_v57 = vmul.f32 %v4915_v2, %v6118_v42  ;;  %v655_v3 = vmul.f32 1.442695, %v610_v12  ;;  %v1665_v22 = vmul.f32 %v5701_v7, %v1632_v30  ;;  %v1666_v17 = vmul.f32 %v5701_v7, %v1633_v32 }
 0x108   : > { %4508 = vst.msk [vmem:[%s5589_s23 + $0x60] sm:$0xff] %vm315_vm0, %v1217_v0  ;;  %4918 = vpow2.f32 %v639_v53  ;;  %v626_v31 = vsub.f32 0.0, %v6159_v29  ;;  %v1763_v24 = vmul.f32 %v5731_v21, %v1730_v39  ;;  %vm1030_vm14 = vweird.f32 %v6118_v42  ;;  %v1656_v0 = vld [vmem:[#allocation2 + $0x16b] sm:$0xff] }
 0x109   : > { %v1027_v62 = vsub.f32 1.0, %v1026_v57  ;;  %4920 = vpow2.f32 %v655_v3  ;;  %v1036_v18 = vand.u32 2147483648, %v6118_v42  ;;  %v671_v6 = vmul.f32 1.442695, %v618_v15 }
 0x10a   : > { %v4917_v48 = vpop.eup %4916  ;;  %v687_v23 = vmul.f32 1.442695, %v626_v31  ;;  %v6185_v52 = vadd.f32 %v6088_v54, %v535_v38  ;;  %vm1031_vm15 = vweird.f32 %v4915_v2  ;;  %v1034_v8 = vand.u32 2147483647, %v6118_v42  ;;  %v495_v38 = vpop.f32.mrf.mxu2 }
 0x10b   : > { %v1028_v26 = vmul.f32 %v4915_v2, %v1027_v62  ;;  %v6188_v16 = vadd.f32 1.0, %v4917_v48  ;;  %v1697_v44 = vadd.f32 %v1665_v22, %v1599_v35  ;;  %v1764_v20 = vmul.f32 %v5731_v21, %v1731_v49  ;;  %vm1032_vm1 = vmor %vm1030_vm14, %vm1031_vm15 }
 0x10c   : > { %v6193_v50 = vmul.f32 %v5935_v56, %v6070_v19  ;;  %4922 = vpow2.f32 %v671_v6  ;;  %v1698_v9 = vadd.f32 %v1666_v17, %v6110_v51  ;;  %v6197_v11 = vadd.f32 %v1861_v5, %v6055_v40 }
 0x10d   : > { %v1029_v45 = vadd.f32 %v4915_v2, %v1028_v26  ;;  %4924 = vrcp.f32 %v6188_v16  ;;  %v6202_v35 = vmul.f32 %v6021_v14, %v6072_v60  ;;  %v1037_v21 = vor.u32 1.1754944e-38, %v1036_v18  ;;  %v519_v18 = vpop.f32.mrf.mxu3 }
 0x10e   : > { %11021 = vst [vmem:[#allocation7_spill] sm:$0xff] %v6193_v50  ;;  %v4919_v47 = vpop.eup %4918  ;;  %4926 = vpow2.f32 %v687_v23  ;;  %v603_v56 = vsub.f32 0.0, %v6185_v52  ;;  %vm1035_vm3 = vcmp.eq.f32.partialorder %v1034_v8, 8.507059e+37  ;;  %v543_v4 = vmul.f32 %v6044_v59, %v471_v33 }
 0x10f   : > { %11022 = vst [vmem:[#allocation8_spill] sm:$0xff] %v6197_v11  ;;  %v4921_v19 = vpop.eup %4920  ;;  %v1033_v51 = vsel %vm1032_vm1, %v4915_v2, %v1029_v45  ;;  %v6207_v40 = vadd.f32 1.0, %v4919_v47  ;;  %v6210_v30 = vadd.f32 %v1763_v24, %v1697_v44  ;;  %v1154_v60 = vand.u32 2147483647, %v6188_v16 }
 0x110   : > { %11023 = vst [vmem:[#allocation9_spill] sm:$0xff] %v6202_v35  ;;  %v1038_v32 = vsel %vm1035_vm3, %v1037_v21, %v1033_v51  ;;  %v6213_v42 = vadd.f32 1.0, %v4921_v19  ;;  %v6215_v12 = vadd.f32 %v1764_v20, %v1698_v9  ;;  %v1156_v2 = vand.u32 2147483648, %v6188_v16 }
 0x111   : > { %11024 = vst [vmem:[#allocation10_spill] sm:$0xff] %v6210_v30  ;;  %v1225_v39 = vmul.f32 %v1038_v32, %v5948_v34  ;;  %4928 = vrcp.f32 %v6207_v40  ;;  %v6220_v5 = vadd.f32 %v1493_v41, %v1395_v25  ;;  %v641_v57 = vmul.f32 1.442695, %v603_v56 }
 0x112   : > { %11025 = vst [vmem:[#allocation11_spill] sm:$0xff] %v6215_v12  ;;  %v4923_v53 = vpop.eup %4922  ;;  %4930 = vrcp.f32 %v6213_v42  ;;  %v551_v3 = vmul.f32 %v6044_v59, %v495_v38  ;;  %v6226_v22 = vmul.f32 %v5701_v7, %v1656_v0  ;;  %v811_v34 = vand.u32 2147483648, %v6207_v40  ;;  %v6712_v12 = vld [vmem:[%s10671_s4 + $0x16] ss:$0 sm:$0xff] }
 0x113   : > { %v4925_v15 = vpop.eup %4924  ;;  %1319 = vst.msk [vmem:[#allocation2 + $0x122] sm:$0xff] %vm315_vm0, %v1225_v39  ;;  %v6229_v17 = vadd.f32 1.0, %v4923_v53  ;;  %v6232_v31 = vadd.f32 %v6088_v54, %v543_v4  ;;  %vm1150_vm4 = vweird.f32 %v6188_v16  ;;  %vm6238_vm5 = vcmp.eq.f32.partialorder %v1154_v60, 8.507059e+37 }
 0x114   : > { %v4927_v25 = vpop.eup %4926  ;;  %4516 = vst.msk [vmem:[%s5589_s23 + $0xa0] sm:$0xff] %vm315_vm0, %v1225_v39  ;;  %v1146_v41 = vmul.f32 %v4925_v15, %v6188_v16  ;;  %v809_v7 = vand.u32 2147483647, %v6207_v40  ;;  %v1157_v24 = vor.u32 1.1754944e-38, %v1156_v2  ;;  %v929_v62 = vand.u32 2147483647, %v6213_v42 }
 0x115   : > { %v931_v48 = vand.u32 2147483648, %v6213_v42  ;;  %4932 = vrcp.f32 %v6229_v17  ;;  %vm1151_vm6 = vweird.f32 %v4925_v15  ;;  %vm805_vm7 = vweird.f32 %v6207_v40  ;;  %11064 = vst [vmem:[#allocation26_spill] sm:$0xff] %v6712_v12 }
 0x116   : > { %v1147_v6 = vsub.f32 1.0, %v1146_v41  ;;  %v6247_v23 = vadd.f32 1.0, %v4927_v25  ;;  %4934 = vpow2.f32 %v641_v57  ;;  %v812_v8 = vor.u32 1.1754944e-38, %v811_v34  ;;  %vm1152_vm12 = vmor %vm1150_vm4, %vm1151_vm6 }
 0x117   : > { %v4929_v26 = vpop.eup %4928  ;;  %vm925_vm8 = vweird.f32 %v6213_v42  ;;  %v1051_v44 = vand.u32 2147483648, %v6229_v17  ;;  %v611_v20 = vsub.f32 0.0, %v6232_v31  ;;  %v6253_v33 = vadd.f32 %v6088_v54, %v551_v3 }
 0x118   : > { %v4931_v9 = vpop.eup %4930  ;;  %v1148_v45 = vmul.f32 %v4925_v15, %v1147_v6  ;;  %v801_v47 = vmul.f32 %v4929_v26, %v6207_v40  ;;  %vm6256_vm9 = vcmp.eq.f32.partialorder %v809_v7, 8.507059e+37  ;;  %v1049_v56 = vand.u32 2147483647, %v6229_v17 }
 0x119   : > { %v559_v19 = vmul.f32 %v6044_v59, %v519_v18  ;;  %v921_v51 = vmul.f32 %v4931_v9, %v6213_v42  ;;  %vm6263_vm10 = vcmp.eq.f32.partialorder %v929_v62, 8.507059e+37  ;;  %v932_v38 = vor.u32 1.1754944e-38, %v931_v48 }
 0x11a   : > { %4936 = vrcp.f32 %v6247_v23  ;;  %v1149_v32 = vadd.f32 %v4925_v15, %v1148_v45  ;;  %v802_v60 = vsub.f32 1.0, %v801_v47  ;;  %vm806_vm11 = vweird.f32 %v4929_v26 }
 0x11b   : > { %vm1045_vm2 = vweird.f32 %v6229_v17  ;;  %v4933_v0 = vpop.eup %4932  ;;  %v922_v39 = vsub.f32 1.0, %v921_v51  ;;  %v1052_v2 = vor.u32 1.1754944e-38, %v1051_v44  ;;  %v657_v53 = vmul.f32 1.442695, %v611_v20  ;;  %vm807_vm1 = vmor %vm805_vm7, %vm806_vm11 }
 0x11c   : > { %v619_v57 = vsub.f32 0.0, %v6253_v33  ;;  %v4935_v3 = vpop.eup %4934  ;;  %v1153_v34 = vsel %vm1152_vm12, %v4925_v15, %v1149_v32  ;;  %v803_v25 = vmul.f32 %v4929_v26, %v802_v60  ;;  %v1041_v41 = vmul.f32 %v4933_v0, %v6229_v17 }
 0x11d   : > { %vm6274_vm13 = vcmp.eq.f32.partialorder %v1049_v56, 8.507059e+37  ;;  %v6279_v62 = vadd.f32 %v6088_v54, %v559_v19  ;;  %v1158_v16 = vsel %vm6238_vm5, %v1157_v24, %v1153_v34  ;;  %v923_v48 = vmul.f32 %v4931_v9, %v922_v39 }
 0x11e   : > { %vm926_vm14 = vweird.f32 %v4931_v9  ;;  %vm1165_vm15 = vweird.f32 %v6247_v23  ;;  %v1233_v18 = vmul.f32 %v1158_v16, %v6091_v63  ;;  %v804_v15 = vadd.f32 %v4929_v26, %v803_v25 }
 0x11f   : > { %v1042_v6 = vsub.f32 1.0, %v1041_v41  ;;  %v6285_v44 = vadd.f32 1.0, %v4935_v3  ;;  %v924_v45 = vadd.f32 %v4931_v9, %v923_v48  ;;  %vm1046_vm3 = vweird.f32 %v4933_v0  ;;  %vm927_vm4 = vmor %vm925_vm8, %vm926_vm14  ;;  %v474_v3 = vpop.f32.mrf.mxu1  ;;  %v6324_v41 = vld [vmem:[%s10671_s4 + $0x1] ss:$0 sm:$0xff]  ;;  %v498_v48 = vpop.f32.mrf.mxu2 }
 0x120   : > { %v6287_v20 = vpop.eup %4936  ;;  %4938 = vpow2.f32 %v657_v53  ;;  %v673_v49 = vmul.f32 1.442695, %v619_v57  ;;  %1327 = vst.msk [vmem:[#allocation2 + $0x182] sm:$0xff] %vm315_vm0, %v1233_v18  ;;  %v808_v24 = vsel %vm807_vm1, %v4929_v26, %v804_v15  ;;  %v627_v56 = vsub.f32 0.0, %v6279_v62  ;;  %v450_v26 = vpop.f32.mrf.mxu0  ;;  %v1363_v53 = vld [vmem:[#allocation2 + $0x170] sm:$0xff]  ;;  %vm1047_vm5 = vmor %vm1045_vm2, %vm1046_vm3 }
 0x121   : > { %v1043_v63 = vmul.f32 %v4933_v0, %v1042_v6  ;;  %v1161_v47 = vmul.f32 %v6287_v20, %v6247_v23  ;;  %4524 = vst.msk [vmem:[%s5589_s23 + $0xe0] sm:$0xff] %vm315_vm0, %v1233_v18  ;;  %v813_v40 = vsel %vm6256_vm9, %v812_v8, %v808_v24  ;;  %v928_v19 = vsel %vm927_vm4, %v4931_v9, %v924_v45  ;;  %v1461_v57 = vld [vmem:[#allocation2 + $0x171] sm:$0xff]  ;;  %v6340_v45 = vld [vmem:[%s10671_s4 + $0x4] ss:$0 sm:$0xff] }
 0x122   : > { %v1169_v51 = vand.u32 2147483647, %v6247_v23  ;;  %4940 = vrcp.f32 %v6285_v44  ;;  %v1210_v42 = vmul.f32 %v813_v40, %v6142_v55  ;;  %v933_v32 = vsel %vm6263_vm10, %v932_v38, %v928_v19  ;;  %v1754_v55 = vld [vmem:[#allocation2 + $0x16c] sm:$0xff] }
 0x123   : > { %v1044_v60 = vadd.f32 %v4933_v0, %v1043_v63  ;;  %v1162_v39 = vsub.f32 1.0, %v1161_v47  ;;  %v1218_v21 = vmul.f32 %v933_v32, %v6147_v37  ;;  %vm1166_vm6 = vweird.f32 %v6287_v20  ;;  %v1559_v24 = vld [vmem:[#allocation2 + $0x172] sm:$0xff]  ;;  %v6370_v32 = vld [vmem:[%s10671_s4 + $0x2] ss:$0 sm:$0xff] }
 0x124   : > { %v1171_v8 = vand.u32 2147483648, %v6247_v23  ;;  %4942 = vpow2.f32 %v673_v49  ;;  %1304 = vst.msk [vmem:[#allocation2 + $0x6a] sm:$0xff] %vm315_vm0, %v1210_v42  ;;  %v689_v38 = vmul.f32 1.442695, %v627_v56  ;;  %v536_v34 = vmul.f32 %v6044_v59, %v450_v26  ;;  %vm1167_vm7 = vmor %vm1165_vm15, %vm1166_vm6  ;;  %v1657_v47 = vld [vmem:[#allocation2 + $0x173] sm:$0xff] }
 0x125   : > { %v1048_v9 = vsel %vm1047_vm5, %v4933_v0, %v1044_v60  ;;  %v1163_v4 = vmul.f32 %v6287_v20, %v1162_v39  ;;  %4501 = vst.msk [vmem:[%s5589_s23 + $0x28] sm:$0xff] %vm315_vm0, %v1210_v42  ;;  %v1396_v17 = vmul.f32 %v6164_v46, %v1363_v53  ;;  %v1494_v0 = vmul.f32 %v6324_v41, %v1461_v57  ;;  %v6377_v53 = vld [vmem:[%s10671_s4 + $0x3] ss:$0 sm:$0xff] }
 0x126   : > { %v4939_v25 = vpop.eup %4938  ;;  %v1053_v37 = vsel %vm6274_vm13, %v1052_v2, %v1048_v9  ;;  %v544_v16 = vmul.f32 %v6044_v59, %v474_v3  ;;  %1312 = vst.msk [vmem:[#allocation2 + $0xca] sm:$0xff] %vm315_vm0, %v1218_v21  ;;  %4944 = vpow2.f32 %v689_v38  ;;  %v1623_v6 = vadd.f32 %v6169_v61, %v6220_v5  ;;  %v522_v5 = vpop.f32.mrf.mxu3 }
 0x127   : > { %v1226_v18 = vmul.f32 %v1053_v37, %v6156_v27  ;;  %v1164_v7 = vadd.f32 %v6287_v20, %v1163_v4  ;;  %v6331_v15 = vadd.f32 1.0, %v4939_v25  ;;  %v6343_v49 = vmul.f32 %v6340_v45, %v1754_v55  ;;  %4509 = vst.msk [vmem:[%s5589_s23 + $0x68] sm:$0xff] %vm315_vm0, %v1218_v21 }
 0x128   : > { %v6333_v2 = vpop.eup %4940  ;;  %v1172_v27 = vor.u32 1.1754944e-38, %v1171_v8  ;;  %v6352_v61 = vadd.f32 %v6088_v54, %v536_v34  ;;  %vm1170_vm8 = vcmp.eq.f32.partialorder %v1169_v51, 8.507059e+37  ;;  %v6357_v56 = vadd.f32 %v6088_v54, %v544_v16 }
 0x129   : > { %1320 = vst.msk [vmem:[#allocation2 + $0x12a] sm:$0xff] %vm315_vm0, %v1226_v18  ;;  %v1168_v63 = vsel %vm1167_vm7, %v6287_v20, %v1164_v7  ;;  %v552_v40 = vmul.f32 %v6044_v59, %v498_v48  ;;  %v1721_v23 = vadd.f32 %v6226_v22, %v1623_v6  ;;  %v816_v42 = vmul.f32 %v6333_v2, %v6285_v44  ;;  %v1755_v22 = vld [vmem:[#allocation2 + $0x174] sm:$0xff] }
 0x12a   : > { %v4943_v19 = vpop.eup %4942  ;;  %4517 = vst.msk [vmem:[%s5589_s23 + $0xa8] sm:$0xff] %vm315_vm0, %v1226_v18  ;;  %v1173_v26 = vsel %vm1170_vm8, %v1172_v27, %v1168_v63  ;;  %4946 = vrcp.f32 %v6331_v15  ;;  %v1526_v51 = vadd.f32 %v1494_v0, %v1396_v17  ;;  %v1592_v60 = vmul.f32 %v6370_v32, %v1559_v24 }
 0x12b   : > { %v1234_v20 = vmul.f32 %v1173_v26, %v6159_v29  ;;  %v560_v39 = vmul.f32 %v6044_v59, %v522_v5  ;;  %v1690_v57 = vmul.f32 %v6377_v53, %v1657_v47  ;;  %v817_v29 = vsub.f32 1.0, %v816_v42 }
 0x12c   : > { %v6380_v3 = vadd.f32 1.0, %v4943_v19  ;;  %v604_v21 = vsub.f32 0.0, %v6352_v61  ;;  %v4945_v8 = vpop.eup %4944  ;;  %v824_v55 = vand.u32 2147483647, %v6285_v44  ;;  %v826_v9 = vand.u32 2147483648, %v6285_v44 }
 0x12d   : > { %1328 = vst.msk [vmem:[#allocation2 + $0x18a] sm:$0xff] %vm315_vm0, %v1234_v20  ;;  %v612_v59 = vsub.f32 0.0, %v6357_v56  ;;  %v6388_v4 = vadd.f32 %v6088_v54, %v552_v40  ;;  %v6391_v38 = vmul.f32 %v6340_v45, %v1755_v22  ;;  %v818_v34 = vmul.f32 %v6333_v2, %v817_v29  ;;  %v1626_v22 = vld [vmem:[#allocation2 + $0x3] sm:$0xff] }
 0x12e   : > { %4525 = vst.msk [vmem:[%s5589_s23 + $0xe8] sm:$0xff] %vm315_vm0, %v1234_v20  ;;  %vm821_vm9 = vweird.f32 %v6333_v2  ;;  %4948 = vrcp.f32 %v6380_v3  ;;  %v1624_v25 = vadd.f32 %v1592_v60, %v1526_v51  ;;  %v6398_v37 = vadd.f32 1.0, %v4945_v8 }
 0x12f   : > { %v643_v17 = vmul.f32 1.442695, %v604_v21  ;;  %v6401_v0 = vadd.f32 %v6088_v54, %v560_v39  ;;  %v819_v48 = vadd.f32 %v6333_v2, %v818_v34  ;;  %vm820_vm10 = vweird.f32 %v6285_v44 }
 0x130   : > { %v4947_v16 = vpop.eup %4946  ;;  %v659_v18 = vmul.f32 1.442695, %v612_v59  ;;  %v620_v7 = vsub.f32 0.0, %v6388_v4  ;;  %vm822_vm11 = vmor %vm820_vm10, %vm821_vm9  ;;  %vm825_vm2 = vcmp.eq.f32.partialorder %v824_v55, 8.507059e+37  ;;  %v827_v6 = vor.u32 1.1754944e-38, %v826_v9 }
 0x131   : > { %v936_v27 = vmul.f32 %v4947_v16, %v6331_v15  ;;  %v944_v24 = vand.u32 2147483647, %v6331_v15  ;;  %v823_v5 = vsel %vm822_vm11, %v6333_v2, %v819_v48  ;;  %v946_v54 = vand.u32 2147483648, %v6331_v15 }
 0x132   : > { %v1064_v63 = vand.u32 2147483647, %v6380_v3  ;;  %4950 = vrcp.f32 %v6398_v37  ;;  %v828_v47 = vsel %vm825_vm2, %v827_v6, %v823_v5  ;;  %v628_v40 = vsub.f32 0.0, %v6401_v0  ;;  %v1430_v6 = vld [vmem:[#allocation2 + $0x1] sm:$0xff] }
 0x133   : > { %v937_v44 = vsub.f32 1.0, %v936_v27  ;;  %4952 = vpow2.f32 %v643_v17  ;;  %v1211_v26 = vmul.f32 %v828_v47, %v6185_v52  ;;  %v1066_v42 = vand.u32 2147483648, %v6380_v3  ;;  %v1528_v5 = vld [vmem:[#allocation2 + $0x2] sm:$0xff] }
 0x134   : > { %v4949_v19 = vpop.eup %4948  ;;  %4954 = vpow2.f32 %v659_v18  ;;  %v675_v20 = vmul.f32 1.442695, %v620_v7  ;;  %v6416_v2 = vadd.f32 %v6343_v49, %v1721_v23  ;;  %v6418_v51 = vadd.f32 %v1690_v57, %v1624_v25  ;;  %v1332_v25 = vld [vmem:[#allocation2] sm:$0xff] }
 0x135   : > { %v938_v60 = vmul.f32 %v4947_v16, %v937_v44  ;;  %vm941_vm12 = vweird.f32 %v4947_v16  ;;  %1305 = vst.msk [vmem:[#allocation2 + $0x7a] sm:$0xff] %vm315_vm0, %v1211_v26  ;;  %vm940_vm13 = vweird.f32 %v6331_v15  ;;  %vm6422_vm14 = vcmp.eq.f32.partialorder %v944_v24, 8.507059e+37 }
 0x136   : > { %11034 = vst [vmem:[#allocation12_spill] sm:$0xff] %v6416_v2  ;;  %v1056_v52 = vmul.f32 %v4949_v19, %v6380_v3  ;;  %4956 = vpow2.f32 %v675_v20  ;;  %v947_v49 = vor.u32 1.1754944e-38, %v946_v54  ;;  %vm1060_vm15 = vweird.f32 %v6380_v3  ;;  %vm942_vm1 = vmor %vm940_vm13, %vm941_vm12  ;;  %v6733_v2 = vld [vmem:[#allocation2 + $0x63] sm:$0xff] }
 0x137   : > { %4502 = vst.msk [vmem:[%s5589_s23 + $0x30] sm:$0xff] %vm315_vm0, %v1211_v26  ;;  %v939_v39 = vadd.f32 %v4947_v16, %v938_v60  ;;  %v691_v23 = vmul.f32 1.442695, %v628_v40  ;;  %vm6430_vm3 = vcmp.eq.f32.partialorder %v1064_v63, 8.507059e+37  ;;  %v1067_v15 = vor.u32 1.1754944e-38, %v1066_v42 }
 0x138   : > { %v4951_v57 = vpop.eup %4950  ;;  %v1057_v29 = vsub.f32 1.0, %v1056_v52  ;;  %v1184_v8 = vand.u32 2147483647, %v6398_v37  ;;  %v1186_v34 = vand.u32 2147483648, %v6398_v37  ;;  %vm1061_vm4 = vweird.f32 %v4949_v19  ;;  %11067 = vst [vmem:[#allocation29_spill] sm:$0xff] %v6733_v2 }
 0x139   : > { %v4953_v55 = vpop.eup %4952  ;;  %v943_v9 = vsel %vm942_vm1, %v4947_v16, %v939_v39  ;;  %v1176_v59 = vmul.f32 %v4951_v57, %v6398_v37  ;;  %4958 = vpow2.f32 %v691_v23  ;;  %vm1180_vm5 = vweird.f32 %v6398_v37  ;;  %vm1062_vm7 = vmor %vm1060_vm15, %vm1061_vm4 }
 0x13a   : > { %v4955_v17 = vpop.eup %4954  ;;  %v948_v48 = vsel %vm6422_vm14, %v947_v49, %v943_v9  ;;  %v1058_v18 = vmul.f32 %v4949_v19, %v1057_v29  ;;  %v6439_v7 = vadd.f32 1.0, %v4953_v55  ;;  %vm6445_vm6 = vcmp.eq.f32.partialorder %v1184_v8, 8.507059e+37  ;;  %v1724_v29 = vld [vmem:[#allocation2 + $0x4] sm:$0xff] }
 0x13b   : > { %v1219_v27 = vmul.f32 %v948_v48, %v6232_v31  ;;  %v1177_v24 = vsub.f32 1.0, %v1176_v59  ;;  %v6443_v16 = vadd.f32 1.0, %v4955_v17  ;;  %v1365_v44 = vmul.f32 %v6164_v46, %v1332_v25 }
 0x13c   : > { %v4957_v54 = vpop.eup %4956  ;;  %v1059_v63 = vadd.f32 %v4949_v19, %v1058_v18  ;;  %4960 = vrcp.f32 %v6439_v7  ;;  %vm1181_vm8 = vweird.f32 %v4951_v57  ;;  %v1463_v40 = vmul.f32 %v6324_v41, %v1430_v6 }
 0x13d   : > { %1313 = vst.msk [vmem:[#allocation2 + $0xda] sm:$0xff] %vm315_vm0, %v1219_v27  ;;  %v1178_v31 = vmul.f32 %v4951_v57, %v1177_v24  ;;  %4962 = vrcp.f32 %v6443_v16  ;;  %v1187_v42 = vor.u32 1.1754944e-38, %v1186_v34  ;;  %v839_v20 = vand.u32 2147483647, %v6439_v7  ;;  %vm1182_vm9 = vmor %vm1180_vm5, %vm1181_vm8 }
 0x13e   : > { %4510 = vst.msk [vmem:[%s5589_s23 + $0x70] sm:$0xff] %vm315_vm0, %v1219_v27  ;;  %v1063_v26 = vsel %vm1062_vm7, %v4949_v19, %v1059_v63  ;;  %v1561_v60 = vmul.f32 %v6370_v32, %v1528_v5  ;;  %v841_v49 = vand.u32 2147483648, %v6439_v7  ;;  %v6463_v23 = vadd.f32 1.0, %v4957_v54  ;;  %v6495_v5 = vld [vmem:[#allocation2 + $0x18] sm:$0xff] }
 0x13f   : > { %v4959_v52 = vpop.eup %4958  ;;  %v1068_v3 = vsel %vm6430_vm3, %v1067_v15, %v1063_v26  ;;  %v1179_v39 = vadd.f32 %v4951_v57, %v1178_v31  ;;  %v959_v19 = vand.u32 2147483647, %v6443_v16  ;;  %v961_v55 = vand.u32 2147483648, %v6443_v16  ;;  %v6504_v31 = vld [vmem:[#allocation2 + $0x19] sm:$0xff] }
 0x140   : > { %v1227_v8 = vmul.f32 %v1068_v3, %v6253_v33  ;;  %v6471_v9 = vadd.f32 1.0, %v4959_v52  ;;  %4964 = vrcp.f32 %v6463_v23  ;;  %v1495_v15 = vadd.f32 %v1463_v40, %v1365_v44  ;;  %v6509_v40 = vld [vmem:[%s10671_s4 + $0x8] ss:$0 sm:$0xff]  ;;  %v6520_v52 = vld [vmem:[#allocation2 + $0x1a] sm:$0xff] }
 0x141   : > { %v1183_v21 = vsel %vm1182_vm9, %v4951_v57, %v1179_v39  ;;  %v1659_v59 = vmul.f32 %v6377_v53, %v1626_v22  ;;  %vm835_vm10 = vweird.f32 %v6439_v7  ;;  %v1757_v37 = vmul.f32 %v6340_v45, %v1724_v29  ;;  %v6522_v3 = vld [vmem:[#allocation2 + $0x1b] sm:$0xff] }
 0x142   : > { %v4961_v34 = vpop.eup %4960  ;;  %1321 = vst.msk [vmem:[#allocation2 + $0x13a] sm:$0xff] %vm315_vm0, %v1227_v8  ;;  %v1188_v33 = vsel %vm6445_vm6, %v1187_v42, %v1183_v21  ;;  %4966 = vrcp.f32 %v6471_v9  ;;  %vm6485_vm11 = vcmp.eq.f32.partialorder %v839_v20, 8.507059e+37  ;;  %vm955_vm2 = vweird.f32 %v6443_v16 }
 0x143   : > { %v4963_v25 = vpop.eup %4962  ;;  %4518 = vst.msk [vmem:[%s5589_s23 + $0xb0] sm:$0xff] %vm315_vm0, %v1227_v8  ;;  %v1235_v57 = vmul.f32 %v1188_v33, %v6279_v62  ;;  %v831_v17 = vmul.f32 %v4961_v34, %v6439_v7  ;;  %v842_v18 = vor.u32 1.1754944e-38, %v841_v49  ;;  %vm6491_vm12 = vcmp.eq.f32.partialorder %v959_v19, 8.507059e+37  ;;  %v6553_v7 = vld [vmem:[%s10671_s4 + $0x9] ss:$0 sm:$0xff] }
 0x144   : > { %v951_v6 = vmul.f32 %v4963_v25, %v6443_v16  ;;  %v962_v24 = vor.u32 1.1754944e-38, %v961_v55  ;;  %vm1075_vm13 = vweird.f32 %v6463_v23  ;;  %v1079_v54 = vand.u32 2147483647, %v6463_v23  ;;  %v1951_v16 = vld [vmem:[#allocation2 + $0x181] sm:$0xff] }
 0x145   : > { %1329 = vst.msk [vmem:[#allocation2 + $0x19a] sm:$0xff] %vm315_vm0, %v1235_v57  ;;  %v832_v62 = vsub.f32 1.0, %v831_v17  ;;  %v1593_v63 = vadd.f32 %v1561_v60, %v1495_v15  ;;  %vm836_vm14 = vweird.f32 %v4961_v34  ;;  %v1081_v44 = vand.u32 2147483648, %v6463_v23  ;;  %v6516_v60 = vld [vmem:[%s10671_s4 + $0x5] ss:$0 sm:$0xff] }
 0x146   : > { %4526 = vst.msk [vmem:[%s5589_s23 + $0xf0] sm:$0xff] %vm315_vm0, %v1235_v57  ;;  %v952_v47 = vsub.f32 1.0, %v951_v6  ;;  %vm1195_vm15 = vweird.f32 %v6471_v9  ;;  %v6511_v26 = vpop.eup %4964  ;;  %vm956_vm1 = vweird.f32 %v4963_v25  ;;  %v1856_v22 = vmul.f32 %v6516_v60, %v6495_v5  ;;  %vm837_vm3 = vmor %vm835_vm10, %vm836_vm14 }
 0x147   : > { %v833_v42 = vmul.f32 %v4961_v34, %v832_v62  ;;  %v1691_v20 = vadd.f32 %v1659_v59, %v1593_v63  ;;  %11045 = vst [vmem:[#allocation13_spill] sm:$0xff] %v6516_v60  ;;  %v1071_v29 = vmul.f32 %v6511_v26, %v6463_v23  ;;  %v1199_v8 = vand.u32 2147483647, %v6471_v9  ;;  %v6535_v59 = vld [vmem:[%s10671_s4 + $0x6] ss:$0 sm:$0xff]  ;;  %vm957_vm4 = vmor %vm955_vm2, %vm956_vm1 }
 0x148   : > { %v6524_v39 = vpop.eup %4966  ;;  %v953_v49 = vmul.f32 %v4963_v25, %v952_v47  ;;  %v1201_v19 = vand.u32 2147483648, %v6471_v9  ;;  %v1954_v33 = vmul.f32 %v6535_v59, %v6504_v31  ;;  %v2052_v6 = vmul.f32 %v6021_v14, %v6520_v52  ;;  %v1853_v62 = vld [vmem:[#allocation2 + $0x180] sm:$0xff] }
 0x149   : > { %v834_v55 = vadd.f32 %v4961_v34, %v833_v42  ;;  %v1191_v21 = vmul.f32 %v6524_v39, %v6471_v9  ;;  %v1789_v15 = vadd.f32 %v1757_v37, %v1691_v20  ;;  %v1072_v17 = vsub.f32 1.0, %v1071_v29 }
 0x14a   : > { %v954_v57 = vadd.f32 %v4963_v25, %v953_v49  ;;  %v2150_v37 = vmul.f32 %v6509_v40, %v6522_v3  ;;  %vm1076_vm5 = vweird.f32 %v6511_v26  ;;  %vm1196_vm6 = vweird.f32 %v6524_v39 }
 0x14b   : > { %v838_v63 = vsel %vm837_vm3, %v4961_v34, %v834_v55  ;;  %v1192_v47 = vsub.f32 1.0, %v1191_v21  ;;  %v1888_v42 = vadd.f32 %v1856_v22, %v1789_v15  ;;  %v1073_v49 = vmul.f32 %v6511_v26, %v1072_v17  ;;  %v6559_v34 = vld [vmem:[#allocation2 + $0x1c] sm:$0xff]  ;;  %v2313_v15 = vld [vmem:[#allocation2 + $0x30] sm:$0xff]  ;;  %v1333_v17 = vld [vmem:[#allocation2 + $0x8] sm:$0xff] }
 0x14c   : > { %v843_v14 = vsel %vm6485_vm11, %v842_v18, %v838_v63  ;;  %v958_v20 = vsel %vm957_vm4, %v4963_v25, %v954_v57  ;;  %v6568_v25 = vld [vmem:[%s10671_s4 + $0xa] ss:$0 sm:$0xff]  ;;  %v6571_v48 = vmul.f32 %v6516_v60, %v1853_v62  ;;  %v6575_v18 = vadd.f32 %v6391_v38, %v6418_v51  ;;  %v6582_v57 = vld [vmem:[%s10671_s4 + $0xb] ss:$0 sm:$0xff]  ;;  %vm6589_vm7 = vmor %vm1075_vm13, %vm1076_vm5 }
 0x14d   : > { %v1212_v29 = vmul.f32 %v843_v14, %v6352_v61  ;;  %v963_v22 = vsel %vm6491_vm12, %v962_v24, %v958_v20  ;;  %v1193_v55 = vmul.f32 %v6524_v39, %v1192_v47  ;;  %v1986_v21 = vadd.f32 %v1954_v33, %v1888_v42  ;;  %v1854_v61 = vld [vmem:[#allocation2 + $0x188] sm:$0xff]  ;;  %v2411_v33 = vld [vmem:[#allocation2 + $0x31] sm:$0xff]  ;;  %vm6614_vm9 = vmor %vm1195_vm15, %vm1196_vm6 }
 0x14e   : > { %11046 = vst [vmem:[#allocation14_spill] sm:$0xff] %v6571_v48  ;;  %v1220_v27 = vmul.f32 %v963_v22, %v6357_v56  ;;  %v1074_v24 = vadd.f32 %v6511_v26, %v1073_v49  ;;  %v1082_v56 = vor.u32 1.1754944e-38, %v1081_v44  ;;  %v2248_v63 = vmul.f32 %v6553_v7, %v6559_v34  ;;  %v6596_v47 = vld [vmem:[#allocation2 + $0x32] sm:$0xff]  ;;  %v6601_v42 = vld [vmem:[%s10671_s4 + $0xc] ss:$0 sm:$0xff]  ;;  %v6731_v48 = vld [vmem:[#allocation2 + $0x62] sm:$0xff] }
 0x14f   : > { %11047 = vst [vmem:[#allocation15_spill] sm:$0xff] %v6575_v18  ;;  %v1194_v51 = vadd.f32 %v6524_v39, %v1193_v55  ;;  %v2084_v62 = vadd.f32 %v2052_v6, %v1986_v21  ;;  %v1431_v14 = vld [vmem:[#allocation2 + $0x9] sm:$0xff]  ;;  %vm1080_vm8 = vcmp.eq.f32.partialorder %v1079_v54, 8.507059e+37  ;;  %vm6618_vm10 = vcmp.eq.f32.partialorder %v1199_v8, 8.507059e+37  ;;  %v6632_v22 = vld [vmem:[#allocation2 + $0x33] sm:$0xff] }
 0x150   : > { %1306 = vst.msk [vmem:[#allocation2 + $0x82] sm:$0xff] %vm315_vm0, %v1212_v29  ;;  %v1529_v20 = vld [vmem:[#allocation2 + $0xa] sm:$0xff]  ;;  %v1078_v44 = vsel %vm6589_vm7, %v6511_v26, %v1074_v24  ;;  %v2346_v8 = vmul.f32 %v6568_v25, %v2313_v15  ;;  %v6634_v55 = vld [vmem:[#allocation2 + $0x34] sm:$0xff]  ;;  %v6652_v15 = vmul.f32 %v6535_v59, %v1951_v16  ;;  %v6655_v24 = vmul.f32 %v6516_v60, %v1854_v61  ;;  %v6674_v16 = vld [vmem:[%s10671_s4 + $0x12] ss:$0 sm:$0xff] }
 0x151   : > { %4503 = vst.msk [vmem:[%s5589_s23 + $0x38] sm:$0xff] %vm315_vm0, %v1212_v29  ;;  %v1202_v29 = vor.u32 1.1754944e-38, %v1201_v19  ;;  %v6625_v26 = vld [vmem:[%s10671_s4 + $0xd] ss:$0 sm:$0xff]  ;;  %v1083_v23 = vsel %vm1080_vm8, %v1082_v56, %v1078_v44  ;;  %v1198_v9 = vsel %vm6614_vm9, %v6524_v39, %v1194_v51  ;;  %v2182_v54 = vadd.f32 %v2150_v37, %v2084_v62  ;;  %v6639_v19 = vld [vmem:[%s10671_s4 + $0xe] ss:$0 sm:$0xff] }
 0x152   : > { %1314 = vst.msk [vmem:[#allocation2 + $0xe2] sm:$0xff] %vm315_vm0, %v1220_v27  ;;  %v6644_v21 = vld [vmem:[%s10671_s4 + $0xf] ss:$0 sm:$0xff]  ;;  %v6649_v39 = vld [vmem:[%s10671_s4 + $0x10] ss:$0 sm:$0xff]  ;;  %v1228_v38 = vmul.f32 %v1083_v23, %v6388_v4  ;;  %v1464_v30 = vmul.f32 %v6324_v41, %v1431_v14  ;;  %v1562_v35 = vmul.f32 %v6370_v32, %v1529_v20  ;;  %v2738_v11 = vmul.f32 %v6639_v19, %v6634_v55 }
 0x153   : > { %v1627_v37 = vld [vmem:[#allocation2 + $0xb] sm:$0xff]  ;;  %11054 = vst [vmem:[#allocation16_spill] sm:$0xff] %v6652_v15  ;;  %v1203_v56 = vsel %vm6618_vm10, %v1202_v29, %v1198_v9  ;;  %v2280_v4 = vadd.f32 %v2248_v63, %v2182_v54  ;;  %v6685_v29 = vld [vmem:[%s10671_s4 + $0x13] ss:$0 sm:$0xff]  ;;  %v6690_v23 = vld [vmem:[%s10671_s4 + $0x14] ss:$0 sm:$0xff]  ;;  %v2542_v63 = vmul.f32 %v6601_v42, %v6596_v47  ;;  %v2640_v9 = vmul.f32 %v6625_v26, %v6632_v22 }
 0x154   : > { %11055 = vst [vmem:[#allocation17_spill] sm:$0xff] %v6655_v24  ;;  %v6662_v51 = vld [vmem:[#allocation2 + $0x48] sm:$0xff]  ;;  %v6669_v44 = vld [vmem:[%s10671_s4 + $0x11] ss:$0 sm:$0xff]  ;;  %v1236_v61 = vmul.f32 %v1203_v56, %v6401_v0  ;;  %v6695_v0 = vld [vmem:[%s10671_s4 + $0x15] ss:$0 sm:$0xff]  ;;  %v1660_v36 = vmul.f32 %v6377_v53, %v1627_v37 }
 0x155   : > { %4511 = vst.msk [vmem:[%s5589_s23 + $0x78] sm:$0xff] %vm315_vm0, %v1220_v27  ;;  %v6664_v62 = vld [vmem:[#allocation2 + $0x49] sm:$0xff]  ;;  %v2444_v27 = vmul.f32 %v6582_v57, %v2411_v33  ;;  %v1366_v33 = vmul.f32 %v6164_v46, %v1333_v17  ;;  %v6705_v56 = vld [vmem:[#allocation2 + $0x60] sm:$0xff]  ;;  %v6717_v17 = vld [vmem:[%s10671_s4 + $0x17] ss:$0 sm:$0xff]  ;;  %v2378_v50 = vadd.f32 %v2346_v8, %v2280_v4  ;;  %v2837_v24 = vmul.f32 %v6644_v21, %v6662_v51 }
 0x156   : > { %11056 = vst [vmem:[#allocation18_spill] sm:$0xff] %v6664_v62  ;;  %v6678_v6 = vld [vmem:[#allocation2 + $0x4a] sm:$0xff]  ;;  %v6707_v15 = vld [vmem:[#allocation2 + $0x61] sm:$0xff]  ;;  %v6729_v18 = vmul.f32 %v6649_v39, %v6664_v62  ;;  %v6772_v37 = vmul.f32 %v6717_v17, %v6733_v2 }
 0x157   : > { %11057 = vst [vmem:[#allocation19_spill] sm:$0xff] %v6678_v6  ;;  %v6680_v49 = vld [vmem:[#allocation2 + $0x4b] sm:$0xff]  ;;  %v6738_v20 = vmul.f32 %v6669_v44, %v6678_v6  ;;  %v1496_v4 = vadd.f32 %v1464_v30, %v1366_v33  ;;  %v2476_v62 = vadd.f32 %v2444_v27, %v2378_v50  ;;  %v6755_v6 = vmul.f32 %v6690_v23, %v6705_v56  ;;  %v6764_v30 = vld [vmem:[%s10671_s4 + $0x18] ss:$0 sm:$0xff]  ;;  %v2020_v33 = vld [vmem:[#allocation2 + $0x22] sm:$0xff] }
 0x158   : > { %11058 = vst [vmem:[#allocation20_spill] sm:$0xff] %v6680_v49  ;;  %v6703_v54 = vld [vmem:[#allocation2 + $0x4c] sm:$0xff]  ;;  %v6742_v8 = vmul.f32 %v6674_v16, %v6680_v49  ;;  %v6759_v49 = vmul.f32 %v6695_v0, %v6707_v15  ;;  %v6768_v50 = vmul.f32 %v6712_v12, %v6731_v48  ;;  %v1955_v12 = vmul.f32 %v6535_v59, %v1922_v43  ;;  %v2510_v2 = vld [vmem:[#allocation2 + $0x3a] sm:$0xff] }
 0x159   : > { %11059 = vst [vmem:[#allocation21_spill] sm:$0xff] %v6690_v23  ;;  %v1725_v14 = vld [vmem:[#allocation2 + $0xc] sm:$0xff]  ;;  %v6751_v58 = vmul.f32 %v6685_v29, %v6703_v54  ;;  %v2118_v23 = vld [vmem:[#allocation2 + $0x23] sm:$0xff] }
 0x15a   : > { %11060 = vst [vmem:[#allocation22_spill] sm:$0xff] %v6695_v0  ;;  %v1758_v27 = vmul.f32 %v6340_v45, %v1725_v14  ;;  %v2216_v0 = vld [vmem:[#allocation2 + $0x24] sm:$0xff]  ;;  %v1465_v14 = vmul.f32 %v6324_v41, %v6504_v31  ;;  %v2805_v31 = vld [vmem:[#allocation2 + $0x50] sm:$0xff] }
 0x15b   : > { %1322 = vst.msk [vmem:[#allocation2 + $0x142] sm:$0xff] %vm315_vm0, %v1228_v38 }
 0x15c   : > { %11061 = vst [vmem:[#allocation23_spill] sm:$0xff] %v6703_v54 }
 0x15d   : > { %11062 = vst [vmem:[#allocation24_spill] sm:$0xff] %v6705_v56 }
 0x15e   : > { %11063 = vst [vmem:[#allocation25_spill] sm:$0xff] %v6707_v15  ;;  %v2574_v15 = vadd.f32 %v2542_v63, %v2476_v62  ;;  %v1563_v62 = vmul.f32 %v6370_v32, %v6520_v52  ;;  %v1661_v52 = vmul.f32 %v6377_v53, %v6522_v3 }
 0x15f   : > { %11065 = vst [vmem:[#allocation27_spill] sm:$0xff] %v6717_v17  ;;  %v2608_v17 = vld [vmem:[#allocation2 + $0x3b] sm:$0xff] }
 0x160   : > { %4519 = vst.msk [vmem:[%s5589_s23 + $0xb8] sm:$0xff] %vm315_vm0, %v1228_v38  ;;  %v6744_v38 = vld [vmem:[#allocation2 + $0x64] sm:$0xff]  ;;  %v2672_v63 = vadd.f32 %v2640_v9, %v2574_v15 }
 0x161   : > { %11066 = vst [vmem:[#allocation28_spill] sm:$0xff] %v6731_v48  ;;  %v6777_v56 = vmul.f32 %v6764_v30, %v6744_v38 }
 0x162   : > { %1330 = vst.msk [vmem:[#allocation2 + $0x1a2] sm:$0xff] %vm315_vm0, %v1236_v61  ;;  %v2770_v15 = vadd.f32 %v2738_v11, %v2672_v63  ;;  %v1759_v11 = vmul.f32 %v6340_v45, %v6559_v34 }
 0x163   : > { %11068 = vst [vmem:[#allocation30_spill] sm:$0xff] %v6744_v38  ;;  %v2903_v38 = vld [vmem:[#allocation2 + $0x51] sm:$0xff] }
 0x164   : > { %4527 = vst.msk [vmem:[%s5589_s23 + $0xf8] sm:$0xff] %vm315_vm0, %v1236_v61  ;;  %v1594_v61 = vadd.f32 %v1562_v35, %v1496_v4  ;;  %v1367_v35 = vmul.f32 %v6164_v46, %v6495_v5  ;;  %v2249_v4 = vmul.f32 %v6553_v7, %v2216_v0  ;;  %v3001_v0 = vld [vmem:[#allocation2 + $0x52] sm:$0xff]  ;;  %v2869_v3 = vadd.f32 %v2837_v24, %v2770_v15 }
 0x165   : > { %11069 = vst [vmem:[#allocation31_spill] sm:$0xff] %v6755_v6  ;;  %v2412_v6 = vld [vmem:[#allocation2 + $0x39] sm:$0xff] }
 0x166   : > { %11070 = vst [vmem:[#allocation32_spill] sm:$0xff] %v6759_v49  ;;  %v1857_v49 = vmul.f32 %v6516_v60, %v1824_v28  ;;  %v1692_v48 = vadd.f32 %v1660_v36, %v1594_v61  ;;  %v6790_v28 = vld [vmem:[%s10671_s4 + $0x7] ss:$0 sm:$0xff]  ;;  %v2151_v36 = vmul.f32 %v6509_v40, %v2118_v23  ;;  %v2706_v61 = vld [vmem:[#allocation2 + $0x3c] sm:$0xff]  ;;  %v2445_v9 = vmul.f32 %v6582_v57, %v2412_v6 }
 0x167   : > { %11071 = vst [vmem:[#allocation33_spill] sm:$0xff] %v6764_v30  ;;  %v2053_v43 = vmul.f32 %v6790_v28, %v2020_v33  ;;  %v1497_v30 = vadd.f32 %v1465_v14, %v1367_v35  ;;  %v6803_v23 = vmul.f32 %v6625_v26, %v2608_v17  ;;  %v3099_v33 = vld [vmem:[#allocation2 + $0x53] sm:$0xff]  ;;  %v6813_v6 = vmul.f32 %v6644_v21, %v2805_v31 }
 0x168   : > { %11072 = vst [vmem:[#allocation34_spill] sm:$0xff] %v6768_v50  ;;  %v2314_v50 = vld [vmem:[#allocation2 + $0x38] sm:$0xff]  ;;  %v1790_v46 = vadd.f32 %v1758_v27, %v1692_v48  ;;  %v1989_v17 = vadd.f32 %v5955_v1, %v6031_v10  ;;  %v6821_v14 = vmul.f32 %v6669_v44, %v3001_v0  ;;  %v6824_v63 = vmul.f32 %v6674_v16, %v3099_v33  ;;  %v6833_v1 = vld [vmem:[#allocation2 + $0x90] sm:$0xff] }
 0x169   : > { %11073 = vst [vmem:[#allocation35_spill] sm:$0xff] %v6777_v56  ;;  %v2347_v5 = vmul.f32 %v6568_v25, %v2314_v50  ;;  %v6800_v56 = vmul.f32 %v6601_v42, %v2510_v2  ;;  %v6806_v50 = vmul.f32 %v6639_v19, %v2706_v61  ;;  %v6808_v27 = vld [vmem:[#allocation2 + $0x54] sm:$0xff]  ;;  %v1595_v35 = vadd.f32 %v1563_v62, %v1497_v30 }
 0x16a   : > { %v1889_v48 = vadd.f32 %v1857_v49, %v1790_v46  ;;  %11074 = vst [vmem:[#allocation36_spill] sm:$0xff] %v6808_v27  ;;  %v6816_v2 = vmul.f32 %v6649_v39, %v2903_v38  ;;  %v2967_v34 = vadd.f32 %v6729_v18, %v2869_v3  ;;  %v6829_v24 = vmul.f32 %v6685_v29, %v6808_v27  ;;  %v5106_v62 = vld [vmem:[#allocation2 + $0x31] sm:$0xff] }
 0x16b   : > { %11075 = vst [vmem:[#allocation37_spill] sm:$0xff] %v6824_v63  ;;  %v1693_v30 = vadd.f32 %v1661_v52, %v1595_v35  ;;  %v1956_v46 = vmul.f32 %v5106_v62, %v6535_v59  ;;  %v2087_v15 = vadd.f32 %v6035_v13, %v1989_v17  ;;  %v5107_v63 = vld [vmem:[#allocation2 + $0x3b] sm:$0xff]  ;;  %v6838_v18 = vld [vmem:[#allocation2 + $0x91] sm:$0xff]  ;;  %v2152_v3 = vmul.f32 %v6509_v40, %v6632_v22 }
 0x16c   : > { %v1987_v49 = vadd.f32 %v1955_v12, %v1889_v48  ;;  %11076 = vst [vmem:[#allocation38_spill] sm:$0xff] %v6833_v1  ;;  %v2054_v48 = vmul.f32 %v6790_v28, %v6596_v47  ;;  %v2153_v52 = vmul.f32 %v5107_v63, %v6509_v40  ;;  %v3065_v35 = vadd.f32 %v6738_v20, %v2967_v34  ;;  %v11078_v17 = vld [vmem:[#allocation3_spill] sm:$0xff] }
 0x16d   : > { %v1791_v12 = vadd.f32 %v1759_v11, %v1693_v30  ;;  %11077 = vst [vmem:[#allocation39_spill] sm:$0xff] %v6838_v18  ;;  %v2250_v13 = vmul.f32 %v6553_v7, %v6634_v55  ;;  %v6851_v63 = vld [vmem:[%s10671_s4] ss:$0 sm:$0xff]  ;;  %v11080_v30 = vld [vmem:[#allocation18_spill] sm:$0xff] }
 0x16e   : > { %v2085_v10 = vadd.f32 %v2053_v43, %v1987_v49  ;;  %v2348_v43 = vmul.f32 %v6568_v25, %v6662_v51  ;;  %v2185_v47 = vadd.f32 %v2153_v52, %v2087_v15  ;;  %11079 = vst [vmem:[#allocation3_spill] sm:$0xff] %v6851_v63  ;;  %v1377_v20 = vmul.f32 %v6851_v63, %v6833_v1  ;;  %v11081_v34 = vld [vmem:[#allocation19_spill] sm:$0xff]  ;;  %v11082_v15 = vld [vmem:[#allocation20_spill] sm:$0xff]  ;;  %v6878_v1 = vld [vmem:[#allocation2 + $0x92] sm:$0xff] }
 0x16f   : > { %v1890_v49 = vadd.f32 %v11078_v17, %v1791_v12  ;;  %v3163_v22 = vadd.f32 %v6742_v8, %v3065_v35  ;;  %v6858_v55 = vmul.f32 %v6582_v57, %v11080_v30  ;;  %v6862_v51 = vmul.f32 %v6601_v42, %v11081_v34  ;;  %11083 = vst [vmem:[#allocation18_spill] sm:$0xff] %v6878_v1  ;;  %v11085_v63 = vld [vmem:[#allocation31_spill] sm:$0xff] }
 0x170   : > { %v2183_v11 = vadd.f32 %v2151_v36, %v2085_v10  ;;  %v1475_v36 = vmul.f32 %v6324_v41, %v6838_v18  ;;  %v6868_v10 = vmul.f32 %v6625_v26, %v11082_v15  ;;  %v2251_v12 = vmul.f32 %v6553_v7, %v2706_v61  ;;  %v6880_v41 = vld [vmem:[#allocation2 + $0x93] sm:$0xff] }
 0x171   : > { %v2349_v8 = vmul.f32 %v6568_v25, %v2805_v31  ;;  %v3261_v52 = vadd.f32 %v6751_v58, %v3163_v22  ;;  %v1988_v35 = vadd.f32 %v1956_v46, %v1890_v49  ;;  %v6875_v17 = vmul.f32 %v6639_v19, %v6703_v54  ;;  %11084 = vst [vmem:[#allocation19_spill] sm:$0xff] %v6880_v41  ;;  %v6887_v22 = vld [vmem:[#allocation2 + $0x68] sm:$0xff] }
 0x172   : > { %v2281_v62 = vadd.f32 %v2249_v4, %v2183_v11  ;;  %v2447_v30 = vmul.f32 %v6582_v57, %v2903_v38  ;;  %v2283_v11 = vadd.f32 %v2251_v12, %v2185_v47  ;;  %v2545_v18 = vmul.f32 %v6601_v42, %v3001_v0  ;;  %11086 = vst [vmem:[#allocation31_spill] sm:$0xff] %v6887_v22  ;;  %v6893_v0 = vld [vmem:[#allocation2 + $0x94] sm:$0xff]  ;;  %v11088_v47 = vld [vmem:[#allocation32_spill] sm:$0xff] }
 0x173   : > { %v1507_v61 = vadd.f32 %v1475_v36, %v1377_v20  ;;  %v3360_v31 = vadd.f32 %v11085_v63, %v3261_v52  ;;  %v2086_v15 = vadd.f32 %v2054_v48, %v1988_v35  ;;  %v2643_v58 = vmul.f32 %v6625_v26, %v3099_v33  ;;  %11087 = vst [vmem:[#allocation40_spill] sm:$0xff] %v6893_v0  ;;  %v11089_v20 = vld [vmem:[#allocation24_spill] sm:$0xff]  ;;  %v11090_v36 = vld [vmem:[#allocation25_spill] sm:$0xff]  ;;  %v11094_v35 = vld [vmem:[#allocation34_spill] sm:$0xff] }
 0x174   : > { %v2379_v4 = vadd.f32 %v2347_v5, %v2281_v62  ;;  %v2741_v46 = vmul.f32 %v6639_v19, %v6808_v27  ;;  %v2381_v38 = vadd.f32 %v2349_v8, %v2283_v11  ;;  %v1573_v54 = vmul.f32 %v6370_v32, %v6878_v1  ;;  %v1835_v62 = vld [vmem:[#allocation2 + $0xa8] sm:$0xff]  ;;  %v11095_v11 = vld [vmem:[#allocation21_spill] sm:$0xff] }
 0x175   : > { %v1671_v5 = vmul.f32 %v6377_v53, %v6880_v41  ;;  %v3458_v63 = vadd.f32 %v11088_v47, %v3360_v31  ;;  %v2184_v48 = vadd.f32 %v2152_v3, %v2086_v15  ;;  %v6898_v33 = vmul.f32 %v6644_v21, %v11089_v20  ;;  %v6905_v32 = vld [vmem:[#allocation2 + $0x69] sm:$0xff] }
 0x176   : > { %v2477_v49 = vadd.f32 %v2445_v9, %v2379_v4  ;;  %v6902_v9 = vmul.f32 %v6649_v39, %v11090_v36  ;;  %11091 = vst [vmem:[#allocation32_spill] sm:$0xff] %v6905_v32  ;;  %v6907_v8 = vld [vmem:[#allocation2 + $0x6a] sm:$0xff]  ;;  %v2479_v3 = vadd.f32 %v2447_v30, %v2381_v38  ;;  %v1605_v15 = vadd.f32 %v1573_v54, %v1507_v61  ;;  %v6930_v61 = vld [vmem:[%s10672_s5] ss:$0 sm:$0xff] }
 0x177   : > { %11092 = vst [vmem:[#allocation24_spill] sm:$0xff] %v6907_v8  ;;  %v11093_v53 = vld [vmem:[#allocation28_spill] sm:$0xff]  ;;  %v3556_v4 = vadd.f32 %v11094_v35, %v3458_v63  ;;  %v6916_v31 = vmul.f32 %v11095_v11, %v6887_v22  ;;  %v2282_v47 = vadd.f32 %v2250_v13, %v2184_v48  ;;  %v1868_v54 = vmul.f32 %v6516_v60, %v1835_v62  ;;  %v11098_v13 = vld [vmem:[#allocation22_spill] sm:$0xff]  ;;  %v6951_v35 = vld [vmem:[%s10673_s6] ss:$0 sm:$0xff] }
 0x178   : > { %v2575_v12 = vadd.f32 %v6800_v56, %v2477_v49  ;;  %v6911_v52 = vmul.f32 %v6669_v44, %v11093_v53  ;;  %v1769_v56 = vmul.f32 %v6340_v45, %v6893_v0  ;;  %v6921_v27 = vld [vmem:[#allocation2 + $0x6b] sm:$0xff]  ;;  %v2577_v1 = vadd.f32 %v2545_v18, %v2479_v3  ;;  %v11102_v3 = vld [vmem:[#allocation35_spill] sm:$0xff] }
 0x179   : > { %11096 = vst [vmem:[#allocation34_spill] sm:$0xff] %v6921_v27  ;;  %v6923_v41 = vld [vmem:[#allocation2 + $0x6c] sm:$0xff]  ;;  %v1703_v53 = vadd.f32 %v1671_v5, %v1605_v15  ;;  %v3654_v30 = vadd.f32 %v6772_v37, %v3556_v4  ;;  %v6934_v45 = vmul.f32 %v11098_v13, %v6905_v32  ;;  %v2380_v63 = vadd.f32 %v2348_v43, %v2282_v47  ;;  %v11103_v43 = vld [vmem:[#allocation27_spill] sm:$0xff] }
 0x17a   : > { %v2673_v49 = vadd.f32 %v6803_v23, %v2575_v12  ;;  %11097 = vst [vmem:[#allocation41_spill] sm:$0xff] %v6923_v41  ;;  %v11099_v23 = vld [vmem:[#allocation26_spill] sm:$0xff]  ;;  %v6940_v18 = vld [vmem:[#allocation2 + $0xa9] sm:$0xff]  ;;  %v2675_v48 = vadd.f32 %v2643_v58, %v2577_v1  ;;  %v2840_v37 = vmul.f32 %v6644_v21, %v6887_v22  ;;  %v6955_v4 = vmul.f32 %v11103_v43, %v6921_v27 }
 0x17b   : > { %v6938_v38 = vmul.f32 %v11099_v23, %v6907_v8  ;;  %11100 = vst [vmem:[#allocation22_spill] sm:$0xff] %v6940_v18  ;;  %v1801_v62 = vadd.f32 %v1769_v56, %v1703_v53  ;;  %v6945_v12 = vld [vmem:[#allocation2 + $0xaa] sm:$0xff]  ;;  %v3752_v15 = vadd.f32 %v11102_v3, %v3654_v30  ;;  %v2478_v58 = vadd.f32 %v6858_v55, %v2380_v63 }
 0x17c   : > { %v2771_v5 = vadd.f32 %v6806_v50, %v2673_v49  ;;  %11101 = vst [vmem:[#allocation26_spill] sm:$0xff] %v6945_v12  ;;  %v11104_v50 = vld [vmem:[#allocation33_spill] sm:$0xff]  ;;  %v2773_v56 = vadd.f32 %v2741_v46, %v2675_v48  ;;  %v1966_v30 = vmul.f32 %v6535_v59, %v6940_v18  ;;  %v2938_v0 = vmul.f32 %v6649_v39, %v6905_v32  ;;  %v11108_v48 = vld [vmem:[#allocation30_spill] sm:$0xff] }
 0x17d   : > { %v6959_v1 = vmul.f32 %v11104_v50, %v6923_v41  ;;  %v6962_v53 = vld [vmem:[#allocation2 + $0xab] sm:$0xff]  ;;  %v1900_v49 = vadd.f32 %v1868_v54, %v1801_v62  ;;  %v3788_v3 = vmul.f32 %v6930_v61, %v3752_v15  ;;  %v2576_v22 = vadd.f32 %v6862_v51, %v2478_v58 }
 0x17e   : > { %11105 = vst [vmem:[#allocation35_spill] sm:$0xff] %v6962_v53  ;;  %v2870_v47 = vadd.f32 %v6813_v6, %v2771_v5  ;;  %v2064_v60 = vmul.f32 %v6790_v28, %v6945_v12  ;;  %v2872_v63 = vadd.f32 %v2840_v37, %v2773_v56  ;;  %v2162_v6 = vmul.f32 %v6509_v40, %v6962_v53  ;;  %v11107_v5 = vld [vmem:[#allocation29_spill] sm:$0xff]  ;;  %v2325_v56 = vld [vmem:[#allocation2 + $0xc0] sm:$0xff] }
 0x17f   : > { %v1998_v36 = vadd.f32 %v1966_v30, %v1900_v49  ;;  %v6977_v46 = vadd.f32 %v6951_v35, %v3788_v3  ;;  %v2674_v54 = vadd.f32 %v6868_v10, %v2576_v22  ;;  %v3133_v51 = vmul.f32 %v6674_v16, %v11107_v5  ;;  %v6986_v15 = vld [vmem:[#allocation2 + $0xac] sm:$0xff]  ;;  %v2423_v49 = vld [vmem:[#allocation2 + $0xc1] sm:$0xff] }
 0x180   : > { %v2968_v55 = vadd.f32 %v6816_v2, %v2870_v47  ;;  %v6984_v62 = vmul.f32 %v6685_v29, %v11108_v48  ;;  %11109 = vst [vmem:[#allocation33_spill] sm:$0xff] %v6986_v15  ;;  %v2970_v37 = vadd.f32 %v2938_v0, %v2872_v63  ;;  %v3036_v58 = vmul.f32 %v6669_v44, %v6907_v8  ;;  %v2521_v53 = vld [vmem:[#allocation2 + $0xc2] sm:$0xff]  ;;  %v7000_v63 = vld [vmem:[#allocation2 + $0x79] sm:$0xff]  ;;  %v7007_v8 = vld [vmem:[#allocation2 + $0xf0] sm:$0xff] }
 0x181   : > { %11106 = vst [vmem:[#allocation27_spill] sm:$0xff] %v6977_v46  ;;  %v2096_v47 = vadd.f32 %v2064_v60, %v1998_v36  ;;  %v3856_v10 = vsub.f32 0.0, %v6977_v46  ;;  %v2772_v22 = vadd.f32 %v6875_v17, %v2674_v54  ;;  %v3134_v30 = vmul.f32 %v6674_v16, %v6921_v27  ;;  %v2619_v12 = vld [vmem:[#allocation2 + $0xc3] sm:$0xff] }
 0x182   : > { %v3066_v2 = vadd.f32 %v6821_v14, %v2968_v55  ;;  %v3232_v3 = vmul.f32 %v6685_v29, %v6923_v41  ;;  %v11110_v14 = vld [vmem:[#allocation37_spill] sm:$0xff]  ;;  %v6998_v55 = vld [vmem:[#allocation2 + $0x78] sm:$0xff]  ;;  %11111 = vst [vmem:[#allocation29_spill] sm:$0xff] %v7000_v63  ;;  %v3068_v60 = vadd.f32 %v3036_v58, %v2970_v37  ;;  %v2260_v18 = vmul.f32 %v6553_v7, %v6986_v15  ;;  %v7012_v46 = vld [vmem:[#allocation2 + $0x80] sm:$0xff] }
 0x183   : > { %v2194_v36 = vadd.f32 %v2162_v6, %v2096_v47  ;;  %v3888_v17 = vmul.f32 1.442695, %v3856_v10  ;;  %v2871_v54 = vadd.f32 %v6898_v33, %v2772_v22  ;;  %v2358_v27 = vmul.f32 %v6568_v25, %v2325_v56  ;;  %11112 = vst [vmem:[#allocation30_spill] sm:$0xff] %v7007_v8  ;;  %v2717_v58 = vld [vmem:[#allocation2 + $0xc4] sm:$0xff] }
 0x184   : > { %v3164_v0 = vadd.f32 %v11110_v14, %v3066_v2  ;;  %v2456_v41 = vmul.f32 %v6582_v57, %v2423_v49  ;;  %v7010_v14 = vld [vmem:[#allocation2 + $0x7a] sm:$0xff]  ;;  %v3166_v32 = vadd.f32 %v3134_v30, %v3068_v60  ;;  %11114 = vst [vmem:[#allocation42_spill] sm:$0xff] %v7012_v46  ;;  %v2554_v6 = vmul.f32 %v6601_v42, %v2521_v53  ;;  %v7029_v60 = vld [vmem:[#allocation2 + $0x82] sm:$0xff] }
 0x185   : > { %11113 = vst [vmem:[#allocation37_spill] sm:$0xff] %v7010_v14  ;;  %v2652_v37 = vmul.f32 %v6625_v26, %v2619_v12  ;;  %4968 = vpow2.f32 %v3888_v17  ;;  %v2969_v33 = vadd.f32 %v6902_v9, %v2871_v54  ;;  %v3330_v47 = vmul.f32 %v11095_v11, %v6998_v55  ;;  %v2816_v12 = vld [vmem:[#allocation2 + $0xd8] sm:$0xff] }
 0x186   : > { %v3262_v2 = vadd.f32 %v6829_v24, %v3164_v0  ;;  %v3428_v56 = vmul.f32 %v11098_v13, %v7000_v63  ;;  %v7021_v24 = vld [vmem:[#allocation2 + $0x81] sm:$0xff]  ;;  %v3264_v10 = vadd.f32 %v3232_v3, %v3166_v32  ;;  %v3331_v53 = vmul.f32 %v11095_v11, %v7012_v46  ;;  %v2914_v30 = vld [vmem:[#allocation2 + $0xd9] sm:$0xff] }
 0x187   : > { %v2292_v22 = vadd.f32 %v2260_v18, %v2194_v36  ;;  %v3067_v0 = vadd.f32 %v6911_v52, %v2969_v33  ;;  %v3526_v9 = vmul.f32 %v11099_v23, %v7010_v14  ;;  %v2750_v17 = vmul.f32 %v6639_v19, %v2717_v58  ;;  %v3012_v36 = vld [vmem:[#allocation2 + $0xda] sm:$0xff]  ;;  %v11116_v58 = vld [vmem:[#allocation5_spill] sm:$0xff]  ;;  %v11117_v46 = vld [vmem:[#allocation4_spill] sm:$0xff] }
 0x188   : > { %v3361_v49 = vadd.f32 %v6916_v31, %v3262_v2  ;;  %v7034_v54 = vmul.f32 %v11095_v11, %v7007_v8  ;;  %v3363_v31 = vadd.f32 %v3331_v53, %v3264_v10  ;;  %v3429_v18 = vmul.f32 %v11098_v13, %v7021_v24  ;;  %v7039_v2 = vld [vmem:[#allocation2 + $0x7b] sm:$0xff]  ;;  %v7051_v53 = vld [vmem:[#allocation2 + $0x84] sm:$0xff] }
 0x189   : > { %v2390_v3 = vadd.f32 %v2358_v27, %v2292_v22  ;;  %v3165_v52 = vadd.f32 %v3133_v51, %v3067_v0  ;;  %11115 = vst [vmem:[#allocation43_spill] sm:$0xff] %v7039_v2  ;;  %v2849_v33 = vmul.f32 %v6644_v21, %v2816_v12  ;;  %v2947_v15 = vmul.f32 %v6649_v39, %v2914_v30  ;;  %v11120_v12 = vld [vmem:[#allocation6_spill] sm:$0xff]  ;;  %v5109_v0 = vld [vmem:[#allocation2 + $0x49] sm:$0xff] }
 0x18a   : > { %v3459_v32 = vadd.f32 %v6934_v45, %v3361_v49  ;;  %v1793_v14 = vadd.f32 %v11117_v46, %v11116_v58  ;;  %v3461_v11 = vadd.f32 %v3429_v18, %v3363_v31  ;;  %v3527_v45 = vmul.f32 %v11099_v23, %v7029_v60  ;;  %v7048_v49 = vld [vmem:[#allocation2 + $0x83] sm:$0xff]  ;;  %11119 = vst [vmem:[#allocation4_spill] sm:$0xff] %v7051_v53 }
 0x18b   : > { %11118 = vst [vmem:[#allocation5_spill] sm:$0xff] %v7048_v49  ;;  %v2488_v27 = vadd.f32 %v2456_v41, %v2390_v3  ;;  %v4969_v10 = vpop.eup %4968  ;;  %v3263_v51 = vadd.f32 %v6984_v62, %v3165_v52  ;;  %v3045_v22 = vmul.f32 %v6669_v44, %v3012_v36  ;;  %v1958_v46 = vmul.f32 %v5109_v0, %v6535_v59  ;;  %v7061_v3 = vld [vmem:[#allocation2 + $0x7c] sm:$0xff] }
 0x18c   : > { %v3557_v8 = vadd.f32 %v6938_v38, %v3459_v32  ;;  %v1892_v30 = vadd.f32 %v11120_v12, %v1793_v14  ;;  %v7056_v38 = vadd.f32 1.0, %v4969_v10  ;;  %v3624_v31 = vmul.f32 %v11103_v43, %v7039_v2  ;;  %11121 = vst [vmem:[#allocation6_spill] sm:$0xff] %v7061_v3  ;;  %v3110_v52 = vld [vmem:[#allocation2 + $0xdb] sm:$0xff]  ;;  %v7065_v14 = vld [vmem:[#allocation2 + $0xf1] sm:$0xff] }
 0x18d   : > { %v3559_v41 = vadd.f32 %v3527_v45, %v3461_v11  ;;  %v3362_v18 = vadd.f32 %v3330_v47, %v3263_v51  ;;  %v3625_v62 = vmul.f32 %v11103_v43, %v7048_v49  ;;  %v2586_v36 = vadd.f32 %v2554_v6, %v2488_v27  ;;  %11122 = vst [vmem:[#allocation44_spill] sm:$0xff] %v7065_v14  ;;  %v11123_v11 = vld [vmem:[#allocation20_spill] sm:$0xff]  ;;  %v3208_v49 = vld [vmem:[#allocation2 + $0xdc] sm:$0xff] }
 0x18e   : > { %v3655_v32 = vadd.f32 %v6955_v4, %v3557_v8  ;;  %v1990_v58 = vadd.f32 %v1958_v46, %v1892_v30  ;;  %4970 = vrcp.f32 %v7056_v38  ;;  %v3723_v8 = vmul.f32 %v11104_v50, %v7051_v53 }
 0x18f   : > { %v2056_v4 = vmul.f32 %v6790_v28, %v11081_v34  ;;  %v2154_v47 = vmul.f32 %v6509_v40, %v11123_v11  ;;  %v3460_v10 = vadd.f32 %v3428_v56, %v3362_v18  ;;  %v3657_v51 = vadd.f32 %v3625_v62, %v3559_v41 }
 0x190   : > { %v3753_v45 = vadd.f32 %v6959_v1, %v3655_v32  ;;  %v2684_v6 = vadd.f32 %v2652_v37, %v2586_v36  ;;  %v3722_v27 = vmul.f32 %v11104_v50, %v7061_v3  ;;  %v3143_v12 = vmul.f32 %v6674_v16, %v3110_v52  ;;  %v11124_v37 = vld [vmem:[#allocation23_spill] sm:$0xff] }
 0x191   : > { %v7080_v30 = vmul.f32 %v11098_v13, %v7065_v14  ;;  %v2088_v0 = vadd.f32 %v2056_v4, %v1990_v58  ;;  %v3558_v46 = vadd.f32 %v3526_v9, %v3460_v10  ;;  %v3755_v53 = vadd.f32 %v3723_v8, %v3657_v51  ;;  %v11125_v8 = vld [vmem:[#allocation25_spill] sm:$0xff] }
 0x192   : > { %v3789_v34 = vmul.f32 %v6930_v61, %v3753_v45  ;;  %v2782_v11 = vadd.f32 %v2750_v17, %v2684_v6  ;;  %v3995_v1 = vand.u32 2147483648, %v7056_v38  ;;  %v2252_v32 = vmul.f32 %v6553_v7, %v11124_v37 }
 0x193   : > { %v2186_v56 = vadd.f32 %v2154_v47, %v2088_v0  ;;  %v2350_v41 = vmul.f32 %v6568_v25, %v11089_v20  ;;  %v3656_v62 = vadd.f32 %v3624_v31, %v3558_v46  ;;  %v3791_v36 = vmul.f32 %v6930_v61, %v3755_v53 }
 0x194   : > { %v7089_v18 = vadd.f32 %v6951_v35, %v3789_v34  ;;  %v2881_v52 = vadd.f32 %v2849_v33, %v2782_v11  ;;  %v4971_v9 = vpop.eup %4970  ;;  %vm3989_vm0 = vweird.f32 %v7056_v38  ;;  %v3241_v17 = vmul.f32 %v6685_v29, %v3208_v49  ;;  %v11126_v34 = vld [vmem:[#allocation28_spill] sm:$0xff] }
 0x195   : > { %v2284_v58 = vadd.f32 %v2252_v32, %v2186_v56  ;;  %v2448_v4 = vmul.f32 %v6582_v57, %v11125_v8  ;;  %v3985_v47 = vmul.f32 %v4971_v9, %v7056_v38  ;;  %v3993_v20 = vand.u32 2147483647, %v7056_v38 }
 0x196   : > { %v3857_v45 = vsub.f32 0.0, %v7089_v18  ;;  %v3754_v10 = vadd.f32 %v3722_v27, %v3656_v62  ;;  %v3996_v31 = vor.u32 1.1754944e-38, %v3995_v1  ;;  %v7100_v53 = vadd.f32 %v6951_v35, %v3791_v36  ;;  %v7108_v1 = vld [vmem:[#allocation2 + $0x98] sm:$0xff] }
 0x197   : > { %v2979_v33 = vadd.f32 %v2947_v15, %v2881_v52  ;;  %v2382_v51 = vadd.f32 %v2350_v41, %v2284_v58  ;;  %v3986_v6 = vsub.f32 1.0, %v3985_v47  ;;  %v2546_v46 = vmul.f32 %v6601_v42, %v11126_v34  ;;  %v7113_v41 = vld [vmem:[#allocation2 + $0x99] sm:$0xff]  ;;  %v2050_v34 = vld [vmem:[#allocation2 + $0x18a] sm:$0xff] }
 0x198   : > { %v3890_v0 = vmul.f32 1.442695, %v3857_v45  ;;  %v3790_v49 = vmul.f32 %v6930_v61, %v3754_v10  ;;  %v3859_v11 = vsub.f32 0.0, %v7100_v53  ;;  %v2644_v27 = vmul.f32 %v6625_v26, %v11107_v5  ;;  %v7117_v58 = vld [vmem:[#allocation2 + $0x9a] sm:$0xff]  ;;  %v2049_v10 = vld [vmem:[#allocation2 + $0x182] sm:$0xff] }
 0x199   : > { %v3077_v56 = vadd.f32 %v3045_v22, %v2979_v33  ;;  %v2480_v37 = vadd.f32 %v2448_v4, %v2382_v51  ;;  %v3987_v32 = vmul.f32 %v4971_v9, %v3986_v6  ;;  %vm3990_vm11 = vweird.f32 %v4971_v9  ;;  %v11127_v47 = vld [vmem:[#allocation3_spill] sm:$0xff] }
 0x19a   : > { %4972 = vpow2.f32 %v3890_v0  ;;  %v7111_v15 = vadd.f32 %v6951_v35, %v3790_v49  ;;  %v3894_v62 = vmul.f32 1.442695, %v3859_v11  ;;  %v2742_v22 = vmul.f32 %v6639_v19, %v11108_v48  ;;  %vm3991_vm2 = vmor %vm3989_vm0, %vm3990_vm11  ;;  %v7129_v48 = vld [vmem:[%s10671_s4 + $0x1] ss:$0 sm:$0xff]  ;;  %v7136_v49 = vld [vmem:[%s10671_s4 + $0x2] ss:$0 sm:$0xff] }
 0x19b   : > { %v3175_v36 = vadd.f32 %v3143_v12, %v3077_v56  ;;  %v2578_v52 = vadd.f32 %v2546_v46, %v2480_v37  ;;  %v3988_v8 = vadd.f32 %v4971_v9, %v3987_v32  ;;  %v2841_v4 = vmul.f32 %v6644_v21, %v6998_v55  ;;  %11128 = vst [vmem:[#allocation20_spill] sm:$0xff] %v7136_v49  ;;  %v7141_v56 = vld [vmem:[#allocation2 + $0xf2] sm:$0xff] }
 0x19c   : > { %v3858_v5 = vsub.f32 0.0, %v7111_v15  ;;  %v1378_v45 = vmul.f32 %v11127_v47, %v7108_v1  ;;  %4974 = vpow2.f32 %v3894_v62  ;;  %v1476_v51 = vmul.f32 %v7129_v48, %v7113_v41  ;;  %11129 = vst [vmem:[#allocation23_spill] sm:$0xff] %v7141_v56  ;;  %v11131_v32 = vld [vmem:[#allocation14_spill] sm:$0xff] }
 0x19d   : > { %v3273_v12 = vadd.f32 %v3241_v17, %v3175_v36  ;;  %v2676_v33 = vadd.f32 %v2644_v27, %v2578_v52  ;;  %v3992_v6 = vsel %vm3991_vm2, %v4971_v9, %v3988_v8  ;;  %vm3994_vm12 = vcmp.eq.f32.partialorder %v3993_v20, 8.507059e+37  ;;  %v1952_v17 = vld [vmem:[#allocation2 + $0x189] sm:$0xff]  ;;  %v11134_v52 = vld [vmem:[#allocation27_spill] sm:$0xff] }
 0x19e   : > { %v3892_v0 = vmul.f32 1.442695, %v3858_v5  ;;  %v1574_v38 = vmul.f32 %v7136_v49, %v7117_v58  ;;  %v3997_v46 = vsel %vm3994_vm12, %v3996_v31, %v3992_v6  ;;  %v1508_v27 = vadd.f32 %v1476_v51, %v1378_v45  ;;  %v11130_v20 = vld [vmem:[#allocation12_spill] sm:$0xff]  ;;  %v7151_v5 = vld [vmem:[#allocation2 + $0xf3] sm:$0xff]  ;;  %v7153_v31 = vld [vmem:[#allocation2 + $0x9b] sm:$0xff] }
 0x19f   : > { %v3372_v11 = vadd.f32 %v7034_v54, %v3273_v12  ;;  %v2774_v37 = vadd.f32 %v2742_v22, %v2676_v33  ;;  %v7145_v62 = vadd.f32 %v11131_v32, %v11130_v20  ;;  %v7148_v36 = vmul.f32 %v6790_v28, %v2049_v10  ;;  %11135 = vst [vmem:[#allocation3_spill] sm:$0xff] %v7151_v5  ;;  %v7158_v45 = vld [vmem:[#allocation2 + $0xf4] sm:$0xff]  ;;  %v7189_v20 = vld [vmem:[#allocation2 + $0x9c] sm:$0xff]  ;;  %v2326_v49 = vld [vmem:[#allocation2 + $0xc8] sm:$0xff] }
 0x1a0   : > { %v4973_v9 = vpop.eup %4972  ;;  %v4464_v8 = vmul.f32 %v3997_v46, %v11134_v52  ;;  %4976 = vpow2.f32 %v3892_v0  ;;  %11136 = vst [vmem:[#allocation12_spill] sm:$0xff] %v7153_v31  ;;  %v1606_v33 = vadd.f32 %v1574_v38, %v1508_v27  ;;  %v7161_v51 = vmul.f32 %v6535_v59, %v1952_v17  ;;  %v11140_v46 = vld [vmem:[#allocation15_spill] sm:$0xff]  ;;  %v1836_v32 = vld [vmem:[#allocation2 + $0xb0] sm:$0xff] }
 0x1a1   : > { %11132 = vst [vmem:[#allocation25_spill] sm:$0xff] %v7145_v62  ;;  %v7155_v54 = vadd.f32 1.0, %v4973_v9  ;;  %v3470_v22 = vadd.f32 %v7080_v30, %v3372_v11  ;;  %v2873_v12 = vadd.f32 %v2841_v4, %v2774_v37  ;;  %v7164_v10 = vmul.f32 %v6790_v28, %v2050_v34  ;;  %v11141_v11 = vld [vmem:[#allocation17_spill] sm:$0xff]  ;;  %v7181_v17 = vld [vmem:[%s10671_s4 + $0x3] ss:$0 sm:$0xff] }
 0x1a2   : > { %11133 = vst [vmem:[#allocation28_spill] sm:$0xff] %v7148_v36  ;;  %4560 = vrot.lane.b32.xlu0 %v4464_v8, %s5231_s17  ;;  %v3536_v6 = vmul.f32 %v11099_v23, %v7141_v56  ;;  %v2939_v0 = vmul.f32 %v6649_v39, %v7000_v63  ;;  %v4975_v30 = vpop.eup %4974  ;;  %v7173_v4 = vadd.f32 %v11141_v11, %v11140_v46  ;;  %v11145_v52 = vld [vmem:[#allocation37_spill] sm:$0xff]  ;;  %v11146_v11 = vld [vmem:[#allocation38_spill] sm:$0xff] }
 0x1a3   : > { %11137 = vst [vmem:[#allocation14_spill] sm:$0xff] %v7158_v45  ;;  %4978 = vrcp.f32 %v7155_v54  ;;  %v3634_v38 = vmul.f32 %v11103_v43, %v7151_v5  ;;  %v1672_v34 = vmul.f32 %v7181_v17, %v7153_v31  ;;  %v7185_v37 = vadd.f32 1.0, %v4975_v30  ;;  %v1934_v36 = vld [vmem:[#allocation2 + $0xb1] sm:$0xff] }
 0x1a4   : > { %11138 = vst [vmem:[#allocation27_spill] sm:$0xff] %v7161_v51  ;;  %v3568_v39 = vadd.f32 %v3536_v6, %v3470_v22  ;;  %v3732_v27 = vmul.f32 %v11104_v50, %v7158_v45  ;;  %v2971_v9 = vadd.f32 %v2939_v0, %v2873_v12  ;;  %v3037_v8 = vmul.f32 %v6669_v44, %v11145_v52  ;;  %v11148_v12 = vld [vmem:[#allocation39_spill] sm:$0xff]  ;;  %v11149_v0 = vld [vmem:[#allocation18_spill] sm:$0xff]  ;;  %v11151_v45 = vld [vmem:[#allocation13_spill] sm:$0xff] }
 0x1a5   : > { %11139 = vst [vmem:[#allocation45_spill] sm:$0xff] %v7164_v10  ;;  %v3135_v46 = vmul.f32 %v6674_v16, %v7039_v2  ;;  %v11147_v10 = vld [vmem:[#allocation21_spill] sm:$0xff]  ;;  %4980 = vrcp.f32 %v7185_v37  ;;  %v3233_v22 = vmul.f32 %v6685_v29, %v7061_v3  ;;  %v7202_v6 = vmul.f32 %v11098_v13, %v11148_v12  ;;  %v11152_v2 = vld [vmem:[#allocation19_spill] sm:$0xff] }
 0x1a6   : > { %11142 = vst [vmem:[#allocation15_spill] sm:$0xff] %v7173_v4  ;;  %v3332_v51 = vmul.f32 %v11147_v10, %v11146_v11  ;;  %v1704_v4 = vadd.f32 %v1672_v34, %v1606_v33  ;;  %v4977_v30 = vpop.eup %4976  ;;  %v7206_v44 = vmul.f32 %v11099_v23, %v11149_v0  ;;  %v3666_v62 = vadd.f32 %v3634_v38, %v3568_v39  ;;  %v7213_v33 = vld [vmem:[%s10671_s4 + $0x4] ss:$0 sm:$0xff]  ;;  %v2032_v5 = vld [vmem:[#allocation2 + $0xb2] sm:$0xff] }
 0x1a7   : > { %11143 = vst [vmem:[#allocation17_spill] sm:$0xff] %v7181_v17  ;;  %v7208_v16 = vadd.f32 1.0, %v4977_v30  ;;  %v1770_v34 = vmul.f32 %v7213_v33, %v7189_v20  ;;  %v1869_v3 = vmul.f32 %v11151_v45, %v1836_v32  ;;  %v4008_v56 = vand.u32 2147483647, %v7155_v54  ;;  %v11153_v30 = vld [vmem:[#allocation40_spill] sm:$0xff]  ;;  %v2130_v39 = vld [vmem:[#allocation2 + $0xb3] sm:$0xff] }
 0x1a8   : > { %11144 = vst [vmem:[#allocation46_spill] sm:$0xff] %v7189_v20  ;;  %v3069_v14 = vadd.f32 %v3037_v8, %v2971_v9  ;;  %v7221_v0 = vmul.f32 %v11103_v43, %v11152_v2  ;;  %v7225_v38 = vmul.f32 %v11104_v50, %v11153_v30  ;;  %v2228_v52 = vld [vmem:[#allocation2 + $0xb4] sm:$0xff]  ;;  %v4010_v11 = vand.u32 2147483648, %v7155_v54 }
 0x1a9   : > { %11150 = vst [vmem:[#allocation21_spill] sm:$0xff] %v7213_v33  ;;  %v4979_v12 = vpop.eup %4978  ;;  %4982 = vrcp.f32 %v7208_v16  ;;  %v1802_v45 = vadd.f32 %v1770_v34, %v1704_v4  ;;  %v1967_v32 = vmul.f32 %v6535_v59, %v1934_v36  ;;  %v3764_v8 = vadd.f32 %v3732_v27, %v3666_v62  ;;  %v2424_v62 = vld [vmem:[#allocation2 + $0xc9] sm:$0xff] }
 0x1aa   : > { %v4000_v9 = vmul.f32 %v4979_v12, %v7155_v54  ;;  %v3167_v33 = vadd.f32 %v3135_v46, %v3069_v14  ;;  %v2065_v2 = vmul.f32 %v6790_v28, %v2032_v5  ;;  %vm4004_vm13 = vweird.f32 %v7155_v54 }
 0x1ab   : > { %v1901_v30 = vadd.f32 %v1869_v3, %v1802_v45  ;;  %v2163_v63 = vmul.f32 %v6509_v40, %v2130_v39  ;;  %v2261_v17 = vmul.f32 %v6553_v7, %v2228_v52  ;;  %v7235_v20 = vpop.eup %4980  ;;  %vm7237_vm14 = vcmp.eq.f32.partialorder %v4008_v56, 8.507059e+37 }
 0x1ac   : > { %v4001_v31 = vsub.f32 1.0, %v4000_v9  ;;  %v4040_v59 = vand.u32 2147483648, %v7185_v37  ;;  %v3800_v14 = vmul.f32 %v6930_v61, %v3764_v8  ;;  %v4011_v36 = vor.u32 1.1754944e-38, %v4010_v11  ;;  %v11157_v8 = vld [vmem:[#allocation7_spill] sm:$0xff] }
 0x1ad   : > { %v4030_v3 = vmul.f32 %v7235_v20, %v7185_v37  ;;  %v3265_v40 = vadd.f32 %v3233_v22, %v3167_v33  ;;  %v1999_v5 = vadd.f32 %v1967_v32, %v1901_v30  ;;  %vm4005_vm15 = vweird.f32 %v4979_v12  ;;  %v11156_v32 = vld [vmem:[#allocation8_spill] sm:$0xff] }
 0x1ae   : > { %v4002_v7 = vmul.f32 %v4979_v12, %v4001_v31  ;;  %v7246_v27 = vadd.f32 %v6951_v35, %v3800_v14  ;;  %v2359_v56 = vmul.f32 %v6568_v25, %v2326_v49  ;;  %v4038_v34 = vand.u32 2147483647, %v7185_v37  ;;  %vm4006_vm3 = vmor %vm4004_vm13, %vm4005_vm15 }
 0x1af   : > { %v4983_v52 = vpop.eup %4982  ;;  %v4031_v46 = vsub.f32 1.0, %v4030_v3  ;;  %v2097_v39 = vadd.f32 %v2065_v2, %v1999_v5  ;;  %v2457_v45 = vmul.f32 %v6582_v57, %v2424_v62  ;;  %vm4034_vm1 = vweird.f32 %v7185_v37  ;;  %v2522_v3 = vld [vmem:[#allocation2 + $0xca] sm:$0xff]  ;;  %v7308_v37 = vld [vmem:[#allocation2 + $0xfc] sm:$0xff] }
 0x1b0   : > { %v4003_v11 = vadd.f32 %v4979_v12, %v4002_v7  ;;  %v4015_v9 = vmul.f32 %v4983_v52, %v7208_v16  ;;  %v7253_v22 = vor.u32 1.1754944e-38, %v4040_v59  ;;  %v3868_v31 = vsub.f32 0.0, %v7246_v27  ;;  %11166 = vst [vmem:[#allocation8_spill] sm:$0xff] %v7308_v37 }
 0x1b1   : > { %v4023_v25 = vand.u32 2147483647, %v7208_v16  ;;  %v3364_v49 = vadd.f32 %v3332_v51, %v3265_v40  ;;  %v2195_v33 = vadd.f32 %v2163_v63, %v2097_v39  ;;  %v1991_v2 = vadd.f32 %v11157_v8, %v11156_v32  ;;  %v2718_v39 = vld [vmem:[#allocation2 + $0xcc] sm:$0xff]  ;;  %v7287_v32 = vld [vmem:[#allocation2 + $0xf8] sm:$0xff]  ;;  %v7359_v40 = vld [vmem:[%s10671_s4 + $0xb] ss:$0 sm:$0xff] }
 0x1b2   : > { %v4007_v57 = vsel %vm4006_vm3, %v4979_v12, %v4003_v11  ;;  %v4016_v30 = vsub.f32 1.0, %v4015_v9  ;;  %v4032_v14 = vmul.f32 %v7235_v20, %v4031_v46  ;;  %v3912_v62 = vmul.f32 1.442695, %v3868_v31  ;;  %v11160_v11 = vld [vmem:[#allocation9_spill] sm:$0xff]  ;;  %v7289_v8 = vld [vmem:[#allocation2 + $0xf9] sm:$0xff] }
 0x1b3   : > { %v4012_v59 = vsel %vm7237_vm14, %v4011_v36, %v4007_v57  ;;  %v4025_v5 = vand.u32 2147483648, %v7208_v16  ;;  %v3462_v54 = vadd.f32 %v7202_v6, %v3364_v49  ;;  %v2293_v7 = vadd.f32 %v2261_v17, %v2195_v33  ;;  %v2620_v36 = vld [vmem:[#allocation2 + $0xcb] sm:$0xff]  ;;  %11161 = vst [vmem:[#allocation13_spill] sm:$0xff] %v7289_v8 }
 0x1b4   : > { %v4465_v51 = vmul.f32 %v4012_v59, %v7089_v18  ;;  %v4017_v63 = vmul.f32 %v4983_v52, %v4016_v30  ;;  %vm4020_vm4 = vweird.f32 %v4983_v52  ;;  %vm7267_vm5 = vcmp.eq.f32.partialorder %v4038_v34, 8.507059e+37  ;;  %v5114_v34 = vld [vmem:[#allocation2 + $0x53] sm:$0xff] }
 0x1b5   : > { %4984 = vpow2.f32 %v3912_v62  ;;  %v3560_v12 = vadd.f32 %v7206_v44, %v3462_v54  ;;  %v2391_v46 = vadd.f32 %v2359_v56, %v2293_v7  ;;  %v2555_v4 = vmul.f32 %v6601_v42, %v2522_v3  ;;  %v7282_v42 = vld [vmem:[%s10671_s4 + $0x8] ss:$0 sm:$0xff]  ;;  %v7306_v62 = vld [vmem:[#allocation2 + $0xfb] sm:$0xff] }
 0x1b6   : > { %v2089_v9 = vadd.f32 %v11160_v11, %v1991_v2  ;;  %4562 = vrot.lane.b32.xlu0 %v4465_v51, %s5231_s17  ;;  %v4018_v17 = vadd.f32 %v4983_v52, %v4017_v63  ;;  %vm4019_vm6 = vweird.f32 %v7208_v16  ;;  %v4033_v18 = vadd.f32 %v7235_v20, %v4032_v14  ;;  %v2817_v2 = vld [vmem:[#allocation2 + $0xe0] sm:$0xff]  ;;  %11165 = vst [vmem:[#allocation40_spill] sm:$0xff] %v7306_v62  ;;  %v11167_v3 = vld [vmem:[#allocation36_spill] sm:$0xff] }
 0x1b7   : > { %vm4035_vm7 = vweird.f32 %v7235_v20  ;;  %vm4021_vm8 = vmor %vm4019_vm6, %vm4020_vm4  ;;  %v4026_v6 = vor.u32 1.1754944e-38, %v4025_v5  ;;  %v3658_v44 = vadd.f32 %v7221_v0, %v3560_v12  ;;  %v2489_v56 = vadd.f32 %v2457_v45, %v2391_v46  ;;  %v11168_v5 = vld [vmem:[#allocation31_spill] sm:$0xff] }
 0x1b8   : > { %v2155_v31 = vmul.f32 %v7282_v42, %v5114_v34  ;;  %v4022_v49 = vsel %vm4021_vm8, %v4983_v52, %v4018_v17  ;;  %vm4024_vm9 = vcmp.eq.f32.partialorder %v4023_v25, 8.507059e+37  ;;  %v2653_v16 = vmul.f32 %v6625_v26, %v2620_v36  ;;  %vm7295_vm10 = vmor %vm4034_vm1, %vm4035_vm7  ;;  %v7300_v26 = vld [vmem:[#allocation2 + $0xfa] sm:$0xff]  ;;  %v3111_v36 = vld [vmem:[#allocation2 + $0xe3] sm:$0xff] }
 0x1b9   : > { %v2751_v33 = vmul.f32 %v6639_v19, %v2718_v39  ;;  %v4027_v0 = vsel %vm4024_vm9, %v4026_v6, %v4022_v49  ;;  %v3756_v52 = vadd.f32 %v7225_v38, %v3658_v44  ;;  %v2587_v25 = vadd.f32 %v2555_v4, %v2489_v56  ;;  %11164 = vst [vmem:[#allocation19_spill] sm:$0xff] %v7300_v26  ;;  %v7313_v38 = vld [vmem:[%s10671_s4 + $0x9] ss:$0 sm:$0xff]  ;;  %v2915_v63 = vld [vmem:[#allocation2 + $0xe1] sm:$0xff]  ;;  %v7372_v34 = vld [vmem:[%s10671_s4 + $0x11] ss:$0 sm:$0xff] }
 0x1ba   : > { %v2187_v19 = vadd.f32 %v2155_v31, %v2089_v9  ;;  %v4466_v30 = vmul.f32 %v4027_v0, %v7111_v15  ;;  %v4037_v14 = vsel %vm7295_vm10, %v7235_v20, %v4033_v18  ;;  %v2253_v59 = vmul.f32 %v7313_v38, %v11167_v3  ;;  %v7320_v15 = vld [vmem:[%s10671_s4 + $0xa] ss:$0 sm:$0xff]  ;;  %v3013_v4 = vld [vmem:[#allocation2 + $0xe2] sm:$0xff]  ;;  %v7378_v49 = vld [vmem:[%s10671_s4 + $0x12] ss:$0 sm:$0xff] }
 0x1bb   : > { %v4985_v57 = vpop.eup %4984  ;;  %v2351_v20 = vmul.f32 %v7320_v15, %v11168_v5  ;;  %v3792_v7 = vmul.f32 %v6930_v61, %v3756_v52  ;;  %v2685_v51 = vadd.f32 %v2653_v16, %v2587_v25  ;;  %v7329_v12 = vmul.f32 %v11147_v10, %v7287_v32  ;;  %v3209_v39 = vld [vmem:[#allocation2 + $0xe4] sm:$0xff]  ;;  %v7386_v25 = vld [vmem:[%s10671_s4 + $0xc] ss:$0 sm:$0xff]  ;;  %v11172_v5 = vld [vmem:[#allocation41_spill] sm:$0xff] }
 0x1bc   : > { %v7324_v54 = vadd.f32 1.0, %v4985_v57  ;;  %4564 = vrot.lane.b32.xlu1 %v4466_v30, %s5231_s17  ;;  %v2850_v46 = vmul.f32 %v6644_v21, %v2817_v2  ;;  %v7335_v11 = vmul.f32 %v11098_v13, %v7289_v8  ;;  %v7339_v9 = vmul.f32 %v11099_v23, %v7300_v26  ;;  %v1829_v56 = vld [vmem:[#allocation2 + $0x60] sm:$0xff]  ;;  %v11170_v2 = vld [vmem:[#allocation24_spill] sm:$0xff] }
 0x1bd   : > { %v2285_v17 = vadd.f32 %v2253_v59, %v2187_v19  ;;  %v4042_v10 = vsel %vm7267_vm5, %v7253_v22, %v4037_v14  ;;  %v7347_v21 = vmul.f32 %v11103_v43, %v7306_v62  ;;  %v7351_v18 = vmul.f32 %v11104_v50, %v7308_v37  ;;  %v11169_v22 = vld [vmem:[#allocation32_spill] sm:$0xff]  ;;  %v7366_v43 = vld [vmem:[%s10671_s4 + $0x10] ss:$0 sm:$0xff]  ;;  %v7570_v62 = vld [vmem:[%s10671_s4 + $0x7] ss:$0 sm:$0xff] }
 0x1be   : > { %4986 = vrcp.f32 %v7324_v54  ;;  %v7354_v13 = vadd.f32 %v6951_v35, %v3792_v7  ;;  %v2783_v23 = vadd.f32 %v2751_v33, %v2685_v51  ;;  %v2449_v44 = vmul.f32 %v7359_v40, %v11169_v22  ;;  %v1927_v57 = vld [vmem:[#allocation2 + $0x61] sm:$0xff]  ;;  %v7394_v14 = vld [vmem:[%s10671_s4 + $0xd] ss:$0 sm:$0xff]  ;;  %v7401_v59 = vld [vmem:[%s10671_s4 + $0xe] ss:$0 sm:$0xff] }
 0x1bf   : > { %v2383_v6 = vadd.f32 %v2351_v20, %v2285_v17  ;;  %v2948_v50 = vmul.f32 %v7366_v43, %v2915_v63  ;;  %v3046_v31 = vmul.f32 %v7372_v34, %v3013_v4  ;;  %v3144_v16 = vmul.f32 %v7378_v49, %v3111_v36  ;;  %v7414_v4 = vld [vmem:[%s10671_s4 + $0xf] ss:$0 sm:$0xff]  ;;  %v11173_v36 = vld [vmem:[#allocation42_spill] sm:$0xff]  ;;  %v2025_v17 = vld [vmem:[#allocation2 + $0x62] sm:$0xff] }
 0x1c0   : > { %v3242_v33 = vmul.f32 %v6685_v29, %v3209_v39  ;;  %v3860_v0 = vsub.f32 0.0, %v7354_v13  ;;  %v2882_v45 = vadd.f32 %v2850_v46, %v2783_v23  ;;  %v2547_v19 = vmul.f32 %v7386_v25, %v11170_v2  ;;  %v11171_v29 = vld [vmem:[#allocation34_spill] sm:$0xff] }
 0x1c1   : > { %v2481_v52 = vadd.f32 %v2449_v44, %v2383_v6  ;;  %v4467_v30 = vmul.f32 %v4042_v10, %v7100_v53  ;;  %v2645_v3 = vmul.f32 %v7394_v14, %v11171_v29  ;;  %v2743_v20 = vmul.f32 %v7401_v59, %v11172_v5  ;;  %v7408_v53 = vld [vmem:[%s10671_s4 + $0x5] ss:$0 sm:$0xff]  ;;  %v11174_v44 = vld [vmem:[#allocation10_spill] sm:$0xff] }
 0x1c2   : > { %v1862_v7 = vmul.f32 %v7408_v53, %v1829_v56  ;;  %v3896_v51 = vmul.f32 1.442695, %v3860_v0  ;;  %v2980_v63 = vadd.f32 %v2948_v50, %v2882_v45  ;;  %v2842_v39 = vmul.f32 %v7414_v4, %v11173_v36  ;;  %v2123_v10 = vld [vmem:[#allocation2 + $0x63] sm:$0xff] }
 0x1c3   : > { %v2579_v46 = vadd.f32 %v2547_v19, %v2481_v52  ;;  %v4173_v6 = vand.u32 2147483647, %v7324_v54  ;;  %v2940_v22 = vmul.f32 %v7366_v43, %v7021_v24  ;;  %v7425_v50 = vld [vmem:[%s10671_s4 + $0x6] ss:$0 sm:$0xff]  ;;  %v4175_v52 = vand.u32 2147483648, %v7324_v54 }
 0x1c4   : > { %v4987_v23 = vpop.eup %4986  ;;  %v1894_v56 = vadd.f32 %v1862_v7, %v11174_v44  ;;  %v1960_v0 = vmul.f32 %v7425_v50, %v1927_v57  ;;  %4566 = vrot.lane.b32.xlu1 %v4467_v30, %s5231_s17  ;;  %4988 = vpow2.f32 %v3896_v51  ;;  %v3078_v2 = vadd.f32 %v3046_v31, %v2980_v63  ;;  %v11175_v57 = vld [vmem:[#allocation5_spill] sm:$0xff] }
 0x1c5   : > { %v4165_v45 = vmul.f32 %v4987_v23, %v7324_v54  ;;  %v2677_v19 = vadd.f32 %v2645_v3, %v2579_v46  ;;  %v2058_v24 = vmul.f32 %v6790_v28, %v2025_v17  ;;  %v2156_v5 = vmul.f32 %v7282_v42, %v2123_v10  ;;  %v7441_v31 = vld [vmem:[%s10671_s4 + $0x13] ss:$0 sm:$0xff]  ;;  %v11176_v3 = vld [vmem:[#allocation4_spill] sm:$0xff] }
 0x1c6   : > { %v1992_v29 = vadd.f32 %v1960_v0, %v1894_v56  ;;  %v3176_v36 = vadd.f32 %v3144_v16, %v3078_v2  ;;  %v3038_v44 = vmul.f32 %v7372_v34, %v7029_v60  ;;  %v3136_v30 = vmul.f32 %v7378_v49, %v11175_v57  ;;  %v2221_v16 = vld [vmem:[#allocation2 + $0x64] sm:$0xff]  ;;  %v7451_v17 = vld [vmem:[#allocation2 + $0x150] sm:$0xff]  ;;  %v11184_v60 = vld [vmem:[#allocation46_spill] sm:$0xff] }
 0x1c7   : > { %v4166_v7 = vsub.f32 1.0, %v4165_v45  ;;  %vm4169_vm0 = vweird.f32 %v7324_v54  ;;  %v2775_v37 = vadd.f32 %v2743_v20, %v2677_v19  ;;  %v7445_v28 = vmul.f32 %v7441_v31, %v11176_v3  ;;  %11179 = vst [vmem:[#allocation7_spill] sm:$0xff] %v7451_v17  ;;  %v7456_v56 = vld [vmem:[%s10671_s4 + $0x14] ss:$0 sm:$0xff] }
 0x1c8   : > { %v2090_v51 = vadd.f32 %v2058_v24, %v1992_v29  ;;  %vm4170_vm11 = vweird.f32 %v4987_v23  ;;  %vm7447_vm2 = vcmp.eq.f32.partialorder %v4173_v6, 8.507059e+37  ;;  %v3274_v46 = vadd.f32 %v3242_v33, %v3176_v36  ;;  %v7462_v2 = vld [vmem:[#allocation2 + $0x151] sm:$0xff] }
 0x1c9   : > { %v4167_v63 = vmul.f32 %v4987_v23, %v4166_v7  ;;  %v4176_v20 = vor.u32 1.1754944e-38, %v4175_v52  ;;  %v2874_v10 = vadd.f32 %v2842_v39, %v2775_v37  ;;  %v7460_v0 = vmul.f32 %v7456_v56, %v7108_v1  ;;  %11180 = vst [vmem:[#allocation9_spill] sm:$0xff] %v7462_v2  ;;  %v7468_v37 = vld [vmem:[%s10671_s4 + $0x15] ss:$0 sm:$0xff]  ;;  %vm4171_vm12 = vmor %vm4169_vm0, %vm4170_vm11 }
 0x1ca   : > { %v2188_v45 = vadd.f32 %v2156_v5, %v2090_v51  ;;  %v4989_v6 = vpop.eup %4988  ;;  %v3373_v33 = vadd.f32 %v7329_v12, %v3274_v46  ;;  %v7472_v39 = vmul.f32 %v7468_v37, %v7113_v41  ;;  %v2254_v52 = vmul.f32 %v7313_v38, %v2221_v16  ;;  %v7488_v41 = vld [vmem:[%s10671_s4 + $0x16] ss:$0 sm:$0xff] }
 0x1cb   : > { %v4168_v19 = vadd.f32 %v4987_v23, %v4167_v63  ;;  %v7478_v1 = vadd.f32 1.0, %v4989_v6  ;;  %v2972_v29 = vadd.f32 %v2940_v22, %v2874_v10  ;;  %v2352_v12 = vmul.f32 %v7320_v15, %v6998_v55  ;;  %v7496_v36 = vld [vmem:[#allocation2 + $0x152] sm:$0xff]  ;;  %v11185_v6 = vld [vmem:[#allocation20_spill] sm:$0xff] }
 0x1cc   : > { %v1393_v24 = vmul.f32 %v11127_v47, %v7451_v17  ;;  %v3471_v7 = vadd.f32 %v7335_v11, %v3373_v33  ;;  %v7492_v54 = vmul.f32 %v7488_v41, %v7117_v58  ;;  %v1491_v22 = vmul.f32 %v7129_v48, %v7462_v2  ;;  %11181 = vst [vmem:[#allocation36_spill] sm:$0xff] %v7496_v36  ;;  %v7498_v55 = vld [vmem:[#allocation2 + $0x153] sm:$0xff]  ;;  %v11196_v2 = vld [vmem:[#allocation43_spill] sm:$0xff] }
 0x1cd   : > { %v4172_v5 = vsel %vm4171_vm12, %v4987_v23, %v4168_v19  ;;  %11182 = vst [vmem:[#allocation31_spill] sm:$0xff] %v7498_v55  ;;  %4990 = vrcp.f32 %v7478_v1  ;;  %v7506_v11 = vld [vmem:[%s10671_s4 + $0x17] ss:$0 sm:$0xff]  ;;  %v11183_v23 = vld [vmem:[#allocation12_spill] sm:$0xff]  ;;  %v2286_v57 = vadd.f32 %v2254_v52, %v2188_v45  ;;  %v3070_v16 = vadd.f32 %v3038_v44, %v2972_v29  ;;  %v7517_v63 = vld [vmem:[%s10671_s4 + $0x18] ss:$0 sm:$0xff] }
 0x1ce   : > { %v4177_v47 = vsel %vm7447_vm2, %v4176_v20, %v4172_v5  ;;  %v7510_v58 = vmul.f32 %v7506_v11, %v11183_v23  ;;  %v3569_v51 = vadd.f32 %v7339_v9, %v3471_v7  ;;  %v7521_v46 = vmul.f32 %v7517_v63, %v11184_v60  ;;  %v11186_v45 = vld [vmem:[#allocation17_spill] sm:$0xff]  ;;  %v11189_v7 = vld [vmem:[#allocation38_spill] sm:$0xff] }
 0x1cf   : > { %v4476_v3 = vmul.f32 %v4177_v47, %v7246_v27  ;;  %v2384_v20 = vadd.f32 %v2352_v12, %v2286_v57  ;;  %v1523_v10 = vadd.f32 %v1491_v22, %v1393_v24  ;;  %v1589_v19 = vmul.f32 %v11185_v6, %v7496_v36  ;;  %v11187_v52 = vld [vmem:[#allocation29_spill] sm:$0xff]  ;;  %v1851_v12 = vld [vmem:[#allocation2 + $0x168] sm:$0xff]  ;;  %v11190_v47 = vld [vmem:[#allocation39_spill] sm:$0xff] }
 0x1d0   : > { %v1687_v27 = vmul.f32 %v11186_v45, %v7498_v55  ;;  %v4053_v9 = vand.u32 2147483647, %v7478_v1  ;;  %v3667_v44 = vadd.f32 %v7347_v21, %v3569_v51  ;;  %v3168_v33 = vadd.f32 %v3136_v30, %v3070_v16  ;;  %v7532_v5 = vld [vmem:[#allocation2 + $0x154] sm:$0xff] }
 0x1d1   : > { %4584 = vrot.lane.b32.xlu0 %v4476_v3, %s5231_s17  ;;  %v2450_v29 = vmul.f32 %v7359_v40, %v11187_v52  ;;  %11188 = vst [vmem:[#allocation32_spill] sm:$0xff] %v7532_v5  ;;  %v4055_v24 = vand.u32 2147483648, %v7478_v1  ;;  %v7537_v22 = vmul.f32 %v7414_v4, %v11189_v7  ;;  %v7541_v23 = vmul.f32 %v7366_v43, %v11190_v47  ;;  %v11191_v3 = vld [vmem:[#allocation37_spill] sm:$0xff]  ;;  %v11192_v16 = vld [vmem:[#allocation18_spill] sm:$0xff] }
 0x1d2   : > { %v1621_v57 = vadd.f32 %v1589_v19, %v1523_v10  ;;  %v3765_v21 = vadd.f32 %v7351_v18, %v3667_v44  ;;  %v2548_v51 = vmul.f32 %v7386_v25, %v11191_v3  ;;  %v7548_v60 = vmul.f32 %v7372_v34, %v11192_v16  ;;  %v1949_v52 = vld [vmem:[#allocation2 + $0x169] sm:$0xff] }
 0x1d3   : > { %v2482_v30 = vadd.f32 %v2450_v29, %v2384_v20  ;;  %v4991_v55 = vpop.eup %4990  ;;  %vm4049_vm13 = vweird.f32 %v7478_v1  ;;  %v11193_v36 = vld [vmem:[#allocation21_spill] sm:$0xff]  ;;  %v1884_v10 = vmul.f32 %v7408_v53, %v1851_v12  ;;  %vm7555_vm14 = vcmp.eq.f32.partialorder %v4053_v9, 8.507059e+37 }
 0x1d4   : > { %v1719_v7 = vadd.f32 %v1687_v27, %v1621_v57  ;;  %v1785_v47 = vmul.f32 %v11193_v36, %v7532_v5  ;;  %v2047_v19 = vld [vmem:[#allocation2 + $0x16a] sm:$0xff]  ;;  %v4045_v18 = vmul.f32 %v4991_v55, %v7478_v1  ;;  %v3801_v44 = vmul.f32 %v6930_v61, %v3765_v21 }
 0x1d5   : > { %v3266_v29 = vadd.f32 %v7445_v28, %v3168_v33  ;;  %v2145_v3 = vld [vmem:[#allocation2 + $0x16b] sm:$0xff]  ;;  %v4056_v16 = vor.u32 1.1754944e-38, %v4055_v24  ;;  %v2646_v27 = vmul.f32 %v7394_v14, %v11196_v2  ;;  %v1982_v5 = vmul.f32 %v7425_v50, %v1949_v52  ;;  %v7577_v2 = vld [vmem:[%s10671_s4] ss:$0 sm:$0xff]  ;;  %v11199_v24 = vld [vmem:[#allocation30_spill] sm:$0xff] }
 0x1d6   : > { %v1817_v57 = vadd.f32 %v1785_v47, %v1719_v7  ;;  %v4046_v12 = vsub.f32 1.0, %v4045_v18  ;;  %v7565_v17 = vadd.f32 %v6951_v35, %v3801_v44  ;;  %v2580_v9 = vadd.f32 %v2548_v51, %v2482_v30  ;;  %11198 = vst [vmem:[#allocation34_spill] sm:$0xff] %v7577_v2  ;;  %v2243_v52 = vld [vmem:[#allocation2 + $0x16c] sm:$0xff]  ;;  %v2341_v7 = vld [vmem:[#allocation2 + $0x180] sm:$0xff] }
 0x1d7   : > { %v2080_v61 = vmul.f32 %v7570_v62, %v2047_v19  ;;  %vm4050_vm15 = vweird.f32 %v4991_v55  ;;  %v2178_v33 = vmul.f32 %v7282_v42, %v2145_v3  ;;  %v1385_v35 = vmul.f32 %v7577_v2, %v11199_v24  ;;  %v11200_v47 = vld [vmem:[#allocation44_spill] sm:$0xff]  ;;  %v11201_v44 = vld [vmem:[#allocation23_spill] sm:$0xff] }
 0x1d8   : > { %11197 = vst [vmem:[#allocation24_spill] sm:$0xff] %v7565_v17  ;;  %v1916_v28 = vadd.f32 %v1884_v10, %v1817_v57  ;;  %v4047_v21 = vmul.f32 %v4991_v55, %v4046_v12  ;;  %v3869_v30 = vsub.f32 0.0, %v7565_v17  ;;  %v3365_v51 = vadd.f32 %v7460_v0, %v3266_v29  ;;  %v11202_v57 = vld [vmem:[#allocation3_spill] sm:$0xff]  ;;  %vm4051_vm1 = vmor %vm4049_vm13, %vm4050_vm15  ;;  %v11203_v0 = vld [vmem:[#allocation6_spill] sm:$0xff] }
 0x1d9   : > { %v1483_v10 = vmul.f32 %v7129_v48, %v11200_v47  ;;  %v2678_v19 = vadd.f32 %v2646_v27, %v2580_v9  ;;  %v1581_v3 = vmul.f32 %v11185_v6, %v11201_v44  ;;  %v1679_v26 = vmul.f32 %v11186_v45, %v11202_v57 }
 0x1da   : > { %v2014_v18 = vadd.f32 %v1982_v5, %v1916_v28  ;;  %v4048_v8 = vadd.f32 %v4991_v55, %v4047_v21  ;;  %v3914_v24 = vmul.f32 1.442695, %v3869_v30  ;;  %v3463_v12 = vadd.f32 %v7472_v39, %v3365_v51  ;;  %v7597_v28 = vld [vmem:[#allocation2 + $0x108] sm:$0xff]  ;;  %v11205_v51 = vld [vmem:[#allocation14_spill] sm:$0xff] }
 0x1db   : > { %v1515_v17 = vadd.f32 %v1483_v10, %v1385_v35  ;;  %v2744_v29 = vmul.f32 %v7401_v59, %v11203_v0  ;;  %v2276_v5 = vmul.f32 %v7313_v38, %v2243_v52  ;;  %v2374_v9 = vmul.f32 %v7320_v15, %v2341_v7  ;;  %11204 = vst [vmem:[#allocation41_spill] sm:$0xff] %v7597_v28  ;;  %v2439_v7 = vld [vmem:[#allocation2 + $0x181] sm:$0xff] }
 0x1dc   : > { %v2112_v27 = vadd.f32 %v2080_v61, %v2014_v18  ;;  %v4052_v47 = vsel %vm4051_vm1, %v4991_v55, %v4048_v8  ;;  %4992 = vpow2.f32 %v3914_v24  ;;  %v3561_v21 = vadd.f32 %v7492_v54, %v3463_v12  ;;  %v5136_v55 = vld [vmem:[#allocation2 + $0x93] sm:$0xff]  ;;  %v2537_v24 = vld [vmem:[#allocation2 + $0x182] sm:$0xff] }
 0x1dd   : > { %v1613_v39 = vadd.f32 %v1581_v3, %v1515_v17  ;;  %v4057_v35 = vsel %vm7555_vm14, %v4056_v16, %v4052_v47  ;;  %v2776_v1 = vadd.f32 %v2744_v29, %v2678_v19  ;;  %v1777_v10 = vmul.f32 %v11193_v36, %v11205_v51  ;;  %v5137_v54 = vld [vmem:[#allocation2 + $0x94] sm:$0xff]  ;;  %v5138_v16 = vld [vmem:[#allocation2 + $0xa8] sm:$0xff]  ;;  %v11209_v29 = vld [vmem:[#allocation35_spill] sm:$0xff] }
 0x1de   : > { %v2210_v30 = vadd.f32 %v2178_v33, %v2112_v27  ;;  %v4468_v61 = vmul.f32 %v4057_v35, %v7354_v13  ;;  %v3659_v52 = vadd.f32 %v7510_v58, %v3561_v21  ;;  %v1876_v8 = vmul.f32 %v7408_v53, %v7597_v28  ;;  %v7617_v19 = vld [vmem:[#allocation2 + $0x109] sm:$0xff]  ;;  %v11207_v58 = vld [vmem:[#allocation22_spill] sm:$0xff]  ;;  %v7643_v51 = vld [vmem:[%s10672_s5] ss:$0 sm:$0xff] }
 0x1df   : > { %v1711_v18 = vadd.f32 %v1679_v26, %v1613_v39  ;;  %v7609_v17 = vmul.f32 %v5136_v55, %v7378_v49  ;;  %v7612_v20 = vmul.f32 %v5137_v54, %v7441_v31  ;;  %v7615_v33 = vmul.f32 %v5138_v16, %v7456_v56  ;;  %11206 = vst [vmem:[#allocation42_spill] sm:$0xff] %v7617_v19  ;;  %v11208_v3 = vld [vmem:[#allocation26_spill] sm:$0xff]  ;;  %v2635_v12 = vld [vmem:[#allocation2 + $0x183] sm:$0xff] }
 0x1e0   : > { %v2308_v13 = vadd.f32 %v2276_v5, %v2210_v30  ;;  %4568 = vrot.lane.b32.xlu2 %v4468_v61, %s5231_s17  ;;  %v3757_v26 = vadd.f32 %v7521_v46, %v3659_v52  ;;  %v7623_v44 = vmul.f32 %v7468_v37, %v11207_v58  ;;  %v7627_v57 = vmul.f32 %v7488_v41, %v11208_v3  ;;  %v11210_v5 = vld [vmem:[#allocation33_spill] sm:$0xff]  ;;  %v2733_v39 = vld [vmem:[#allocation2 + $0x184] sm:$0xff]  ;;  %v2832_v52 = vld [vmem:[#allocation2 + $0x198] sm:$0xff] }
 0x1e1   : > { %v1809_v0 = vadd.f32 %v1777_v10, %v1711_v18  ;;  %v7631_v27 = vmul.f32 %v7506_v11, %v11209_v29  ;;  %v7635_v47 = vmul.f32 %v7517_v63, %v11210_v5  ;;  %v2472_v21 = vmul.f32 %v7359_v40, %v2439_v7  ;;  %v7638_v35 = vld [vmem:[#allocation2 + $0x10a] sm:$0xff]  ;;  %v2930_v18 = vld [vmem:[#allocation2 + $0x199] sm:$0xff] }
 0x1e2   : > { %v2406_v46 = vadd.f32 %v2374_v9, %v2308_v13  ;;  %11211 = vst [vmem:[#allocation10_spill] sm:$0xff] %v7638_v35  ;;  %v4993_v30 = vpop.eup %4992  ;;  %v3793_v10 = vmul.f32 %v7643_v51, %v3757_v26  ;;  %v2875_v61 = vadd.f32 %v7537_v22, %v2776_v1  ;;  %v1974_v9 = vmul.f32 %v7425_v50, %v7617_v19  ;;  %v7649_v7 = vld [vmem:[#allocation2 + $0x10b] sm:$0xff]  ;;  %v3028_v3 = vld [vmem:[#allocation2 + $0x19a] sm:$0xff] }
 0x1e3   : > { %v1908_v55 = vadd.f32 %v1876_v8, %v1809_v0  ;;  %11212 = vst [vmem:[#allocation5_spill] sm:$0xff] %v7649_v7  ;;  %v7651_v54 = vadd.f32 1.0, %v4993_v30  ;;  %v2570_v13 = vmul.f32 %v7386_v25, %v2537_v24  ;;  %v2668_v58 = vmul.f32 %v7394_v14, %v2635_v12  ;;  %v7658_v22 = vld [vmem:[%s10673_s6] ss:$0 sm:$0xff]  ;;  %v7666_v29 = vld [vmem:[#allocation2 + $0x10c] sm:$0xff] }
 0x1e4   : > { %v2504_v16 = vadd.f32 %v2472_v21, %v2406_v46  ;;  %v7661_v1 = vadd.f32 %v7658_v22, %v3793_v10  ;;  %v2766_v8 = vmul.f32 %v7401_v59, %v2733_v39  ;;  %v2072_v0 = vmul.f32 %v7570_v62, %v7638_v35  ;;  %11213 = vst [vmem:[#allocation4_spill] sm:$0xff] %v7666_v29  ;;  %v7668_v24 = vld [vmem:[#allocation2 + $0x120] sm:$0xff] }
 0x1e5   : > { %v2006_v26 = vadd.f32 %v1974_v9, %v1908_v55  ;;  %11214 = vst [vmem:[#allocation12_spill] sm:$0xff] %v7668_v24  ;;  %4994 = vrcp.f32 %v7651_v54  ;;  %v2865_v12 = vmul.f32 %v7414_v4, %v2832_v52  ;;  %v2963_v5 = vmul.f32 %v7366_v43, %v2930_v18  ;;  %v7678_v55 = vld [vmem:[#allocation2 + $0x121] sm:$0xff] }
 0x1e6   : > { %v2170_v46 = vmul.f32 %v7282_v42, %v7649_v7  ;;  %v3861_v21 = vsub.f32 0.0, %v7661_v1  ;;  %v2973_v39 = vadd.f32 %v7541_v23, %v2875_v61  ;;  %v2602_v30 = vadd.f32 %v2570_v13, %v2504_v16  ;;  %11215 = vst [vmem:[#allocation46_spill] sm:$0xff] %v7678_v55  ;;  %v7680_v9 = vld [vmem:[#allocation2 + $0x122] sm:$0xff]  ;;  %v11218_v13 = vld [vmem:[#allocation13_spill] sm:$0xff] }
 0x1e7   : > { %v3061_v10 = vmul.f32 %v7372_v34, %v3028_v3  ;;  %11216 = vst [vmem:[#allocation20_spill] sm:$0xff] %v7680_v9  ;;  %v7682_v35 = vld [vmem:[#allocation2 + $0x123] sm:$0xff]  ;;  %v2104_v19 = vadd.f32 %v2072_v0, %v2006_v26  ;;  %v2268_v52 = vmul.f32 %v7313_v38, %v7666_v29  ;;  %v2366_v18 = vmul.f32 %v7320_v15, %v7668_v24 }
 0x1e8   : > { %11217 = vst [vmem:[#allocation17_spill] sm:$0xff] %v7682_v35  ;;  %v1386_v7 = vmul.f32 %v7577_v2, %v7287_v32  ;;  %v3898_v23 = vmul.f32 1.442695, %v3861_v21  ;;  %v3071_v61 = vadd.f32 %v7548_v60, %v2973_v39  ;;  %v2700_v16 = vadd.f32 %v2668_v58, %v2602_v30  ;;  %v7699_v29 = vld [vmem:[#allocation2 + $0x124] sm:$0xff]  ;;  %v3126_v21 = vld [vmem:[#allocation2 + $0x19b] sm:$0xff] }
 0x1e9   : > { %v1484_v3 = vmul.f32 %v7129_v48, %v11218_v13  ;;  %v2202_v28 = vadd.f32 %v2170_v46, %v2104_v19  ;;  %v2464_v26 = vmul.f32 %v7359_v40, %v7678_v55  ;;  %v2562_v0 = vmul.f32 %v7386_v25, %v7680_v9  ;;  %11219 = vst [vmem:[#allocation29_spill] sm:$0xff] %v7699_v29  ;;  %v11220_v30 = vld [vmem:[#allocation19_spill] sm:$0xff] }
 0x1ea   : > { %v2660_v24 = vmul.f32 %v7394_v14, %v7682_v35  ;;  %v4188_v32 = vand.u32 2147483647, %v7651_v54  ;;  %4996 = vpow2.f32 %v3898_v23  ;;  %v3169_v60 = vadd.f32 %v7609_v17, %v3071_v61  ;;  %v3224_v2 = vld [vmem:[#allocation2 + $0x19c] sm:$0xff] }
 0x1eb   : > { %v2798_v58 = vadd.f32 %v2766_v8, %v2700_v16  ;;  %v4995_v48 = vpop.eup %4994  ;;  %v4190_v19 = vand.u32 2147483648, %v7651_v54  ;;  %v2300_v46 = vadd.f32 %v2268_v52, %v2202_v28  ;;  %v1516_v39 = vadd.f32 %v1484_v3, %v1386_v7 }
 0x1ec   : > { %v1582_v13 = vmul.f32 %v11185_v6, %v11220_v30  ;;  %v4180_v9 = vmul.f32 %v4995_v48, %v7651_v54  ;;  %v3267_v35 = vadd.f32 %v7612_v20, %v3169_v60  ;;  %v2758_v23 = vmul.f32 %v7401_v59, %v7699_v29  ;;  %v3323_v20 = vld [vmem:[#allocation2 + $0x1b0] sm:$0xff]  ;;  %v2819_v29 = vld [vmem:[#allocation2 + $0xf8] sm:$0xff] }
 0x1ed   : > { %v2897_v55 = vadd.f32 %v2865_v12, %v2798_v58  ;;  %vm4184_vm3 = vweird.f32 %v7651_v54  ;;  %v3159_v17 = vmul.f32 %v7378_v49, %v3126_v21  ;;  %v2398_v8 = vadd.f32 %v2366_v18, %v2300_v46  ;;  %v7717_v12 = vld [vmem:[#allocation2 + $0x138] sm:$0xff]  ;;  %v11224_v58 = vld [vmem:[#allocation40_spill] sm:$0xff]  ;;  %v7723_v30 = vld [vmem:[#allocation2 + $0x110] sm:$0xff] }
 0x1ee   : > { %v1614_v61 = vadd.f32 %v1582_v13, %v1516_v39  ;;  %v4181_v28 = vsub.f32 1.0, %v4180_v9  ;;  %vm7712_vm4 = vcmp.eq.f32.partialorder %v4188_v32, 8.507059e+37  ;;  %v3366_v6 = vadd.f32 %v7615_v33, %v3267_v35  ;;  %11223 = vst [vmem:[#allocation38_spill] sm:$0xff] %v7717_v12  ;;  %v3421_v39 = vld [vmem:[#allocation2 + $0x1b1] sm:$0xff] }
 0x1ef   : > { %v2995_v52 = vadd.f32 %v2963_v5, %v2897_v55  ;;  %v4191_v16 = vor.u32 1.1754944e-38, %v4190_v19  ;;  %v3257_v3 = vmul.f32 %v7441_v31, %v3224_v2  ;;  %v2496_v60 = vadd.f32 %v2464_v26, %v2398_v8  ;;  %v3519_v19 = vld [vmem:[#allocation2 + $0x1b2] sm:$0xff] }
 0x1f0   : > { %v1680_v21 = vmul.f32 %v11186_v45, %v11224_v58  ;;  %v4997_v18 = vpop.eup %4996  ;;  %v4182_v46 = vmul.f32 %v4995_v48, %v4181_v28  ;;  %vm4185_vm5 = vweird.f32 %v4995_v48  ;;  %v3464_v9 = vadd.f32 %v7623_v44, %v3366_v6  ;;  %v11227_v58 = vld [vmem:[#allocation7_spill] sm:$0xff] }
 0x1f1   : > { %v3093_v32 = vadd.f32 %v3061_v10, %v2995_v52  ;;  %v7725_v33 = vadd.f32 1.0, %v4997_v18  ;;  %v3356_v35 = vmul.f32 %v7456_v56, %v3323_v20  ;;  %v2857_v2 = vmul.f32 %v7414_v4, %v7717_v12  ;;  %vm4186_vm6 = vmor %vm4184_vm3, %vm4185_vm5  ;;  %v11225_v10 = vld [vmem:[#allocation8_spill] sm:$0xff]  ;;  %v7740_v52 = vld [vmem:[#allocation2 + $0x139] sm:$0xff] }
 0x1f2   : > { %v1712_v5 = vadd.f32 %v1680_v21, %v1614_v61  ;;  %v4183_v55 = vadd.f32 %v4995_v48, %v4182_v46  ;;  %v3562_v45 = vadd.f32 %v7627_v57, %v3464_v9  ;;  %v2594_v13 = vadd.f32 %v2562_v0, %v2496_v60  ;;  %11226 = vst [vmem:[#allocation39_spill] sm:$0xff] %v7740_v52  ;;  %v7742_v0 = vld [vmem:[#allocation2 + $0x111] sm:$0xff]  ;;  %v7753_v9 = vld [vmem:[#allocation2 + $0x13a] sm:$0xff] }
 0x1f3   : > { %v3191_v26 = vadd.f32 %v3159_v17, %v3093_v32  ;;  %4998 = vrcp.f32 %v7725_v33  ;;  %v3454_v44 = vmul.f32 %v7468_v37, %v3421_v39  ;;  %v1778_v8 = vmul.f32 %v11193_v36, %v11225_v10  ;;  %v3617_v60 = vld [vmem:[#allocation2 + $0x1b3] sm:$0xff]  ;;  %11229 = vst [vmem:[#allocation37_spill] sm:$0xff] %v7753_v9 }
 0x1f4   : > { %v1877_v28 = vmul.f32 %v7408_v53, %v7723_v30  ;;  %v4187_v61 = vsel %vm4186_vm6, %v4995_v48, %v4183_v55  ;;  %v3660_v6 = vadd.f32 %v7631_v27, %v3562_v45  ;;  %v2692_v17 = vadd.f32 %v2660_v24, %v2594_v13  ;;  %v11228_v48 = vld [vmem:[#allocation24_spill] sm:$0xff]  ;;  %v7755_v32 = vld [vmem:[#allocation2 + $0x112] sm:$0xff] }
 0x1f5   : > { %v3289_v57 = vadd.f32 %v3257_v3, %v3191_v26  ;;  %v4192_v54 = vsel %vm7712_vm4, %v4191_v16, %v4187_v61  ;;  %v3552_v20 = vmul.f32 %v7488_v41, %v3519_v19  ;;  %v7749_v36 = vmul.f32 %v7456_v56, %v11227_v58  ;;  %v3715_v3 = vld [vmem:[#allocation2 + $0x1b4] sm:$0xff] }
 0x1f6   : > { %v1810_v21 = vadd.f32 %v1778_v8, %v1712_v5  ;;  %v4477_v18 = vmul.f32 %v4192_v54, %v11228_v48  ;;  %v3758_v27 = vadd.f32 %v7635_v47, %v3660_v6  ;;  %v2790_v46 = vadd.f32 %v2758_v23, %v2692_v17  ;;  %v7759_v16 = vld [vmem:[#allocation2 + $0x13b] sm:$0xff]  ;;  %v11231_v39 = vld [vmem:[#allocation9_spill] sm:$0xff]  ;;  %v2334_v54 = vld [vmem:[#allocation2 + $0x128] sm:$0xff] }
 0x1f7   : > { %v3388_v24 = vadd.f32 %v3356_v35, %v3289_v57  ;;  %v2955_v7 = vmul.f32 %v7366_v43, %v7740_v52  ;;  %11230 = vst [vmem:[#allocation18_spill] sm:$0xff] %v7759_v16  ;;  %v7763_v55 = vmul.f32 %v7468_v37, %v11231_v39  ;;  %v1975_v47 = vmul.f32 %v7425_v50, %v7742_v0  ;;  %v7770_v19 = vld [vmem:[#allocation2 + $0x113] sm:$0xff] }
 0x1f8   : > { %v1909_v5 = vadd.f32 %v1877_v28, %v1810_v21  ;;  %4586 = vrot.lane.b32.xlu1 %v4477_v18, %s5231_s17  ;;  %v3794_v23 = vmul.f32 %v7643_v51, %v3758_v27  ;;  %v3650_v45 = vmul.f32 %v7506_v11, %v3617_v60  ;;  %v2889_v26 = vadd.f32 %v2857_v2, %v2790_v46  ;;  %v7783_v17 = vld [vmem:[#allocation2 + $0x114] sm:$0xff] }
 0x1f9   : > { %v3486_v35 = vadd.f32 %v3454_v44, %v3388_v24  ;;  %11232 = vst [vmem:[#allocation21_spill] sm:$0xff] %v7770_v19  ;;  %v4999_v13 = vpop.eup %4998  ;;  %v3748_v10 = vmul.f32 %v7517_v63, %v3715_v3  ;;  %v3053_v8 = vmul.f32 %v7372_v34, %v7753_v9  ;;  %v2073_v61 = vmul.f32 %v7570_v62, %v7755_v32 }
 0x1fa   : > { %v2007_v28 = vadd.f32 %v1975_v47, %v1909_v5  ;;  %v4060_v6 = vmul.f32 %v4999_v13, %v7725_v33  ;;  %v7779_v57 = vadd.f32 %v7658_v22, %v3794_v23  ;;  %v3151_v2 = vmul.f32 %v7378_v49, %v7759_v16  ;;  %11233 = vst [vmem:[#allocation43_spill] sm:$0xff] %v7783_v17 }
 0x1fb   : > { %v3584_v44 = vadd.f32 %v3552_v20, %v3486_v35  ;;  %v4068_v60 = vand.u32 2147483647, %v7725_v33  ;;  %v2987_v58 = vadd.f32 %v2955_v7, %v2889_v26  ;;  %v2171_v48 = vmul.f32 %v7282_v42, %v7770_v19  ;;  %v7790_v20 = vld [vmem:[#allocation2 + $0x13c] sm:$0xff]  ;;  %v2432_v26 = vld [vmem:[#allocation2 + $0x129] sm:$0xff] }
 0x1fc   : > { %v2105_v21 = vadd.f32 %v2073_v61, %v2007_v28  ;;  %v4061_v18 = vsub.f32 1.0, %v4060_v6  ;;  %v4070_v27 = vand.u32 2147483648, %v7725_v33  ;;  %v3862_v24 = vsub.f32 0.0, %v7779_v57  ;;  %11234 = vst [vmem:[#allocation30_spill] sm:$0xff] %v7790_v20  ;;  %v11235_v6 = vld [vmem:[#allocation36_spill] sm:$0xff]  ;;  %v3113_v19 = vld [vmem:[#allocation2 + $0xfb] sm:$0xff] }
 0x1fd   : > { %v3682_v3 = vadd.f32 %v3650_v45, %v3584_v44  ;;  %v3085_v46 = vadd.f32 %v3053_v8, %v2987_v58  ;;  %v2269_v5 = vmul.f32 %v7313_v38, %v7783_v17  ;;  %v2367_v47 = vmul.f32 %v7320_v15, %v2334_v54  ;;  %v7799_v8 = vld [vmem:[#allocation2 + $0x68] sm:$0xff] }
 0x1fe   : > { %v2203_v39 = vadd.f32 %v2171_v48, %v2105_v21  ;;  %v4062_v7 = vmul.f32 %v4999_v13, %v4061_v18  ;;  %vm4065_vm7 = vweird.f32 %v4999_v13  ;;  %v3900_v23 = vmul.f32 1.442695, %v3862_v24  ;;  %11236 = vst [vmem:[#allocation44_spill] sm:$0xff] %v7799_v8  ;;  %v2530_v21 = vld [vmem:[#allocation2 + $0x12a] sm:$0xff] }
 0x1ff   : > { %v3780_v35 = vadd.f32 %v3748_v10, %v3682_v3  ;;  %v3183_v28 = vadd.f32 %v3151_v2, %v3085_v46  ;;  %v3249_v61 = vmul.f32 %v7441_v31, %v7790_v20  ;;  %v3544_v45 = vmul.f32 %v7488_v41, %v11235_v6  ;;  %v7804_v24 = vld [vmem:[#allocation2 + $0x69] sm:$0xff]  ;;  %v7936_v20 = vld [vmem:[%s10671_s4 + $0x2] ss:$0 sm:$0xff] }
 0x200   : > { %v2301_v44 = vadd.f32 %v2269_v5, %v2203_v39  ;;  %v4063_v58 = vadd.f32 %v4999_v13, %v4062_v7  ;;  %vm4064_vm8 = vweird.f32 %v7725_v33  ;;  %5000 = vpow2.f32 %v3900_v23  ;;  %11237 = vst [vmem:[#allocation23_spill] sm:$0xff] %v7804_v24  ;;  %v2628_v39 = vld [vmem:[#allocation2 + $0x12b] sm:$0xff] }
 0x201   : > { %v3816_v54 = vmul.f32 %v7643_v51, %v3780_v35  ;;  %vm4066_vm9 = vmor %vm4064_vm8, %vm4065_vm7  ;;  %v4071_v10 = vor.u32 1.1754944e-38, %v4070_v27  ;;  %v3281_v48 = vadd.f32 %v3249_v61, %v3183_v28  ;;  %v2465_v18 = vmul.f32 %v7359_v40, %v2432_v26  ;;  %v11239_v26 = vld [vmem:[#allocation11_spill] sm:$0xff] }
 0x202   : > { %v2399_v2 = vadd.f32 %v2367_v47, %v2301_v44  ;;  %v4067_v3 = vsel %vm4066_vm9, %v4999_v13, %v4063_v58  ;;  %vm4069_vm10 = vcmp.eq.f32.partialorder %v4068_v60, 8.507059e+37  ;;  %v1863_v33 = vmul.f32 %v7408_v53, %v7799_v8  ;;  %v7813_v47 = vld [vmem:[#allocation2 + $0x6a] sm:$0xff]  ;;  %v11240_v44 = vld [vmem:[#allocation31_spill] sm:$0xff] }
 0x203   : > { %v7807_v46 = vadd.f32 %v7658_v22, %v3816_v54  ;;  %v4072_v5 = vsel %vm4069_vm10, %v4071_v10, %v4067_v3  ;;  %v3380_v7 = vadd.f32 %v7749_v36, %v3281_v48  ;;  %v2563_v27 = vmul.f32 %v7386_v25, %v2530_v21  ;;  %11238 = vst [vmem:[#allocation3_spill] sm:$0xff] %v7813_v47  ;;  %v2726_v60 = vld [vmem:[#allocation2 + $0x12c] sm:$0xff]  ;;  %v2825_v21 = vld [vmem:[#allocation2 + $0x140] sm:$0xff]  ;;  %v3316_v3 = vld [vmem:[#allocation2 + $0x158] sm:$0xff] }
 0x204   : > { %v2497_v23 = vadd.f32 %v2465_v18, %v2399_v2  ;;  %v4469_v35 = vmul.f32 %v4072_v5, %v7661_v1  ;;  %v1895_v28 = vadd.f32 %v1863_v33, %v11239_v26  ;;  %v1961_v61 = vmul.f32 %v7425_v50, %v7804_v24  ;;  %v7824_v10 = vld [vmem:[#allocation2 + $0x6b] sm:$0xff]  ;;  %v3414_v33 = vld [vmem:[#allocation2 + $0x159] sm:$0xff] }
 0x205   : > { %v3884_v13 = vsub.f32 0.0, %v7807_v46  ;;  %v3478_v6 = vadd.f32 %v7763_v55, %v3380_v7  ;;  %v3642_v36 = vmul.f32 %v7506_v11, %v11240_v44  ;;  %v2661_v54 = vmul.f32 %v7394_v14, %v2628_v39  ;;  %11241 = vst [vmem:[#allocation6_spill] sm:$0xff] %v7824_v10  ;;  %v11242_v2 = vld [vmem:[#allocation32_spill] sm:$0xff]  ;;  %v3512_v5 = vld [vmem:[#allocation2 + $0x15a] sm:$0xff] }
 0x206   : > { %v2595_v58 = vadd.f32 %v2563_v27, %v2497_v23  ;;  %v5001_v1 = vpop.eup %5000  ;;  %4570 = vrot.lane.b32.xlu2 %v4469_v35, %s5231_s17  ;;  %v3740_v18 = vmul.f32 %v7517_v63, %v11242_v2  ;;  %v1993_v55 = vadd.f32 %v1961_v61, %v1895_v28  ;;  %v2059_v7 = vmul.f32 %v7570_v62, %v7813_v47  ;;  %v7834_v44 = vld [vmem:[#allocation2 + $0x6c] sm:$0xff]  ;;  %v3021_v2 = vld [vmem:[#allocation2 + $0x142] sm:$0xff] }
 0x207   : > { %v3944_v48 = vmul.f32 1.442695, %v3884_v13  ;;  %v7831_v23 = vadd.f32 1.0, %v5001_v1  ;;  %v3576_v39 = vadd.f32 %v3544_v45, %v3478_v6  ;;  %v2759_v26 = vmul.f32 %v7401_v59, %v2726_v60  ;;  %11243 = vst [vmem:[#allocation14_spill] sm:$0xff] %v7834_v44  ;;  %v2923_v13 = vld [vmem:[#allocation2 + $0x141] sm:$0xff] }
 0x208   : > { %v2693_v27 = vadd.f32 %v2661_v54, %v2595_v58  ;;  %v2858_v35 = vmul.f32 %v7414_v4, %v2825_v21  ;;  %v3610_v24 = vld [vmem:[#allocation2 + $0x15b] sm:$0xff]  ;;  %v2091_v8 = vadd.f32 %v2059_v7, %v1993_v55  ;;  %v2157_v28 = vmul.f32 %v7282_v42, %v7824_v10  ;;  %v3119_v61 = vld [vmem:[#allocation2 + $0x143] sm:$0xff] }
 0x209   : > { %5002 = vpow2.f32 %v3944_v48  ;;  %v7841_v45 = vmul.f32 %v7456_v56, %v3316_v3  ;;  %v7844_v60 = vmul.f32 %v7468_v37, %v3414_v33  ;;  %v7847_v6 = vmul.f32 %v7488_v41, %v3512_v5  ;;  %v3708_v58 = vld [vmem:[#allocation2 + $0x15c] sm:$0xff]  ;;  %v3217_v48 = vld [vmem:[#allocation2 + $0x144] sm:$0xff] }
 0x20a   : > { %5004 = vrcp.f32 %v7831_v23  ;;  %v7849_v54 = vld [vmem:[#allocation2 + $0x98] sm:$0xff]  ;;  %v3674_v21 = vadd.f32 %v3642_v36, %v3576_v39  ;;  %v2791_v1 = vadd.f32 %v2759_v26, %v2693_v27  ;;  %v2189_v55 = vadd.f32 %v2157_v28, %v2091_v8  ;;  %v7853_v7 = vld [vmem:[#allocation2 + $0x80] sm:$0xff] }
 0x20b   : > { %11244 = vst [vmem:[#allocation22_spill] sm:$0xff] %v7849_v54  ;;  %v2255_v42 = vmul.f32 %v7313_v38, %v7834_v44  ;;  %v7855_v3 = vld [vmem:[#allocation2 + $0x99] sm:$0xff]  ;;  %v2956_v33 = vmul.f32 %v7366_v43, %v2923_v13  ;;  %v3054_v10 = vmul.f32 %v7372_v34, %v3021_v2  ;;  %v7860_v5 = vmul.f32 %v7506_v11, %v3610_v24  ;;  %v7869_v44 = vld [vmem:[#allocation2 + $0xa8] sm:$0xff] }
 0x20c   : > { %11245 = vst [vmem:[#allocation26_spill] sm:$0xff] %v7853_v7  ;;  %v2353_v36 = vmul.f32 %v7320_v15, %v7853_v7  ;;  %v7864_v39 = vld [vmem:[#allocation2 + $0x9a] sm:$0xff]  ;;  %v3772_v8 = vadd.f32 %v3740_v18, %v3674_v21  ;;  %v2890_v27 = vadd.f32 %v2858_v35, %v2791_v1  ;;  %v3152_v38 = vmul.f32 %v7378_v49, %v3119_v61  ;;  %v7871_v13 = vld [vmem:[#allocation2 + $0xa9] sm:$0xff] }
 0x20d   : > { %11246 = vst [vmem:[#allocation35_spill] sm:$0xff] %v7855_v3  ;;  %v2287_v26 = vadd.f32 %v2255_v42, %v2189_v55  ;;  %v7867_v28 = vld [vmem:[#allocation2 + $0x9b] sm:$0xff]  ;;  %v3250_v2 = vmul.f32 %v7441_v31, %v3217_v48  ;;  %v7875_v24 = vmul.f32 %v7517_v63, %v3708_v58  ;;  %v7881_v15 = vmul.f32 %v7414_v4, %v7849_v54  ;;  %v7929_v54 = vld [vmem:[#allocation2 + $0xb0] sm:$0xff] }
 0x20e   : > { %11247 = vst [vmem:[#allocation33_spill] sm:$0xff] %v7864_v39  ;;  %v7877_v47 = vld [vmem:[#allocation2 + $0x81] sm:$0xff]  ;;  %v7885_v18 = vmul.f32 %v7366_v43, %v7855_v3  ;;  %v3808_v61 = vmul.f32 %v7643_v51, %v3772_v8  ;;  %v2988_v21 = vadd.f32 %v2956_v33, %v2890_v27  ;;  %v7890_v48 = vmul.f32 %v7372_v34, %v7864_v39  ;;  %v11253_v43 = vld [vmem:[#allocation34_spill] sm:$0xff] }
 0x20f   : > { %11248 = vst [vmem:[#allocation13_spill] sm:$0xff] %v7867_v28  ;;  %v5003_v35 = vpop.eup %5002  ;;  %v2385_v1 = vadd.f32 %v2353_v36, %v2287_v26  ;;  %v7892_v58 = vld [vmem:[#allocation2 + $0x9c] sm:$0xff]  ;;  %v7898_v4 = vmul.f32 %v7378_v49, %v7867_v28  ;;  %v1379_v7 = vmul.f32 %v11253_v43, %v7869_v44  ;;  %v2451_v49 = vmul.f32 %v7359_v40, %v7877_v47  ;;  %v7919_v28 = vld [vmem:[#allocation2 + $0xab] sm:$0xff] }
 0x210   : > { %11249 = vst [vmem:[#allocation19_spill] sm:$0xff] %v7869_v44  ;;  %v5005_v55 = vpop.eup %5004  ;;  %v7894_v42 = vadd.f32 1.0, %v5003_v35  ;;  %v7905_v33 = vld [vmem:[%s10671_s4 + $0x1] ss:$0 sm:$0xff]  ;;  %v7911_v8 = vadd.f32 %v7658_v22, %v3808_v61  ;;  %v3086_v27 = vadd.f32 %v3054_v10, %v2988_v21  ;;  %v7915_v26 = vld [vmem:[#allocation2 + $0x82] sm:$0xff]  ;;  %v7917_v35 = vld [vmem:[#allocation2 + $0xaa] sm:$0xff]  ;;  %v7926_v61 = vmul.f32 %v7441_v31, %v7892_v58 }
 0x211   : > { %11250 = vst [vmem:[#allocation40_spill] sm:$0xff] %v7871_v13  ;;  %v1477_v34 = vmul.f32 %v7905_v33, %v7871_v13  ;;  %v4075_v36 = vmul.f32 %v5005_v55, %v7831_v23  ;;  %v4083_v39 = vand.u32 2147483647, %v7831_v23  ;;  %v4085_v3 = vand.u32 2147483648, %v7831_v23 }
 0x212   : > { %11251 = vst [vmem:[#allocation8_spill] sm:$0xff] %v7877_v47  ;;  %5006 = vrcp.f32 %v7894_v42  ;;  %v3876_v21 = vsub.f32 0.0, %v7911_v8  ;;  %v3184_v40 = vadd.f32 %v3152_v38, %v3086_v27  ;;  %v2483_v47 = vadd.f32 %v2451_v49, %v2385_v1  ;;  %v7949_v27 = vld [vmem:[#allocation2 + $0xac] sm:$0xff]  ;;  %v7951_v49 = vld [vmem:[#allocation2 + $0xc0] sm:$0xff] }
 0x213   : > { %11252 = vst [vmem:[#allocation7_spill] sm:$0xff] %v7892_v58  ;;  %v4076_v10 = vsub.f32 1.0, %v4075_v36  ;;  %v2549_v13 = vmul.f32 %v7386_v25, %v7915_v26  ;;  %v1509_v44 = vadd.f32 %v1477_v34, %v1379_v7  ;;  %v1575_v31 = vmul.f32 %v7936_v20, %v7917_v35  ;;  %v7943_v36 = vld [vmem:[%s10671_s4 + $0x3] ss:$0 sm:$0xff] }
 0x214   : > { %11254 = vst [vmem:[#allocation24_spill] sm:$0xff] %v7915_v26  ;;  %v1673_v38 = vmul.f32 %v7943_v36, %v7919_v28  ;;  %vm4080_vm0 = vweird.f32 %v5005_v55  ;;  %v3928_v25 = vmul.f32 1.442695, %v3876_v21  ;;  %v3282_v7 = vadd.f32 %v3250_v2, %v3184_v40  ;;  %v7947_v34 = vld [vmem:[#allocation2 + $0x83] sm:$0xff]  ;;  %v7959_v2 = vld [vmem:[#allocation2 + $0xb1] sm:$0xff] }
 0x215   : > { %11255 = vst [vmem:[#allocation9_spill] sm:$0xff] %v7917_v35  ;;  %v4077_v1 = vmul.f32 %v5005_v55, %v4076_v10  ;;  %vm4079_vm11 = vweird.f32 %v7831_v23  ;;  %v2581_v26 = vadd.f32 %v2549_v13, %v2483_v47  ;;  %v7956_v58 = vmul.f32 %v7456_v56, %v7929_v54  ;;  %v7964_v23 = vld [vmem:[#allocation2 + $0x84] sm:$0xff] }
 0x216   : > { %11256 = vst [vmem:[#allocation36_spill] sm:$0xff] %v7919_v28  ;;  %v1607_v35 = vadd.f32 %v1575_v31, %v1509_v44  ;;  %v4086_v28 = vor.u32 1.1754944e-38, %v4085_v3  ;;  %5008 = vpow2.f32 %v3928_v25  ;;  %v3381_v10 = vadd.f32 %v7841_v45, %v3282_v7  ;;  %vm4081_vm2 = vmor %vm4079_vm11, %vm4080_vm0  ;;  %v7969_v56 = vld [vmem:[%s10671_s4 + $0x4] ss:$0 sm:$0xff]  ;;  %v7977_v31 = vld [vmem:[#allocation2 + $0xb2] sm:$0xff] }
 0x217   : > { %11257 = vst [vmem:[#allocation11_spill] sm:$0xff] %v7929_v54  ;;  %v4078_v16 = vadd.f32 %v5005_v55, %v4077_v1  ;;  %v2647_v40 = vmul.f32 %v7394_v14, %v7947_v34  ;;  %v1771_v44 = vmul.f32 %v7969_v56, %v7949_v27  ;;  %v1870_v45 = vmul.f32 %v7408_v53, %v7951_v49 }
 0x218   : > { %11258 = vst [vmem:[#allocation31_spill] sm:$0xff] %v7947_v34  ;;  %v5007_v21 = vpop.eup %5006  ;;  %v1705_v47 = vadd.f32 %v1673_v38, %v1607_v35  ;;  %vm4084_vm12 = vcmp.eq.f32.partialorder %v4083_v39, 8.507059e+37  ;;  %v3479_v14 = vadd.f32 %v7844_v60, %v3381_v10  ;;  %v7979_v35 = vld [vmem:[#allocation2 + $0xc1] sm:$0xff]  ;;  %v7983_v25 = vmul.f32 %v7468_v37, %v7959_v2 }
 0x219   : > { %11259 = vst [vmem:[#allocation32_spill] sm:$0xff] %v7949_v27  ;;  %v4082_v3 = vsel %vm4081_vm2, %v5005_v55, %v4078_v16  ;;  %v4405_v13 = vmul.f32 %v5007_v21, %v7894_v42  ;;  %v2679_v1 = vadd.f32 %v2647_v40, %v2581_v26  ;;  %v2745_v39 = vmul.f32 %v7401_v59, %v7964_v23  ;;  %v7996_v26 = vld [vmem:[#allocation2 + $0xc2] sm:$0xff] }
 0x21a   : > { %11260 = vst [vmem:[#allocation34_spill] sm:$0xff] %v7951_v49  ;;  %v4087_v38 = vsel %vm4084_vm12, %v4086_v28, %v4082_v3  ;;  %v1803_v7 = vadd.f32 %v1771_v44, %v1705_v47  ;;  %v3577_v16 = vadd.f32 %v7847_v6, %v3479_v14  ;;  %v4415_v60 = vand.u32 2147483648, %v7894_v42  ;;  %v7998_v10 = vld [vmem:[#allocation2 + $0xc3] sm:$0xff]  ;;  %v8003_v47 = vld [vmem:[#allocation2 + $0xb3] sm:$0xff] }
 0x21b   : > { %11261 = vst [vmem:[#allocation47_spill] sm:$0xff] %v7959_v2  ;;  %v4470_v34 = vmul.f32 %v4087_v38, %v7779_v57  ;;  %v4406_v53 = vsub.f32 1.0, %v4405_v13  ;;  %v7992_v55 = vmul.f32 %v7488_v41, %v7977_v31  ;;  %v1968_v37 = vmul.f32 %v7425_v50, %v7979_v35  ;;  %v8005_v41 = vld [vmem:[#allocation2 + $0xb4] sm:$0xff]  ;;  %v8020_v38 = vld [vmem:[#allocation2 + $0xc4] sm:$0xff] }
 0x21c   : > { %11262 = vst [vmem:[#allocation48_spill] sm:$0xff] %v7964_v23  ;;  %v1902_v28 = vadd.f32 %v1870_v45, %v1803_v7  ;;  %v5009_v57 = vpop.eup %5008  ;;  %vm4410_vm13 = vweird.f32 %v5007_v21  ;;  %v4413_v59 = vand.u32 2147483647, %v7894_v42  ;;  %v3675_v40 = vadd.f32 %v7860_v5, %v3577_v16  ;;  %v8016_v5 = vld [vmem:[%s10671_s4 + $0x8] ss:$0 sm:$0xff] }
 0x21d   : > { %11263 = vst [vmem:[#allocation49_spill] sm:$0xff] %v7977_v31  ;;  %4572 = vrot.lane.b32.xlu0 %v4470_v34, %s5231_s17  ;;  %v4407_v6 = vmul.f32 %v5007_v21, %v4406_v53  ;;  %vm4409_vm14 = vweird.f32 %v7894_v42  ;;  %v8008_v50 = vadd.f32 1.0, %v5009_v57  ;;  %v2777_v44 = vadd.f32 %v2745_v39, %v2679_v1  ;;  %v8022_v42 = vld [vmem:[#allocation2 + $0xd8] sm:$0xff] }
 0x21e   : > { %11264 = vst [vmem:[#allocation50_spill] sm:$0xff] %v7979_v35  ;;  %v2000_v45 = vadd.f32 %v1968_v37, %v1902_v28  ;;  %v3773_v13 = vadd.f32 %v7875_v24, %v3675_v40  ;;  %v2066_v34 = vmul.f32 %v7570_v62, %v7996_v26  ;;  %v2164_v14 = vmul.f32 %v8016_v5, %v7998_v10  ;;  %vm4411_vm15 = vmor %vm4409_vm14, %vm4410_vm13  ;;  %v8034_v53 = vld [vmem:[#allocation2 + $0xd9] sm:$0xff] }
 0x21f   : > { %11265 = vst [vmem:[#allocation51_spill] sm:$0xff] %v7996_v26  ;;  %v4408_v3 = vadd.f32 %v5007_v21, %v4407_v6  ;;  %v4416_v1 = vor.u32 1.1754944e-38, %v4415_v60  ;;  %5010 = vrcp.f32 %v8008_v50  ;;  %v8028_v24 = vmul.f32 %v7506_v11, %v8003_v47  ;;  %v8037_v37 = vld [vmem:[#allocation2 + $0xda] sm:$0xff]  ;;  %v8045_v11 = vld [vmem:[%s10671_s4 + $0x9] ss:$0 sm:$0xff] }
 0x220   : > { %11266 = vst [vmem:[#allocation52_spill] sm:$0xff] %v7998_v10  ;;  %v8032_v7 = vmul.f32 %v7517_v63, %v8005_v41  ;;  %vm4414_vm1 = vcmp.eq.f32.partialorder %v4413_v59, 8.507059e+37  ;;  %v3809_v39 = vmul.f32 %v7643_v51, %v3773_v13  ;;  %v2098_v28 = vadd.f32 %v2066_v34, %v2000_v45  ;;  %v8039_v60 = vld [vmem:[#allocation2 + $0xdb] sm:$0xff]  ;;  %v8058_v45 = vld [vmem:[#allocation2 + $0xf0] sm:$0xff]  ;;  %v8067_v13 = vld [vmem:[%s10671_s4 + $0xb] ss:$0 sm:$0xff] }
 0x221   : > { %11267 = vst [vmem:[#allocation53_spill] sm:$0xff] %v8003_v47  ;;  %v4412_v16 = vsel %vm4411_vm15, %v5007_v21, %v4408_v3  ;;  %v2876_v6 = vadd.f32 %v7881_v15, %v2777_v44  ;;  %v2262_v63 = vmul.f32 %v8045_v11, %v8020_v38  ;;  %v8052_v21 = vld [vmem:[%s10671_s4 + $0xa] ss:$0 sm:$0xff]  ;;  %v8056_v40 = vld [vmem:[#allocation2 + $0xdc] sm:$0xff]  ;;  %v2458_v34 = vmul.f32 %v8067_v13, %v8034_v53 }
 0x222   : > { %11268 = vst [vmem:[#allocation54_spill] sm:$0xff] %v8005_v41  ;;  %v4417_v57 = vsel %vm4414_vm1, %v4416_v1, %v4412_v16  ;;  %v2360_v59 = vmul.f32 %v8052_v21, %v8022_v42  ;;  %v8062_v44 = vadd.f32 %v7658_v22, %v3809_v39  ;;  %v2196_v3 = vadd.f32 %v2164_v14, %v2098_v28  ;;  %v8071_v1 = vld [vmem:[#allocation2 + $0xf1] sm:$0xff]  ;;  %v8076_v16 = vld [vmem:[%s10671_s4 + $0xc] ss:$0 sm:$0xff]  ;;  %v8083_v14 = vld [vmem:[%s10671_s4 + $0xd] ss:$0 sm:$0xff] }
 0x223   : > { %11269 = vst [vmem:[#allocation55_spill] sm:$0xff] %v8020_v38  ;;  %v4492_v15 = vmul.f32 %v4417_v57, %v7807_v46  ;;  %v2556_v46 = vmul.f32 %v8076_v16, %v8037_v37  ;;  %v2654_v39 = vmul.f32 %v8083_v14, %v8039_v60  ;;  %v8087_v28 = vld [vmem:[#allocation2 + $0xf2] sm:$0xff]  ;;  %v1380_v57 = vmul.f32 %v11253_v43, %v7929_v54  ;;  %v8108_v54 = vld [vmem:[%s10671_s4 + $0xf] ss:$0 sm:$0xff]  ;;  %v8119_v38 = vld [vmem:[%s10671_s4 + $0x10] ss:$0 sm:$0xff] }
 0x224   : > { %11270 = vst [vmem:[#allocation56_spill] sm:$0xff] %v8022_v42  ;;  %v2974_v23 = vadd.f32 %v7885_v18, %v2876_v6  ;;  %v8099_v42 = vld [vmem:[%s10671_s4 + $0xe] ss:$0 sm:$0xff]  ;;  %v2294_v6 = vadd.f32 %v2262_v63, %v2196_v3  ;;  %v1576_v26 = vmul.f32 %v7936_v20, %v7977_v31  ;;  %v8132_v63 = vld [vmem:[%s10671_s4 + $0x11] ss:$0 sm:$0xff]  ;;  %v1772_v52 = vmul.f32 %v7969_v56, %v8005_v41 }
 0x225   : > { %11271 = vst [vmem:[#allocation57_spill] sm:$0xff] %v8034_v53  ;;  %v1478_v53 = vmul.f32 %v7905_v33, %v7959_v2  ;;  %4616 = vrot.lane.b32.xlu1 %v4492_v15, %s5231_s17  ;;  %v8112_v15 = vmul.f32 %v8108_v54, %v8058_v45  ;;  %v8114_v2 = vld [vmem:[#allocation2 + $0xf3] sm:$0xff]  ;;  %v5011_v18 = vpop.eup %5010  ;;  %v8136_v3 = vmul.f32 %v8132_v63, %v8087_v28  ;;  %vm4289_vm4 = vweird.f32 %v8008_v50 }
 0x226   : > { %11272 = vst [vmem:[#allocation58_spill] sm:$0xff] %v8037_v37  ;;  %v3877_v37 = vsub.f32 0.0, %v8062_v44  ;;  %v3072_v49 = vadd.f32 %v7890_v48, %v2974_v23  ;;  %vm4290_vm3 = vweird.f32 %v5011_v18 }
 0x227   : > { %11273 = vst [vmem:[#allocation59_spill] sm:$0xff] %v8039_v60  ;;  %v8103_v60 = vmul.f32 %v8099_v42, %v8056_v40  ;;  %v1510_v10 = vadd.f32 %v1478_v53, %v1380_v57  ;;  %v2392_v53 = vadd.f32 %v2360_v59, %v2294_v6  ;;  %v8143_v57 = vld [vmem:[%s10671_s4 + $0x12] ss:$0 sm:$0xff]  ;;  %v8153_v59 = vld [vmem:[#allocation2 + $0xf4] sm:$0xff]  ;;  %vm4291_vm5 = vmor %vm4289_vm4, %vm4290_vm3 }
 0x228   : > { %11274 = vst [vmem:[#allocation60_spill] sm:$0xff] %v8056_v40  ;;  %v8123_v40 = vmul.f32 %v8119_v38, %v8071_v1  ;;  %v3930_v35 = vmul.f32 1.442695, %v3877_v37  ;;  %v8147_v48 = vmul.f32 %v8143_v57, %v8114_v2  ;;  %v1674_v37 = vmul.f32 %v7943_v36, %v8003_v47 }
 0x229   : > { %11275 = vst [vmem:[#allocation61_spill] sm:$0xff] %v8058_v45  ;;  %v4285_v45 = vmul.f32 %v5011_v18, %v8008_v50  ;;  %v1608_v23 = vadd.f32 %v1576_v26, %v1510_v10  ;;  %v3170_v27 = vadd.f32 %v7898_v4, %v3072_v49  ;;  %v2490_v6 = vadd.f32 %v2458_v34, %v2392_v53  ;;  %v8160_v26 = vld [vmem:[%s10671_s4 + $0x5] ss:$0 sm:$0xff]  ;;  %v8166_v49 = vld [vmem:[#allocation2 + $0xc9] sm:$0xff]  ;;  %v8171_v53 = vld [vmem:[%s10671_s4 + $0x13] ss:$0 sm:$0xff] }
 0x22a   : > { %11276 = vst [vmem:[#allocation62_spill] sm:$0xff] %v8062_v44  ;;  %5012 = vpow2.f32 %v3930_v35  ;;  %v4293_v35 = vand.u32 2147483647, %v8008_v50  ;;  %v3015_v44 = vld [vmem:[#allocation2 + $0xfa] sm:$0xff] }
 0x22b   : > { %11277 = vst [vmem:[#allocation63_spill] sm:$0xff] %v8071_v1  ;;  %v8138_v1 = vld [vmem:[#allocation2 + $0xc8] sm:$0xff]  ;;  %v4286_v31 = vsub.f32 1.0, %v4285_v45  ;;  %v1706_v9 = vadd.f32 %v1674_v37, %v1608_v23  ;;  %v3268_v4 = vadd.f32 %v7926_v61, %v3170_v27  ;;  %v2588_v34 = vadd.f32 %v2556_v46, %v2490_v6  ;;  %v11285_v37 = vld [vmem:[#allocation41_spill] sm:$0xff] }
 0x22c   : > { %11278 = vst [vmem:[#allocation64_spill] sm:$0xff] %v8087_v28  ;;  %v4295_v28 = vand.u32 2147483648, %v8008_v50  ;;  %v1871_v10 = vmul.f32 %v8160_v26, %v8138_v1  ;;  %v8175_v23 = vmul.f32 %v8171_v53, %v8153_v59  ;;  %vm4294_vm6 = vcmp.eq.f32.partialorder %v4293_v35, 8.507059e+37 }
 0x22d   : > { %11279 = vst [vmem:[#allocation65_spill] sm:$0xff] %v8114_v2  ;;  %v4287_v45 = vmul.f32 %v5011_v18, %v4286_v31  ;;  %v8180_v31 = vld [vmem:[%s10671_s4 + $0x14] ss:$0 sm:$0xff]  ;;  %v1804_v27 = vadd.f32 %v1772_v52, %v1706_v9  ;;  %v3367_v6 = vadd.f32 %v7956_v58, %v3268_v4  ;;  %v11286_v2 = vld [vmem:[#allocation42_spill] sm:$0xff]  ;;  %v2686_v47 = vadd.f32 %v2654_v39, %v2588_v34  ;;  %v8201_v52 = vld [vmem:[%s10671_s4 + $0x6] ss:$0 sm:$0xff] }
 0x22e   : > { %11280 = vst [vmem:[#allocation66_spill] sm:$0xff] %v8138_v1  ;;  %v8184_v61 = vmul.f32 %v8180_v31, %v11285_v37  ;;  %v4296_v41 = vor.u32 1.1754944e-38, %v4295_v28  ;;  %v1969_v9 = vmul.f32 %v8201_v52, %v8166_v49  ;;  %v8205_v58 = vld [vmem:[#allocation2 + $0xca] sm:$0xff]  ;;  %v8211_v39 = vld [vmem:[%s10671_s4 + $0x16] ss:$0 sm:$0xff]  ;;  %v11288_v28 = vld [vmem:[#allocation10_spill] sm:$0xff] }
 0x22f   : > { %11281 = vst [vmem:[#allocation67_spill] sm:$0xff] %v8153_v59  ;;  %v4288_v46 = vadd.f32 %v5011_v18, %v4287_v45  ;;  %v8191_v59 = vld [vmem:[%s10671_s4 + $0x15] ss:$0 sm:$0xff]  ;;  %v1903_v12 = vadd.f32 %v1871_v10, %v1804_v27  ;;  %v3465_v4 = vadd.f32 %v7983_v25, %v3367_v6  ;;  %v8215_v10 = vmul.f32 %v8211_v39, %v11288_v28  ;;  %v8217_v34 = vld [vmem:[#allocation2 + $0xcb] sm:$0xff] }
 0x230   : > { %11282 = vst [vmem:[#allocation68_spill] sm:$0xff] %v8166_v49  ;;  %v8195_v1 = vmul.f32 %v8191_v59, %v11286_v2  ;;  %v5013_v50 = vpop.eup %5012  ;;  %v11291_v25 = vld [vmem:[#allocation5_spill] sm:$0xff] }
 0x231   : > { %11283 = vst [vmem:[#allocation69_spill] sm:$0xff] %v8171_v53  ;;  %v4292_v45 = vsel %vm4291_vm5, %v5011_v18, %v4288_v46  ;;  %v8219_v49 = vadd.f32 1.0, %v5013_v50  ;;  %v8224_v18 = vld [vmem:[%s10671_s4 + $0x17] ss:$0 sm:$0xff]  ;;  %v2001_v46 = vadd.f32 %v1969_v9, %v1903_v12  ;;  %v8230_v6 = vld [vmem:[#allocation2 + $0xcc] sm:$0xff]  ;;  %v3563_v17 = vadd.f32 %v7992_v55, %v3465_v4 }
 0x232   : > { %11284 = vst [vmem:[#allocation70_spill] sm:$0xff] %v8180_v31  ;;  %v4297_v27 = vsel %vm4294_vm6, %v4296_v41, %v4292_v45  ;;  %v8228_v35 = vmul.f32 %v8224_v18, %v11291_v25  ;;  %v2784_v41 = vadd.f32 %v8103_v60, %v2686_v47  ;;  %v2067_v50 = vmul.f32 %v7570_v62, %v8205_v58  ;;  %v2917_v45 = vld [vmem:[#allocation2 + $0xf9] sm:$0xff]  ;;  %v8241_v12 = vld [vmem:[%s10671_s4 + $0x18] ss:$0 sm:$0xff]  ;;  %v11294_v9 = vld [vmem:[#allocation4_spill] sm:$0xff] }
 0x233   : > { %11287 = vst [vmem:[#allocation41_spill] sm:$0xff] %v8205_v58  ;;  %5014 = vrcp.f32 %v8219_v49  ;;  %v2165_v55 = vmul.f32 %v8016_v5, %v8217_v34  ;;  %v2328_v47 = vld [vmem:[#allocation2 + $0xe0] sm:$0xff]  ;;  %v1387_v62 = vmul.f32 %v11253_v43, %v11285_v37  ;;  %v3661_v60 = vadd.f32 %v8028_v24, %v3563_v17 }
 0x234   : > { %11289 = vst [vmem:[#allocation42_spill] sm:$0xff] %v8215_v10  ;;  %v4484_v10 = vmul.f32 %v4297_v27, %v7911_v8  ;;  %v8245_v8 = vmul.f32 %v8241_v12, %v11294_v9  ;;  %v2099_v4 = vadd.f32 %v2067_v50, %v2001_v46  ;;  %v2263_v27 = vmul.f32 %v8045_v11, %v8230_v6  ;;  %v2426_v46 = vld [vmem:[#allocation2 + $0xe1] sm:$0xff] }
 0x235   : > { %11290 = vst [vmem:[#allocation10_spill] sm:$0xff] %v8217_v34  ;;  %v8256_v58 = vmul.f32 %v8108_v54, %v2819_v29  ;;  %v8262_v34 = vmul.f32 %v8132_v63, %v3015_v44  ;;  %v8265_v43 = vmul.f32 %v8143_v57, %v3113_v19  ;;  %v1485_v17 = vmul.f32 %v7905_v33, %v11286_v2 }
 0x236   : > { %11292 = vst [vmem:[#allocation5_spill] sm:$0xff] %v8228_v35  ;;  %4600 = vrot.lane.b32.xlu2 %v4484_v10, %s5231_s17  ;;  %v3211_v35 = vld [vmem:[#allocation2 + $0xfc] sm:$0xff]  ;;  %v3759_v24 = vadd.f32 %v8032_v7, %v3661_v60  ;;  %v2883_v37 = vadd.f32 %v8112_v15, %v2784_v41  ;;  %v2197_v10 = vadd.f32 %v2165_v55, %v2099_v4  ;;  %vm4304_vm7 = vweird.f32 %v8219_v49 }
 0x237   : > { %11293 = vst [vmem:[#allocation71_spill] sm:$0xff] %v8230_v6  ;;  %v2361_v29 = vmul.f32 %v8052_v21, %v2328_v47  ;;  %v8273_v50 = vmul.f32 %v8171_v53, %v3211_v35  ;;  %v1583_v44 = vmul.f32 %v7936_v20, %v11288_v28  ;;  %v1681_v19 = vmul.f32 %v7943_v36, %v11291_v25  ;;  %v2524_v55 = vld [vmem:[#allocation2 + $0xe2] sm:$0xff] }
 0x238   : > { %11295 = vst [vmem:[#allocation4_spill] sm:$0xff] %v8245_v8  ;;  %v8259_v8 = vmul.f32 %v8119_v38, %v2917_v45  ;;  %v1517_v45 = vadd.f32 %v1485_v17, %v1387_v62  ;;  %v3795_v2 = vmul.f32 %v7643_v51, %v3759_v24  ;;  %v2981_v7 = vadd.f32 %v8123_v40, %v2883_v37  ;;  %v2622_v62 = vld [vmem:[#allocation2 + $0xe3] sm:$0xff] }
 0x239   : > { %v2295_v60 = vadd.f32 %v2263_v27, %v2197_v10  ;;  %v8283_v15 = vmul.f32 %v8180_v31, %v7723_v30  ;;  %v5015_v41 = vpop.eup %5014  ;;  %v2459_v35 = vmul.f32 %v8067_v13, %v2426_v46  ;;  %v8289_v28 = vmul.f32 %v8191_v59, %v7742_v0  ;;  %v11296_v24 = vld [vmem:[#allocation12_spill] sm:$0xff] }
 0x23a   : > { %v1615_v25 = vadd.f32 %v1583_v44, %v1517_v45  ;;  %v4300_v51 = vmul.f32 %v5015_v41, %v8219_v49  ;;  %v4310_v40 = vand.u32 2147483648, %v8219_v49  ;;  %v8294_v47 = vadd.f32 %v7658_v22, %v3795_v2 }
 0x23b   : > { %v2393_v30 = vadd.f32 %v2361_v29, %v2295_v60  ;;  %v3079_v4 = vadd.f32 %v8136_v3, %v2981_v7  ;;  %v1779_v17 = vmul.f32 %v7969_v56, %v11294_v9  ;;  %v1878_v0 = vmul.f32 %v8160_v26, %v11296_v24  ;;  %v2720_v3 = vld [vmem:[#allocation2 + $0xe4] sm:$0xff]  ;;  %v11297_v24 = vld [vmem:[#allocation46_spill] sm:$0xff] }
 0x23c   : > { %v1713_v27 = vadd.f32 %v1681_v19, %v1615_v25  ;;  %v4301_v37 = vsub.f32 1.0, %v4300_v51  ;;  %v3863_v10 = vsub.f32 0.0, %v8294_v47  ;;  %v2557_v45 = vmul.f32 %v8076_v16, %v2524_v55 }
 0x23d   : > { %v2491_v46 = vadd.f32 %v2459_v35, %v2393_v30  ;;  %v4308_v22 = vand.u32 2147483647, %v8219_v49  ;;  %v3177_v29 = vadd.f32 %v8147_v48, %v3079_v4  ;;  %v2655_v44 = vmul.f32 %v8083_v14, %v2622_v62 }
 0x23e   : > { %v1811_v19 = vadd.f32 %v1779_v17, %v1713_v27  ;;  %v4302_v2 = vmul.f32 %v5015_v41, %v4301_v37  ;;  %vm4305_vm8 = vweird.f32 %v5015_v41  ;;  %v3902_v9 = vmul.f32 1.442695, %v3863_v10  ;;  %v11299_v17 = vld [vmem:[#allocation17_spill] sm:$0xff]  ;;  %v1340_v37 = vld [vmem:[#allocation2 + $0x60] sm:$0xff] }
 0x23f   : > { %v2589_v7 = vadd.f32 %v2557_v45, %v2491_v46  ;;  %v4311_v60 = vor.u32 1.1754944e-38, %v4310_v40  ;;  %v3275_v25 = vadd.f32 %v8175_v23, %v3177_v29  ;;  %v1976_v35 = vmul.f32 %v8201_v52, %v11297_v24  ;;  %vm4306_vm9 = vmor %vm4304_vm7, %vm4305_vm8  ;;  %v8316_v40 = vld [vmem:[%s10671_s4 + $0x7] ss:$0 sm:$0xff]  ;;  %v11298_v23 = vld [vmem:[#allocation20_spill] sm:$0xff] }
 0x240   : > { %v1910_v51 = vadd.f32 %v1878_v0, %v1811_v19  ;;  %v4303_v55 = vadd.f32 %v5015_v41, %v4302_v2  ;;  %5016 = vpow2.f32 %v3902_v9  ;;  %v2753_v48 = vmul.f32 %v8099_v42, %v2720_v3  ;;  %v11301_v2 = vld [vmem:[#allocation62_spill] sm:$0xff] }
 0x241   : > { %v2687_v30 = vadd.f32 %v2655_v44, %v2589_v7  ;;  %v3374_v62 = vadd.f32 %v8184_v61, %v3275_v25  ;;  %v2074_v27 = vmul.f32 %v8316_v40, %v11298_v23  ;;  %v2172_v0 = vmul.f32 %v8016_v5, %v11299_v17  ;;  %v1438_v61 = vld [vmem:[#allocation2 + $0x61] sm:$0xff]  ;;  %v11300_v44 = vld [vmem:[#allocation21_spill] sm:$0xff]  ;;  %v11306_v23 = vld [vmem:[#allocation38_spill] sm:$0xff] }
 0x242   : > { %v2008_v4 = vadd.f32 %v1976_v35, %v1910_v51  ;;  %v4307_v10 = vsel %vm4306_vm9, %v5015_v41, %v4303_v55  ;;  %vm4309_vm10 = vcmp.eq.f32.partialorder %v4308_v22, 8.507059e+37  ;;  %v8324_v49 = vmul.f32 %v8211_v39, %v7755_v32  ;;  %v11302_v41 = vld [vmem:[#allocation43_spill] sm:$0xff]  ;;  %v8337_v25 = vld [vmem:[#allocation2 + $0x150] sm:$0xff] }
 0x243   : > { %v2785_v46 = vadd.f32 %v2753_v48, %v2687_v30  ;;  %v4312_v45 = vsel %vm4309_vm10, %v4311_v60, %v4307_v10  ;;  %v3472_v29 = vadd.f32 %v8195_v1, %v3374_v62  ;;  %v8329_v3 = vmul.f32 %v8224_v18, %v11300_v44  ;;  %11303 = vst [vmem:[#allocation12_spill] sm:$0xff] %v8337_v25  ;;  %v8342_v32 = vld [vmem:[%s10671_s4] ss:$0 sm:$0xff]  ;;  %v11304_v60 = vld [vmem:[#allocation42_spill] sm:$0xff]  ;;  %v11305_v35 = vld [vmem:[#allocation29_spill] sm:$0xff] }
 0x244   : > { %v2106_v19 = vadd.f32 %v2074_v27, %v2008_v4  ;;  %v4485_v9 = vmul.f32 %v4312_v45, %v11301_v2  ;;  %v8335_v22 = vmul.f32 %v8241_v12, %v11302_v41  ;;  %v1373_v1 = vmul.f32 %v8342_v32, %v1340_v37  ;;  %v1536_v30 = vld [vmem:[#allocation2 + $0x62] sm:$0xff]  ;;  %v11308_v10 = vld [vmem:[#allocation37_spill] sm:$0xff] }
 0x245   : > { %v2884_v7 = vadd.f32 %v8256_v58, %v2785_v46  ;;  %v3570_v51 = vadd.f32 %v11304_v60, %v3472_v29  ;;  %v2270_v55 = vmul.f32 %v8045_v11, %v11305_v35  ;;  %v1471_v58 = vmul.f32 %v7905_v33, %v1438_v61  ;;  %v1634_v48 = vld [vmem:[#allocation2 + $0x63] sm:$0xff]  ;;  %v8357_v46 = vld [vmem:[#allocation2 + $0x151] sm:$0xff] }
 0x246   : > { %v2204_v24 = vadd.f32 %v2172_v0, %v2106_v19  ;;  %v5017_v62 = vpop.eup %5016  ;;  %4602 = vrot.lane.b32.xlu0 %v4485_v9, %s5231_s17  ;;  %v2368_v27 = vmul.f32 %v8052_v21, %v11306_v23  ;;  %v11307_v17 = vld [vmem:[#allocation39_spill] sm:$0xff]  ;;  %v2564_v0 = vmul.f32 %v8076_v16, %v11308_v10  ;;  %11309 = vst [vmem:[#allocation46_spill] sm:$0xff] %v8357_v46  ;;  %v11310_v61 = vld [vmem:[#allocation5_spill] sm:$0xff]  ;;  %v8373_v60 = vld [vmem:[#allocation2 + $0x168] sm:$0xff] }
 0x247   : > { %v2982_v4 = vadd.f32 %v8259_v8, %v2884_v7  ;;  %v2466_v37 = vmul.f32 %v8067_v13, %v11307_v17  ;;  %v8359_v45 = vadd.f32 1.0, %v5017_v62  ;;  %v3668_v29 = vadd.f32 %v11310_v61, %v3570_v51  ;;  %v8366_v8 = vld [vmem:[#allocation2 + $0x152] sm:$0xff]  ;;  %11314 = vst [vmem:[#allocation62_spill] sm:$0xff] %v8373_v60  ;;  %v1732_v61 = vld [vmem:[#allocation2 + $0x64] sm:$0xff] }
 0x248   : > { %v8364_v44 = vmul.f32 %v8108_v54, %v8337_v25  ;;  %11311 = vst [vmem:[#allocation20_spill] sm:$0xff] %v8366_v8  ;;  %v1503_v19 = vadd.f32 %v1471_v58, %v1373_v1  ;;  %v2302_v9 = vadd.f32 %v2270_v55, %v2204_v24  ;;  %v8369_v7 = vld [vmem:[#allocation2 + $0x153] sm:$0xff]  ;;  %v1569_v35 = vmul.f32 %v7936_v20, %v1536_v30  ;;  %v8388_v24 = vld [vmem:[#allocation2 + $0x169] sm:$0xff] }
 0x249   : > { %v3080_v2 = vadd.f32 %v8262_v34, %v2982_v4  ;;  %11312 = vst [vmem:[#allocation17_spill] sm:$0xff] %v8369_v7  ;;  %v8371_v41 = vld [vmem:[#allocation2 + $0x154] sm:$0xff]  ;;  %v1667_v51 = vmul.f32 %v7943_v36, %v1634_v48  ;;  %5018 = vrcp.f32 %v8359_v45  ;;  %v8386_v34 = vmul.f32 %v8119_v38, %v8357_v46  ;;  %v11318_v55 = vld [vmem:[#allocation4_spill] sm:$0xff] }
 0x24a   : > { %11313 = vst [vmem:[#allocation21_spill] sm:$0xff] %v8371_v41  ;;  %v11315_v62 = vld [vmem:[#allocation18_spill] sm:$0xff]  ;;  %v3766_v58 = vadd.f32 %v11318_v55, %v3668_v29  ;;  %v2400_v48 = vadd.f32 %v2368_v27, %v2302_v9  ;;  %v8392_v4 = vld [vmem:[#allocation2 + $0x16a] sm:$0xff]  ;;  %v1601_v10 = vadd.f32 %v1569_v35, %v1503_v19  ;;  %v8402_v46 = vmul.f32 %v8143_v57, %v8369_v7 }
 0x24b   : > { %v2662_v23 = vmul.f32 %v8083_v14, %v11315_v62  ;;  %v11316_v17 = vld [vmem:[#allocation30_spill] sm:$0xff]  ;;  %11317 = vst [vmem:[#allocation43_spill] sm:$0xff] %v8388_v24  ;;  %v3178_v30 = vadd.f32 %v8265_v43, %v3080_v2  ;;  %v8406_v29 = vmul.f32 %v8171_v53, %v8371_v41  ;;  %v8410_v43 = vmul.f32 %v8180_v31, %v8373_v60  ;;  %v8412_v27 = vld [vmem:[#allocation2 + $0x16b] sm:$0xff]  ;;  %v8419_v2 = vld [vmem:[%s10672_s5] ss:$0 sm:$0xff] }
 0x24c   : > { %v8382_v1 = vmul.f32 %v8099_v42, %v11316_v17  ;;  %11319 = vst [vmem:[#allocation42_spill] sm:$0xff] %v8392_v4  ;;  %v8394_v62 = vld [vmem:[#allocation2 + $0x78] sm:$0xff]  ;;  %v8398_v17 = vmul.f32 %v8132_v63, %v8366_v8  ;;  %v8414_v19 = vld [vmem:[#allocation2 + $0x16c] sm:$0xff]  ;;  %v3802_v9 = vmul.f32 %v8419_v2, %v3766_v58  ;;  %v8425_v55 = vmul.f32 %v8191_v59, %v8388_v24 }
 0x24d   : > { %11320 = vst [vmem:[#allocation29_spill] sm:$0xff] %v8394_v62  ;;  %v3276_v35 = vadd.f32 %v8273_v50, %v3178_v30  ;;  %v1699_v41 = vadd.f32 %v1667_v51, %v1601_v10  ;;  %v8427_v60 = vld [vmem:[#allocation2 + $0x90] sm:$0xff]  ;;  %v2498_v7 = vadd.f32 %v2466_v37, %v2400_v48  ;;  %v8431_v8 = vmul.f32 %v8211_v39, %v8392_v4  ;;  %v8441_v50 = vld [vmem:[%s10673_s6] ss:$0 sm:$0xff] }
 0x24e   : > { %11321 = vst [vmem:[#allocation38_spill] sm:$0xff] %v8412_v27  ;;  %v1765_v25 = vmul.f32 %v7969_v56, %v1732_v61  ;;  %v1864_v6 = vmul.f32 %v8160_v26, %v8394_v62  ;;  %v8436_v58 = vld [vmem:[#allocation2 + $0x91] sm:$0xff]  ;;  %v8444_v51 = vadd.f32 %v8441_v50, %v3802_v9  ;;  %v8449_v30 = vmul.f32 %v8224_v18, %v8412_v27 }
 0x24f   : > { %11322 = vst [vmem:[#allocation39_spill] sm:$0xff] %v8414_v19  ;;  %v3375_v37 = vadd.f32 %v8283_v15, %v3276_v35  ;;  %v8453_v48 = vmul.f32 %v8241_v12, %v8414_v19  ;;  %v8455_v10 = vld [vmem:[#allocation2 + $0x92] sm:$0xff]  ;;  %v5019_v62 = vpop.eup %5018  ;;  %v4098_v4 = vand.u32 2147483647, %v8359_v45  ;;  %v4100_v9 = vand.u32 2147483648, %v8359_v45 }
 0x250   : > { %11323 = vst [vmem:[#allocation37_spill] sm:$0xff] %v8425_v55  ;;  %v8457_v61 = vld [vmem:[#allocation2 + $0x93] sm:$0xff]  ;;  %v1797_v24 = vadd.f32 %v1765_v25, %v1699_v41  ;;  %v8463_v15 = vmul.f32 %v8052_v21, %v8427_v60  ;;  %v4090_v35 = vmul.f32 %v5019_v62, %v8359_v45  ;;  %v3870_v27 = vsub.f32 0.0, %v8444_v51 }
 0x251   : > { %11324 = vst [vmem:[#allocation5_spill] sm:$0xff] %v8427_v60  ;;  %v3473_v19 = vadd.f32 %v8289_v28, %v3375_v37  ;;  %v8476_v25 = vmul.f32 %v8076_v16, %v8455_v10  ;;  %v8480_v41 = vmul.f32 %v8083_v14, %v8457_v61  ;;  %vm4094_vm0 = vweird.f32 %v8359_v45 }
 0x252   : > { %11325 = vst [vmem:[#allocation18_spill] sm:$0xff] %v8431_v8  ;;  %v2596_v8 = vadd.f32 %v2564_v0, %v2498_v7  ;;  %v1896_v55 = vadd.f32 %v1864_v6, %v1797_v24  ;;  %v4091_v60 = vsub.f32 1.0, %v4090_v35  ;;  %v3916_v28 = vmul.f32 1.442695, %v3870_v27  ;;  %v8492_v24 = vld [vmem:[#allocation2 + $0x94] sm:$0xff] }
 0x253   : > { %11326 = vst [vmem:[#allocation30_spill] sm:$0xff] %v8436_v58  ;;  %v3571_v37 = vadd.f32 %v8324_v49, %v3473_v19  ;;  %vm8486_vm11 = vcmp.eq.f32.partialorder %v4098_v4, 8.507059e+37  ;;  %v4101_v6 = vor.u32 1.1754944e-38, %v4100_v9  ;;  %vm4095_vm2 = vweird.f32 %v5019_v62  ;;  %v8495_v35 = vld [vmem:[#allocation2 + $0x7b] sm:$0xff]  ;;  %v11338_v19 = vld [vmem:[#allocation44_spill] sm:$0xff] }
 0x254   : > { %11327 = vst [vmem:[#allocation4_spill] sm:$0xff] %v8444_v51  ;;  %v8484_v51 = vld [vmem:[#allocation2 + $0x7a] sm:$0xff]  ;;  %v2694_v0 = vadd.f32 %v2662_v23, %v2596_v8  ;;  %5020 = vpow2.f32 %v3916_v28  ;;  %v1374_v9 = vmul.f32 %v8342_v32, %v11338_v19  ;;  %vm4096_vm12 = vmor %vm4094_vm0, %vm4095_vm2 }
 0x255   : > { %11328 = vst [vmem:[#allocation72_spill] sm:$0xff] %v8449_v30  ;;  %v8472_v30 = vmul.f32 %v8067_v13, %v8436_v58  ;;  %v3669_v27 = vadd.f32 %v8329_v3, %v3571_v37  ;;  %v2060_v4 = vmul.f32 %v8316_v40, %v8484_v51  ;;  %v11339_v8 = vld [vmem:[#allocation23_spill] sm:$0xff]  ;;  %v2158_v37 = vmul.f32 %v8016_v5, %v8495_v35  ;;  %v11350_v58 = vld [vmem:[#allocation6_spill] sm:$0xff] }
 0x256   : > { %11329 = vst [vmem:[#allocation73_spill] sm:$0xff] %v8453_v48  ;;  %v8468_v48 = vld [vmem:[#allocation2 + $0x79] sm:$0xff]  ;;  %v1472_v23 = vmul.f32 %v7905_v33, %v11339_v8  ;;  %v11342_v8 = vld [vmem:[#allocation40_spill] sm:$0xff] }
 0x257   : > { %11330 = vst [vmem:[#allocation74_spill] sm:$0xff] %v8455_v10  ;;  %v1962_v7 = vmul.f32 %v8201_v52, %v8468_v48  ;;  %v11340_v3 = vld [vmem:[#allocation19_spill] sm:$0xff] }
 0x258   : > { %11331 = vst [vmem:[#allocation75_spill] sm:$0xff] %v8457_v61  ;;  %v4092_v61 = vmul.f32 %v5019_v62, %v4091_v60  ;;  %v8506_v60 = vmul.f32 %v8099_v42, %v8492_v24  ;;  %v8510_v28 = vmul.f32 %v8108_v54, %v11340_v3  ;;  %v11343_v3 = vld [vmem:[#allocation9_spill] sm:$0xff] }
 0x259   : > { %11332 = vst [vmem:[#allocation76_spill] sm:$0xff] %v8468_v48  ;;  %v1994_v49 = vadd.f32 %v1962_v7, %v1896_v55  ;;  %v3767_v48 = vadd.f32 %v8335_v22, %v3669_v27  ;;  %v2792_v55 = vadd.f32 %v8382_v1, %v2694_v0  ;;  %v1504_v7 = vadd.f32 %v1472_v23, %v1374_v9  ;;  %v11345_v9 = vld [vmem:[#allocation36_spill] sm:$0xff] }
 0x25a   : > { %11333 = vst [vmem:[#allocation77_spill] sm:$0xff] %v8484_v51  ;;  %v4093_v10 = vadd.f32 %v5019_v62, %v4092_v61  ;;  %v11341_v61 = vld [vmem:[#allocation3_spill] sm:$0xff]  ;;  %v8526_v45 = vmul.f32 %v8132_v63, %v11343_v3  ;;  %v8534_v23 = vmul.f32 %v8143_v57, %v11345_v9  ;;  %v11351_v9 = vld [vmem:[#allocation34_spill] sm:$0xff] }
 0x25b   : > { %11336 = vst [vmem:[#allocation78_spill] sm:$0xff] %v8492_v24  ;;  %v1570_v22 = vmul.f32 %v7936_v20, %v11341_v61  ;;  %v3803_v19 = vmul.f32 %v8419_v2, %v3767_v48  ;;  %v8522_v24 = vmul.f32 %v8119_v38, %v11342_v8  ;;  %v2092_v0 = vadd.f32 %v2060_v4, %v1994_v49  ;;  %v5021_v48 = vpop.eup %5020  ;;  %v11348_v8 = vld [vmem:[#allocation32_spill] sm:$0xff]  ;;  %v11361_v51 = vld [vmem:[#allocation14_spill] sm:$0xff] }
 0x25c   : > { %11337 = vst [vmem:[#allocation79_spill] sm:$0xff] %v8495_v35  ;;  %v4097_v27 = vsel %vm4096_vm12, %v5019_v62, %v4093_v10  ;;  %v8530_v35 = vld [vmem:[#allocation2 + $0x7c] sm:$0xff]  ;;  %v8542_v3 = vmul.f32 %v8171_v53, %v11348_v8  ;;  %v8546_v49 = vadd.f32 1.0, %v5021_v48  ;;  %v2891_v4 = vadd.f32 %v8364_v44, %v2792_v55 }
 0x25d   : > { %v4102_v1 = vsel %vm8486_vm11, %v4101_v6, %v4097_v27  ;;  %11344 = vst [vmem:[#allocation44_spill] sm:$0xff] %v8530_v35  ;;  %v1602_v62 = vadd.f32 %v1570_v22, %v1504_v7  ;;  %v8538_v61 = vadd.f32 %v8441_v50, %v3803_v19  ;;  %v1668_v6 = vmul.f32 %v7943_v36, %v11350_v58  ;;  %v11353_v19 = vld [vmem:[#allocation50_spill] sm:$0xff]  ;;  %v11355_v44 = vld [vmem:[#allocation51_spill] sm:$0xff] }
 0x25e   : > { %11346 = vst [vmem:[#allocation23_spill] sm:$0xff] %v8534_v23  ;;  %v4471_v10 = vmul.f32 %v4102_v1, %v8294_v47  ;;  %v2190_v27 = vadd.f32 %v2158_v37, %v2092_v0  ;;  %v8551_v7 = vmul.f32 %v8180_v31, %v11351_v9  ;;  %v2256_v22 = vmul.f32 %v8045_v11, %v8530_v35  ;;  %v11357_v37 = vld [vmem:[#allocation52_spill] sm:$0xff] }
 0x25f   : > { %11347 = vst [vmem:[#allocation19_spill] sm:$0xff] %v8538_v61  ;;  %v3871_v47 = vsub.f32 0.0, %v8538_v61  ;;  %v8559_v1 = vmul.f32 %v8191_v59, %v11353_v19  ;;  %v1700_v48 = vadd.f32 %v1668_v6, %v1602_v62  ;;  %5022 = vrcp.f32 %v8546_v49  ;;  %v11362_v6 = vld [vmem:[#allocation22_spill] sm:$0xff] }
 0x260   : > { %11349 = vst [vmem:[#allocation3_spill] sm:$0xff] %v8542_v3  ;;  %4574 = vrot.lane.b32.xlu1 %v4471_v10, %s5231_s17  ;;  %v8564_v55 = vmul.f32 %v8211_v39, %v11355_v44  ;;  %v8568_v0 = vmul.f32 %v8224_v18, %v11357_v37  ;;  %v11359_v10 = vld [vmem:[#allocation55_spill] sm:$0xff]  ;;  %v2989_v35 = vadd.f32 %v8386_v34, %v2891_v4  ;;  %v11367_v4 = vld [vmem:[#allocation26_spill] sm:$0xff]  ;;  %vm4199_vm13 = vweird.f32 %v8546_v49 }
 0x261   : > { %11352 = vst [vmem:[#allocation40_spill] sm:$0xff] %v8551_v7  ;;  %v8572_v8 = vmul.f32 %v8241_v12, %v11359_v10  ;;  %v3918_v58 = vmul.f32 1.442695, %v3871_v47  ;;  %v1766_v62 = vmul.f32 %v7969_v56, %v11361_v51  ;;  %v2288_v7 = vadd.f32 %v2256_v22, %v2190_v27  ;;  %v11368_v27 = vld [vmem:[#allocation7_spill] sm:$0xff] }
 0x262   : > { %11354 = vst [vmem:[#allocation9_spill] sm:$0xff] %v8559_v1  ;;  %v8579_v1 = vmul.f32 %v8052_v21, %v11362_v6  ;;  %v3087_v34 = vadd.f32 %v8398_v17, %v2989_v35  ;;  %v1865_v6 = vmul.f32 %v8160_v26, %v11367_v4  ;;  %v8598_v22 = vmul.f32 %v8099_v42, %v11368_v27  ;;  %v11375_v27 = vld [vmem:[#allocation8_spill] sm:$0xff] }
 0x263   : > { %11356 = vst [vmem:[#allocation36_spill] sm:$0xff] %v8564_v55  ;;  %v11363_v55 = vld [vmem:[#allocation35_spill] sm:$0xff]  ;;  %5024 = vpow2.f32 %v3918_v58  ;;  %v1798_v51 = vadd.f32 %v1766_v62, %v1700_v48  ;;  %v1381_v48 = vmul.f32 %v8342_v32, %v11351_v9  ;;  %v1479_v62 = vmul.f32 %v7905_v33, %v11353_v19 }
 0x264   : > { %11358 = vst [vmem:[#allocation32_spill] sm:$0xff] %v8568_v0  ;;  %v8583_v61 = vmul.f32 %v8067_v13, %v11363_v55  ;;  %v11364_v0 = vld [vmem:[#allocation33_spill] sm:$0xff]  ;;  %v11369_v55 = vld [vmem:[#allocation11_spill] sm:$0xff]  ;;  %v3185_v17 = vadd.f32 %v8402_v46, %v3087_v34  ;;  %v11380_v46 = vld [vmem:[#allocation66_spill] sm:$0xff] }
 0x265   : > { %11360 = vst [vmem:[#allocation6_spill] sm:$0xff] %v8572_v8  ;;  %v8587_v3 = vmul.f32 %v8076_v16, %v11364_v0  ;;  %v11366_v8 = vld [vmem:[#allocation13_spill] sm:$0xff]  ;;  %v8602_v23 = vmul.f32 %v8108_v54, %v11369_v55  ;;  %v11371_v0 = vld [vmem:[#allocation47_spill] sm:$0xff]  ;;  %v1897_v35 = vadd.f32 %v1865_v6, %v1798_v51  ;;  %v5023_v4 = vpop.eup %5022  ;;  %v1963_v55 = vmul.f32 %v8201_v52, %v11375_v27  ;;  %v11382_v27 = vld [vmem:[#allocation24_spill] sm:$0xff] }
 0x266   : > { %v8591_v47 = vmul.f32 %v8083_v14, %v11366_v8  ;;  %v11373_v8 = vld [vmem:[#allocation49_spill] sm:$0xff]  ;;  %v8629_v34 = vmul.f32 %v8180_v31, %v11380_v46  ;;  %v4195_v9 = vmul.f32 %v5023_v4, %v8546_v49  ;;  %v3283_v19 = vadd.f32 %v8406_v29, %v3185_v17  ;;  %v11383_v31 = vld [vmem:[#allocation68_spill] sm:$0xff] }
 0x267   : > { %11365 = vst [vmem:[#allocation34_spill] sm:$0xff] %v8587_v3  ;;  %v8606_v3 = vmul.f32 %v8119_v38, %v11371_v0  ;;  %v8610_v58 = vmul.f32 %v8132_v63, %v11373_v8  ;;  %v2386_v51 = vadd.f32 %v8463_v15, %v2288_v7  ;;  %v4203_v6 = vand.u32 2147483647, %v8546_v49 }
 0x268   : > { %11370 = vst [vmem:[#allocation50_spill] sm:$0xff] %v8602_v23  ;;  %v11376_v23 = vld [vmem:[#allocation53_spill] sm:$0xff]  ;;  %v4205_v46 = vand.u32 2147483648, %v8546_v49  ;;  %v1577_v7 = vmul.f32 %v7936_v20, %v11355_v44  ;;  %v1675_v17 = vmul.f32 %v7943_v36, %v11357_v37  ;;  %vm4200_vm14 = vweird.f32 %v5023_v4  ;;  %v11392_v49 = vld [vmem:[#allocation48_spill] sm:$0xff] }
 0x269   : > { %11372 = vst [vmem:[#allocation51_spill] sm:$0xff] %v8606_v3  ;;  %v8621_v0 = vmul.f32 %v8143_v57, %v11376_v23  ;;  %v11378_v3 = vld [vmem:[#allocation54_spill] sm:$0xff]  ;;  %v1995_v23 = vadd.f32 %v1963_v55, %v1897_v35  ;;  %v2484_v55 = vadd.f32 %v8472_v30, %v2386_v51  ;;  %vm8652_vm15 = vcmp.eq.f32.partialorder %v4203_v6, 8.507059e+37  ;;  %vm4201_vm1 = vmor %vm4199_vm13, %vm4200_vm14  ;;  %v11389_v6 = vld [vmem:[#allocation56_spill] sm:$0xff] }
 0x26a   : > { %11374 = vst [vmem:[#allocation52_spill] sm:$0xff] %v8610_v58  ;;  %v8625_v8 = vmul.f32 %v8171_v53, %v11378_v3  ;;  %v1511_v3 = vadd.f32 %v1479_v62, %v1381_v48  ;;  %v4196_v58 = vsub.f32 1.0, %v4195_v9  ;;  %v8642_v53 = vmul.f32 %v8191_v59, %v11383_v31  ;;  %v11384_v48 = vld [vmem:[#allocation37_spill] sm:$0xff]  ;;  %v11387_v31 = vld [vmem:[#allocation31_spill] sm:$0xff] }
 0x26b   : > { %11377 = vst [vmem:[#allocation55_spill] sm:$0xff] %v8621_v0  ;;  %v2061_v0 = vmul.f32 %v8316_v40, %v11382_v27  ;;  %v4206_v9 = vor.u32 1.1754944e-38, %v4205_v46  ;;  %v1773_v51 = vmul.f32 %v7969_v56, %v11359_v10 }
 0x26c   : > { %11379 = vst [vmem:[#allocation14_spill] sm:$0xff] %v8625_v8  ;;  %v5025_v8 = vpop.eup %5024  ;;  %v4197_v35 = vmul.f32 %v5023_v4, %v4196_v58  ;;  %v2582_v58 = vadd.f32 %v8476_v25, %v2484_v55 }
 0x26d   : > { %11381 = vst [vmem:[#allocation22_spill] sm:$0xff] %v8629_v34  ;;  %v3382_v34 = vadd.f32 %v8410_v43, %v3283_v19  ;;  %v8644_v29 = vadd.f32 1.0, %v5025_v8  ;;  %v2093_v15 = vadd.f32 %v2061_v0, %v1995_v23  ;;  %v2159_v0 = vmul.f32 %v8016_v5, %v11387_v31  ;;  %v11388_v19 = vld [vmem:[#allocation18_spill] sm:$0xff]  ;;  %v11395_v31 = vld [vmem:[#allocation73_spill] sm:$0xff] }
 0x26e   : > { %v1609_v8 = vadd.f32 %v1577_v7, %v1511_v3  ;;  %v4198_v44 = vadd.f32 %v5023_v4, %v4197_v35  ;;  %v1872_v23 = vmul.f32 %v8160_v26, %v11389_v6  ;;  %v2680_v46 = vadd.f32 %v8480_v41, %v2582_v58  ;;  %v11391_v7 = vld [vmem:[#allocation41_spill] sm:$0xff]  ;;  %v11398_v6 = vld [vmem:[#allocation58_spill] sm:$0xff] }
 0x26f   : > { %v3480_v62 = vadd.f32 %v11384_v48, %v3382_v34  ;;  %5026 = vrcp.f32 %v8644_v29  ;;  %v2191_v30 = vadd.f32 %v2159_v0, %v2093_v15  ;;  %v11390_v48 = vld [vmem:[#allocation72_spill] sm:$0xff]  ;;  %v8671_v35 = vmul.f32 %v8211_v39, %v11391_v7 }
 0x270   : > { %v1707_v34 = vadd.f32 %v1675_v17, %v1609_v8  ;;  %v4202_v27 = vsel %vm4201_vm1, %v5023_v4, %v4198_v44  ;;  %v2257_v15 = vmul.f32 %v8045_v11, %v11392_v49  ;;  %v11393_v17 = vld [vmem:[#allocation10_spill] sm:$0xff]  ;;  %v11394_v4 = vld [vmem:[#allocation4_spill] sm:$0xff]  ;;  %v2778_v41 = vadd.f32 %v8506_v60, %v2680_v46  ;;  %v11396_v8 = vld [vmem:[#allocation71_spill] sm:$0xff] }
 0x271   : > { %v3578_v37 = vadd.f32 %v11388_v19, %v3480_v62  ;;  %v4207_v25 = vsel %vm8652_vm15, %v4206_v9, %v4202_v27  ;;  %v8679_v10 = vmul.f32 %v8224_v18, %v11393_v17  ;;  %v8686_v44 = vmul.f32 %v8241_v12, %v11396_v8  ;;  %v11400_v46 = vld [vmem:[#allocation63_spill] sm:$0xff] }
 0x272   : > { %v1805_v62 = vadd.f32 %v1773_v51, %v1707_v34  ;;  %v4478_v55 = vmul.f32 %v4207_v25, %v11394_v4  ;;  %v2289_v9 = vadd.f32 %v2257_v15, %v2191_v30  ;;  %v2068_v27 = vmul.f32 %v8316_v40, %v11398_v6  ;;  %v11401_v25 = vld [vmem:[#allocation64_spill] sm:$0xff]  ;;  %v8709_v15 = vld [vmem:[#allocation2 + $0x110] sm:$0xff]  ;;  %v11403_v4 = vld [vmem:[#allocation59_spill] sm:$0xff] }
 0x273   : > { %v3676_v3 = vadd.f32 %v11390_v48, %v3578_v37  ;;  %v11397_v37 = vld [vmem:[#allocation57_spill] sm:$0xff]  ;;  %v2877_v60 = vadd.f32 %v8510_v28, %v2778_v41  ;;  %v4218_v30 = vand.u32 2147483647, %v8644_v29  ;;  %v8703_v7 = vmul.f32 %v8067_v13, %v11400_v46  ;;  %11402 = vst [vmem:[#allocation35_spill] sm:$0xff] %v8709_v15 }
 0x274   : > { %v1904_v19 = vadd.f32 %v1872_v23, %v1805_v62  ;;  %v1970_v58 = vmul.f32 %v8201_v52, %v11397_v37  ;;  %4588 = vrot.lane.b32.xlu2 %v4478_v55, %s5231_s17  ;;  %v11399_v48 = vld [vmem:[#allocation61_spill] sm:$0xff]  ;;  %v8707_v49 = vmul.f32 %v8076_v16, %v11401_v25  ;;  %v2166_v55 = vmul.f32 %v8016_v5, %v11403_v4  ;;  %v11412_v4 = vld [vmem:[#allocation34_spill] sm:$0xff] }
 0x275   : > { %v3774_v0 = vadd.f32 %v11395_v31, %v3676_v3  ;;  %v5027_v43 = vpop.eup %5026  ;;  %v8698_v3 = vmul.f32 %v8052_v21, %v11399_v48  ;;  %v2975_v62 = vadd.f32 %v8522_v24, %v2877_v60  ;;  %v8717_v31 = vld [vmem:[#allocation2 + $0x111] sm:$0xff]  ;;  %v2387_v41 = vadd.f32 %v8579_v1, %v2289_v9  ;;  %v11408_v60 = vld [vmem:[#allocation23_spill] sm:$0xff] }
 0x276   : > { %v4210_v34 = vmul.f32 %v5027_v43, %v8644_v29  ;;  %v2002_v23 = vadd.f32 %v1970_v58, %v1904_v19  ;;  %11404 = vst [vmem:[#allocation33_spill] sm:$0xff] %v8717_v31  ;;  %vm4215_vm3 = vweird.f32 %v5027_v43  ;;  %v1388_v6 = vmul.f32 %v8342_v32, %v8709_v15  ;;  %v8725_v24 = vld [vmem:[#allocation2 + $0x112] sm:$0xff] }
 0x277   : > { %v3810_v51 = vmul.f32 %v8419_v2, %v3774_v0  ;;  %v4220_v0 = vand.u32 2147483648, %v8644_v29  ;;  %v3073_v58 = vadd.f32 %v8526_v45, %v2975_v62  ;;  %11405 = vst [vmem:[#allocation13_spill] sm:$0xff] %v8725_v24  ;;  %vm4214_vm4 = vweird.f32 %v8644_v29  ;;  %v11410_v29 = vld [vmem:[#allocation60_spill] sm:$0xff] }
 0x278   : > { %v4211_v17 = vsub.f32 1.0, %v4210_v34  ;;  %v2100_v8 = vadd.f32 %v2068_v27, %v2002_v23  ;;  %vm8728_vm5 = vcmp.eq.f32.partialorder %v4218_v30, 8.507059e+37  ;;  %v1486_v1 = vmul.f32 %v7905_v33, %v8717_v31  ;;  %v8736_v23 = vld [vmem:[#allocation2 + $0x113] sm:$0xff]  ;;  %vm4216_vm6 = vmor %vm4214_vm4, %vm4215_vm3  ;;  %v11411_v33 = vld [vmem:[#allocation3_spill] sm:$0xff] }
 0x279   : > { %v8712_v28 = vadd.f32 %v8441_v50, %v3810_v51  ;;  %v2485_v51 = vadd.f32 %v8583_v61, %v2387_v41  ;;  %v3171_v45 = vadd.f32 %v11408_v60, %v3073_v58  ;;  %11409 = vst [vmem:[#allocation26_spill] sm:$0xff] %v8736_v23  ;;  %v4221_v46 = vor.u32 1.1754944e-38, %v4220_v0  ;;  %v8755_v58 = vld [vmem:[#allocation2 + $0x108] sm:$0xff] }
 0x27a   : > { %v4212_v19 = vmul.f32 %v5027_v43, %v4211_v17  ;;  %v2198_v48 = vadd.f32 %v2166_v55, %v2100_v8  ;;  %v2264_v30 = vmul.f32 %v8045_v11, %v11410_v29  ;;  %v1518_v25 = vadd.f32 %v1486_v1, %v1388_v6  ;;  %v8747_v55 = vld [vmem:[#allocation2 + $0x128] sm:$0xff]  ;;  %v11415_v8 = vld [vmem:[#allocation65_spill] sm:$0xff]  ;;  %11416 = vst [vmem:[#allocation47_spill] sm:$0xff] %v8755_v58  ;;  %v11419_v1 = vld [vmem:[#allocation19_spill] sm:$0xff] }
 0x27b   : > { %v3878_v37 = vsub.f32 0.0, %v8712_v28  ;;  %v1584_v61 = vmul.f32 %v7936_v20, %v8725_v24  ;;  %v3269_v62 = vadd.f32 %v11411_v33, %v3171_v45  ;;  %v2583_v41 = vadd.f32 %v11412_v4, %v2485_v51  ;;  %11414 = vst [vmem:[#allocation11_spill] sm:$0xff] %v8747_v55  ;;  %v8757_v20 = vld [vmem:[#allocation2 + $0x109] sm:$0xff]  ;;  %v11423_v29 = vld [vmem:[#allocation67_spill] sm:$0xff]  ;;  %v8844_v24 = vld [vmem:[#allocation2 + $0x158] sm:$0xff] }
 0x27c   : > { %v4213_v9 = vadd.f32 %v5027_v43, %v4212_v19  ;;  %v8745_v19 = vld [vmem:[#allocation2 + $0x114] sm:$0xff]  ;;  %11417 = vst [vmem:[#allocation49_spill] sm:$0xff] %v8757_v20  ;;  %v1682_v51 = vmul.f32 %v7943_v36, %v8736_v23  ;;  %v2296_v45 = vadd.f32 %v2264_v30, %v2198_v48  ;;  %v8774_v33 = vld [vmem:[#allocation2 + $0x120] sm:$0xff] }
 0x27d   : > { %v3932_v27 = vmul.f32 1.442695, %v3878_v37  ;;  %11413 = vst [vmem:[#allocation7_spill] sm:$0xff] %v8745_v19  ;;  %v8753_v37 = vmul.f32 %v8083_v14, %v11415_v8  ;;  %v1616_v6 = vadd.f32 %v1584_v61, %v1518_v25  ;;  %v2681_v34 = vadd.f32 %v8591_v47, %v2583_v41  ;;  %v8768_v14 = vld [vmem:[#allocation2 + $0x10c] sm:$0xff]  ;;  %v8776_v25 = vld [vmem:[#allocation2 + $0x121] sm:$0xff] }
 0x27e   : > { %v4217_v17 = vsel %vm4216_vm6, %v5027_v43, %v4213_v9  ;;  %v8759_v43 = vld [vmem:[#allocation2 + $0x10a] sm:$0xff]  ;;  %11422 = vst [vmem:[#allocation54_spill] sm:$0xff] %v8768_v14  ;;  %v1780_v61 = vmul.f32 %v7969_v56, %v8745_v19  ;;  %v1879_v47 = vmul.f32 %v8160_v26, %v8747_v55  ;;  %v8796_v56 = vld [vmem:[#allocation2 + $0x122] sm:$0xff] }
 0x27f   : > { %5028 = vpow2.f32 %v3932_v27  ;;  %v4222_v0 = vsel %vm8728_vm5, %v4221_v46, %v4217_v17  ;;  %11418 = vst [vmem:[#allocation8_spill] sm:$0xff] %v8759_v43  ;;  %v11420_v27 = vld [vmem:[#allocation40_spill] sm:$0xff]  ;;  %v8772_v17 = vmul.f32 %v8099_v42, %v11423_v29  ;;  %v1714_v36 = vadd.f32 %v1682_v51, %v1616_v6  ;;  %v11426_v48 = vld [vmem:[#allocation9_spill] sm:$0xff] }
 0x280   : > { %v4479_v9 = vmul.f32 %v4222_v0, %v11419_v1  ;;  %v3368_v60 = vadd.f32 %v11420_v27, %v3269_v62  ;;  %v8766_v46 = vld [vmem:[#allocation2 + $0x10b] sm:$0xff]  ;;  %11424 = vst [vmem:[#allocation66_spill] sm:$0xff] %v8774_v33  ;;  %v8786_v62 = vmul.f32 %v8108_v54, %v8755_v58  ;;  %v8790_v42 = vmul.f32 %v8119_v38, %v8757_v20  ;;  %v8807_v51 = vld [vmem:[#allocation2 + $0x123] sm:$0xff]  ;;  %v11437_v20 = vld [vmem:[#allocation50_spill] sm:$0xff] }
 0x281   : > { %11421 = vst [vmem:[#allocation53_spill] sm:$0xff] %v8766_v46  ;;  %v8794_v4 = vmul.f32 %v8132_v63, %v8759_v43  ;;  %v2779_v41 = vadd.f32 %v8598_v22, %v2681_v34  ;;  %v8801_v0 = vmul.f32 %v8143_v57, %v8766_v46  ;;  %v11428_v8 = vld [vmem:[#allocation69_spill] sm:$0xff]  ;;  %v1812_v1 = vadd.f32 %v1780_v61, %v1714_v36  ;;  %v11432_v22 = vld [vmem:[#allocation70_spill] sm:$0xff]  ;;  %v11440_v58 = vld [vmem:[#allocation32_spill] sm:$0xff] }
 0x282   : > { %11425 = vst [vmem:[#allocation24_spill] sm:$0xff] %v8776_v25  ;;  %4590 = vrot.lane.b32.xlu0 %v4479_v9, %s5231_s17  ;;  %v3466_v30 = vadd.f32 %v11426_v48, %v3368_v60  ;;  %v8805_v6 = vmul.f32 %v11428_v8, %v8768_v14  ;;  %v8809_v9 = vld [vmem:[#allocation2 + $0x129] sm:$0xff]  ;;  %v2394_v48 = vadd.f32 %v8698_v3, %v2296_v45 }
 0x283   : > { %11427 = vst [vmem:[#allocation68_spill] sm:$0xff] %v8796_v56  ;;  %v11431_v60 = vld [vmem:[#allocation36_spill] sm:$0xff]  ;;  %v8815_v34 = vmul.f32 %v11432_v22, %v8774_v33  ;;  %v8819_v46 = vmul.f32 %v8191_v59, %v8776_v25  ;;  %v8832_v3 = vmul.f32 %v8211_v39, %v8796_v56  ;;  %v1911_v45 = vadd.f32 %v1879_v47, %v1812_v1  ;;  %v8859_v1 = vld [vmem:[#allocation2 + $0x15b] sm:$0xff] }
 0x284   : > { %11429 = vst [vmem:[#allocation37_spill] sm:$0xff] %v8807_v51  ;;  %v3564_v29 = vadd.f32 %v11431_v60, %v3466_v30  ;;  %v8821_v14 = vld [vmem:[#allocation2 + $0x124] sm:$0xff]  ;;  %v2878_v30 = vadd.f32 %v11437_v20, %v2779_v41  ;;  %v8834_v60 = vld [vmem:[#allocation2 + $0x12c] sm:$0xff]  ;;  %v2492_v19 = vadd.f32 %v8703_v7, %v2394_v48  ;;  %v8840_v23 = vmul.f32 %v8224_v18, %v8807_v51  ;;  %v8846_v20 = vld [vmem:[#allocation2 + $0x159] sm:$0xff] }
 0x285   : > { %11430 = vst [vmem:[#allocation31_spill] sm:$0xff] %v8809_v9  ;;  %v5029_v27 = vpop.eup %5028  ;;  %v8823_v43 = vld [vmem:[#allocation2 + $0x12a] sm:$0xff]  ;;  %v8848_v41 = vld [vmem:[#allocation2 + $0x15a] sm:$0xff] }
 0x286   : > { %11433 = vst [vmem:[#allocation18_spill] sm:$0xff] %v8819_v46  ;;  %v8825_v36 = vld [vmem:[#allocation2 + $0x12b] sm:$0xff]  ;;  %v8827_v61 = vadd.f32 1.0, %v5029_v27  ;;  %v3662_v55 = vadd.f32 %v11440_v58, %v3564_v29  ;;  %v1977_v27 = vmul.f32 %v8201_v52, %v8809_v9  ;;  %v8853_v58 = vmul.f32 %v8241_v12, %v8821_v14  ;;  %v11447_v29 = vld [vmem:[#allocation6_spill] sm:$0xff]  ;;  %v11448_v9 = vld [vmem:[#allocation51_spill] sm:$0xff] }
 0x287   : > { %11434 = vst [vmem:[#allocation56_spill] sm:$0xff] %v8821_v14  ;;  %v2075_v7 = vmul.f32 %v8316_v40, %v8823_v43  ;;  %v2173_v47 = vmul.f32 %v8016_v5, %v8825_v36  ;;  %v2976_v31 = vadd.f32 %v11448_v9, %v2878_v30  ;;  %v8868_v46 = vld [vmem:[#allocation2 + $0x140] sm:$0xff]  ;;  %v8876_v5 = vmul.f32 %v8119_v38, %v8846_v20  ;;  %v11451_v9 = vld [vmem:[#allocation52_spill] sm:$0xff] }
 0x288   : > { %11435 = vst [vmem:[#allocation72_spill] sm:$0xff] %v8823_v43  ;;  %5030 = vrcp.f32 %v8827_v61  ;;  %v3760_v48 = vadd.f32 %v11447_v29, %v3662_v55  ;;  %v2009_v15 = vadd.f32 %v1977_v27, %v1911_v45  ;;  %v8872_v43 = vmul.f32 %v8108_v54, %v8844_v24 }
 0x289   : > { %11436 = vst [vmem:[#allocation41_spill] sm:$0xff] %v8825_v36  ;;  %v8880_v55 = vmul.f32 %v8132_v63, %v8848_v41  ;;  %v3074_v30 = vadd.f32 %v11451_v9, %v2976_v31  ;;  %v1389_v63 = vmul.f32 %v8342_v32, %v8774_v33  ;;  %v8900_v31 = vld [vmem:[%s10671_s4 + $0x1] ss:$0 sm:$0xff]  ;;  %vm4319_vm8 = vweird.f32 %v8827_v61  ;;  %v2421_v36 = vld [vmem:[#allocation2 + $0xa9] sm:$0xff] }
 0x28a   : > { %11438 = vst [vmem:[#allocation48_spill] sm:$0xff] %v8832_v3  ;;  %v8865_v3 = vld [vmem:[#allocation2 + $0x15c] sm:$0xff]  ;;  %v2107_v45 = vadd.f32 %v2075_v7, %v2009_v15 }
 0x28b   : > { %11439 = vst [vmem:[#allocation10_spill] sm:$0xff] %v8834_v60  ;;  %v8893_v38 = vmul.f32 %v11428_v8, %v8865_v3  ;;  %v2369_v8 = vmul.f32 %v8052_v21, %v8868_v46  ;;  %v8910_v7 = vld [vmem:[#allocation2 + $0x142] sm:$0xff] }
 0x28c   : > { %11441 = vst [vmem:[#allocation4_spill] sm:$0xff] %v8840_v23  ;;  %v2271_v23 = vmul.f32 %v8045_v11, %v8834_v60  ;;  %v3796_v11 = vmul.f32 %v8419_v2, %v3760_v48  ;;  %v9168_v60 = vld [vmem:[%s10671_s4 + $0x16] ss:$0 sm:$0xff] }
 0x28d   : > { %11442 = vst [vmem:[#allocation73_spill] sm:$0xff] %v8844_v24 }
 0x28e   : > { %11443 = vst [vmem:[#allocation71_spill] sm:$0xff] %v8846_v20  ;;  %v8905_v15 = vadd.f32 %v8441_v50, %v3796_v11  ;;  %v5031_v29 = vpop.eup %5030  ;;  %v4323_v20 = vand.u32 2147483647, %v8827_v61 }
 0x28f   : > { %11444 = vst [vmem:[#allocation57_spill] sm:$0xff] %v8848_v41  ;;  %vm4320_vm7 = vweird.f32 %v5031_v29 }
 0x290   : > { %11445 = vst [vmem:[#allocation58_spill] sm:$0xff] %v8853_v58  ;;  %v2590_v58 = vadd.f32 %v8707_v49, %v2492_v19  ;;  %v8886_v49 = vmul.f32 %v8143_v57, %v8859_v1  ;;  %v8889_v19 = vld [vmem:[#allocation2 + $0x141] sm:$0xff]  ;;  %v1487_v57 = vmul.f32 %v8900_v31, %v8776_v25  ;;  %v8937_v25 = vld [vmem:[#allocation2 + $0x138] sm:$0xff]  ;;  %vm4321_vm9 = vmor %vm4319_vm8, %vm4320_vm7  ;;  %vm4324_vm10 = vcmp.eq.f32.partialorder %v4323_v20, 8.507059e+37 }
 0x291   : > { %11446 = vst [vmem:[#allocation61_spill] sm:$0xff] %v8859_v1  ;;  %v2565_v1 = vmul.f32 %v8076_v16, %v8910_v7  ;;  %v8985_v20 = vld [vmem:[#allocation2 + $0x174] sm:$0xff] }
 0x292   : > { %11449 = vst [vmem:[#allocation63_spill] sm:$0xff] %v8865_v3  ;;  %v2688_v54 = vadd.f32 %v8753_v37, %v2590_v58  ;;  %v11453_v37 = vld [vmem:[#allocation55_spill] sm:$0xff]  ;;  %v2205_v58 = vadd.f32 %v2173_v47, %v2107_v45  ;;  %v1519_v9 = vadd.f32 %v1487_v57, %v1389_v63  ;;  %v11455_v45 = vld [vmem:[#allocation14_spill] sm:$0xff]  ;;  %v2467_v63 = vmul.f32 %v8067_v13, %v8889_v19 }
 0x293   : > { %11450 = vst [vmem:[#allocation64_spill] sm:$0xff] %v8868_v46  ;;  %v3172_v27 = vadd.f32 %v11453_v37, %v3074_v30  ;;  %v8916_v3 = vld [vmem:[%s10671_s4 + $0x2] ss:$0 sm:$0xff]  ;;  %v8923_v47 = vld [vmem:[%s10671_s4 + $0x3] ss:$0 sm:$0xff]  ;;  %v4315_v30 = vmul.f32 %v5031_v29, %v8827_v61 }
 0x294   : > { %11452 = vst [vmem:[#allocation59_spill] sm:$0xff] %v8889_v19  ;;  %v2786_v48 = vadd.f32 %v8772_v17, %v2688_v54  ;;  %v1585_v11 = vmul.f32 %v8916_v3, %v8796_v56  ;;  %v1683_v21 = vmul.f32 %v8923_v47, %v8807_v51  ;;  %v3864_v17 = vsub.f32 0.0, %v8905_v15  ;;  %v11456_v51 = vld [vmem:[#allocation22_spill] sm:$0xff]  ;;  %v8941_v19 = vld [vmem:[#allocation2 + $0x143] sm:$0xff] }
 0x295   : > { %11454 = vst [vmem:[#allocation23_spill] sm:$0xff] %v8910_v7  ;;  %v3270_v54 = vadd.f32 %v11455_v45, %v3172_v27  ;;  %v2303_v37 = vadd.f32 %v2271_v23, %v2205_v58  ;;  %v4316_v46 = vsub.f32 1.0, %v4315_v30  ;;  %v4325_v27 = vand.u32 2147483648, %v8827_v61 }
 0x296   : > { %v2885_v57 = vadd.f32 %v8786_v62, %v2786_v48  ;;  %v1617_v41 = vadd.f32 %v1585_v11, %v1519_v9  ;;  %v3904_v24 = vmul.f32 1.442695, %v3864_v17  ;;  %11457 = vst [vmem:[#allocation60_spill] sm:$0xff] %v8937_v25  ;;  %v8945_v9 = vld [vmem:[#allocation2 + $0x144] sm:$0xff]  ;;  %v8974_v17 = vld [vmem:[%s10671_s4 + $0xe] ss:$0 sm:$0xff] }
 0x297   : > { %v3369_v56 = vadd.f32 %v11456_v51, %v3270_v54  ;;  %v2401_v13 = vadd.f32 %v2369_v8, %v2303_v37  ;;  %11458 = vst [vmem:[#allocation3_spill] sm:$0xff] %v8941_v19  ;;  %v4317_v62 = vmul.f32 %v5031_v29, %v4316_v46  ;;  %v8950_v51 = vld [vmem:[%s10671_s4 + $0x4] ss:$0 sm:$0xff]  ;;  %v1880_v46 = vmul.f32 %v8160_v26, %v8937_v25  ;;  %v8968_v26 = vld [vmem:[#allocation2 + $0x171] sm:$0xff] }
 0x298   : > { %v2983_v45 = vadd.f32 %v8790_v42, %v2885_v57  ;;  %v1715_v23 = vadd.f32 %v1683_v21, %v1617_v41  ;;  %5032 = vpow2.f32 %v3904_v24  ;;  %11459 = vst [vmem:[#allocation34_spill] sm:$0xff] %v8945_v9  ;;  %v1781_v42 = vmul.f32 %v8950_v51, %v8821_v14  ;;  %v8961_v24 = vld [vmem:[%s10671_s4 + $0xd] ss:$0 sm:$0xff]  ;;  %v8966_v21 = vld [vmem:[#allocation2 + $0x170] sm:$0xff]  ;;  %v3515_v25 = vld [vmem:[#allocation2 + $0x182] sm:$0xff] }
 0x299   : > { %v3467_v16 = vadd.f32 %v8642_v53, %v3369_v56  ;;  %v2499_v48 = vadd.f32 %v2467_v63, %v2401_v13  ;;  %v4318_v41 = vadd.f32 %v5031_v29, %v4317_v62  ;;  %v4326_v56 = vor.u32 1.1754944e-38, %v4325_v27  ;;  %11460 = vst [vmem:[#allocation65_spill] sm:$0xff] %v8966_v21  ;;  %v8978_v63 = vld [vmem:[#allocation2 + $0x139] sm:$0xff] }
 0x29a   : > { %v3081_v58 = vadd.f32 %v8794_v4, %v2983_v45  ;;  %v2663_v4 = vmul.f32 %v8961_v24, %v8941_v19  ;;  %11461 = vst [vmem:[#allocation19_spill] sm:$0xff] %v8968_v26  ;;  %v1813_v61 = vadd.f32 %v1781_v42, %v1715_v23  ;;  %v2761_v54 = vmul.f32 %v8974_v17, %v8945_v9  ;;  %v8981_v37 = vld [vmem:[#allocation2 + $0x172] sm:$0xff]  ;;  %v8997_v62 = vld [vmem:[#allocation2 + $0x13a] sm:$0xff]  ;;  %v9103_v9 = vld [vmem:[%s10671_s4 + $0x11] ss:$0 sm:$0xff] }
 0x29b   : > { %v3565_v53 = vadd.f32 %v8671_v35, %v3467_v16  ;;  %v2597_v11 = vadd.f32 %v2565_v1, %v2499_v48  ;;  %v4322_v30 = vsel %vm4321_vm9, %v5031_v29, %v4318_v41  ;;  %11462 = vst [vmem:[#allocation40_spill] sm:$0xff] %v8978_v63  ;;  %v8983_v29 = vld [vmem:[#allocation2 + $0x173] sm:$0xff]  ;;  %v8991_v23 = vmul.f32 %v11432_v22, %v8966_v21  ;;  %v9004_v42 = vld [vmem:[#allocation2 + $0x13b] sm:$0xff] }
 0x29c   : > { %v3179_v8 = vadd.f32 %v8801_v0, %v3081_v58  ;;  %v4327_v0 = vsel %vm4324_vm10, %v4326_v56, %v4322_v30  ;;  %11463 = vst [vmem:[#allocation67_spill] sm:$0xff] %v8981_v37  ;;  %v2076_v41 = vmul.f32 %v8316_v40, %v8997_v62  ;;  %v3417_v19 = vld [vmem:[#allocation2 + $0x181] sm:$0xff]  ;;  %v11485_v21 = vld [vmem:[#allocation29_spill] sm:$0xff] }
 0x29d   : > { %v3663_v35 = vadd.f32 %v8679_v10, %v3565_v53  ;;  %v2695_v57 = vadd.f32 %v2663_v4, %v2597_v11  ;;  %11464 = vst [vmem:[#allocation9_spill] sm:$0xff] %v8983_v29  ;;  %v1912_v10 = vadd.f32 %v1880_v46, %v1813_v61  ;;  %v4486_v45 = vmul.f32 %v4327_v0, %v8712_v28  ;;  %v9028_v53 = vld [vmem:[%s10671_s4 + $0xa] ss:$0 sm:$0xff]  ;;  %v9048_v61 = vld [vmem:[%s10671_s4 + $0x9] ss:$0 sm:$0xff]  ;;  %v11471_v0 = vld [vmem:[#allocation46_spill] sm:$0xff] }
 0x29e   : > { %v3277_v1 = vadd.f32 %v8805_v6, %v3179_v8  ;;  %11465 = vst [vmem:[#allocation69_spill] sm:$0xff] %v8985_v20  ;;  %v5033_v27 = vpop.eup %5032  ;;  %v8995_v6 = vmul.f32 %v8191_v59, %v8968_v26  ;;  %v1978_v28 = vmul.f32 %v8201_v52, %v8978_v63  ;;  %v9012_v59 = vmul.f32 %v8211_v39, %v8981_v37  ;;  %v11469_v39 = vld [vmem:[#allocation12_spill] sm:$0xff]  ;;  %v9117_v37 = vld [vmem:[%s10671_s4 + $0x12] ss:$0 sm:$0xff]  ;;  %v11483_v26 = vld [vmem:[#allocation38_spill] sm:$0xff] }
 0x29f   : > { %v3761_v13 = vadd.f32 %v8686_v44, %v3663_v35  ;;  %11466 = vst [vmem:[#allocation36_spill] sm:$0xff] %v8997_v62  ;;  %v8999_v16 = vadd.f32 1.0, %v5033_v27  ;;  %v2793_v48 = vadd.f32 %v2761_v54, %v2695_v57  ;;  %v9006_v44 = vld [vmem:[#allocation2 + $0x13c] sm:$0xff]  ;;  %4604 = vrot.lane.b32.xlu1 %v4486_v45, %s5231_s17  ;;  %v9016_v46 = vmul.f32 %v8224_v18, %v8983_v29  ;;  %v9041_v8 = vld [vmem:[%s10671_s4 + $0x8] ss:$0 sm:$0xff]  ;;  %v11473_v45 = vld [vmem:[#allocation17_spill] sm:$0xff] }
 0x2a0   : > { %v3376_v58 = vadd.f32 %v8815_v34, %v3277_v1  ;;  %11467 = vst [vmem:[#allocation70_spill] sm:$0xff] %v9004_v42  ;;  %v9020_v34 = vmul.f32 %v8241_v12, %v8985_v20  ;;  %v2010_v52 = vadd.f32 %v1978_v28, %v1912_v10  ;;  %v9032_v4 = vmul.f32 %v9028_v53, %v11469_v39  ;;  %v11470_v12 = vld [vmem:[#allocation18_spill] sm:$0xff]  ;;  %v9056_v54 = vld [vmem:[%s10671_s4 + $0xb] ss:$0 sm:$0xff]  ;;  %v9065_v57 = vld [vmem:[%s10671_s4 + $0xc] ss:$0 sm:$0xff] }
 0x2a1   : > { %11468 = vst [vmem:[#allocation50_spill] sm:$0xff] %v9006_v44  ;;  %v3797_v22 = vmul.f32 %v8419_v2, %v3761_v13  ;;  %5034 = vrcp.f32 %v8999_v16  ;;  %v2174_v11 = vmul.f32 %v9041_v8, %v9004_v42  ;;  %v2272_v30 = vmul.f32 %v9048_v61, %v9006_v44  ;;  %v11472_v10 = vld [vmem:[#allocation20_spill] sm:$0xff]  ;;  %v11475_v28 = vld [vmem:[#allocation21_spill] sm:$0xff]  ;;  %v11479_v44 = vld [vmem:[#allocation42_spill] sm:$0xff] }
 0x2a2   : > { %v3474_v56 = vadd.f32 %v11470_v12, %v3376_v58  ;;  %v2892_v35 = vadd.f32 %v8872_v43, %v2793_v48  ;;  %v9060_v1 = vmul.f32 %v9056_v54, %v11471_v0  ;;  %v9069_v27 = vmul.f32 %v9065_v57, %v11472_v10  ;;  %v11474_v58 = vld [vmem:[#allocation48_spill] sm:$0xff]  ;;  %v11476_v12 = vld [vmem:[#allocation62_spill] sm:$0xff]  ;;  %11482 = vst [vmem:[#allocation51_spill] sm:$0xff] %v9117_v37  ;;  %v11489_v63 = vld [vmem:[#allocation39_spill] sm:$0xff] }
 0x2a3   : > { %v9035_v18 = vadd.f32 %v8441_v50, %v3797_v22  ;;  %v9073_v43 = vmul.f32 %v8961_v24, %v11473_v45  ;;  %v9079_v22 = vmul.f32 %v8974_v17, %v11475_v28  ;;  %v9084_v39 = vld [vmem:[%s10671_s4 + $0xf] ss:$0 sm:$0xff]  ;;  %v2108_v45 = vadd.f32 %v2076_v41, %v2010_v52  ;;  %11497 = vst [vmem:[#allocation20_spill] sm:$0xff] %v9168_v60 }
 0x2a4   : > { %v3572_v48 = vadd.f32 %v11474_v58, %v3474_v56  ;;  %v9088_v0 = vmul.f32 %v9084_v39, %v11476_v12  ;;  %v2990_v10 = vadd.f32 %v8876_v5, %v2892_v35  ;;  %v9094_v56 = vld [vmem:[%s10671_s4 + $0x10] ss:$0 sm:$0xff]  ;;  %v11477_v58 = vld [vmem:[#allocation43_spill] sm:$0xff]  ;;  %v9107_v12 = vmul.f32 %v9103_v9, %v11479_v44  ;;  %v11481_v42 = vld [vmem:[#allocation4_spill] sm:$0xff] }
 0x2a5   : > { %v3865_v13 = vsub.f32 0.0, %v9035_v18  ;;  %v9098_v28 = vmul.f32 %v9094_v56, %v11477_v58  ;;  %v3319_v5 = vld [vmem:[#allocation2 + $0x180] sm:$0xff]  ;;  %v4113_v52 = vand.u32 2147483647, %v8999_v16  ;;  %v4115_v41 = vand.u32 2147483648, %v8999_v16  ;;  %v11486_v62 = vld [vmem:[#allocation76_spill] sm:$0xff] }
 0x2a6   : > { %11480 = vst [vmem:[#allocation6_spill] sm:$0xff] %v9107_v12  ;;  %v3670_v20 = vadd.f32 %v11481_v42, %v3572_v48  ;;  %v2206_v29 = vadd.f32 %v2174_v11, %v2108_v45  ;;  %v9121_v44 = vmul.f32 %v9117_v37, %v11483_v26  ;;  %v1375_v7 = vmul.f32 %v8342_v32, %v11485_v21  ;;  %v11487_v11 = vld [vmem:[#allocation58_spill] sm:$0xff]  ;;  %v9133_v45 = vld [vmem:[%s10671_s4 + $0x13] ss:$0 sm:$0xff] }
 0x2a7   : > { %11478 = vst [vmem:[#allocation32_spill] sm:$0xff] %v9098_v28  ;;  %v3906_v35 = vmul.f32 1.442695, %v3865_v13  ;;  %v9112_v58 = vpop.eup %5034  ;;  %v1473_v13 = vmul.f32 %v8900_v31, %v11486_v62  ;;  %v9137_v26 = vmul.f32 %v9133_v45, %v11489_v63  ;;  %vm4109_vm0 = vweird.f32 %v8999_v16  ;;  %v9144_v62 = vld [vmem:[%s10671_s4 + $0x14] ss:$0 sm:$0xff]  ;;  %v11513_v12 = vld [vmem:[#allocation78_spill] sm:$0xff] }
 0x2a8   : > { %11484 = vst [vmem:[#allocation52_spill] sm:$0xff] %v9121_v44  ;;  %v4105_v42 = vmul.f32 %v9112_v58, %v8999_v16  ;;  %v3768_v48 = vadd.f32 %v11487_v11, %v3670_v20  ;;  %v3088_v21 = vadd.f32 %v8880_v55, %v2990_v10  ;;  %v9147_v20 = vmul.f32 %v9144_v62, %v3319_v5  ;;  %v3613_v11 = vld [vmem:[#allocation2 + $0x183] sm:$0xff]  ;;  %v2715_v28 = vld [vmem:[#allocation2 + $0xac] sm:$0xff] }
 0x2a9   : > { %5036 = vpow2.f32 %v3906_v35  ;;  %11488 = vst [vmem:[#allocation55_spill] sm:$0xff] %v9133_v45  ;;  %v9152_v35 = vld [vmem:[%s10671_s4 + $0x15] ss:$0 sm:$0xff]  ;;  %vm9157_vm11 = vcmp.eq.f32.partialorder %v4113_v52, 8.507059e+37  ;;  %v4116_v10 = vor.u32 1.1754944e-38, %v4115_v41  ;;  %v1505_v52 = vadd.f32 %v1473_v13, %v1375_v7  ;;  %v11512_v44 = vld [vmem:[#allocation79_spill] sm:$0xff] }
 0x2aa   : > { %11490 = vst [vmem:[#allocation14_spill] sm:$0xff] %v9137_v26  ;;  %v9155_v63 = vmul.f32 %v9152_v35, %v3417_v19  ;;  %v4106_v14 = vsub.f32 1.0, %v4105_v42  ;;  %v3804_v33 = vmul.f32 %v8419_v2, %v3768_v48  ;;  %v3711_v26 = vld [vmem:[#allocation2 + $0x184] sm:$0xff]  ;;  %v3186_v5 = vadd.f32 %v8886_v49, %v3088_v21  ;;  %v9181_v49 = vld [vmem:[%s10671_s4 + $0x17] ss:$0 sm:$0xff] }
 0x2ab   : > { %11491 = vst [vmem:[#allocation22_spill] sm:$0xff] %v9144_v62  ;;  %v9171_v19 = vmul.f32 %v9168_v60, %v3515_v25  ;;  %vm4110_vm2 = vweird.f32 %v9112_v58  ;;  %v9190_v25 = vld [vmem:[%s10671_s4 + $0x18] ss:$0 sm:$0xff]  ;;  %v9200_v13 = vld [vmem:[%s10671_s4 + $0x5] ss:$0 sm:$0xff]  ;;  %v11505_v48 = vld [vmem:[#allocation5_spill] sm:$0xff]  ;;  %v9239_v16 = vmul.f32 %v9048_v61, %v11513_v12 }
 0x2ac   : > { %11492 = vst [vmem:[#allocation12_spill] sm:$0xff] %v9147_v20  ;;  %v9163_v20 = vadd.f32 %v2272_v30, %v2206_v29  ;;  %v4107_v42 = vmul.f32 %v9112_v58, %v4106_v14  ;;  %v9176_v41 = vadd.f32 %v8441_v50, %v3804_v33  ;;  %v9184_v29 = vmul.f32 %v9181_v49, %v3613_v11  ;;  %v11504_v33 = vld [vmem:[#allocation77_spill] sm:$0xff]  ;;  %vm4111_vm12 = vmor %vm4109_vm0, %vm4110_vm2 }
 0x2ad   : > { %11493 = vst [vmem:[#allocation18_spill] sm:$0xff] %v9152_v35  ;;  %v3284_v30 = vadd.f32 %v8893_v38, %v3186_v5  ;;  %v9193_v14 = vmul.f32 %v9190_v25, %v3711_v26  ;;  %v1571_v7 = vmul.f32 %v8916_v3, %v11504_v33  ;;  %v9204_v21 = vmul.f32 %v9200_v13, %v11505_v48  ;;  %v9211_v26 = vld [vmem:[%s10671_s4 + $0x6] ss:$0 sm:$0xff]  ;;  %v11506_v33 = vld [vmem:[#allocation30_spill] sm:$0xff]  ;;  %v2323_v48 = vld [vmem:[#allocation2 + $0xa8] sm:$0xff] }
 0x2ae   : > { %11494 = vst [vmem:[#allocation46_spill] sm:$0xff] %v9155_v63  ;;  %v4108_v11 = vadd.f32 %v9112_v58, %v4107_v42  ;;  %v3872_v5 = vsub.f32 0.0, %v9176_v41  ;;  %v9221_v63 = vld [vmem:[#allocation2 + $0xc8] sm:$0xff] }
 0x2af   : > { %11498 = vst [vmem:[#allocation17_spill] sm:$0xff] %v9171_v19  ;;  %v5037_v38 = vpop.eup %5036  ;;  %v9256_v55 = vld [vmem:[#allocation2 + $0xca] sm:$0xff] }
 0x2b0   : > { %11499 = vst [vmem:[#allocation48_spill] sm:$0xff] %v9176_v41  ;;  %v9227_v42 = vadd.f32 1.0, %v5037_v38  ;;  %v3383_v41 = vadd.f32 %v8991_v23, %v3284_v30  ;;  %v2617_v38 = vld [vmem:[#allocation2 + $0xab] sm:$0xff] }
 0x2b1   : > { %11500 = vst [vmem:[#allocation21_spill] sm:$0xff] %v9181_v49  ;;  %v11511_v49 = vld [vmem:[#allocation75_spill] sm:$0xff]  ;;  %v9241_v23 = vld [vmem:[#allocation2 + $0xc9] sm:$0xff] }
 0x2b2   : > { %11501 = vst [vmem:[#allocation62_spill] sm:$0xff] %v9184_v29  ;;  %v11508_v29 = vld [vmem:[#allocation74_spill] sm:$0xff]  ;;  %5038 = vrcp.f32 %v9227_v42  ;;  %v3481_v12 = vadd.f32 %v8995_v6, %v3383_v41  ;;  %vm4124_vm13 = vweird.f32 %v9227_v42 }
 0x2b3   : > { %11502 = vst [vmem:[#allocation43_spill] sm:$0xff] %v9190_v25  ;;  %v9219_v19 = vmul.f32 %v8316_v40, %v11508_v29  ;;  %v1603_v25 = vadd.f32 %v1571_v7, %v1505_v52  ;;  %v2519_v40 = vld [vmem:[#allocation2 + $0xaa] sm:$0xff]  ;;  %v4112_v29 = vsel %vm4111_vm12, %v9112_v58, %v4108_v11  ;;  %v2814_v58 = vld [vmem:[#allocation2 + $0xc0] sm:$0xff]  ;;  %v9254_v7 = vmul.f32 %v9056_v54, %v2421_v36 }
 0x2b4   : > { %11503 = vst [vmem:[#allocation42_spill] sm:$0xff] %v9193_v14  ;;  %v9215_v14 = vmul.f32 %v9211_v26, %v11506_v33  ;;  %v9232_v33 = vmul.f32 %v9041_v8, %v11511_v49  ;;  %v4117_v52 = vsel %vm9157_vm11, %v4116_v10, %v4112_v29  ;;  %v9247_v49 = vmul.f32 %v9028_v53, %v2323_v48  ;;  %v2912_v11 = vld [vmem:[#allocation2 + $0xc1] sm:$0xff] }
 0x2b5   : > { %11509 = vst [vmem:[#allocation38_spill] sm:$0xff] %v9219_v19  ;;  %v3920_v19 = vmul.f32 1.442695, %v3872_v5  ;;  %v4472_v30 = vmul.f32 %v4117_v52, %v8905_v15  ;;  %v9259_v10 = vmul.f32 %v9065_v57, %v2519_v40  ;;  %v9262_v5 = vmul.f32 %v8961_v24, %v2617_v38  ;;  %v3108_v29 = vld [vmem:[#allocation2 + $0xc3] sm:$0xff]  ;;  %v9276_v38 = vld [vmem:[#allocation2 + $0xf8] sm:$0xff] }
 0x2b6   : > { %11507 = vst [vmem:[#allocation4_spill] sm:$0xff] %v9215_v14  ;;  %v1669_v14 = vmul.f32 %v8923_v47, %v11512_v44  ;;  %v1382_v44 = vmul.f32 %v8342_v32, %v9221_v63  ;;  %v9265_v48 = vmul.f32 %v8974_v17, %v2715_v28  ;;  %v3010_v32 = vld [vmem:[#allocation2 + $0xc2] sm:$0xff]  ;;  %v1480_v15 = vmul.f32 %v8900_v31, %v9241_v23  ;;  %v9278_v28 = vld [vmem:[#allocation2 + $0xf9] sm:$0xff] }
 0x2b7   : > { %11510 = vst [vmem:[#allocation29_spill] sm:$0xff] %v9221_v63  ;;  %5040 = vpow2.f32 %v3920_v19  ;;  %4576 = vrot.lane.b32.xlu2 %v4472_v30, %s5231_s17  ;;  %v3579_v36 = vadd.f32 %v9012_v59, %v3481_v12  ;;  %v11516_v19 = vld [vmem:[#allocation44_spill] sm:$0xff]  ;;  %v9274_v40 = vmul.f32 %v9084_v39, %v2814_v58  ;;  %v4128_v52 = vand.u32 2147483647, %v9227_v42 }
 0x2b8   : > { %11514 = vst [vmem:[#allocation76_spill] sm:$0xff] %v9241_v23  ;;  %v1701_v6 = vadd.f32 %v1669_v14, %v1603_v25  ;;  %v1767_v41 = vmul.f32 %v8950_v51, %v11516_v19  ;;  %v9282_v23 = vmul.f32 %v9094_v56, %v2912_v11  ;;  %v3206_v30 = vld [vmem:[#allocation2 + $0xc4] sm:$0xff]  ;;  %v1512_v63 = vadd.f32 %v1480_v15, %v1382_v44 }
 0x2b9   : > { %11515 = vst [vmem:[#allocation58_spill] sm:$0xff] %v9256_v55  ;;  %v1578_v59 = vmul.f32 %v8916_v3, %v9256_v55  ;;  %v4130_v25 = vand.u32 2147483648, %v9227_v42  ;;  %v3677_v14 = vadd.f32 %v9016_v46, %v3579_v36  ;;  %v2402_v58 = vadd.f32 %v9032_v4, %v9163_v20  ;;  %v9293_v19 = vld [vmem:[#allocation2 + $0xcb] sm:$0xff] }
 0x2ba   : > { %11517 = vst [vmem:[#allocation39_spill] sm:$0xff] %v9274_v40  ;;  %v9291_v12 = vmul.f32 %v9103_v9, %v3010_v32  ;;  %v5039_v40 = vpop.eup %5038  ;;  %v9296_v11 = vmul.f32 %v9117_v37, %v3108_v29  ;;  %v9300_v15 = vmul.f32 %v9028_v53, %v9276_v38  ;;  %v9304_v46 = vmul.f32 %v9056_v54, %v9278_v28  ;;  %v9313_v29 = vld [vmem:[#allocation2 + $0xcc] sm:$0xff] }
 0x2bb   : > { %11518 = vst [vmem:[#allocation77_spill] sm:$0xff] %v9276_v38  ;;  %v1610_v44 = vadd.f32 %v1578_v59, %v1512_v63  ;;  %v4120_v4 = vmul.f32 %v5039_v40, %v9227_v42  ;;  %v3775_v20 = vadd.f32 %v9020_v34, %v3677_v14  ;;  %v9308_v32 = vadd.f32 %v1767_v41, %v1701_v6  ;;  %v9315_v63 = vld [vmem:[#allocation2 + $0xfa] sm:$0xff] }
 0x2bc   : > { %11519 = vst [vmem:[#allocation5_spill] sm:$0xff] %v9278_v28  ;;  %v9311_v55 = vmul.f32 %v9133_v45, %v3206_v30  ;;  %vm9318_vm14 = vcmp.eq.f32.partialorder %v4128_v52, 8.507059e+37  ;;  %v1676_v34 = vmul.f32 %v8923_v47, %v9293_v19  ;;  %v4131_v41 = vor.u32 1.1754944e-38, %v4130_v25  ;;  %v9328_v38 = vld [vmem:[#allocation2 + $0xfb] sm:$0xff] }
 0x2bd   : > { %11520 = vst [vmem:[#allocation30_spill] sm:$0xff] %v9282_v23  ;;  %v5041_v36 = vpop.eup %5040  ;;  %v4121_v6 = vsub.f32 1.0, %v4120_v4  ;;  %v3811_v30 = vmul.f32 %v8419_v2, %v3775_v20  ;;  %v2500_v14 = vadd.f32 %v9060_v1, %v2402_v58  ;;  %vm4125_vm15 = vweird.f32 %v5039_v40  ;;  %v3305_v25 = vld [vmem:[#allocation2 + $0xd8] sm:$0xff] }
 0x2be   : > { %11521 = vst [vmem:[#allocation74_spill] sm:$0xff] %v9291_v12  ;;  %v9322_v28 = vadd.f32 1.0, %v5041_v36  ;;  %v1708_v52 = vadd.f32 %v1676_v34, %v1610_v44  ;;  %v1774_v36 = vmul.f32 %v8950_v51, %v9313_v29  ;;  %v3403_v58 = vld [vmem:[#allocation2 + $0xd9] sm:$0xff]  ;;  %v9347_v44 = vmul.f32 %v8961_v24, %v9328_v38  ;;  %vm4126_vm1 = vmor %vm4124_vm13, %vm4125_vm15 }
 0x2bf   : > { %11522 = vst [vmem:[#allocation75_spill] sm:$0xff] %v9293_v19  ;;  %v4122_v4 = vmul.f32 %v5039_v40, %v4121_v6  ;;  %v9340_v2 = vadd.f32 %v8441_v50, %v3811_v30  ;;  %v2598_v1 = vadd.f32 %v9069_v27, %v2500_v14  ;;  %v9343_v20 = vld [vmem:[#allocation2 + $0xda] sm:$0xff]  ;;  %v11533_v50 = vld [vmem:[#allocation33_spill] sm:$0xff] }
 0x2c0   : > { %11523 = vst [vmem:[#allocation79_spill] sm:$0xff] %v9296_v11  ;;  %5042 = vrcp.f32 %v9322_v28  ;;  %v9337_v11 = vmul.f32 %v9065_v57, %v9315_v63  ;;  %v9359_v30 = vmul.f32 %v9094_v56, %v11533_v50  ;;  %v9363_v19 = vld [vmem:[#allocation2 + $0xe0] sm:$0xff]  ;;  %v9376_v50 = vmul.f32 %v9152_v35, %v3403_v58 }
 0x2c1   : > { %11524 = vst [vmem:[#allocation78_spill] sm:$0xff] %v9311_v55  ;;  %v9330_v55 = vld [vmem:[#allocation2 + $0xfc] sm:$0xff]  ;;  %v4123_v27 = vadd.f32 %v5039_v40, %v4122_v4  ;;  %v3879_v14 = vsub.f32 0.0, %v9340_v2  ;;  %v1806_v4 = vadd.f32 %v1774_v36, %v1708_v52  ;;  %v9385_v42 = vmul.f32 %v9168_v60, %v9343_v20 }
 0x2c2   : > { %11525 = vst [vmem:[#allocation44_spill] sm:$0xff] %v9313_v29  ;;  %v9351_v34 = vmul.f32 %v8974_v17, %v9330_v55  ;;  %v2696_v29 = vadd.f32 %v9073_v43, %v2598_v1  ;;  %v1873_v43 = vmul.f32 %v9200_v13, %v9363_v19  ;;  %v9380_v1 = vld [vmem:[#allocation2 + $0xe1] sm:$0xff]  ;;  %vm4229_vm4 = vweird.f32 %v9322_v28 }
 0x2c3   : > { %11526 = vst [vmem:[#allocation80_spill] sm:$0xff] %v9315_v63  ;;  %v11532_v63 = vld [vmem:[#allocation35_spill] sm:$0xff]  ;;  %v3934_v23 = vmul.f32 1.442695, %v3879_v14  ;;  %v1971_v36 = vmul.f32 %v9211_v26, %v9380_v1 }
 0x2c4   : > { %11529 = vst [vmem:[#allocation81_spill] sm:$0xff] %v9328_v38  ;;  %v9355_v6 = vmul.f32 %v9084_v39, %v11532_v63  ;;  %v11535_v38 = vld [vmem:[#allocation13_spill] sm:$0xff]  ;;  %v9373_v63 = vmul.f32 %v9144_v62, %v3305_v25  ;;  %v1905_v52 = vadd.f32 %v1873_v43, %v1806_v4  ;;  %v11544_v14 = vld [vmem:[#allocation7_spill] sm:$0xff]  ;;  %v4235_v43 = vand.u32 2147483648, %v9322_v28 }
 0x2c5   : > { %11530 = vst [vmem:[#allocation82_spill] sm:$0xff] %v9330_v55  ;;  %v9367_v12 = vmul.f32 %v9103_v9, %v11535_v38  ;;  %v4127_v55 = vsel %vm4126_vm1, %v5039_v40, %v4123_v27  ;;  %v2794_v38 = vadd.f32 %v9079_v22, %v2696_v29  ;;  %5044 = vpow2.f32 %v3934_v23  ;;  %v9399_v27 = vld [vmem:[#allocation2 + $0xe3] sm:$0xff] }
 0x2c6   : > { %11531 = vst [vmem:[#allocation83_spill] sm:$0xff] %v9340_v2  ;;  %v9387_v2 = vld [vmem:[#allocation2 + $0xe2] sm:$0xff]  ;;  %v2003_v59 = vadd.f32 %v1971_v36, %v1905_v52 }
 0x2c7   : > { %11534 = vst [vmem:[#allocation35_spill] sm:$0xff] %v9363_v19  ;;  %v11541_v19 = vld [vmem:[#allocation26_spill] sm:$0xff]  ;;  %v11547_v23 = vld [vmem:[#allocation11_spill] sm:$0xff]  ;;  %v11549_v52 = vld [vmem:[#allocation32_spill] sm:$0xff] }
 0x2c8   : > { %11536 = vst [vmem:[#allocation33_spill] sm:$0xff] %v9373_v63  ;;  %v5043_v63 = vpop.eup %5042  ;;  %v9395_v40 = vmul.f32 %v9117_v37, %v11541_v19  ;;  %v9413_v19 = vld [vmem:[#allocation2 + $0xe4] sm:$0xff] }
 0x2c9   : > { %11537 = vst [vmem:[#allocation13_spill] sm:$0xff] %v9376_v50  ;;  %v4132_v50 = vsel %vm9318_vm14, %v4131_v41, %v4127_v55  ;;  %v4225_v29 = vmul.f32 %v5043_v63, %v9322_v28  ;;  %v2893_v55 = vadd.f32 %v9088_v0, %v2794_v38  ;;  %v9409_v41 = vld [vmem:[%s10671_s4 + $0x7] ss:$0 sm:$0xff]  ;;  %v4233_v0 = vand.u32 2147483647, %v9322_v28 }
 0x2ca   : > { %11538 = vst [vmem:[#allocation84_spill] sm:$0xff] %v9380_v1  ;;  %v4473_v22 = vmul.f32 %v4132_v50, %v9035_v18  ;;  %v2069_v18 = vmul.f32 %v9409_v41, %v9387_v2  ;;  %v9417_v50 = vmul.f32 %v9144_v62, %v11547_v23  ;;  %v1898_v38 = vadd.f32 %v9204_v21, %v9308_v32  ;;  %v11550_v1 = vld [vmem:[#allocation31_spill] sm:$0xff]  ;;  %v11553_v32 = vld [vmem:[#allocation6_spill] sm:$0xff] }
 0x2cb   : > { %11539 = vst [vmem:[#allocation85_spill] sm:$0xff] %v9385_v42  ;;  %v9403_v42 = vmul.f32 %v9133_v45, %v11544_v14  ;;  %v4226_v4 = vsub.f32 1.0, %v4225_v29  ;;  %v2991_v36 = vadd.f32 %v11549_v52, %v2893_v55  ;;  %v9429_v62 = vmul.f32 %v9152_v35, %v11550_v1  ;;  %v9436_v29 = vld [vmem:[%s10671_s4] ss:$0 sm:$0xff]  ;;  %v11555_v45 = vld [vmem:[#allocation52_spill] sm:$0xff] }
 0x2cc   : > { %11540 = vst [vmem:[#allocation86_spill] sm:$0xff] %v9387_v2  ;;  %4578 = vrot.lane.b32.xlu0 %v4473_v22, %s5231_s17  ;;  %v2101_v14 = vadd.f32 %v2069_v18, %v2003_v59  ;;  %v2167_v2 = vmul.f32 %v9041_v8, %v9399_v27  ;;  %vm4230_vm3 = vweird.f32 %v5043_v63  ;;  %v2265_v22 = vmul.f32 %v9048_v61, %v9413_v19  ;;  %v11554_v59 = vld [vmem:[#allocation4_spill] sm:$0xff]  ;;  %v3599_v35 = vld [vmem:[#allocation2 + $0xdb] sm:$0xff] }
 0x2cd   : > { %11542 = vst [vmem:[#allocation26_spill] sm:$0xff] %v9395_v40  ;;  %v1383_v21 = vmul.f32 %v9436_v29, %v3305_v25  ;;  %v3089_v55 = vadd.f32 %v11553_v32, %v2991_v36  ;;  %v1996_v18 = vadd.f32 %v11554_v59, %v1898_v38  ;;  %vm4234_vm5 = vcmp.eq.f32.partialorder %v4233_v0, 8.507059e+37  ;;  %vm4231_vm6 = vmor %vm4229_vm4, %vm4230_vm3  ;;  %v11556_v25 = vld [vmem:[#allocation38_spill] sm:$0xff] }
 0x2ce   : > { %11543 = vst [vmem:[#allocation87_spill] sm:$0xff] %v9399_v27  ;;  %v2199_v52 = vadd.f32 %v2167_v2, %v2101_v14  ;;  %v1481_v27 = vmul.f32 %v8900_v31, %v3403_v58  ;;  %v3697_v36 = vld [vmem:[#allocation2 + $0xdc] sm:$0xff]  ;;  %v11557_v2 = vld [vmem:[#allocation72_spill] sm:$0xff]  ;;  %v11560_v14 = vld [vmem:[#allocation21_spill] sm:$0xff] }
 0x2cf   : > { %11545 = vst [vmem:[#allocation7_spill] sm:$0xff] %v9403_v42  ;;  %v3187_v40 = vadd.f32 %v11555_v45, %v3089_v55  ;;  %v2094_v37 = vadd.f32 %v11556_v25, %v1996_v18  ;;  %v9449_v58 = vmul.f32 %v9168_v60, %v11557_v2  ;;  %v11562_v0 = vld [vmem:[#allocation10_spill] sm:$0xff]  ;;  %v9461_v45 = vmul.f32 %v11560_v14, %v3599_v35  ;;  %v11565_v18 = vld [vmem:[#allocation48_spill] sm:$0xff] }
 0x2d0   : > { %11546 = vst [vmem:[#allocation88_spill] sm:$0xff] %v9413_v19  ;;  %v4236_v19 = vor.u32 1.1754944e-38, %v4235_v43  ;;  %v2297_v32 = vadd.f32 %v2265_v22, %v2199_v52  ;;  %v11563_v43 = vld [vmem:[#allocation43_spill] sm:$0xff]  ;;  %v1513_v22 = vadd.f32 %v1481_v27, %v1383_v21  ;;  %v1939_v55 = vld [vmem:[#allocation2 + $0xf1] sm:$0xff]  ;;  %v1677_v27 = vmul.f32 %v8923_v47, %v3599_v35 }
 0x2d1   : > { %11548 = vst [vmem:[#allocation11_spill] sm:$0xff] %v9417_v50  ;;  %v4227_v50 = vmul.f32 %v5043_v63, %v4226_v4  ;;  %v9457_v59 = vmul.f32 %v11563_v43, %v11562_v0  ;;  %v2037_v60 = vld [vmem:[#allocation2 + $0xf2] sm:$0xff]  ;;  %v1775_v21 = vmul.f32 %v8950_v51, %v3697_v36 }
 0x2d2   : > { %11551 = vst [vmem:[#allocation32_spill] sm:$0xff] %v9429_v62  ;;  %v5045_v62 = vpop.eup %5044  ;;  %v9485_v35 = vmul.f32 %v9409_v41, %v2037_v60 }
 0x2d3   : > { %11552 = vst [vmem:[#allocation31_spill] sm:$0xff] %v9436_v29  ;;  %v4228_v4 = vadd.f32 %v5043_v63, %v4227_v50  ;;  %v9443_v42 = vadd.f32 1.0, %v5045_v62  ;;  %v11559_v50 = vld [vmem:[#allocation41_spill] sm:$0xff] }
 0x2d4   : > { %11558 = vst [vmem:[#allocation6_spill] sm:$0xff] %v9449_v58  ;;  %v9453_v28 = vmul.f32 %v11560_v14, %v11559_v50  ;;  %v2192_v58 = vadd.f32 %v9232_v33, %v2094_v37  ;;  %v2233_v14 = vld [vmem:[#allocation2 + $0xf4] sm:$0xff] }
 0x2d5   : > { %v4232_v38 = vsel %vm4231_vm6, %v5043_v63, %v4228_v4  ;;  %11564 = vst [vmem:[#allocation52_spill] sm:$0xff] %v9457_v59  ;;  %5046 = vrcp.f32 %v9443_v42  ;;  %v1841_v63 = vld [vmem:[#allocation2 + $0xf0] sm:$0xff]  ;;  %v11566_v4 = vld [vmem:[#allocation14_spill] sm:$0xff]  ;;  %vm4334_vm7 = vweird.f32 %v9443_v42 }
 0x2d6   : > { %11561 = vst [vmem:[#allocation4_spill] sm:$0xff] %v9453_v28  ;;  %v4237_v62 = vsel %vm4234_vm5, %v4236_v19, %v4232_v38  ;;  %v3285_v25 = vadd.f32 %v11566_v4, %v3187_v40  ;;  %v9467_v28 = vmul.f32 %v11563_v43, %v3697_v36  ;;  %v2135_v59 = vld [vmem:[#allocation2 + $0xf3] sm:$0xff]  ;;  %v2395_v19 = vadd.f32 %v9300_v15, %v2297_v32  ;;  %v11568_v40 = vld [vmem:[#allocation12_spill] sm:$0xff] }
 0x2d7   : > { %v4480_v52 = vmul.f32 %v4237_v62, %v11565_v18  ;;  %v1579_v38 = vmul.f32 %v8916_v3, %v9343_v20  ;;  %v2290_v37 = vadd.f32 %v9239_v16, %v2192_v58  ;;  %v9478_v33 = vmul.f32 %v9200_v13, %v1841_v63  ;;  %v11569_v32 = vld [vmem:[#allocation46_spill] sm:$0xff]  ;;  %v11570_v58 = vld [vmem:[#allocation47_spill] sm:$0xff] }
 0x2d8   : > { %11567 = vst [vmem:[#allocation38_spill] sm:$0xff] %v9467_v28  ;;  %v3384_v62 = vadd.f32 %v11568_v40, %v3285_v25  ;;  %v9481_v18 = vmul.f32 %v9211_v26, %v1939_v55  ;;  %v2493_v15 = vadd.f32 %v9304_v46, %v2395_v19  ;;  %v9488_v36 = vmul.f32 %v9041_v8, %v2135_v59  ;;  %v11571_v25 = vld [vmem:[#allocation17_spill] sm:$0xff] }
 0x2d9   : > { %4592 = vrot.lane.b32.xlu1 %v4480_v52, %s5231_s17  ;;  %v1611_v20 = vadd.f32 %v1579_v38, %v1513_v22  ;;  %v2388_v4 = vadd.f32 %v9247_v49, %v2290_v37  ;;  %v9493_v16 = vmul.f32 %v9048_v61, %v2233_v14  ;;  %v9497_v63 = vmul.f32 %v9028_v53, %v11570_v58  ;;  %v11574_v58 = vld [vmem:[#allocation62_spill] sm:$0xff] }
 0x2da   : > { %v3482_v52 = vadd.f32 %v11569_v32, %v3384_v62  ;;  %v4338_v46 = vand.u32 2147483647, %v9443_v42  ;;  %v2591_v60 = vadd.f32 %v9337_v11, %v2493_v15  ;;  %v1390_v59 = vmul.f32 %v9436_v29, %v11547_v23  ;;  %v11572_v62 = vld [vmem:[#allocation49_spill] sm:$0xff]  ;;  %v11573_v11 = vld [vmem:[#allocation8_spill] sm:$0xff] }
 0x2db   : > { %v5047_v55 = vpop.eup %5046  ;;  %v1488_v22 = vmul.f32 %v8900_v31, %v11550_v1  ;;  %v2486_v19 = vadd.f32 %v9254_v7, %v2388_v4  ;;  %v1709_v38 = vadd.f32 %v1677_v27, %v1611_v20  ;;  %v9511_v37 = vmul.f32 %v9056_v54, %v11572_v62  ;;  %v11577_v4 = vld [vmem:[#allocation42_spill] sm:$0xff] }
 0x2dc   : > { %v4330_v49 = vmul.f32 %v5047_v55, %v9443_v42  ;;  %v3580_v14 = vadd.f32 %v11571_v25, %v3482_v52  ;;  %v2689_v40 = vadd.f32 %v9347_v44, %v2591_v60  ;;  %v9515_v15 = vmul.f32 %v9065_v57, %v11573_v11 }
 0x2dd   : > { %v1520_v23 = vadd.f32 %v1488_v22, %v1390_v59  ;;  %v4340_v1 = vand.u32 2147483648, %v9443_v42  ;;  %v2584_v52 = vadd.f32 %v9259_v10, %v2486_v19  ;;  %vm9521_vm8 = vcmp.eq.f32.partialorder %v4338_v46, 8.507059e+37 }
 0x2de   : > { %v4331_v32 = vsub.f32 1.0, %v4330_v49  ;;  %v3678_v28 = vadd.f32 %v11574_v58, %v3580_v14  ;;  %v2787_v44 = vadd.f32 %v9351_v34, %v2689_v40  ;;  %v1586_v27 = vmul.f32 %v8916_v3, %v11557_v2  ;;  %v11578_v49 = vld [vmem:[#allocation53_spill] sm:$0xff]  ;;  %v9538_v34 = vld [vmem:[%s10672_s5] ss:$0 sm:$0xff] }
 0x2df   : > { %vm4335_vm9 = vweird.f32 %v5047_v55  ;;  %v2682_v59 = vadd.f32 %v9262_v5, %v2584_v52  ;;  %v1807_v10 = vadd.f32 %v1775_v21, %v1709_v38  ;;  %v9533_v46 = vmul.f32 %v8961_v24, %v11578_v49  ;;  %v11580_v38 = vld [vmem:[#allocation66_spill] sm:$0xff]  ;;  %v11587_v49 = vld [vmem:[#allocation51_spill] sm:$0xff] }
 0x2e0   : > { %v4332_v20 = vmul.f32 %v5047_v55, %v4331_v32  ;;  %v3776_v60 = vadd.f32 %v11577_v4, %v3678_v28  ;;  %v2886_v22 = vadd.f32 %v9355_v6, %v2787_v44  ;;  %v1618_v25 = vadd.f32 %v1586_v27, %v1520_v23  ;;  %vm4336_vm10 = vmor %vm4334_vm7, %vm4335_vm9  ;;  %v11579_v6 = vld [vmem:[#allocation54_spill] sm:$0xff]  ;;  %v11582_v32 = vld [vmem:[#allocation24_spill] sm:$0xff] }
 0x2e1   : > { %v4341_v19 = vor.u32 1.1754944e-38, %v4340_v1  ;;  %v2780_v28 = vadd.f32 %v9265_v48, %v2682_v59  ;;  %v9547_v21 = vmul.f32 %v8974_v17, %v11579_v6  ;;  %v9551_v40 = vmul.f32 %v9084_v39, %v11580_v38  ;;  %v9558_v48 = vld [vmem:[%s10673_s6] ss:$0 sm:$0xff] }
 0x2e2   : > { %v4333_v14 = vadd.f32 %v5047_v55, %v4332_v20  ;;  %v3812_v2 = vmul.f32 %v9538_v34, %v3776_v60  ;;  %v2984_v5 = vadd.f32 %v9359_v30, %v2886_v22  ;;  %v1684_v62 = vmul.f32 %v8923_v47, %v11559_v50  ;;  %v11581_v30 = vld [vmem:[#allocation39_spill] sm:$0xff]  ;;  %v11585_v60 = vld [vmem:[#allocation30_spill] sm:$0xff]  ;;  %v11586_v22 = vld [vmem:[#allocation37_spill] sm:$0xff] }
 0x2e3   : > { %v2879_v23 = vadd.f32 %v11581_v30, %v2780_v28  ;;  %v9566_v1 = vmul.f32 %v9094_v56, %v11582_v32  ;;  %v11584_v27 = vld [vmem:[#allocation83_spill] sm:$0xff]  ;;  %v1906_v30 = vadd.f32 %v9478_v33, %v1807_v10  ;;  %v11599_v33 = vld [vmem:[#allocation60_spill] sm:$0xff]  ;;  %v11600_v10 = vld [vmem:[#allocation22_spill] sm:$0xff] }
 0x2e4   : > { %v4337_v11 = vsel %vm4336_vm10, %v5047_v55, %v4333_v14  ;;  %v9561_v42 = vadd.f32 %v9558_v48, %v3812_v2  ;;  %v3082_v50 = vadd.f32 %v9367_v12, %v2984_v5  ;;  %v11583_v55 = vld [vmem:[#allocation68_spill] sm:$0xff]  ;;  %v1716_v44 = vadd.f32 %v1684_v62, %v1618_v25  ;;  %v11588_v2 = vld [vmem:[#allocation26_spill] sm:$0xff]  ;;  %v11590_v28 = vld [vmem:[#allocation55_spill] sm:$0xff] }
 0x2e5   : > { %v4342_v58 = vsel %vm9521_vm8, %v4341_v19, %v4337_v11  ;;  %v9573_v52 = vmul.f32 %v9103_v9, %v11583_v55  ;;  %v2977_v59 = vadd.f32 %v11585_v60, %v2879_v23  ;;  %v9580_v14 = vmul.f32 %v11587_v49, %v11586_v22  ;;  %v11589_v19 = vld [vmem:[#allocation56_spill] sm:$0xff]  ;;  %v11592_v25 = vld [vmem:[#allocation73_spill] sm:$0xff]  ;;  %v11593_v62 = vld [vmem:[#allocation74_spill] sm:$0xff] }
 0x2e6   : > { %v4487_v20 = vmul.f32 %v4342_v58, %v11584_v27  ;;  %v3880_v4 = vsub.f32 0.0, %v9561_v42  ;;  %v3180_v7 = vadd.f32 %v11588_v2, %v3082_v50  ;;  %v9585_v12 = vmul.f32 %v11590_v28, %v11589_v19  ;;  %v11594_v23 = vld [vmem:[#allocation71_spill] sm:$0xff]  ;;  %v11596_v27 = vld [vmem:[#allocation64_spill] sm:$0xff]  ;;  %v11597_v60 = vld [vmem:[#allocation57_spill] sm:$0xff] }
 0x2e7   : > { %v1782_v5 = vmul.f32 %v8950_v51, %v11562_v0  ;;  %v9591_v6 = vmul.f32 %v9028_v53, %v11592_v25  ;;  %v3075_v11 = vadd.f32 %v11593_v62, %v2977_v59  ;;  %v9598_v32 = vmul.f32 %v9056_v54, %v11594_v23  ;;  %v11595_v58 = vld [vmem:[#allocation7_spill] sm:$0xff] }
 0x2e8   : > { %11591 = vst [vmem:[#allocation72_spill] sm:$0xff] %v9585_v12  ;;  %4606 = vrot.lane.b32.xlu2 %v4487_v20, %s5231_s17  ;;  %v3936_v38 = vmul.f32 1.442695, %v3880_v4  ;;  %v3278_v50 = vadd.f32 %v11595_v58, %v3180_v7  ;;  %v1881_v0 = vmul.f32 %v9200_v13, %v11596_v27  ;;  %v9605_v22 = vmul.f32 %v9065_v57, %v11597_v60  ;;  %v11598_v20 = vld [vmem:[#allocation79_spill] sm:$0xff]  ;;  %v11603_v7 = vld [vmem:[#allocation40_spill] sm:$0xff]  ;;  %v11607_v27 = vld [vmem:[#allocation78_spill] sm:$0xff] }
 0x2e9   : > { %v1814_v55 = vadd.f32 %v1782_v5, %v1716_v44  ;;  %v3173_v4 = vadd.f32 %v11598_v20, %v3075_v11  ;;  %v2004_v59 = vadd.f32 %v9481_v18, %v1906_v30  ;;  %v9611_v2 = vmul.f32 %v11600_v10, %v11599_v33  ;;  %v11602_v19 = vld [vmem:[#allocation11_spill] sm:$0xff]  ;;  %v11604_v44 = vld [vmem:[#allocation18_spill] sm:$0xff]  ;;  %v11608_v60 = vld [vmem:[#allocation36_spill] sm:$0xff] }
 0x2ea   : > { %5048 = vpow2.f32 %v3936_v38  ;;  %v3377_v25 = vadd.f32 %v11602_v19, %v3278_v50  ;;  %v9616_v5 = vmul.f32 %v11604_v44, %v11603_v7  ;;  %v11606_v23 = vld [vmem:[#allocation59_spill] sm:$0xff]  ;;  %v11609_v18 = vld [vmem:[#allocation20_spill] sm:$0xff]  ;;  %v11611_v20 = vld [vmem:[#allocation61_spill] sm:$0xff] }
 0x2eb   : > { %11601 = vst [vmem:[#allocation41_spill] sm:$0xff] %v9611_v2  ;;  %v1913_v62 = vadd.f32 %v1881_v0, %v1814_v55  ;;  %v1979_v58 = vmul.f32 %v9211_v26, %v11606_v23  ;;  %v3271_v38 = vadd.f32 %v11607_v27, %v3173_v4  ;;  %v2102_v11 = vadd.f32 %v9485_v35, %v2004_v59  ;;  %v1343_v50 = vld [vmem:[#allocation2 + $0x80] sm:$0xff]  ;;  %v11612_v7 = vld [vmem:[#allocation32_spill] sm:$0xff]  ;;  %v11615_v35 = vld [vmem:[#allocation33_spill] sm:$0xff] }
 0x2ec   : > { %11605 = vst [vmem:[#allocation10_spill] sm:$0xff] %v9616_v5  ;;  %v9624_v30 = vmul.f32 %v11609_v18, %v11608_v60  ;;  %v9628_v33 = vmul.f32 %v8961_v24, %v11611_v20  ;;  %v1441_v19 = vld [vmem:[#allocation2 + $0x81] sm:$0xff]  ;;  %v3475_v5 = vadd.f32 %v11612_v7, %v3377_v25  ;;  %v11616_v60 = vld [vmem:[#allocation65_spill] sm:$0xff]  ;;  %v11620_v25 = vld [vmem:[#allocation6_spill] sm:$0xff] }
 0x2ed   : > { %v2011_v55 = vadd.f32 %v1979_v58, %v1913_v62  ;;  %v11613_v0 = vld [vmem:[#allocation23_spill] sm:$0xff]  ;;  %v3370_v59 = vadd.f32 %v11615_v35, %v3271_v38  ;;  %v2200_v27 = vadd.f32 %v9488_v36, %v2102_v11  ;;  %v9641_v20 = vmul.f32 %v9084_v39, %v11616_v60  ;;  %v9648_v7 = vld [vmem:[#allocation2 + $0x188] sm:$0xff]  ;;  %v11621_v11 = vld [vmem:[#allocation13_spill] sm:$0xff] }
 0x2ee   : > { %11610 = vst [vmem:[#allocation43_spill] sm:$0xff] %v9624_v30  ;;  %v2077_v23 = vmul.f32 %v9409_v41, %v11613_v0  ;;  %v11614_v2 = vld [vmem:[#allocation63_spill] sm:$0xff]  ;;  %v3573_v62 = vadd.f32 %v11620_v25, %v3475_v5  ;;  %v9650_v0 = vld [vmem:[#allocation2 + $0x189] sm:$0xff]  ;;  %v1474_v38 = vmul.f32 %v8900_v31, %v1441_v19 }
 0x2ef   : > { %v9635_v4 = vmul.f32 %v8974_v17, %v11614_v2  ;;  %11617 = vst [vmem:[#allocation48_spill] sm:$0xff] %v9641_v20  ;;  %v11618_v30 = vld [vmem:[#allocation19_spill] sm:$0xff]  ;;  %v1376_v2 = vmul.f32 %v9436_v29, %v1343_v50  ;;  %v3468_v35 = vadd.f32 %v11621_v11, %v3370_v59  ;;  %v2298_v60 = vadd.f32 %v9493_v16, %v2200_v27  ;;  %v11626_v50 = vld [vmem:[#allocation4_spill] sm:$0xff]  ;;  %v11628_v59 = vld [vmem:[#allocation69_spill] sm:$0xff] }
 0x2f0   : > { %v9645_v12 = vmul.f32 %v9094_v56, %v11618_v30  ;;  %v2109_v58 = vadd.f32 %v2077_v23, %v2011_v55  ;;  %v5049_v36 = vpop.eup %5048  ;;  %v11622_v20 = vld [vmem:[#allocation67_spill] sm:$0xff]  ;;  %v9664_v55 = vld [vmem:[#allocation2 + $0x18a] sm:$0xff]  ;;  %v3671_v25 = vadd.f32 %v11626_v50, %v3573_v62  ;;  %v9673_v16 = vmul.f32 %v11590_v28, %v11628_v59 }
 0x2f1   : > { %v9658_v30 = vmul.f32 %v9103_v9, %v11622_v20  ;;  %v9666_v23 = vadd.f32 1.0, %v5049_v36  ;;  %v11627_v31 = vld [vmem:[#allocation3_spill] sm:$0xff]  ;;  %v11630_v27 = vld [vmem:[#allocation85_spill] sm:$0xff]  ;;  %v2396_v11 = vadd.f32 %v9497_v63, %v2298_v60  ;;  %v9683_v36 = vmul.f32 %v11604_v44, %v9650_v0  ;;  %v11635_v60 = vld [vmem:[#allocation52_spill] sm:$0xff] }
 0x2f2   : > { %11619 = vst [vmem:[#allocation14_spill] sm:$0xff] %v9645_v12  ;;  %v11624_v12 = vld [vmem:[#allocation9_spill] sm:$0xff]  ;;  %v2175_v19 = vmul.f32 %v9041_v8, %v11627_v31  ;;  %v3566_v20 = vadd.f32 %v11630_v27, %v3468_v35  ;;  %v1539_v50 = vld [vmem:[#allocation2 + $0x82] sm:$0xff]  ;;  %v9690_v59 = vmul.f32 %v11609_v18, %v9664_v55  ;;  %v1506_v63 = vadd.f32 %v1474_v38, %v1376_v2  ;;  %v11640_v18 = vld [vmem:[#allocation34_spill] sm:$0xff] }
 0x2f3   : > { %11623 = vst [vmem:[#allocation12_spill] sm:$0xff] %v9658_v30  ;;  %v9662_v5 = vmul.f32 %v11587_v49, %v11624_v12  ;;  %v9679_v12 = vmul.f32 %v11600_v10, %v9648_v7  ;;  %v9685_v62 = vld [vmem:[#allocation2 + $0x18b] sm:$0xff]  ;;  %5050 = vrcp.f32 %v9666_v23  ;;  %v3769_v27 = vadd.f32 %v11635_v60, %v3671_v25  ;;  %v1932_v60 = vld [vmem:[#allocation2 + $0x99] sm:$0xff] }
 0x2f4   : > { %11629 = vst [vmem:[#allocation47_spill] sm:$0xff] %v9673_v16  ;;  %v2207_v31 = vadd.f32 %v2175_v19, %v2109_v58  ;;  %v9692_v35 = vld [vmem:[#allocation2 + $0x18c] sm:$0xff]  ;;  %v3664_v10 = vadd.f32 %v9461_v45, %v3566_v20  ;;  %v2494_v44 = vadd.f32 %v9511_v37, %v2396_v11  ;;  %v1735_v30 = vld [vmem:[#allocation2 + $0x84] sm:$0xff]  ;;  %v11638_v58 = vld [vmem:[#allocation50_spill] sm:$0xff]  ;;  %v1572_v2 = vmul.f32 %v8916_v3, %v1539_v50 }
 0x2f5   : > { %11625 = vst [vmem:[#allocation46_spill] sm:$0xff] %v9662_v5  ;;  %v1637_v5 = vld [vmem:[#allocation2 + $0x83] sm:$0xff]  ;;  %v9703_v19 = vmul.f32 %v11563_v43, %v11638_v58  ;;  %v11642_v37 = vld [vmem:[#allocation38_spill] sm:$0xff]  ;;  %v3805_v25 = vmul.f32 %v9538_v34, %v3769_v27  ;;  %v9717_v11 = vmul.f32 %v11563_v43, %v9692_v35  ;;  %v4353_v50 = vand.u32 2147483647, %v9666_v23 }
 0x2f6   : > { %11631 = vst [vmem:[#allocation17_spill] sm:$0xff] %v9679_v12  ;;  %v11637_v12 = vld [vmem:[#allocation21_spill] sm:$0xff]  ;;  %v3762_v38 = vadd.f32 %v11642_v37, %v3664_v10  ;;  %v2592_v20 = vadd.f32 %v9515_v15, %v2494_v44  ;;  %v2030_v58 = vld [vmem:[#allocation2 + $0x9a] sm:$0xff]  ;;  %v4355_v44 = vand.u32 2147483648, %v9666_v23  ;;  %vm4349_vm0 = vweird.f32 %v9666_v23 }
 0x2f7   : > { %11632 = vst [vmem:[#allocation49_spill] sm:$0xff] %v9683_v36  ;;  %v11636_v36 = vld [vmem:[#allocation70_spill] sm:$0xff]  ;;  %v9709_v45 = vmul.f32 %v11637_v12, %v9685_v62  ;;  %v9724_v15 = vadd.f32 %v9558_v48, %v3805_v25  ;;  %v2324_v25 = vld [vmem:[#allocation2 + $0xb0] sm:$0xff]  ;;  %vm9748_vm11 = vcmp.eq.f32.partialorder %v4353_v50, 8.507059e+37 }
 0x2f8   : > { %11633 = vst [vmem:[#allocation8_spill] sm:$0xff] %v9690_v59  ;;  %v9699_v16 = vmul.f32 %v11637_v12, %v11636_v36  ;;  %v2273_v59 = vmul.f32 %v9048_v61, %v11640_v18  ;;  %v1834_v36 = vld [vmem:[#allocation2 + $0x98] sm:$0xff]  ;;  %v1670_v12 = vmul.f32 %v8923_v47, %v1637_v5  ;;  %v3798_v10 = vmul.f32 %v9538_v34, %v3762_v38 }
 0x2f9   : > { %11634 = vst [vmem:[#allocation62_spill] sm:$0xff] %v9692_v35  ;;  %v2128_v3 = vld [vmem:[#allocation2 + $0x9b] sm:$0xff]  ;;  %v2690_v43 = vadd.f32 %v9533_v46, %v2592_v20  ;;  %v5051_v27 = vpop.eup %5050  ;;  %v9732_v47 = vmul.f32 %v9211_v26, %v1932_v60 }
 0x2fa   : > { %11639 = vst [vmem:[#allocation42_spill] sm:$0xff] %v9703_v19  ;;  %v2305_v18 = vadd.f32 %v2273_v59, %v2207_v31  ;;  %v1604_v19 = vadd.f32 %v1572_v2, %v1506_v63  ;;  %v9729_v31 = vmul.f32 %v9200_v13, %v1834_v36  ;;  %v9739_v5 = vadd.f32 %v9558_v48, %v3798_v10  ;;  %v2226_v63 = vld [vmem:[#allocation2 + $0x9c] sm:$0xff]  ;;  %v2422_v10 = vld [vmem:[#allocation2 + $0xb1] sm:$0xff] }
 0x2fb   : > { %11641 = vst [vmem:[#allocation53_spill] sm:$0xff] %v9709_v45  ;;  %v1768_v45 = vmul.f32 %v8950_v51, %v1735_v30  ;;  %v9735_v51 = vmul.f32 %v9409_v41, %v2030_v58  ;;  %v4345_v30 = vmul.f32 %v5051_v27, %v9666_v23  ;;  %v3873_v59 = vsub.f32 0.0, %v9724_v15  ;;  %v2716_v50 = vld [vmem:[#allocation2 + $0xb4] sm:$0xff] }
 0x2fc   : > { %11643 = vst [vmem:[#allocation54_spill] sm:$0xff] %v9717_v11  ;;  %v9743_v46 = vmul.f32 %v9041_v8, %v2128_v3  ;;  %v2788_v2 = vadd.f32 %v9547_v21, %v2690_v43  ;;  %v2403_v37 = vadd.f32 %v9591_v6, %v2305_v18  ;;  %v1702_v38 = vadd.f32 %v1670_v12, %v1604_v19  ;;  %v2520_v6 = vld [vmem:[#allocation2 + $0xb2] sm:$0xff] }
 0x2fd   : > { %11644 = vst [vmem:[#allocation66_spill] sm:$0xff] %v9724_v15  ;;  %v4346_v20 = vsub.f32 1.0, %v4345_v30  ;;  %v3866_v60 = vsub.f32 0.0, %v9739_v5  ;;  %v3922_v58 = vmul.f32 1.442695, %v3873_v59  ;;  %v4356_v3 = vor.u32 1.1754944e-38, %v4355_v44 }
 0x2fe   : > { %v2887_v11 = vadd.f32 %v9551_v40, %v2788_v2  ;;  %v2501_v15 = vadd.f32 %v9598_v32, %v2403_v37  ;;  %v9756_v21 = vmul.f32 %v9048_v61, %v2226_v63  ;;  %vm4350_vm2 = vweird.f32 %v5051_v27  ;;  %v2618_v12 = vld [vmem:[#allocation2 + $0xb3] sm:$0xff] }
 0x2ff   : > { %v4347_v19 = vmul.f32 %v5051_v27, %v4346_v20  ;;  %v3908_v18 = vmul.f32 1.442695, %v3866_v60  ;;  %5052 = vpow2.f32 %v3922_v58  ;;  %v9759_v30 = vadd.f32 %v1768_v45, %v1702_v38  ;;  %v9771_v2 = vld [vmem:[#allocation2 + $0x158] sm:$0xff]  ;;  %vm4351_vm12 = vmor %vm4349_vm0, %vm4350_vm2  ;;  %v11648_v37 = vld [vmem:[#allocation29_spill] sm:$0xff] }
 0x300   : > { %v2985_v43 = vadd.f32 %v9566_v1, %v2887_v11  ;;  %v9762_v44 = vmul.f32 %v9028_v53, %v2324_v25  ;;  %v9765_v40 = vmul.f32 %v9056_v54, %v2422_v10  ;;  %v2599_v59 = vadd.f32 %v9605_v22, %v2501_v15  ;;  %11647 = vst [vmem:[#allocation39_spill] sm:$0xff] %v9771_v2  ;;  %v9786_v22 = vld [vmem:[#allocation2 + $0x159] sm:$0xff]  ;;  %v11651_v20 = vld [vmem:[#allocation76_spill] sm:$0xff] }
 0x301   : > { %v4348_v32 = vadd.f32 %v5051_v27, %v4347_v19  ;;  %5054 = vpow2.f32 %v3908_v18  ;;  %v9769_v63 = vmul.f32 %v9065_v57, %v2520_v6  ;;  %v9777_v45 = vmul.f32 %v8961_v24, %v2618_v12  ;;  %11649 = vst [vmem:[#allocation24_spill] sm:$0xff] %v9786_v22  ;;  %v9788_v15 = vld [vmem:[#allocation2 + $0x15a] sm:$0xff]  ;;  %v9806_v18 = vld [vmem:[#allocation2 + $0x170] sm:$0xff] }
 0x302   : > { %v3083_v1 = vadd.f32 %v9573_v52, %v2985_v43  ;;  %v9780_v11 = vmul.f32 %v8974_v17, %v2716_v50  ;;  %v9784_v38 = vmul.f32 %v9084_v39, %v11648_v37  ;;  %11650 = vst [vmem:[#allocation68_spill] sm:$0xff] %v9788_v15  ;;  %v9792_v23 = vmul.f32 %v9094_v56, %v11651_v20  ;;  %v11652_v52 = vld [vmem:[#allocation58_spill] sm:$0xff]  ;;  %v11654_v58 = vld [vmem:[#allocation75_spill] sm:$0xff]  ;;  %v11659_v50 = vld [vmem:[#allocation44_spill] sm:$0xff] }
 0x303   : > { %v4352_v25 = vsel %vm4351_vm12, %v5051_v27, %v4348_v32  ;;  %v9796_v60 = vmul.f32 %v9103_v9, %v11652_v52  ;;  %v9800_v10 = vmul.f32 %v11587_v49, %v11654_v58  ;;  %v9802_v6 = vld [vmem:[#allocation2 + $0x15b] sm:$0xff]  ;;  %11658 = vst [vmem:[#allocation26_spill] sm:$0xff] %v9806_v18  ;;  %v9813_v43 = vmul.f32 %v11590_v28, %v11659_v50  ;;  %v9819_v37 = vld [vmem:[#allocation2 + $0x171] sm:$0xff] }
 0x304   : > { %11656 = vst [vmem:[#allocation37_spill] sm:$0xff] %v9802_v6  ;;  %v9804_v19 = vld [vmem:[#allocation2 + $0x15c] sm:$0xff]  ;;  %v4357_v27 = vsel %vm9748_vm11, %v4356_v3, %v4352_v25  ;;  %v3181_v12 = vadd.f32 %v9580_v14, %v3083_v1  ;;  %v9817_v32 = vmul.f32 %v9200_v13, %v9771_v2  ;;  %v9821_v20 = vld [vmem:[#allocation2 + $0x172] sm:$0xff]  ;;  %v2697_v3 = vadd.f32 %v9628_v33, %v2599_v59  ;;  %v11665_v2 = vld [vmem:[#allocation72_spill] sm:$0xff] }
 0x305   : > { %11653 = vst [vmem:[#allocation83_spill] sm:$0xff] %v9796_v60  ;;  %v9823_v52 = vld [vmem:[#allocation2 + $0x173] sm:$0xff]  ;;  %v5053_v58 = vpop.eup %5052  ;;  %v4488_v36 = vmul.f32 %v4357_v27, %v9561_v42  ;;  %v9829_v14 = vmul.f32 %v9211_v26, %v9786_v22  ;;  %v9833_v1 = vmul.f32 %v9409_v41, %v9788_v15  ;;  %v9846_v42 = vmul.f32 %v9048_v61, %v9804_v19  ;;  %v11688_v15 = vld [vmem:[#allocation12_spill] sm:$0xff] }
 0x306   : > { %11655 = vst [vmem:[#allocation30_spill] sm:$0xff] %v9800_v10  ;;  %v9835_v25 = vld [vmem:[#allocation2 + $0x174] sm:$0xff]  ;;  %v9837_v50 = vadd.f32 1.0, %v5053_v58  ;;  %v9842_v10 = vmul.f32 %v9041_v8, %v9802_v6  ;;  %v9851_v59 = vmul.f32 %v9028_v53, %v9806_v18  ;;  %v9855_v27 = vmul.f32 %v9056_v54, %v9819_v37 }
 0x307   : > { %11657 = vst [vmem:[#allocation51_spill] sm:$0xff] %v9804_v19  ;;  %v5055_v33 = vpop.eup %5054  ;;  %4608 = vrot.lane.b32.xlu0 %v4488_v36, %s5231_s17  ;;  %v9863_v8 = vmul.f32 %v8961_v24, %v9823_v52  ;;  %v9870_v53 = vmul.f32 %v8974_v17, %v9835_v25  ;;  %v9874_v54 = vmul.f32 %v9084_v39, %v9648_v7 }
 0x308   : > { %11660 = vst [vmem:[#allocation56_spill] sm:$0xff] %v9813_v43  ;;  %v3279_v43 = vadd.f32 %v11665_v2, %v3181_v12  ;;  %v9859_v2 = vmul.f32 %v9065_v57, %v9821_v20  ;;  %v9865_v61 = vadd.f32 1.0, %v5055_v33  ;;  %5056 = vrcp.f32 %v9837_v50  ;;  %v11669_v12 = vld [vmem:[#allocation41_spill] sm:$0xff]  ;;  %v9902_v33 = vld [vmem:[#allocation2 + $0x141] sm:$0xff] }
 0x309   : > { %11661 = vst [vmem:[#allocation55_spill] sm:$0xff] %v9819_v37  ;;  %v2795_v57 = vadd.f32 %v9635_v4, %v2697_v3  ;;  %v9880_v24 = vmul.f32 %v9094_v56, %v9650_v0  ;;  %v9884_v36 = vmul.f32 %v9103_v9, %v9664_v55  ;;  %v4250_v17 = vand.u32 2147483648, %v9837_v50  ;;  %v11674_v0 = vld [vmem:[#allocation10_spill] sm:$0xff]  ;;  %v11675_v9 = vld [vmem:[#allocation48_spill] sm:$0xff]  ;;  %v9900_v3 = vld [vmem:[#allocation2 + $0x140] sm:$0xff] }
 0x30a   : > { %11662 = vst [vmem:[#allocation73_spill] sm:$0xff] %v9821_v20  ;;  %v3378_v58 = vadd.f32 %v11669_v12, %v3279_v43  ;;  %5058 = vrcp.f32 %v9865_v61  ;;  %v9890_v39 = vmul.f32 %v11587_v49, %v9685_v62  ;;  %v9894_v7 = vmul.f32 %v11590_v28, %v9692_v35  ;;  %v11677_v28 = vld [vmem:[#allocation77_spill] sm:$0xff]  ;;  %v11692_v35 = vld [vmem:[#allocation42_spill] sm:$0xff] }
 0x30b   : > { %11663 = vst [vmem:[#allocation74_spill] sm:$0xff] %v9823_v52  ;;  %v4145_v4 = vand.u32 2147483648, %v9865_v61  ;;  %v4248_v56 = vand.u32 2147483647, %v9837_v50  ;;  %v2894_v55 = vadd.f32 %v11675_v9, %v2795_v57  ;;  %v1899_v49 = vadd.f32 %v9729_v31, %v9759_v30  ;;  %v11679_v57 = vld [vmem:[#allocation43_spill] sm:$0xff]  ;;  %v11680_v9 = vld [vmem:[#allocation14_spill] sm:$0xff] }
 0x30c   : > { %11664 = vst [vmem:[#allocation71_spill] sm:$0xff] %v9835_v25  ;;  %v3476_v43 = vadd.f32 %v11674_v0, %v3378_v58  ;;  %v1392_v62 = vmul.f32 %v9436_v29, %v9900_v3  ;;  %v9910_v12 = vmul.f32 %v9200_v13, %v11677_v28  ;;  %v11678_v25 = vld [vmem:[#allocation5_spill] sm:$0xff]  ;;  %v4143_v58 = vand.u32 2147483647, %v9865_v61  ;;  %v9922_v31 = vld [vmem:[%s10671_s4 + $0x1] ss:$0 sm:$0xff] }
 0x30d   : > { %11666 = vst [vmem:[#allocation7_spill] sm:$0xff] %v9863_v8  ;;  %v9914_v52 = vmul.f32 %v9211_v26, %v11678_v25  ;;  %v2992_v20 = vadd.f32 %v11680_v9, %v2894_v55  ;;  %v1490_v30 = vmul.f32 %v9922_v31, %v9902_v33  ;;  %v9926_v13 = vld [vmem:[#allocation2 + $0x142] sm:$0xff]  ;;  %vm4244_vm13 = vweird.f32 %v9837_v50 }
 0x30e   : > { %11667 = vst [vmem:[#allocation64_spill] sm:$0xff] %v9870_v53  ;;  %v3574_v0 = vadd.f32 %v11679_v57, %v3476_v43  ;;  %v9928_v28 = vld [vmem:[#allocation2 + $0x143] sm:$0xff]  ;;  %v5057_v26 = vpop.eup %5056  ;;  %v4251_v25 = vor.u32 1.1754944e-38, %v4250_v17  ;;  %v1997_v43 = vadd.f32 %v9732_v47, %v1899_v49  ;;  %vm4139_vm14 = vweird.f32 %v9865_v61  ;;  %v9947_v49 = vld [vmem:[%s10671_s4 + $0x2] ss:$0 sm:$0xff] }
 0x30f   : > { %11668 = vst [vmem:[#allocation57_spill] sm:$0xff] %v9874_v54  ;;  %v9932_v57 = vld [vmem:[#allocation2 + $0x144] sm:$0xff]  ;;  %v4146_v37 = vor.u32 1.1754944e-38, %v4145_v4  ;;  %v4240_v18 = vmul.f32 %v5057_v26, %v9837_v50  ;;  %vm9938_vm15 = vcmp.eq.f32.partialorder %v4248_v56, 8.507059e+37  ;;  %v3090_v17 = vadd.f32 %v11688_v15, %v2992_v20  ;;  %v9954_v56 = vld [vmem:[%s10671_s4 + $0x3] ss:$0 sm:$0xff] }
 0x310   : > { %11670 = vst [vmem:[#allocation79_spill] sm:$0xff] %v9880_v24  ;;  %v11685_v55 = vld [vmem:[#allocation35_spill] sm:$0xff]  ;;  %v3672_v6 = vadd.f32 %v9699_v16, %v3574_v0  ;;  %v5059_v22 = vpop.eup %5058  ;;  %v1522_v47 = vadd.f32 %v1490_v30, %v1392_v62  ;;  %v1588_v4 = vmul.f32 %v9947_v49, %v9926_v13  ;;  %v1686_v16 = vmul.f32 %v9954_v56, %v9928_v28  ;;  %v11689_v0 = vld [vmem:[#allocation84_spill] sm:$0xff]  ;;  %v11693_v24 = vld [vmem:[#allocation46_spill] sm:$0xff] }
 0x311   : > { %11671 = vst [vmem:[#allocation60_spill] sm:$0xff] %v9884_v36  ;;  %v1384_v9 = vmul.f32 %v9436_v29, %v11685_v55  ;;  %v1482_v15 = vmul.f32 %v9922_v31, %v11689_v0  ;;  %v4135_v20 = vmul.f32 %v5059_v22, %v9865_v61  ;;  %vm9961_vm1 = vcmp.eq.f32.partialorder %v4143_v58, 8.507059e+37 }
 0x312   : > { %11672 = vst [vmem:[#allocation22_spill] sm:$0xff] %v9890_v39  ;;  %v4241_v30 = vsub.f32 1.0, %v4240_v18  ;;  %v9969_v39 = vld [vmem:[%s10671_s4 + $0x4] ss:$0 sm:$0xff]  ;;  %vm4245_vm3 = vweird.f32 %v5057_v26  ;;  %v3188_v54 = vadd.f32 %v11693_v24, %v3090_v17  ;;  %v2095_v53 = vadd.f32 %v9735_v51, %v1997_v43  ;;  %v11695_v24 = vld [vmem:[#allocation86_spill] sm:$0xff]  ;;  %v11696_v43 = vld [vmem:[#allocation17_spill] sm:$0xff] }
 0x313   : > { %11673 = vst [vmem:[#allocation11_spill] sm:$0xff] %v9894_v7  ;;  %v3770_v7 = vadd.f32 %v11692_v35, %v3672_v6  ;;  %v1784_v36 = vmul.f32 %v9969_v39, %v9932_v57  ;;  %v1620_v58 = vadd.f32 %v1588_v4, %v1522_v47  ;;  %vm4140_vm4 = vweird.f32 %v5059_v22  ;;  %v11694_v35 = vld [vmem:[#allocation47_spill] sm:$0xff]  ;;  %vm4246_vm5 = vmor %vm4244_vm13, %vm4245_vm3 }
 0x314   : > { %11676 = vst [vmem:[#allocation40_spill] sm:$0xff] %v9902_v33  ;;  %v3286_v6 = vadd.f32 %v11694_v35, %v3188_v54  ;;  %v2193_v33 = vadd.f32 %v9743_v46, %v2095_v53  ;;  %v1514_v60 = vadd.f32 %v1482_v15, %v1384_v9  ;;  %v1580_v51 = vmul.f32 %v9947_v49, %v11695_v24  ;;  %v11697_v54 = vld [vmem:[#allocation87_spill] sm:$0xff]  ;;  %v11698_v53 = vld [vmem:[#allocation88_spill] sm:$0xff]  ;;  %vm4141_vm6 = vmor %vm4139_vm14, %vm4140_vm4 }
 0x315   : > { %11681 = vst [vmem:[#allocation18_spill] sm:$0xff] %v9922_v31  ;;  %v3806_v18 = vmul.f32 %v9538_v34, %v3770_v7  ;;  %v1718_v8 = vadd.f32 %v1686_v16, %v1620_v58  ;;  %v1678_v46 = vmul.f32 %v9954_v56, %v11697_v54  ;;  %v11699_v16 = vld [vmem:[#allocation49_spill] sm:$0xff]  ;;  %v11701_v58 = vld [vmem:[#allocation8_spill] sm:$0xff] }
 0x316   : > { %11682 = vst [vmem:[#allocation59_spill] sm:$0xff] %v9926_v13  ;;  %v4242_v13 = vmul.f32 %v5057_v26, %v4241_v30  ;;  %v3385_v7 = vadd.f32 %v11696_v43, %v3286_v6  ;;  %v1612_v4 = vadd.f32 %v1580_v51, %v1514_v60  ;;  %v11700_v30 = vld [vmem:[#allocation66_spill] sm:$0xff]  ;;  %v10013_v6 = vld [vmem:[#allocation2 + $0x1a0] sm:$0xff]  ;;  %v10026_v51 = vld [vmem:[%s10671_s4 + $0x14] ss:$0 sm:$0xff] }
 0x317   : > { %11683 = vst [vmem:[#allocation78_spill] sm:$0xff] %v9928_v28  ;;  %v4136_v28 = vsub.f32 1.0, %v4135_v20  ;;  %v1816_v17 = vadd.f32 %v1784_v36, %v1718_v8  ;;  %v2291_v36 = vadd.f32 %v9756_v21, %v2193_v33  ;;  %v11703_v33 = vld [vmem:[#allocation53_spill] sm:$0xff] }
 0x318   : > { %11684 = vst [vmem:[#allocation36_spill] sm:$0xff] %v9932_v57  ;;  %v4243_v29 = vadd.f32 %v5057_v26, %v4242_v13  ;;  %v9979_v57 = vadd.f32 %v9558_v48, %v3806_v18  ;;  %v3483_v8 = vadd.f32 %v11699_v16, %v3385_v7  ;;  %v10044_v7 = vld [vmem:[%s10671_s4 + $0x16] ss:$0 sm:$0xff]  ;;  %v10069_v16 = vld [vmem:[#allocation2 + $0x1a4] sm:$0xff] }
 0x319   : > { %v4137_v31 = vmul.f32 %v5059_v22, %v4136_v28  ;;  %v1776_v28 = vmul.f32 %v9969_v39, %v11698_v53  ;;  %v1915_v15 = vadd.f32 %v9817_v32, %v1816_v17  ;;  %v2389_v18 = vadd.f32 %v9762_v44, %v2291_v36  ;;  %11704 = vst [vmem:[#allocation20_spill] sm:$0xff] %v10013_v6  ;;  %v10018_v44 = vld [vmem:[%s10671_s4 + $0x8] ss:$0 sm:$0xff]  ;;  %v11716_v36 = vld [vmem:[#allocation82_spill] sm:$0xff] }
 0x31a   : > { %v4247_v9 = vsel %vm4246_vm5, %v5057_v26, %v4243_v29  ;;  %v3874_v47 = vsub.f32 0.0, %v9979_v57  ;;  %v1710_v26 = vadd.f32 %v1678_v46, %v1612_v4  ;;  %v3581_v61 = vadd.f32 %v11701_v58, %v3483_v8  ;;  %11706 = vst [vmem:[#allocation61_spill] sm:$0xff] %v10026_v51  ;;  %v10052_v46 = vld [vmem:[#allocation2 + $0x1a2] sm:$0xff] }
 0x31b   : > { %v4138_v13 = vadd.f32 %v5059_v22, %v4137_v31  ;;  %v4252_v50 = vsel %vm9938_vm15, %v4251_v25, %v4247_v9  ;;  %v2013_v19 = vadd.f32 %v9829_v14, %v1915_v15  ;;  %v2487_v62 = vadd.f32 %v9765_v40, %v2389_v18  ;;  %11708 = vst [vmem:[#allocation23_spill] sm:$0xff] %v10044_v7 }
 0x31c   : > { %v4481_v31 = vmul.f32 %v4252_v50, %v11700_v30  ;;  %v3924_v29 = vmul.f32 1.442695, %v3874_v47  ;;  %v1808_v21 = vadd.f32 %v1776_v28, %v1710_v26  ;;  %v3679_v35 = vadd.f32 %v11703_v33, %v3581_v61  ;;  %11710 = vst [vmem:[#allocation33_spill] sm:$0xff] %v10052_v46  ;;  %v10060_v47 = vld [vmem:[%s10671_s4 + $0x17] ss:$0 sm:$0xff]  ;;  %v10067_v50 = vld [vmem:[#allocation2 + $0x1a3] sm:$0xff] }
 0x31d   : > { %v4142_v20 = vsel %vm4141_vm6, %v5059_v22, %v4138_v13  ;;  %v11702_v22 = vld [vmem:[#allocation80_spill] sm:$0xff]  ;;  %v10030_v40 = vmul.f32 %v10026_v51, %v11685_v55  ;;  %v10048_v17 = vmul.f32 %v10044_v7, %v11695_v24  ;;  %v11711_v13 = vld [vmem:[#allocation54_spill] sm:$0xff]  ;;  %11712 = vst [vmem:[#allocation65_spill] sm:$0xff] %v10060_v47  ;;  %v10064_v4 = vmul.f32 %v10060_v47, %v11697_v54 }
 0x31e   : > { %v4147_v60 = vsel %vm9961_vm1, %v4146_v37, %v4142_v20  ;;  %4594 = vrot.lane.b32.xlu2 %v4481_v31, %s5231_s17  ;;  %5060 = vpow2.f32 %v3924_v29  ;;  %v2071_v32 = vmul.f32 %v9409_v41, %v11702_v22  ;;  %v2111_v37 = vadd.f32 %v9833_v1, %v2013_v19  ;;  %v10035_v1 = vld [vmem:[%s10671_s4 + $0x15] ss:$0 sm:$0xff]  ;;  %v10050_v55 = vld [vmem:[#allocation2 + $0x1a1] sm:$0xff]  ;;  %11713 = vst [vmem:[#allocation19_spill] sm:$0xff] %v10067_v50 }
 0x31f   : > { %v4474_v25 = vmul.f32 %v4147_v60, %v9739_v5  ;;  %v11705_v5 = vld [vmem:[#allocation81_spill] sm:$0xff]  ;;  %11707 = vst [vmem:[#allocation32_spill] sm:$0xff] %v10035_v1  ;;  %v10039_v43 = vmul.f32 %v10035_v1, %v11689_v0  ;;  %v1907_v28 = vadd.f32 %v9910_v12, %v1808_v21  ;;  %v3777_v9 = vadd.f32 %v11711_v13, %v3679_v35  ;;  %v10074_v12 = vld [vmem:[%s10671_s4 + $0x18] ss:$0 sm:$0xff]  ;;  %v2823_v21 = vld [vmem:[#allocation2 + $0x128] sm:$0xff] }
 0x320   : > { %v2169_v14 = vmul.f32 %v10018_v44, %v11705_v5  ;;  %11709 = vst [vmem:[#allocation63_spill] sm:$0xff] %v10050_v55  ;;  %v2585_v0 = vadd.f32 %v9769_v63, %v2487_v62  ;;  %v2209_v24 = vadd.f32 %v9842_v10, %v2111_v37  ;;  %v10078_v63 = vmul.f32 %v10074_v12, %v11698_v53  ;;  %v10088_v10 = vld [vmem:[%s10671_s4 + $0x9] ss:$0 sm:$0xff]  ;;  %v2332_v20 = vld [vmem:[#allocation2 + $0x110] sm:$0xff] }
 0x321   : > { %4580 = vrot.lane.b32.xlu1 %v4474_v25, %s5231_s17  ;;  %11714 = vst [vmem:[#allocation6_spill] sm:$0xff] %v10069_v16  ;;  %v10082_v8 = vmul.f32 %v10026_v51, %v10013_v6  ;;  %v2005_v54 = vadd.f32 %v9914_v52, %v1907_v28  ;;  %v2267_v15 = vmul.f32 %v10088_v10, %v11716_v36  ;;  %v2430_v29 = vld [vmem:[#allocation2 + $0x111] sm:$0xff]  ;;  %v2921_v37 = vld [vmem:[#allocation2 + $0x129] sm:$0xff] }
 0x322   : > { %11715 = vst [vmem:[#allocation13_spill] sm:$0xff] %v10074_v12  ;;  %v3813_v30 = vmul.f32 %v9538_v34, %v3777_v9  ;;  %v2683_v53 = vadd.f32 %v9777_v45, %v2585_v0  ;;  %v10096_v31 = vmul.f32 %v10035_v1, %v10050_v55  ;;  %v10100_v52 = vmul.f32 %v10044_v7, %v10052_v46  ;;  %v2528_v26 = vld [vmem:[#allocation2 + $0x112] sm:$0xff]  ;;  %v10127_v28 = vld [vmem:[%s10671_s4 + $0xb] ss:$0 sm:$0xff]  ;;  %v10150_v36 = vld [vmem:[%s10671_s4 + $0xe] ss:$0 sm:$0xff] }
 0x323   : > { %v2307_v58 = vadd.f32 %v9846_v42, %v2209_v24  ;;  %v10105_v61 = vmul.f32 %v10060_v47, %v10067_v50  ;;  %v10109_v45 = vmul.f32 %v10074_v12, %v10069_v16  ;;  %v2103_v18 = vadd.f32 %v2071_v32, %v2005_v54  ;;  %v2626_v19 = vld [vmem:[#allocation2 + $0x113] sm:$0xff]  ;;  %v10120_v42 = vld [vmem:[%s10671_s4 + $0xa] ss:$0 sm:$0xff]  ;;  %v3117_v24 = vld [vmem:[#allocation2 + $0x12b] sm:$0xff]  ;;  %11718 = vst [vmem:[#allocation9_spill] sm:$0xff] %v10150_v36 }
 0x324   : > { %v5061_v60 = vpop.eup %5060  ;;  %v2724_v25 = vld [vmem:[#allocation2 + $0x114] sm:$0xff]  ;;  %v10114_v33 = vadd.f32 %v9558_v48, %v3813_v30  ;;  %v2781_v35 = vadd.f32 %v9780_v11, %v2683_v53  ;;  %v2365_v62 = vmul.f32 %v10120_v42, %v2332_v20  ;;  %v2463_v13 = vmul.f32 %v10127_v28, %v2430_v29  ;;  %v10133_v11 = vld [vmem:[%s10671_s4 + $0xc] ss:$0 sm:$0xff]  ;;  %v10158_v30 = vld [vmem:[%s10671_s4 + $0xf] ss:$0 sm:$0xff] }
 0x325   : > { %v10111_v22 = vadd.f32 1.0, %v5061_v60  ;;  %v2405_v32 = vadd.f32 %v9851_v59, %v2307_v58  ;;  %v2201_v5 = vadd.f32 %v2169_v14, %v2103_v18  ;;  %v10136_v9 = vmul.f32 %v10133_v11, %v2528_v26  ;;  %v3019_v0 = vld [vmem:[#allocation2 + $0x12a] sm:$0xff]  ;;  %11719 = vst [vmem:[#allocation4_spill] sm:$0xff] %v10158_v30  ;;  %v1358_v18 = vld [vmem:[#allocation2 + $0x138] sm:$0xff]  ;;  %v11725_v55 = vld [vmem:[#allocation31_spill] sm:$0xff] }
 0x326   : > { %11717 = vst [vmem:[#allocation67_spill] sm:$0xff] %v10114_v33  ;;  %v3215_v54 = vld [vmem:[#allocation2 + $0x12c] sm:$0xff]  ;;  %v10153_v20 = vmul.f32 %v10150_v36, %v2724_v25  ;;  %v10161_v53 = vmul.f32 %v10158_v30, %v2823_v21  ;;  %v3881_v29 = vsub.f32 0.0, %v10114_v33  ;;  %v2880_v26 = vadd.f32 %v9784_v38, %v2781_v35  ;;  %v11726_v6 = vld [vmem:[#allocation18_spill] sm:$0xff] }
 0x327   : > { %5062 = vrcp.f32 %v10111_v22  ;;  %v10142_v59 = vld [vmem:[%s10671_s4 + $0xd] ss:$0 sm:$0xff]  ;;  %v2503_v60 = vadd.f32 %v9855_v27, %v2405_v32  ;;  %v2299_v58 = vadd.f32 %v2267_v15, %v2201_v5  ;;  %v10169_v25 = vld [vmem:[%s10671_s4 + $0x10] ss:$0 sm:$0xff]  ;;  %v10177_v21 = vld [vmem:[%s10671_s4 + $0x11] ss:$0 sm:$0xff]  ;;  %v10202_v50 = vmul.f32 %v10026_v51, %v9900_v3 }
 0x328   : > { %v10145_v14 = vmul.f32 %v10142_v59, %v2626_v19  ;;  %v1456_v19 = vld [vmem:[#allocation2 + $0x139] sm:$0xff]  ;;  %11720 = vst [vmem:[#allocation3_spill] sm:$0xff] %v10169_v25  ;;  %v10172_v16 = vmul.f32 %v10169_v25, %v2921_v37  ;;  %v10180_v38 = vmul.f32 %v10177_v21, %v3019_v0  ;;  %v10185_v27 = vld [vmem:[%s10671_s4 + $0x12] ss:$0 sm:$0xff]  ;;  %v10193_v35 = vld [vmem:[%s10671_s4 + $0x13] ss:$0 sm:$0xff]  ;;  %v2978_v5 = vadd.f32 %v9792_v23, %v2880_v26 }
 0x329   : > { %11721 = vst [vmem:[#allocation69_spill] sm:$0xff] %v10177_v21  ;;  %v10188_v15 = vmul.f32 %v10185_v27, %v3117_v24  ;;  %v10196_v37 = vmul.f32 %v10193_v35, %v3215_v54  ;;  %v3938_v32 = vmul.f32 1.442695, %v3881_v29  ;;  %v2601_v0 = vadd.f32 %v9859_v2, %v2503_v60  ;;  %v11727_v54 = vld [vmem:[#allocation83_spill] sm:$0xff]  ;;  %v11729_v2 = vld [vmem:[#allocation40_spill] sm:$0xff] }
 0x32a   : > { %11722 = vst [vmem:[#allocation85_spill] sm:$0xff] %v10185_v27  ;;  %v4263_v24 = vand.u32 2147483647, %v10111_v22  ;;  %v4265_v46 = vand.u32 2147483648, %v10111_v22  ;;  %v1391_v27 = vmul.f32 %v11725_v55, %v1358_v18  ;;  %v1489_v33 = vmul.f32 %v11726_v6, %v1456_v19  ;;  %v11728_v29 = vld [vmem:[#allocation7_spill] sm:$0xff]  ;;  %v11734_v18 = vld [vmem:[#allocation36_spill] sm:$0xff] }
 0x32b   : > { %11723 = vst [vmem:[#allocation52_spill] sm:$0xff] %v10193_v35  ;;  %5064 = vpow2.f32 %v3938_v32  ;;  %v3076_v35 = vadd.f32 %v11727_v54, %v2978_v5  ;;  %v2699_v21 = vadd.f32 %v11728_v29, %v2601_v0  ;;  %v2397_v23 = vadd.f32 %v2365_v62, %v2299_v58  ;;  %v11730_v3 = vld [vmem:[#allocation59_spill] sm:$0xff]  ;;  %v11736_v58 = vld [vmem:[#allocation30_spill] sm:$0xff]  ;;  %v11737_v0 = vld [vmem:[#allocation64_spill] sm:$0xff] }
 0x32c   : > { %11724 = vst [vmem:[#allocation70_spill] sm:$0xff] %v10202_v50  ;;  %v10212_v60 = vmul.f32 %v10035_v1, %v11729_v2  ;;  %v10216_v51 = vmul.f32 %v10044_v7, %v11730_v3  ;;  %v11732_v50 = vld [vmem:[#allocation78_spill] sm:$0xff]  ;;  %v10224_v19 = vmul.f32 %v10074_v12, %v11734_v18  ;;  %vm4259_vm7 = vweird.f32 %v10111_v22  ;;  %v1849_v3 = vld [vmem:[#allocation2 + $0x150] sm:$0xff]  ;;  %v11740_v1 = vld [vmem:[#allocation56_spill] sm:$0xff] }
 0x32d   : > { %v5063_v26 = vpop.eup %5062  ;;  %v10220_v55 = vmul.f32 %v10060_v47, %v11732_v50  ;;  %v1554_v32 = vld [vmem:[#allocation2 + $0x13a] sm:$0xff]  ;;  %v3174_v5 = vadd.f32 %v11736_v58, %v3076_v35  ;;  %v2797_v54 = vadd.f32 %v11737_v0, %v2699_v21  ;;  %vm10230_vm8 = vcmp.eq.f32.partialorder %v4263_v24, 8.507059e+37  ;;  %v1947_v35 = vld [vmem:[#allocation2 + $0x151] sm:$0xff] }
 0x32e   : > { %11731 = vst [vmem:[#allocation21_spill] sm:$0xff] %v10216_v51  ;;  %v4255_v62 = vmul.f32 %v5063_v26, %v10111_v22  ;;  %v1652_v29 = vld [vmem:[#allocation2 + $0x13b] sm:$0xff]  ;;  %v4266_v50 = vor.u32 1.1754944e-38, %v4265_v46  ;;  %v2495_v47 = vadd.f32 %v2463_v13, %v2397_v23  ;;  %v1521_v18 = vadd.f32 %v1489_v33, %v1391_v27  ;;  %v2045_v58 = vld [vmem:[#allocation2 + $0x152] sm:$0xff]  ;;  %v10242_v46 = vld [vmem:[%s10671_s4 + $0x5] ss:$0 sm:$0xff] }
 0x32f   : > { %11733 = vst [vmem:[#allocation50_spill] sm:$0xff] %v10220_v55  ;;  %v1750_v2 = vld [vmem:[#allocation2 + $0x13c] sm:$0xff]  ;;  %v11741_v55 = vld [vmem:[#allocation57_spill] sm:$0xff]  ;;  %v1587_v51 = vmul.f32 %v9947_v49, %v1554_v32  ;;  %vm4260_vm9 = vweird.f32 %v5063_v26  ;;  %v1685_v21 = vmul.f32 %v9954_v56, %v1652_v29  ;;  %v10245_v33 = vmul.f32 %v10242_v46, %v1849_v3 }
 0x330   : > { %11735 = vst [vmem:[#allocation34_spill] sm:$0xff] %v10224_v19  ;;  %v4256_v12 = vsub.f32 1.0, %v4255_v62  ;;  %v3272_v19 = vadd.f32 %v11740_v1, %v3174_v5  ;;  %v2896_v6 = vadd.f32 %v11741_v55, %v2797_v54  ;;  %v1783_v24 = vmul.f32 %v9969_v39, %v1750_v2  ;;  %v11742_v23 = vld [vmem:[#allocation79_spill] sm:$0xff]  ;;  %v2143_v62 = vld [vmem:[#allocation2 + $0x153] sm:$0xff]  ;;  %v2437_v3 = vld [vmem:[#allocation2 + $0x169] sm:$0xff] }
 0x331   : > { %v5065_v1 = vpop.eup %5064  ;;  %v2593_v32 = vadd.f32 %v10136_v9, %v2495_v47  ;;  %v1619_v0 = vadd.f32 %v1587_v51, %v1521_v18  ;;  %v10255_v54 = vld [vmem:[%s10671_s4 + $0x6] ss:$0 sm:$0xff]  ;;  %v2241_v2 = vld [vmem:[#allocation2 + $0x154] sm:$0xff]  ;;  %v2339_v51 = vld [vmem:[#allocation2 + $0x168] sm:$0xff] }
 0x332   : > { %v4257_v13 = vmul.f32 %v5063_v26, %v4256_v12  ;;  %v3371_v27 = vadd.f32 %v10030_v40, %v3272_v19  ;;  %v2994_v55 = vadd.f32 %v11742_v23, %v2896_v6  ;;  %v10250_v5 = vadd.f32 1.0, %v5065_v1  ;;  %v11743_v19 = vld [vmem:[#allocation60_spill] sm:$0xff]  ;;  %vm4261_vm10 = vmor %vm4259_vm7, %vm4260_vm9 }
 0x333   : > { %v10258_v29 = vmul.f32 %v10255_v54, %v1947_v35  ;;  %v10261_v12 = vmul.f32 %v9409_v41, %v2045_v58  ;;  %v2691_v9 = vadd.f32 %v10145_v14, %v2593_v32  ;;  %v1717_v18 = vadd.f32 %v1685_v21, %v1619_v0  ;;  %v11744_v35 = vld [vmem:[#allocation25_spill] sm:$0xff]  ;;  %v11745_v58 = vld [vmem:[#allocation16_spill] sm:$0xff] }
 0x334   : > { %v4258_v40 = vadd.f32 %v5063_v26, %v4257_v13  ;;  %v3469_v6 = vadd.f32 %v10039_v43, %v3371_v27  ;;  %v3092_v47 = vadd.f32 %v11743_v19, %v2994_v55  ;;  %5066 = vrcp.f32 %v10250_v5  ;;  %v2147_v1 = vld [vmem:[#allocation2 + $0x183] sm:$0xff]  ;;  %v11746_v27 = vld [vmem:[#allocation22_spill] sm:$0xff]  ;;  %v2731_v7 = vld [vmem:[#allocation2 + $0x16c] sm:$0xff] }
 0x335   : > { %v10271_v41 = vmul.f32 %v10018_v44, %v2143_v62  ;;  %v2016_v43 = vadd.f32 %v11745_v58, %v11744_v35  ;;  %v2789_v55 = vadd.f32 %v10153_v20, %v2691_v9  ;;  %v2535_v32 = vld [vmem:[#allocation2 + $0x16a] sm:$0xff]  ;;  %v10281_v21 = vmul.f32 %v10088_v10, %v2241_v2 }
 0x336   : > { %v4262_v13 = vsel %vm4261_vm10, %v5063_v26, %v4258_v40  ;;  %v3567_v14 = vadd.f32 %v10048_v17, %v3469_v6  ;;  %v3190_v23 = vadd.f32 %v11746_v27, %v3092_v47  ;;  %v10284_v62 = vmul.f32 %v10120_v42, %v2339_v51  ;;  %v2633_v26 = vld [vmem:[#allocation2 + $0x16b] sm:$0xff]  ;;  %v11747_v6 = vld [vmem:[#allocation11_spill] sm:$0xff]  ;;  %v10321_v27 = vld [vmem:[#allocation2 + $0x198] sm:$0xff] }
 0x337   : > { %v4267_v22 = vsel %vm10230_vm8, %v4266_v50, %v4262_v13  ;;  %v10287_v0 = vmul.f32 %v10127_v28, %v2437_v3  ;;  %v2888_v19 = vadd.f32 %v10161_v53, %v2789_v55  ;;  %v2830_v50 = vld [vmem:[#allocation2 + $0x180] sm:$0xff]  ;;  %v10293_v9 = vadd.f32 %v1783_v24, %v1717_v18  ;;  %v11748_v51 = vld [vmem:[#allocation28_spill] sm:$0xff] }
 0x338   : > { %v4482_v17 = vmul.f32 %v4267_v22, %v9979_v57  ;;  %v3665_v40 = vadd.f32 %v10064_v4, %v3567_v14  ;;  %v3288_v20 = vadd.f32 %v11747_v6, %v3190_v23  ;;  %v2928_v47 = vld [vmem:[#allocation2 + $0x181] sm:$0xff]  ;;  %v10296_v2 = vmul.f32 %v10133_v11, %v2535_v32 }
 0x339   : > { %v2114_v3 = vadd.f32 %v11748_v51, %v2016_v43  ;;  %v2180_v35 = vmul.f32 %v10018_v44, %v2147_v1  ;;  %v2986_v53 = vadd.f32 %v10172_v16, %v2888_v19  ;;  %v10305_v58 = vmul.f32 %v10142_v59, %v2633_v26  ;;  %v10307_v24 = vld [vmem:[#allocation2 + $0x184] sm:$0xff] }
 0x33a   : > { %4596 = vrot.lane.b32.xlu0 %v4482_v17, %s5231_s17  ;;  %v3763_v57 = vadd.f32 %v10078_v63, %v3665_v40  ;;  %v3387_v4 = vadd.f32 %v10082_v8, %v3288_v20  ;;  %v5067_v18 = vpop.eup %5066  ;;  %v10310_v13 = vmul.f32 %v10150_v36, %v2731_v7  ;;  %v10313_v43 = vmul.f32 %v10158_v30, %v2830_v50  ;;  %v11749_v23 = vld [vmem:[#allocation15_spill] sm:$0xff]  ;;  %v2148_v40 = vld [vmem:[#allocation2 + $0x18b] sm:$0xff] }
 0x33b   : > { %v10316_v1 = vmul.f32 %v10169_v25, %v2928_v47  ;;  %v2212_v63 = vadd.f32 %v2180_v35, %v2114_v3  ;;  %v4360_v8 = vmul.f32 %v5067_v18, %v10250_v5  ;;  %v11750_v55 = vld [vmem:[#allocation27_spill] sm:$0xff]  ;;  %vm4364_vm0 = vweird.f32 %v10250_v5 }
 0x33c   : > { %v3799_v16 = vmul.f32 %v9538_v34, %v3763_v57  ;;  %v3485_v14 = vadd.f32 %v10096_v31, %v3387_v4  ;;  %v2017_v32 = vadd.f32 %v11750_v55, %v11749_v23  ;;  %v4368_v22 = vand.u32 2147483647, %v10250_v5  ;;  %v10335_v7 = vld [vmem:[#allocation2 + $0x199] sm:$0xff]  ;;  %v11751_v57 = vld [vmem:[#allocation45_spill] sm:$0xff]  ;;  %v3026_v55 = vld [vmem:[#allocation2 + $0x182] sm:$0xff] }
 0x33d   : > { %v3084_v26 = vadd.f32 %v10180_v38, %v2986_v53  ;;  %v2278_v17 = vmul.f32 %v10088_v10, %v10307_v24  ;;  %v4361_v6 = vsub.f32 1.0, %v4360_v8  ;;  %v4370_v20 = vand.u32 2147483648, %v10250_v5  ;;  %v10344_v8 = vld [vmem:[#allocation2 + $0x19a] sm:$0xff] }
 0x33e   : > { %v10332_v31 = vadd.f32 %v9558_v48, %v3799_v16  ;;  %v3583_v19 = vadd.f32 %v10100_v52, %v3485_v14  ;;  %vm4365_vm11 = vweird.f32 %v5067_v18  ;;  %v2376_v38 = vmul.f32 %v10120_v42, %v10321_v27 }
 0x33f   : > { %v3182_v50 = vadd.f32 %v10188_v15, %v3084_v26  ;;  %v2310_v47 = vadd.f32 %v2278_v17, %v2212_v63  ;;  %v4362_v51 = vmul.f32 %v5067_v18, %v4361_v6  ;;  %v2115_v4 = vadd.f32 %v11751_v57, %v2017_v32  ;;  %vm4366_vm12 = vmor %vm4364_vm0, %vm4365_vm11 }
 0x340   : > { %v3867_v3 = vsub.f32 0.0, %v10332_v31  ;;  %v3681_v35 = vadd.f32 %v10105_v61, %v3583_v19  ;;  %v2474_v16 = vmul.f32 %v10127_v28, %v10335_v7  ;;  %v2181_v15 = vmul.f32 %v10018_v44, %v2148_v40  ;;  %v10355_v40 = vld [vmem:[#allocation2 + $0x19b] sm:$0xff] }
 0x341   : > { %v3280_v53 = vadd.f32 %v10196_v37, %v3182_v50  ;;  %v2408_v52 = vadd.f32 %v2376_v38, %v2310_v47  ;;  %v4363_v63 = vadd.f32 %v5067_v18, %v4362_v51  ;;  %vm4369_vm2 = vcmp.eq.f32.partialorder %v4368_v22, 8.507059e+37  ;;  %v11752_v37 = vld [vmem:[#allocation70_spill] sm:$0xff]  ;;  %v11753_v47 = vld [vmem:[#allocation69_spill] sm:$0xff] }
 0x342   : > { %v3910_v14 = vmul.f32 1.442695, %v3867_v3  ;;  %v3779_v23 = vadd.f32 %v10109_v45, %v3681_v35  ;;  %v4371_v61 = vor.u32 1.1754944e-38, %v4370_v20  ;;  %v2213_v17 = vadd.f32 %v2181_v15, %v2115_v4  ;;  %v10363_v20 = vld [vmem:[#allocation2 + $0x19c] sm:$0xff]  ;;  %v11756_v4 = vld [vmem:[#allocation21_spill] sm:$0xff] }
 0x343   : > { %v3379_v32 = vadd.f32 %v11752_v37, %v3280_v53  ;;  %v2506_v26 = vadd.f32 %v2474_v16, %v2408_v52  ;;  %v4367_v6 = vsel %vm4366_vm12, %v5067_v18, %v4363_v63  ;;  %v2572_v22 = vmul.f32 %v10133_v11, %v10344_v8  ;;  %v11754_v38 = vld [vmem:[#allocation62_spill] sm:$0xff]  ;;  %v11755_v18 = vld [vmem:[#allocation67_spill] sm:$0xff]  ;;  %v11757_v16 = vld [vmem:[#allocation20_spill] sm:$0xff] }
 0x344   : > { %5068 = vpow2.f32 %v3910_v14  ;;  %v3815_v19 = vmul.f32 %v9538_v34, %v3779_v23  ;;  %v4372_v45 = vsel %vm4369_vm2, %v4371_v61, %v4367_v6  ;;  %v10361_v5 = vmul.f32 %v11753_v47, %v3026_v55  ;;  %v5218_v63 = vld [vmem:[%s10671_s4] ss:$0 sm:$0xff]  ;;  %v2834_v37 = vld [vmem:[#allocation2 + $0x1b0] sm:$0xff]  ;;  %v11761_v6 = vld [vmem:[#allocation50_spill] sm:$0xff] }
 0x345   : > { %v3477_v50 = vadd.f32 %v10212_v60, %v3379_v32  ;;  %v2279_v51 = vmul.f32 %v10088_v10, %v11754_v38  ;;  %v4489_v3 = vmul.f32 %v4372_v45, %v11755_v18  ;;  %v2604_v35 = vadd.f32 %v2572_v22, %v2506_v26  ;;  %v3124_v60 = vld [vmem:[#allocation2 + $0x183] sm:$0xff]  ;;  %v11760_v26 = vld [vmem:[#allocation18_spill] sm:$0xff]  ;;  %v11762_v18 = vld [vmem:[#allocation85_spill] sm:$0xff] }
 0x346   : > { %v10369_v34 = vadd.f32 %v9558_v48, %v3815_v19  ;;  %v2670_v57 = vmul.f32 %v10142_v59, %v10355_v40  ;;  %v2377_v15 = vmul.f32 %v10120_v42, %v11757_v16  ;;  %v11758_v14 = vld [vmem:[#allocation39_spill] sm:$0xff]  ;;  %v2768_v61 = vmul.f32 %v10150_v36, %v10363_v20  ;;  %v11759_v32 = vld [vmem:[#allocation24_spill] sm:$0xff] }
 0x347   : > { %v3575_v53 = vadd.f32 %v11756_v4, %v3477_v50  ;;  %v2311_v52 = vadd.f32 %v2279_v51, %v2213_v17  ;;  %v1394_v23 = vmul.f32 %v5218_v63, %v11758_v14  ;;  %4610 = vrot.lane.b32.xlu1 %v4489_v3, %s5231_s17  ;;  %v1492_v17 = vmul.f32 %v11760_v26, %v11759_v32  ;;  %v11763_v4 = vld [vmem:[#allocation63_spill] sm:$0xff]  ;;  %v11764_v32 = vld [vmem:[#allocation34_spill] sm:$0xff] }
 0x348   : > { %v3883_v48 = vsub.f32 0.0, %v10369_v34  ;;  %v2702_v55 = vadd.f32 %v2670_v57, %v2604_v35  ;;  %v1914_v22 = vadd.f32 %v10245_v33, %v10293_v9  ;;  %v2867_v45 = vmul.f32 %v10158_v30, %v2834_v37  ;;  %v2932_v57 = vld [vmem:[#allocation2 + $0x1b1] sm:$0xff]  ;;  %v11767_v37 = vld [vmem:[#allocation19_spill] sm:$0xff] }
 0x349   : > { %v3673_v19 = vadd.f32 %v11761_v6, %v3575_v53  ;;  %v2409_v50 = vadd.f32 %v2377_v15, %v2311_v52  ;;  %v10391_v3 = vmul.f32 %v11762_v18, %v3124_v60  ;;  %v2475_v63 = vmul.f32 %v10127_v28, %v11763_v4  ;;  %v3030_v52 = vld [vmem:[#allocation2 + $0x1b2] sm:$0xff]  ;;  %v3325_v4 = vld [vmem:[#allocation2 + $0x1c8] sm:$0xff] }
 0x34a   : > { %v5069_v38 = vpop.eup %5068  ;;  %v3942_v51 = vmul.f32 1.442695, %v3883_v48  ;;  %v2800_v35 = vadd.f32 %v2768_v61, %v2702_v55  ;;  %v2012_v26 = vadd.f32 %v10258_v29, %v1914_v22  ;;  %v2965_v33 = vmul.f32 %v10169_v25, %v2932_v57  ;;  %v11765_v48 = vld [vmem:[#allocation33_spill] sm:$0xff]  ;;  %v11766_v55 = vld [vmem:[#allocation52_spill] sm:$0xff]  ;;  %v10412_v29 = vld [vmem:[%s10672_s5] ss:$0 sm:$0xff] }
 0x34b   : > { %v10395_v14 = vadd.f32 1.0, %v5069_v38  ;;  %v3771_v53 = vadd.f32 %v11764_v32, %v3673_v19  ;;  %v2507_v15 = vadd.f32 %v2475_v63, %v2409_v50  ;;  %v2573_v60 = vmul.f32 %v10133_v11, %v11765_v48  ;;  %v3128_v38 = vld [vmem:[#allocation2 + $0x1b3] sm:$0xff]  ;;  %v10427_v32 = vld [vmem:[%s10673_s6] ss:$0 sm:$0xff] }
 0x34c   : > { %5070 = vpow2.f32 %v3942_v51  ;;  %v2899_v9 = vadd.f32 %v2867_v45, %v2800_v35  ;;  %v10405_v61 = vmul.f32 %v11766_v55, %v10307_v24  ;;  %v2671_v6 = vmul.f32 %v10142_v59, %v11767_v37  ;;  %v11768_v24 = vld [vmem:[#allocation61_spill] sm:$0xff] }
 0x34d   : > { %5072 = vrcp.f32 %v10395_v14  ;;  %v1524_v19 = vadd.f32 %v1492_v17, %v1394_v23  ;;  %v3807_v22 = vmul.f32 %v10412_v29, %v3771_v53  ;;  %v3063_v50 = vmul.f32 %v11753_v47, %v3030_v52  ;;  %v11769_v17 = vld [vmem:[#allocation68_spill] sm:$0xff]  ;;  %v10436_v52 = vld [vmem:[#allocation2 + $0x1b8] sm:$0xff] }
 0x34e   : > { %v2997_v45 = vadd.f32 %v2965_v33, %v2899_v9  ;;  %v2605_v51 = vadd.f32 %v2573_v60, %v2507_v15  ;;  %v2110_v35 = vadd.f32 %v10261_v12, %v2012_v26  ;;  %v10419_v57 = vmul.f32 %v11768_v24, %v10321_v27  ;;  %v11770_v33 = vld [vmem:[#allocation32_spill] sm:$0xff]  ;;  %v3226_v27 = vld [vmem:[#allocation2 + $0x1b4] sm:$0xff]  ;;  %11771 = vst [vmem:[#allocation38_spill] sm:$0xff] %v10436_v52 }
 0x34f   : > { %v3161_v23 = vmul.f32 %v11762_v18, %v3128_v38  ;;  %v1590_v63 = vmul.f32 %v9947_v49, %v11769_v17  ;;  %v10430_v53 = vadd.f32 %v10427_v32, %v3807_v22  ;;  %v10434_v12 = vmul.f32 %v11770_v33, %v10335_v7  ;;  %v11772_v38 = vld [vmem:[#allocation37_spill] sm:$0xff] }
 0x350   : > { %v3095_v26 = vadd.f32 %v3063_v50, %v2997_v45  ;;  %v2703_v9 = vadd.f32 %v2671_v6, %v2605_v51  ;;  %v2208_v15 = vadd.f32 %v10271_v41, %v2110_v35  ;;  %v3259_v49 = vmul.f32 %v11766_v55, %v3226_v27  ;;  %v11773_v45 = vld [vmem:[#allocation6_spill] sm:$0xff] }
 0x351   : > { %v1622_v60 = vadd.f32 %v1590_v63, %v1524_v19  ;;  %v1688_v17 = vmul.f32 %v9954_v56, %v11772_v38  ;;  %v4158_v22 = vand.u32 2147483647, %v10395_v14  ;;  %v3875_v48 = vsub.f32 0.0, %v10430_v53  ;;  %v10446_v50 = vld [vmem:[#allocation2 + $0x1b9] sm:$0xff] }
 0x352   : > { %v5071_v37 = vpop.eup %5070  ;;  %v3193_v7 = vadd.f32 %v3161_v23, %v3095_v26  ;;  %v2769_v6 = vmul.f32 %v10150_v36, %v11773_v45  ;;  %11774 = vst [vmem:[#allocation29_spill] sm:$0xff] %v10446_v50  ;;  %v2306_v19 = vadd.f32 %v10281_v21, %v2208_v15  ;;  %v3358_v35 = vmul.f32 %v11768_v24, %v3325_v4  ;;  %v3423_v26 = vld [vmem:[#allocation2 + $0x1c9] sm:$0xff] }
 0x353   : > { %v5073_v51 = vpop.eup %5072  ;;  %v10448_v41 = vadd.f32 1.0, %v5071_v37  ;;  %v2868_v56 = vmul.f32 %v10158_v30, %v10436_v52  ;;  %v3926_v27 = vmul.f32 1.442695, %v3875_v48  ;;  %v4160_v45 = vand.u32 2147483648, %v10395_v14  ;;  %v3521_v52 = vld [vmem:[#allocation2 + $0x1ca] sm:$0xff]  ;;  %v10460_v30 = vld [vmem:[#allocation2 + $0x1ba] sm:$0xff] }
 0x354   : > { %v4150_v63 = vmul.f32 %v5073_v51, %v10395_v14  ;;  %v3291_v23 = vadd.f32 %v3259_v49, %v3193_v7  ;;  %v2801_v38 = vadd.f32 %v2769_v6, %v2703_v9  ;;  %v2966_v37 = vmul.f32 %v10169_v25, %v10446_v50  ;;  %11775 = vst [vmem:[#allocation76_spill] sm:$0xff] %v10460_v30  ;;  %v11778_v49 = vld [vmem:[#allocation23_spill] sm:$0xff]  ;;  %v3717_v25 = vld [vmem:[#allocation2 + $0x1cc] sm:$0xff] }
 0x355   : > { %5074 = vrcp.f32 %v10448_v41  ;;  %v1720_v16 = vadd.f32 %v1688_v17, %v1622_v60  ;;  %v2404_v4 = vadd.f32 %v10284_v62, %v2306_v19  ;;  %vm4154_vm13 = vweird.f32 %v10395_v14  ;;  %v3619_v17 = vld [vmem:[#allocation2 + $0x1cb] sm:$0xff]  ;;  %v10470_v19 = vld [vmem:[#allocation2 + $0x1bb] sm:$0xff] }
 0x356   : > { %v4151_v21 = vsub.f32 1.0, %v4150_v63  ;;  %5076 = vpow2.f32 %v3926_v27  ;;  %v3390_v15 = vadd.f32 %v3358_v35, %v3291_v23  ;;  %vm10463_vm14 = vcmp.eq.f32.partialorder %v4158_v22, 8.507059e+37  ;;  %11779 = vst [vmem:[#allocation58_spill] sm:$0xff] %v10470_v19  ;;  %v11780_v27 = vld [vmem:[#allocation65_spill] sm:$0xff] }
 0x357   : > { %v3456_v9 = vmul.f32 %v11770_v33, %v3423_v26  ;;  %v3554_v7 = vmul.f32 %v11778_v49, %v3521_v52  ;;  %vm4155_vm15 = vweird.f32 %v5073_v51  ;;  %v2502_v60 = vadd.f32 %v10287_v0, %v2404_v4  ;;  %v3326_v14 = vld [vmem:[#allocation2 + $0x1d0] sm:$0xff] }
 0x358   : > { %v4152_v6 = vmul.f32 %v5073_v51, %v4151_v21  ;;  %v2900_v62 = vadd.f32 %v2868_v56, %v2801_v38  ;;  %v4161_v35 = vor.u32 1.1754944e-38, %v4160_v45  ;;  %v3652_v23 = vmul.f32 %v11780_v27, %v3619_v17  ;;  %v11781_v21 = vld [vmem:[#allocation51_spill] sm:$0xff]  ;;  %vm4156_vm1 = vmor %vm4154_vm13, %vm4155_vm15 }
 0x359   : > { %v3488_v63 = vadd.f32 %v3456_v9, %v3390_v15  ;;  %v3064_v22 = vmul.f32 %v11753_v47, %v10460_v30  ;;  %v2600_v26 = vadd.f32 %v10296_v2, %v2502_v60  ;;  %v1786_v36 = vmul.f32 %v9969_v39, %v11781_v21  ;;  %v10485_v15 = vld [vmem:[#allocation2 + $0x1bc] sm:$0xff] }
 0x35a   : > { %v4153_v50 = vadd.f32 %v5073_v51, %v4152_v6  ;;  %v2998_v52 = vadd.f32 %v2966_v37, %v2900_v62  ;;  %v4398_v45 = vand.u32 2147483647, %v10448_v41  ;;  %v4400_v56 = vand.u32 2147483648, %v10448_v41  ;;  %v11782_v6 = vld [vmem:[#allocation13_spill] sm:$0xff] }
 0x35b   : > { %v5075_v0 = vpop.eup %5074  ;;  %v3586_v38 = vadd.f32 %v3554_v7, %v3488_v63  ;;  %v3162_v4 = vmul.f32 %v11762_v18, %v10470_v19  ;;  %v2698_v39 = vadd.f32 %v10305_v58, %v2600_v26  ;;  %v3750_v60 = vmul.f32 %v11782_v6, %v3717_v25  ;;  %v11783_v58 = vld [vmem:[#allocation26_spill] sm:$0xff]  ;;  %v11789_v26 = vld [vmem:[#allocation71_spill] sm:$0xff] }
 0x35c   : > { %v5077_v2 = vpop.eup %5076  ;;  %v4157_v37 = vsel %vm4156_vm1, %v5073_v51, %v4153_v50  ;;  %v4390_v9 = vmul.f32 %v5075_v0, %v10448_v41  ;;  %v3096_v63 = vadd.f32 %v3064_v22, %v2998_v52  ;;  %v3260_v50 = vmul.f32 %v11766_v55, %v10485_v15  ;;  %v3424_v22 = vld [vmem:[#allocation2 + $0x1d1] sm:$0xff] }
 0x35d   : > { %v4162_v17 = vsel %vm10463_vm14, %v4161_v35, %v4157_v37  ;;  %v10492_v62 = vadd.f32 1.0, %v5077_v2  ;;  %v3684_v7 = vadd.f32 %v3652_v23, %v3586_v38  ;;  %v2796_v30 = vadd.f32 %v10310_v13, %v2698_v39  ;;  %v3522_v13 = vld [vmem:[#allocation2 + $0x1d2] sm:$0xff] }
 0x35e   : > { %v4475_v21 = vmul.f32 %v4162_v17, %v10332_v31  ;;  %v4391_v19 = vsub.f32 1.0, %v4390_v9  ;;  %vm4395_vm3 = vweird.f32 %v5075_v0  ;;  %v3359_v25 = vmul.f32 %v11768_v24, %v3326_v14  ;;  %v3718_v17 = vld [vmem:[#allocation2 + $0x1d4] sm:$0xff] }
 0x35f   : > { %5078 = vrcp.f32 %v10492_v62  ;;  %v1885_v51 = vmul.f32 %v10242_v46, %v11783_v58  ;;  %v2895_v35 = vadd.f32 %v10313_v43, %v2796_v30  ;;  %v3782_v31 = vadd.f32 %v3750_v60, %v3684_v7  ;;  %v2342_v58 = vld [vmem:[#allocation2 + $0x188] sm:$0xff] }
 0x360   : > { %4582 = vrot.lane.b32.xlu2 %v4475_v21, %s5231_s17  ;;  %v4392_v48 = vmul.f32 %v5075_v0, %v4391_v19  ;;  %v3194_v23 = vadd.f32 %v3162_v4, %v3096_v63  ;;  %vm4394_vm4 = vweird.f32 %v10448_v41  ;;  %vm10505_vm5 = vcmp.eq.f32.partialorder %v4398_v45, 8.507059e+37  ;;  %v3620_v4 = vld [vmem:[#allocation2 + $0x1d3] sm:$0xff]  ;;  %v11786_v45 = vld [vmem:[#allocation55_spill] sm:$0xff] }
 0x361   : > { %v4401_v52 = vor.u32 1.1754944e-38, %v4400_v56  ;;  %v1818_v38 = vadd.f32 %v1786_v36, %v1720_v16  ;;  %v2993_v46 = vadd.f32 %v10316_v1, %v2895_v35  ;;  %v3818_v37 = vmul.f32 %v10412_v29, %v3782_v31  ;;  %vm4396_vm6 = vmor %vm4394_vm4, %vm4395_vm3  ;;  %v5221_v63 = vld [vmem:[%s10671_s4 + $0x7] ss:$0 sm:$0xff]  ;;  %v11788_v31 = vld [vmem:[#allocation74_spill] sm:$0xff] }
 0x362   : > { %v4393_v2 = vadd.f32 %v5075_v0, %v4392_v48  ;;  %v3292_v19 = vadd.f32 %v3260_v50, %v3194_v23  ;;  %v3457_v30 = vmul.f32 %v11770_v33, %v3424_v22  ;;  %v3555_v43 = vmul.f32 %v11778_v49, %v3522_v13 }
 0x363   : > { %v1917_v41 = vadd.f32 %v1885_v51, %v1818_v38  ;;  %v1983_v9 = vmul.f32 %v10255_v54, %v11786_v45  ;;  %v3091_v36 = vadd.f32 %v10361_v5, %v2993_v46  ;;  %v10518_v16 = vadd.f32 %v10427_v32, %v3818_v37  ;;  %v11787_v54 = vld [vmem:[#allocation73_spill] sm:$0xff] }
 0x364   : > { %v4397_v39 = vsel %vm4396_vm6, %v5075_v0, %v4393_v2  ;;  %v3391_v1 = vadd.f32 %v3359_v25, %v3292_v19  ;;  %v4280_v14 = vand.u32 2147483648, %v10492_v62  ;;  %v2081_v0 = vmul.f32 %v5221_v63, %v11787_v54  ;;  %v2538_v45 = vld [vmem:[#allocation2 + $0x18a] sm:$0xff] }
 0x365   : > { %v5079_v56 = vpop.eup %5078  ;;  %v4402_v60 = vsel %vm10505_vm5, %v4401_v52, %v4397_v39  ;;  %v2015_v7 = vadd.f32 %v1983_v9, %v1917_v41  ;;  %v3189_v50 = vadd.f32 %v10391_v3, %v3091_v36  ;;  %v3653_v25 = vmul.f32 %v11780_v27, %v3620_v4 }
 0x366   : > { %v4491_v5 = vmul.f32 %v4402_v60, %v10369_v34  ;;  %v4270_v21 = vmul.f32 %v5079_v56, %v10492_v62  ;;  %v3886_v51 = vsub.f32 0.0, %v10518_v16  ;;  %v3489_v48 = vadd.f32 %v3457_v30, %v3391_v1  ;;  %v2440_v30 = vld [vmem:[#allocation2 + $0x189] sm:$0xff] }
 0x367   : > { %v2113_v35 = vadd.f32 %v2081_v0, %v2015_v7  ;;  %v2179_v23 = vmul.f32 %v10018_v44, %v11788_v31  ;;  %v3287_v13 = vadd.f32 %v10405_v61, %v3189_v50  ;;  %v3751_v34 = vmul.f32 %v11782_v6, %v3718_v17  ;;  %v2636_v17 = vld [vmem:[#allocation2 + $0x18b] sm:$0xff] }
 0x368   : > { %4614 = vrot.lane.b32.xlu0 %v4491_v5, %s5231_s17  ;;  %v4271_v22 = vsub.f32 1.0, %v4270_v21  ;;  %v2277_v3 = vmul.f32 %v10088_v10, %v11789_v26  ;;  %v3948_v52 = vmul.f32 1.442695, %v3886_v51  ;;  %v3587_v38 = vadd.f32 %v3555_v43, %v3489_v48  ;;  %v11791_v51 = vld [vmem:[#allocation20_spill] sm:$0xff] }
 0x369   : > { %v2211_v2 = vadd.f32 %v2179_v23, %v2113_v35  ;;  %v2375_v46 = vmul.f32 %v10120_v42, %v2342_v58  ;;  %vm4275_vm7 = vweird.f32 %v5079_v56  ;;  %v4278_v19 = vand.u32 2147483647, %v10492_v62  ;;  %v11792_v48 = vld [vmem:[#allocation4_spill] sm:$0xff] }
 0x36a   : > { %v4272_v37 = vmul.f32 %v5079_v56, %v4271_v22  ;;  %v3386_v44 = vadd.f32 %v10419_v57, %v3287_v13  ;;  %5080 = vpow2.f32 %v3948_v52  ;;  %v3685_v4 = vadd.f32 %v3653_v25, %v3587_v38  ;;  %v11793_v13 = vld [vmem:[#allocation63_spill] sm:$0xff]  ;;  %v11795_v38 = vld [vmem:[#allocation33_spill] sm:$0xff] }
 0x36b   : > { %v2309_v61 = vadd.f32 %v2277_v3, %v2211_v2  ;;  %vm4274_vm8 = vweird.f32 %v10492_v62  ;;  %v3550_v43 = vmul.f32 %v11778_v49, %v10344_v8  ;;  %v4281_v42 = vor.u32 1.1754944e-38, %v4280_v14 }
 0x36c   : > { %v4273_v41 = vadd.f32 %v5079_v56, %v4272_v37  ;;  %v3484_v10 = vadd.f32 %v10434_v12, %v3386_v44  ;;  %vm4276_vm9 = vmor %vm4274_vm8, %vm4275_vm7  ;;  %v3783_v9 = vadd.f32 %v3751_v34, %v3685_v4  ;;  %v2473_v36 = vmul.f32 %v10127_v28, %v2440_v30  ;;  %v2734_v28 = vld [vmem:[#allocation2 + $0x18c] sm:$0xff]  ;;  %v11794_v34 = vld [vmem:[#allocation3_spill] sm:$0xff] }
 0x36d   : > { %v2407_v39 = vadd.f32 %v2375_v46, %v2309_v61  ;;  %vm4279_vm10 = vcmp.eq.f32.partialorder %v4278_v19, 8.507059e+37  ;;  %v3648_v60 = vmul.f32 %v11780_v27, %v10355_v40  ;;  %v2571_v8 = vmul.f32 %v10133_v11, %v2538_v45  ;;  %v11796_v30 = vld [vmem:[#allocation19_spill] sm:$0xff] }
 0x36e   : > { %v4277_v57 = vsel %vm4276_vm9, %v5079_v56, %v4273_v41  ;;  %v3582_v1 = vadd.f32 %v3550_v43, %v3484_v10  ;;  %v3819_v12 = vmul.f32 %v10412_v29, %v3783_v9  ;;  %v3746_v54 = vmul.f32 %v11782_v6, %v10363_v20  ;;  %v11797_v43 = vld [vmem:[#allocation6_spill] sm:$0xff] }
 0x36f   : > { %v4282_v62 = vsel %vm4279_vm10, %v4281_v42, %v4277_v57  ;;  %v2505_v7 = vadd.f32 %v2473_v36, %v2407_v39  ;;  %v2669_v40 = vmul.f32 %v10142_v59, %v2636_v17  ;;  %v2866_v20 = vmul.f32 %v11792_v48, %v11791_v51  ;;  %v11798_v42 = vld [vmem:[#allocation38_spill] sm:$0xff] }
 0x370   : > { %v4483_v63 = vmul.f32 %v4282_v62, %v10430_v53  ;;  %v3680_v14 = vadd.f32 %v3648_v60, %v3582_v1  ;;  %v5081_v56 = vpop.eup %5080  ;;  %v10555_v0 = vadd.f32 %v10427_v32, %v3819_v12  ;;  %v11790_v53 = vld [vmem:[#allocation9_spill] sm:$0xff]  ;;  %v2964_v26 = vmul.f32 %v11794_v34, %v11793_v13 }
 0x371   : > { %v2603_v5 = vadd.f32 %v2571_v8, %v2505_v7  ;;  %v3982_v50 = vadd.f32 1.0, %v5081_v56  ;;  %v2767_v58 = vmul.f32 %v11790_v53, %v2734_v28  ;;  %v3062_v2 = vmul.f32 %v11753_v47, %v11795_v38  ;;  %v11799_v47 = vld [vmem:[#allocation29_spill] sm:$0xff]  ;;  %v4565_v38 = vpop.permute.xlu1 %4564 }
 0x372   : > { %4598 = vrot.lane.b32.xlu1 %v4483_v63, %s5231_s17  ;;  %v3778_v21 = vadd.f32 %v3746_v54, %v3680_v14  ;;  %v3887_v11 = vsub.f32 0.0, %v10555_v0  ;;  %v3160_v4 = vmul.f32 %v11762_v18, %v11796_v30  ;;  %v3258_v45 = vmul.f32 %v11766_v55, %v11797_v43  ;;  %v11800_v55 = vld [vmem:[#allocation76_spill] sm:$0xff] }
 0x373   : > { %v2701_v25 = vadd.f32 %v2669_v40, %v2603_v5  ;;  %5082 = vrcp.f32 %v3982_v50  ;;  %v3357_v9 = vmul.f32 %v11768_v24, %v11798_v42  ;;  %v4445_v39 = vand.u32 2147483648, %v3982_v50 }
 0x374   : > { %v3814_v35 = vmul.f32 %v10412_v29, %v3778_v21  ;;  %v3950_v31 = vmul.f32 1.442695, %v3887_v11  ;;  %v3455_v57 = vmul.f32 %v11770_v33, %v11799_v47  ;;  %v4443_v60 = vand.u32 2147483647, %v3982_v50  ;;  %v11801_v33 = vld [vmem:[#allocation58_spill] sm:$0xff] }
 0x375   : > { %v2799_v23 = vadd.f32 %v2767_v58, %v2701_v25  ;;  %vm4439_vm11 = vweird.f32 %v3982_v50  ;;  %v4446_v7 = vor.u32 1.1754944e-38, %v4445_v39  ;;  %v3553_v8 = vmul.f32 %v11778_v49, %v11800_v55 }
 0x376   : > { %v10565_v22 = vadd.f32 %v10427_v32, %v3814_v35  ;;  %5084 = vpow2.f32 %v3950_v31  ;;  %vm4444_vm12 = vcmp.eq.f32.partialorder %v4443_v60, 8.507059e+37  ;;  %v3651_v28 = vmul.f32 %v11780_v27, %v11801_v33 }
 0x377   : > { %v2898_v59 = vadd.f32 %v2866_v20, %v2799_v23  ;;  %v3749_v21 = vmul.f32 %v11782_v6, %v10485_v15  ;;  %vm4656_vm4 = vcmask 523520  }
 0x378   : > { %v3882_v3 = vsub.f32 0.0, %v10565_v22  ;;  %4659 = vst.msk [vmem:[%s5589_s23 + $0x10] sm:$0xff] %vm4656_vm4, %v4565_v38 }
 0x379   : > { %v2996_v52 = vadd.f32 %v2964_v26, %v2898_v59  ;;  %v5083_v46 = vpop.eup %5082  ;;  %v4561_v26 = vpop.permute.xlu0 %4560 }
 0x37a   : > { %v3940_v37 = vmul.f32 1.442695, %v3882_v3  ;;  %v4435_v19 = vmul.f32 %v5083_v46, %v3982_v50  ;;  %vm4440_vm0 = vweird.f32 %v5083_v46  ;;  %v4569_v3 = vpop.permute.xlu2 %4568  ;;  %4657 = vst.msk [vmem:[%s5589_s23] sm:$0xff] %vm4656_vm4, %v4561_v26 }
 0x37b   : > { %v3094_v44 = vadd.f32 %v3062_v2, %v2996_v52  ;;  %vm4441_vm2 = vmor %vm4439_vm11, %vm4440_vm0  ;;  %4661 = vst.msk [vmem:[%s5589_s23 + $0x20] sm:$0xff] %vm4656_vm4, %v4569_v3 }
 0x37c   : > { %5086 = vpow2.f32 %v3940_v37  ;;  %v5085_v61 = vpop.eup %5084  ;;  %v4436_v41 = vsub.f32 1.0, %v4435_v19 }
 0x37d   : > { %v3192_v10 = vadd.f32 %v3160_v4, %v3094_v44  ;;  %v3983_v36 = vadd.f32 1.0, %v5085_v61  ;;  %v4567_v4 = vpop.permute.xlu1 %4566 }
 0x37e   : > { %v4437_v1 = vmul.f32 %v5083_v46, %v4436_v41  ;;  %4660 = vst.msk [vmem:[%s5589_s23 + $0x18] sm:$0xff] %vm4656_vm4, %v4567_v4 }
 0x37f   : > { %v3290_v17 = vadd.f32 %v3258_v45, %v3192_v10  ;;  %5088 = vrcp.f32 %v3983_v36  ;;  %v4458_v25 = vand.u32 2147483647, %v3983_v36  ;;  %v4460_v53 = vand.u32 2147483648, %v3983_v36 }
 0x380   : > { %v4438_v18 = vadd.f32 %v5083_v46, %v4437_v1  ;;  %vm4454_vm14 = vweird.f32 %v3983_v36 }
 0x381   : > { %v3389_v62 = vadd.f32 %v3357_v9, %v3290_v17  ;;  %vm4459_vm1 = vcmp.eq.f32.partialorder %v4458_v25, 8.507059e+37  ;;  %v4461_v15 = vor.u32 1.1754944e-38, %v4460_v53  ;;  %v4563_v44 = vpop.permute.xlu0 %4562 }
 0x382   : > { %v5087_v12 = vpop.eup %5086  ;;  %v4442_v63 = vsel %vm4441_vm2, %v5083_v46, %v4438_v18  ;;  %v4571_v30 = vpop.permute.xlu2 %4570  ;;  %4658 = vst.msk [vmem:[%s5589_s23 + $0x8] sm:$0xff] %vm4656_vm4, %v4563_v44 }
 0x383   : > { %v3978_v24 = vadd.f32 1.0, %v5087_v12  ;;  %v3487_v14 = vadd.f32 %v3455_v57, %v3389_v62  ;;  %v4447_v54 = vsel %vm4444_vm12, %v4446_v7, %v4442_v63  ;;  %4662 = vst.msk [vmem:[%s5589_s23 + $0x28] sm:$0xff] %vm4656_vm4, %v4571_v30 }
 0x384   : > { %v4494_v5 = vmul.f32 %v4447_v54, %v10518_v16 }
 0x385   : > { %5090 = vrcp.f32 %v3978_v24  ;;  %v5089_v56 = vpop.eup %5088  ;;  %v3585_v40 = vadd.f32 %v3553_v8, %v3487_v14  ;;  %v4383_v31 = vand.u32 2147483647, %v3978_v24  ;;  %v4385_v23 = vand.u32 2147483648, %v3978_v24 }
 0x386   : > { %v4450_v50 = vmul.f32 %v5089_v56, %v3983_v36  ;;  %4620 = vrot.lane.b32.xlu0 %v4494_v5, %s5231_s17  ;;  %vm4455_vm13 = vweird.f32 %v5089_v56  ;;  %vm4379_vm5 = vweird.f32 %v3978_v24 }
 0x387   : > { %v3683_v49 = vadd.f32 %v3651_v28, %v3585_v40  ;;  %vm4456_vm15 = vmor %vm4454_vm14, %vm4455_vm13  ;;  %v4386_v46 = vor.u32 1.1754944e-38, %v4385_v23  ;;  %vm4384_vm7 = vcmp.eq.f32.partialorder %v4383_v31, 8.507059e+37 }
 0x388   : > { %v4451_v11 = vsub.f32 1.0, %v4450_v50 }
 0x389   : > { %v3781_v58 = vadd.f32 %v3749_v21, %v3683_v49  ;;  %v4585_v43 = vpop.permute.xlu0 %4584 }
 0x38a   : > { %v4452_v48 = vmul.f32 %v5089_v56, %v4451_v11  ;;  %v4601_v10 = vpop.permute.xlu2 %4600  ;;  %4669 = vst.msk [vmem:[%s5589_s23 + $0x60] sm:$0xff] %vm4656_vm4, %v4585_v43 }
 0x38b   : > { %v5091_v51 = vpop.eup %5090  ;;  %v3817_v20 = vmul.f32 %v10412_v29, %v3781_v58  ;;  %4677 = vst.msk [vmem:[%s5589_s23 + $0xa0] sm:$0xff] %vm4656_vm4, %v4601_v10 }
 0x38c   : > { %v4375_v27 = vmul.f32 %v5091_v51, %v3978_v24  ;;  %v4453_v35 = vadd.f32 %v5089_v56, %v4452_v48  ;;  %vm4380_vm3 = vweird.f32 %v5091_v51 }
 0x38d   : > { %v10590_v6 = vadd.f32 %v10427_v32, %v3817_v20  ;;  %vm4381_vm6 = vmor %vm4379_vm5, %vm4380_vm3 }
 0x38e   : > { %v4376_v16 = vsub.f32 1.0, %v4375_v27  ;;  %v4457_v59 = vsel %vm4456_vm15, %v5089_v56, %v4453_v35 }
 0x38f   : > { %v4462_v34 = vsel %vm4459_vm1, %v4461_v15, %v4457_v59  ;;  %v3885_v29 = vsub.f32 0.0, %v10590_v6 }
 0x390   : > { %v4377_v13 = vmul.f32 %v5091_v51, %v4376_v16  ;;  %v4495_v52 = vmul.f32 %v4462_v34, %v10555_v0 }
 0x391   : > { %v3946_v2 = vmul.f32 1.442695, %v3885_v29  ;;  %v4573_v1 = vpop.permute.xlu0 %4572 }
 0x392   : > { %v4378_v32 = vadd.f32 %v5091_v51, %v4377_v13  ;;  %4622 = vrot.lane.b32.xlu1 %v4495_v52, %s5231_s17  ;;  %v4589_v57 = vpop.permute.xlu2 %4588  ;;  %4663 = vst.msk [vmem:[%s5589_s23 + $0x30] sm:$0xff] %vm4656_vm4, %v4573_v1 }
 0x393   : > { %5092 = vpow2.f32 %v3946_v2  ;;  %4671 = vst.msk [vmem:[%s5589_s23 + $0x70] sm:$0xff] %vm4656_vm4, %v4589_v57 }
 0x394   : > { %v4382_v37 = vsel %vm4381_vm6, %v5091_v51, %v4378_v32 }
 0x395   : > { %v4387_v0 = vsel %vm4384_vm7, %v4386_v46, %v4382_v37 }
 0x396   : > { %v4490_v19 = vmul.f32 %v4387_v0, %v10565_v22  ;;  %v4587_v22 = vpop.permute.xlu1 %4586 }
 0x397   : > { %4670 = vst.msk [vmem:[%s5589_s23 + $0x68] sm:$0xff] %vm4656_vm4, %v4587_v22 }
 0x398   : > { %4612 = vrot.lane.b32.xlu2 %v4490_v19, %s5231_s17 }
 0x399   : > { %v5093_v61 = vpop.eup %5092  ;;  %v4603_v8 = vpop.permute.xlu0 %4602 }
 0x39a   : > { %v3981_v41 = vadd.f32 1.0, %v5093_v61  ;;  %v4577_v55 = vpop.permute.xlu2 %4576  ;;  %4678 = vst.msk [vmem:[%s5589_s23 + $0xa8] sm:$0xff] %vm4656_vm4, %v4603_v8 }
 0x39b   : > { %4665 = vst.msk [vmem:[%s5589_s23 + $0x40] sm:$0xff] %vm4656_vm4, %v4577_v55 }
 0x39c   : > { %5094 = vrcp.f32 %v3981_v41  ;;  %v4430_v39 = vand.u32 2147483648, %v3981_v41  ;;  %v4428_v47 = vand.u32 2147483647, %v3981_v41  ;;  %vm4424_vm9 = vweird.f32 %v3981_v41 }
 0x39e   : > { %v4617_v60 = vpop.permute.xlu1 %4616  ;;  %v4431_v18 = vor.u32 1.1754944e-38, %v4430_v39  ;;  %vm4429_vm0 = vcmp.eq.f32.partialorder %v4428_v47, 8.507059e+37 }
 0x39f   : > { %4685 = vst.msk [vmem:[%s5589_s23 + $0xe0] sm:$0xff] %vm4656_vm4, %v4617_v60 }
 0x3a1   : > { %v4591_v14 = vpop.permute.xlu0 %4590 }
 0x3a2   : > { %v5095_v45 = vpop.eup %5094  ;;  %v4607_v63 = vpop.permute.xlu2 %4606  ;;  %4672 = vst.msk [vmem:[%s5589_s23 + $0x78] sm:$0xff] %vm4656_vm4, %v4591_v14 }
 0x3a3   : > { %v4420_v42 = vmul.f32 %v5095_v45, %v3981_v41  ;;  %vm4425_vm8 = vweird.f32 %v5095_v45  ;;  %4680 = vst.msk [vmem:[%s5589_s23 + $0xb8] sm:$0xff] %vm4656_vm4, %v4607_v63 }
 0x3a4   : > { %vm4426_vm10 = vmor %vm4424_vm9, %vm4425_vm8 }
 0x3a5   : > { %v4421_v9 = vsub.f32 1.0, %v4420_v42 }
 0x3a6   : > { %v4575_v24 = vpop.permute.xlu1 %4574 }
 0x3a7   : > { %v4422_v36 = vmul.f32 %v5095_v45, %v4421_v9  ;;  %4664 = vst.msk [vmem:[%s5589_s23 + $0x38] sm:$0xff] %vm4656_vm4, %v4575_v24 }
 0x3a9   : > { %v4423_v17 = vadd.f32 %v5095_v45, %v4422_v36  ;;  %v4579_v28 = vpop.permute.xlu0 %4578 }
 0x3aa   : > { %v4595_v33 = vpop.permute.xlu2 %4594  ;;  %4666 = vst.msk [vmem:[%s5589_s23 + $0x48] sm:$0xff] %vm4656_vm4, %v4579_v28 }
 0x3ab   : > { %v4427_v62 = vsel %vm4426_vm10, %v5095_v45, %v4423_v17  ;;  %4674 = vst.msk [vmem:[%s5589_s23 + $0x88] sm:$0xff] %vm4656_vm4, %v4595_v33 }
 0x3ac   : > { %v4432_v12 = vsel %vm4429_vm0, %v4431_v18, %v4427_v62 }
 0x3ad   : > { %v4493_v7 = vmul.f32 %v4432_v12, %v10590_v6 }
 0x3ae   : > { %v4605_v54 = vpop.permute.xlu1 %4604 }
 0x3af   : > { %4618 = vrot.lane.b32.xlu2 %v4493_v7, %s5231_s17  ;;  %4679 = vst.msk [vmem:[%s5589_s23 + $0xb0] sm:$0xff] %vm4656_vm4, %v4605_v54 }
 0x3b1   : > { %v4609_v40 = vpop.permute.xlu0 %4608 }
 0x3b2   : > { %4681 = vst.msk [vmem:[%s5589_s23 + $0xc0] sm:$0xff] %vm4656_vm4, %v4609_v40 }
 0x3b6   : > { %v4593_v56 = vpop.permute.xlu1 %4592 }
 0x3b7   : > { %4673 = vst.msk [vmem:[%s5589_s23 + $0x80] sm:$0xff] %vm4656_vm4, %v4593_v56 }
 0x3b9   : > { %v4597_v50 = vpop.permute.xlu0 %4596 }
 0x3ba   : > { %v4583_v5 = vpop.permute.xlu2 %4582  ;;  %4675 = vst.msk [vmem:[%s5589_s23 + $0x90] sm:$0xff] %vm4656_vm4, %v4597_v50 }
 0x3bb   : > { %4668 = vst.msk [vmem:[%s5589_s23 + $0x58] sm:$0xff] %vm4656_vm4, %v4583_v5 }
 0x3be   : > { %v4581_v21 = vpop.permute.xlu1 %4580 }
 0x3bf   : > { %4667 = vst.msk [vmem:[%s5589_s23 + $0x50] sm:$0xff] %vm4656_vm4, %v4581_v21 }
 0x3c6   : > { %v4611_v49 = vpop.permute.xlu1 %4610 }
 0x3c7   : > { %4682 = vst.msk [vmem:[%s5589_s23 + $0xc8] sm:$0xff] %vm4656_vm4, %v4611_v49 }
 0x3da   : > { %v4615_v25 = vpop.permute.xlu0 %4614 }
 0x3db   : > { %4684 = vst.msk [vmem:[%s5589_s23 + $0xd8] sm:$0xff] %vm4656_vm4, %v4615_v25 }
 0x3e4   : > { %v4599_v53 = vpop.permute.xlu1 %4598 }
 0x3e5   : > { %4676 = vst.msk [vmem:[%s5589_s23 + $0x98] sm:$0xff] %vm4656_vm4, %v4599_v53 }
 0x3f2   : > { %v4613_v11 = vpop.permute.xlu2 %4612 }
 0x3f3   : > { %4683 = vst.msk [vmem:[%s5589_s23 + $0xd0] sm:$0xff] %vm4656_vm4, %v4613_v11 }
 0x3f8   : > { %v4621_v58 = vpop.permute.xlu0 %4620 }
 0x3f9   : > { %4687 = vst.msk [vmem:[%s5589_s23 + $0xf0] sm:$0xff] %vm4656_vm4, %v4621_v58 }
 0x404   : > { %v4623_v51 = vpop.permute.xlu1 %4622 }
 0x405   : > { %4688 = vst.msk [vmem:[%s5589_s23 + $0xf8] sm:$0xff] %vm4656_vm4, %v4623_v51 }
 0x409   : > { %v4619_v48 = vpop.permute.xlu2 %4618 }
 0x40a   : > { %4686 = vst.msk [vmem:[%s5589_s23 + $0xe8] sm:$0xff] %vm4656_vm4, %v4619_v48 }
 0x40b PF: > { %s17_s24 = sadd.s32 1, %s5228_s24  }
 0x40c   : > { %p14_p4 = scmp.ge.s32.totalorder %s17_s24, 4  }
 0x40e   :  { %16 = sbr.rel (!%p14_p4) target bundleno = 1 (0x1), region = 82 }

</bundles_post_ra>
